<compile_context>
chip_gen: v6e
topology: v6e:2x2x1
jax: 0.10.0
libtpu: 0.0.40
codegen_flags: <defaults>
</compile_context>

<pallas_src>
import math
from functools import partial

import jax
import jax.numpy as jnp
from jax.experimental import pallas as pl
from jax.experimental.pallas import tpu as pltpu

# ---- EMGFAN constants (default constructor arguments) -----------------------
C = 32                       # conv channels
KS = 3                       # conv kernel size
K_PAD = 16                   # conv1 im2col K padded 9 -> 16 (aligned MXU feed)
P_DIM = 64                   # FANLayer p branch: int(256 * 0.25)
G_DIM = 128                  # FANLayer g branch: 256 - 2 * 64
FAN_IN = 576                 # FAN input features (32 ch * 18 pooled pixels)
FAN_COLS = 4 * P_DIM         # fused [p | zero gap | g] projection width (g lane-aligned)
FAN_OUT = 2 * P_DIM + G_DIM  # 256
OUT_GESTURE = 7
OUT_PAD = 128                # lane-dense padded logits width
BN_EPS = 1e-5

_PI = math.pi
_INV_PI = 1.0 / math.pi
_INV_SQRT2 = 1.0 / math.sqrt(2.0)


# ---- in-kernel transcendentals (mul/add/floor/exp/abs/where + EUP recip) ----
def _sin_cos(x):
    """sin(x), cos(x): range-reduce to [-pi/2, pi/2] + Taylor (err ~1e-7)."""
    k = jnp.floor(x * _INV_PI + 0.5)                 # x = r + k*pi
    r = x - k * _PI
    parity = k - 2.0 * jnp.floor(k * 0.5)            # k mod 2
    sign = 1.0 - 2.0 * parity                        # (-1)**k
    r2 = r * r
    s = r * (1.0 + r2 * (-1.0 / 6.0 + r2 * (1.0 / 120.0 + r2 * (-1.0 / 5040.0
            + r2 * (1.0 / 362880.0 + r2 * (-1.0 / 39916800.0))))))
    c = 1.0 + r2 * (-0.5 + r2 * (1.0 / 24.0 + r2 * (-1.0 / 720.0
            + r2 * (1.0 / 40320.0 + r2 * (-1.0 / 3628800.0
            + r2 * (1.0 / 479001600.0))))))
    return sign * s, sign * c


def _erf(x):
    """Abramowitz & Stegun 7.1.26 rational approximation (max err ~1.5e-7)."""
    a1, a2, a3, a4, a5 = (0.254829592, -0.284496736, 1.421413741,
                          -1.453152027, 1.061405429)
    pc = 0.3275911
    sgn = jnp.where(x >= 0.0, 1.0, -1.0)
    ax = jnp.abs(x)
    t = pl.reciprocal(1.0 + pc * ax, approx=True)    # EUP slot, frees VALU
    poly = ((((a5 * t + a4) * t + a3) * t + a2) * t + a1) * t
    return sgn * (1.0 - poly * jnp.exp(-ax * ax))


def _gelu_exact(x):
    # PyTorch nn.GELU() default (exact): 0.5 * x * (1 + erf(x / sqrt(2)))
    return 0.5 * x * (1.0 + _erf(x * _INV_SQRT2))


# ---- PyTorch-layout params -> kernel matmul layouts (pure layout plumbing) --
def _pack_params(p, pool_h, pool_w):
    f32 = jnp.float32
    # conv1: (32, 1, 3, 3) -> (16, 32); row t = dy*3 + dx, zero rows 9..15
    w1k = p["conv1_w"].astype(f32).reshape(C, KS * KS).T
    w1k = jnp.pad(w1k, ((0, K_PAD - KS * KS), (0, 0)))
    b1k = p["conv1_b"].astype(f32).reshape(1, C)
    # conv2: (32, 32, 3, 3) -> (288, 32); row = (dy*3+dx)*32 + c_in
    w2k = jnp.transpose(p["conv2_w"].astype(f32), (2, 3, 1, 0)).reshape(KS * KS * C, C)
    b2k = p["conv2_b"].astype(f32).reshape(1, C)
    # eval-mode BatchNorm2d folded to per-channel scale/shift
    scale = p["bn_gamma"] / jnp.sqrt(p["bn_var"] + BN_EPS)
    bnsc = scale.astype(f32).reshape(1, C)
    bnsh = (p["bn_beta"] - p["bn_mean"] * scale).astype(f32).reshape(1, C)

    # FAN weights: PyTorch columns follow the NCHW flatten order (c, py, px);
    # permute rows to the kernel's pooled-slab order (py, px, c).
    def fan_rows(w):
        j = w.shape[0]
        return jnp.transpose(w.astype(f32).reshape(j, C, pool_h, pool_w),
                             (2, 3, 1, 0)).reshape(pool_h * pool_w * C, j)

    wpk = fan_rows(p["fan_p_w"])                              # (576, 64)
    wgk = fan_rows(p["fan_g_w"])                              # (576, 128)
    gap = jnp.zeros((pool_h * pool_w * C, P_DIM), f32)        # keeps g lane-aligned
    wpgk = jnp.concatenate([wpk, gap, wgk], axis=1)           # (576, 256): [p | 0 | g]
    bpgk = jnp.concatenate([p["fan_p_b"].astype(f32), jnp.zeros((P_DIM,), f32),
                            p["fan_g_b"].astype(f32)]).reshape(1, FAN_COLS)
    # fc2: (7, 256) -> lane-dense (256, 128); rows [0:64]=cos(p), [64:128]=sin(p), [128:256]=g
    n_out = p["fc2_w"].shape[0]
    wfc2k = jnp.zeros((FAN_OUT, OUT_PAD), f32).at[:, :n_out].set(p["fc2_w"].astype(f32).T)
    bfc2k = jnp.zeros((1, OUT_PAD), f32).at[0, :n_out].set(p["fc2_b"].astype(f32))
    return (w1k, b1k, w2k, b2k, bnsc, bnsh, wpgk, bpgk, wfc2k, bfc2k)


@partial(jax.jit, static_argnames=("batch_tile",))
def emgfan_forward(x, params, *, batch_tile=32):
    B, in_ch, H, W = x.shape
    assert in_ch == 1
    H1, W1 = H - KS + 1, W - KS + 1            # conv1 output spatial
    H2, W2 = H1 - KS + 1, W1 - KS + 1          # conv2 output spatial
    HP, WP = H2 // 2, W2 // 2                  # after 2x2 maxpool
    assert HP * WP * C == FAN_IN, "pooled feature map must flatten to 576 features"
    n_out = params["fc2_w"].shape[0]
    assert n_out <= OUT_PAD

    bt = max(8, 8 * (batch_tile // 8))         # multiple of 8 keeps every slice aligned
    num_tiles = -(-B // bt)                    # keep >= 2 steps when possible (v7x megacore)
    b_pad = num_tiles * bt
    m1 = H1 * W1 * bt                          # matmul M per grid step

    weights = _pack_params(params, HP, WP)
    (w1k, b1k, w2k, b2k, bnsc, bnsh, wpgk, bpgk, wfc2k, bfc2k) = weights

    # conv1 im2col in the wrapper; rows ordered (grid tile, y, x, image) so all
    # in-kernel shifts are whole-sublane-tile moves.  K padded 9 -> 16.
    xs = x[:, 0].astype(jnp.float32)                                           # (B, H, W)
    pat = jnp.stack([xs[:, dy:dy + H1, dx:dx + W1]
                     for dy in range(KS) for dx in range(KS)], axis=-1)        # (B, H1, W1, 9)
    pat = jnp.pad(pat, ((0, b_pad - B), (0, 0), (0, 0), (0, K_PAD - KS * KS)))
    pat = pat.reshape(num_tiles, bt, H1, W1, K_PAD).transpose(0, 2, 3, 1, 4)
    patches1 = pat.reshape(num_tiles, m1, K_PAD)
    # TODO(synk): nn.Dropout(0.5) and training-mode BatchNorm batch statistics
    # are inference no-ops and are not implemented (kernel assumes eval mode).

    def kernel(p1_ref, w1_ref, b1_ref, w2_ref, b2_ref, bnsc_ref, bnsh_ref,
               wpg_ref, bpg_ref, wfc2_ref, bfc2_ref, out_ref):
        f32 = jnp.float32
        # ---- conv1 (one im2col matmul for the whole batch tile) + ReLU -------
        c1 = jnp.dot(p1_ref[0], w1_ref[...], preferred_element_type=f32)
        c1 = jnp.maximum(c1 + b1_ref[...], 0.0)                      # (m1, C)

        # ---- conv2: 9 accumulated per-tap matmuls on aligned shifted views ---
        # row r = (y*W1 + x)*bt + b ; tap (dy,dx) reads row r + (dy*W1+dx)*bt.
        # Rows with x >= W2 or y >= H2 are garbage and never read downstream.
        c1_ext = jnp.concatenate(
            [c1, jnp.zeros(((KS - 1) * (W1 + 1) * bt, C), f32)], axis=0)
        acc = None
        for dy in range(KS):
            for dx in range(KS):
                t = dy * KS + dx
                off = (dy * W1 + dx) * bt                            # multiple of 8
                lhs = c1_ext[off:off + m1]                           # free aligned view
                d = jnp.dot(lhs, w2_ref[t * C:(t + 1) * C, :],
                            preferred_element_type=f32)
                acc = d if acc is None else acc + d
        z = jnp.maximum(acc + b2_ref[...], 0.0)         # ReLU(conv2) BEFORE BN (spec order)
        z = z * bnsc_ref[...] + bnsh_ref[...]           # folded eval-mode BatchNorm2d

        # ---- 2x2/2 maxpool: x-neighbour = +bt rows, y-neighbour = +W1*bt rows
        xnb = jnp.concatenate([z[bt:], jnp.zeros((bt, C), f32)], axis=0)
        zr = jnp.maximum(z, xnb)
        ynb = jnp.concatenate([zr[W1 * bt:], jnp.zeros((W1 * bt, C), f32)], axis=0)
        pmax = jnp.maximum(zr, ynb)     # pooled (b, py, px) lives at row (2py*W1+2px)*bt + b

        # ---- FAN projection: 18 accumulated (bt, C) @ (C, 256) matmuls -------
        fan = None
        for py in range(HP):
            for px in range(WP):
                s = py * WP + px
                roff = (2 * py * W1 + 2 * px) * bt
                slab = pmax[roff:roff + bt]                          # (bt, C) aligned view
                d = jnp.dot(slab, wpg_ref[s * C:(s + 1) * C, :],
                            preferred_element_type=f32)
                fan = d if fan is None else fan + d
        fan = fan + bpg_ref[...]                                     # (bt, 256) = [p | 0 | g]
        p_lin = fan[:, :P_DIM]
        g_lin = fan[:, 2 * P_DIM:]
        sin_p, cos_p = _sin_cos(p_lin)
        g_act = _gelu_exact(g_lin)

        # ---- fc2: weight split per FAN segment (no lane concat), lane-dense out
        logits = (jnp.dot(cos_p, wfc2_ref[:P_DIM, :], preferred_element_type=f32)
                  + jnp.dot(sin_p, wfc2_ref[P_DIM:2 * P_DIM, :], preferred_element_type=f32)
                  + jnp.dot(g_act, wfc2_ref[2 * P_DIM:, :], preferred_element_type=f32)
                  + bfc2_ref[...])
        out_ref[0] = logits                                          # (bt, 128)

    full = lambda a: pl.BlockSpec(a.shape, lambda i, nd=a.ndim: (0,) * nd)
    out = pl.pallas_call(
        kernel,
        out_shape=jax.ShapeDtypeStruct((num_tiles, bt, OUT_PAD), jnp.float32),
        grid=(num_tiles,),
        in_specs=[pl.BlockSpec((1, m1, K_PAD), lambda i: (i, 0, 0))]
                 + [full(a) for a in weights],
        out_specs=pl.BlockSpec((1, bt, OUT_PAD), lambda i: (i, 0, 0)),
        compiler_params=pltpu.CompilerParams(dimension_semantics=("parallel",)),
    )(patches1, *weights)
    return out.reshape(b_pad, OUT_PAD)[:B, :n_out]


def init_params(key, out_gesture=OUT_GESTURE):
    """Parameters in PyTorch layouts; emgfan_forward permutes them explicitly."""
    def uniform(k, shape, fan_in):
        bound = 1.0 / math.sqrt(fan_in)
        return jax.random.uniform(k, shape, jnp.float32, -bound, bound)

    ks = jax.random.split(key, 14)
    return {
        "conv1_w": uniform(ks[0], (C, 1, KS, KS), KS * KS),
        "conv1_b": uniform(ks[1], (C,), KS * KS),
        "conv2_w": uniform(ks[2], (C, C, KS, KS), KS * KS * C),
        "conv2_b": uniform(ks[3], (C,), KS * KS * C),
        "bn_gamma": jax.random.uniform(ks[4], (C,), jnp.float32, 0.5, 1.5),
        "bn_beta": jax.random.uniform(ks[5], (C,), jnp.float32, -0.2, 0.2),
        "bn_mean": jax.random.uniform(ks[6], (C,), jnp.float32, -0.2, 0.2),
        "bn_var": jax.random.uniform(ks[7], (C,), jnp.float32, 0.5, 1.5),
        "fan_p_w": uniform(ks[8], (P_DIM, FAN_IN), FAN_IN),
        "fan_p_b": uniform(ks[9], (P_DIM,), FAN_IN),
        "fan_g_w": uniform(ks[10], (G_DIM, FAN_IN), FAN_IN),
        "fan_g_b": uniform(ks[11], (G_DIM,), FAN_IN),
        "fc2_w": uniform(ks[12], (out_gesture, FAN_OUT), FAN_OUT),
        "fc2_b": uniform(ks[13], (out_gesture,), FAN_OUT),
    }


if __name__ == "__main__":
    key = jax.random.PRNGKey(0)
    k_param, k_x = jax.random.split(key)

    params = init_params(k_param, OUT_GESTURE)
    # NCHW input, 1 channel, 16x10 spatial:
    # conv3x3 -> 14x8, conv3x3 -> 12x6, maxpool2 -> 6x3, flatten -> 576 = FAN in_dim
    x = jax.random.normal(k_x, (16, 1, 16, 10), jnp.float32)

    out = emgfan_forward(x, params, batch_tile=8)    # 2 batch tiles -> 2 parallel grid steps
    out = jax.block_until_ready(out)
    assert out.shape == (16, OUT_GESTURE)
    print("KERNEL_OK")
</pallas_src>

<mosaic_0001>
module attributes {stable_mosaic.version = 11 : i64} {
  func.func @kernel(%arg0: i32, %arg1: memref<1x896x16xf32, #tpu.memory_space<vmem>>, %arg2: memref<16x32xf32, #tpu.memory_space<vmem>>, %arg3: memref<1x32xf32, #tpu.memory_space<vmem>>, %arg4: memref<288x32xf32, #tpu.memory_space<vmem>>, %arg5: memref<1x32xf32, #tpu.memory_space<vmem>>, %arg6: memref<1x32xf32, #tpu.memory_space<vmem>>, %arg7: memref<1x32xf32, #tpu.memory_space<vmem>>, %arg8: memref<576x256xf32, #tpu.memory_space<vmem>>, %arg9: memref<1x256xf32, #tpu.memory_space<vmem>>, %arg10: memref<256x128xf32, #tpu.memory_space<vmem>>, %arg11: memref<1x128xf32, #tpu.memory_space<vmem>>, %arg12: memref<1x8x128xf32, #tpu.memory_space<vmem>>) attributes {dimension_semantics = [#tpu.dimension_semantics<parallel>], iteration_bounds = array<i64: 2>, scalar_prefetch = 0 : i64, scratch_operands = 0 : i64, tpu.core_type = #tpu.core_type<tc>, window_params = [{transform_indices = @transform_0, window_bounds = array<i64: 1, 896, 16>}, {pipeline_mode = #tpu.pipeline_mode<synchronous>, transform_indices = @transform_1, window_bounds = array<i64: 16, 32>}, {pipeline_mode = #tpu.pipeline_mode<synchronous>, transform_indices = @transform_2, window_bounds = array<i64: 1, 32>}, {pipeline_mode = #tpu.pipeline_mode<synchronous>, transform_indices = @transform_3, window_bounds = array<i64: 288, 32>}, {pipeline_mode = #tpu.pipeline_mode<synchronous>, transform_indices = @transform_4, window_bounds = array<i64: 1, 32>}, {pipeline_mode = #tpu.pipeline_mode<synchronous>, transform_indices = @transform_5, window_bounds = array<i64: 1, 32>}, {pipeline_mode = #tpu.pipeline_mode<synchronous>, transform_indices = @transform_6, window_bounds = array<i64: 1, 32>}, {pipeline_mode = #tpu.pipeline_mode<synchronous>, transform_indices = @transform_7, window_bounds = array<i64: 576, 256>}, {pipeline_mode = #tpu.pipeline_mode<synchronous>, transform_indices = @transform_8, window_bounds = array<i64: 1, 256>}, {pipeline_mode = #tpu.pipeline_mode<synchronous>, transform_indices = @transform_9, window_bounds = array<i64: 256, 128>}, {pipeline_mode = #tpu.pipeline_mode<synchronous>, transform_indices = @transform_10, window_bounds = array<i64: 1, 128>}, {transform_indices = @transform_11, window_bounds = array<i64: 1, 8, 128>}]} {
    %c0 = arith.constant 0 : index
    %c0_0 = arith.constant 0 : index
    %c0_1 = arith.constant 0 : index
    %0 = vector.load %arg1[%c0, %c0_0, %c0_1] : memref<1x896x16xf32, #tpu.memory_space<vmem>>, vector<1x896x16xf32>
    %1 = vector.shape_cast %0 : vector<1x896x16xf32> to vector<896x16xf32>
    %c0_2 = arith.constant 0 : index
    %c0_3 = arith.constant 0 : index
    %2 = vector.load %arg2[%c0_2, %c0_3] : memref<16x32xf32, #tpu.memory_space<vmem>>, vector<16x32xf32>
    %cst = arith.constant dense<0.000000e+00> : vector<896x32xf32>
    %3 = tpu.matmul %1, %2, %cst {dimension_numbers = #tpu.dot_dimension_numbers<[1], [0], [0], [1], [0, 0, 1, 1], [], []>} : vector<896x16xf32>, vector<16x32xf32>, vector<896x32xf32> -> vector<896x32xf32>
    %c0_4 = arith.constant 0 : index
    %c0_5 = arith.constant 0 : index
    %4 = vector.load %arg3[%c0_4, %c0_5] : memref<1x32xf32, #tpu.memory_space<vmem>>, vector<1x32xf32>
    %5 = vector.broadcast %4 : vector<1x32xf32> to vector<896x32xf32>
    %6 = arith.addf %3, %5 : vector<896x32xf32>
    %cst_6 = arith.constant 0.000000e+00 : f32
    %7 = vector.broadcast %cst_6 : f32 to vector<896x32xf32>
    %8 = arith.maximumf %6, %7 : vector<896x32xf32>
    %cst_7 = arith.constant 0.000000e+00 : f32
    %9 = vector.broadcast %cst_7 : f32 to vector<144x32xf32>
    %10 = tpu.concatenate %8, %9 in 0 : vector<896x32xf32>, vector<144x32xf32> -> vector<1040x32xf32>
    %11 = vector.extract_strided_slice %10 {offsets = [0, 0], sizes = [896, 32], strides = [1, 1]} : vector<1040x32xf32> to vector<896x32xf32>
    %c0_8 = arith.constant 0 : index
    %c0_9 = arith.constant 0 : index
    %12 = vector.load %arg4[%c0_8, %c0_9] : memref<288x32xf32, #tpu.memory_space<vmem>>, vector<32x32xf32>
    %cst_10 = arith.constant dense<0.000000e+00> : vector<896x32xf32>
    %13 = tpu.matmul %11, %12, %cst_10 {dimension_numbers = #tpu.dot_dimension_numbers<[1], [0], [0], [1], [0, 0, 1, 1], [], []>} : vector<896x32xf32>, vector<32x32xf32>, vector<896x32xf32> -> vector<896x32xf32>
    %14 = vector.extract_strided_slice %10 {offsets = [8, 0], sizes = [896, 32], strides = [1, 1]} : vector<1040x32xf32> to vector<896x32xf32>
    %c32 = arith.constant 32 : index
    %c0_11 = arith.constant 0 : index
    %15 = vector.load %arg4[%c32, %c0_11] : memref<288x32xf32, #tpu.memory_space<vmem>>, vector<32x32xf32>
    %cst_12 = arith.constant dense<0.000000e+00> : vector<896x32xf32>
    %16 = tpu.matmul %14, %15, %cst_12 {dimension_numbers = #tpu.dot_dimension_numbers<[1], [0], [0], [1], [0, 0, 1, 1], [], []>} : vector<896x32xf32>, vector<32x32xf32>, vector<896x32xf32> -> vector<896x32xf32>
    %17 = arith.addf %13, %16 : vector<896x32xf32>
    %18 = vector.extract_strided_slice %10 {offsets = [16, 0], sizes = [896, 32], strides = [1, 1]} : vector<1040x32xf32> to vector<896x32xf32>
    %c64 = arith.constant 64 : index
    %c0_13 = arith.constant 0 : index
    %19 = vector.load %arg4[%c64, %c0_13] : memref<288x32xf32, #tpu.memory_space<vmem>>, vector<32x32xf32>
    %cst_14 = arith.constant dense<0.000000e+00> : vector<896x32xf32>
    %20 = tpu.matmul %18, %19, %cst_14 {dimension_numbers = #tpu.dot_dimension_numbers<[1], [0], [0], [1], [0, 0, 1, 1], [], []>} : vector<896x32xf32>, vector<32x32xf32>, vector<896x32xf32> -> vector<896x32xf32>
    %21 = arith.addf %17, %20 : vector<896x32xf32>
    %22 = vector.extract_strided_slice %10 {offsets = [64, 0], sizes = [896, 32], strides = [1, 1]} : vector<1040x32xf32> to vector<896x32xf32>
    %c96 = arith.constant 96 : index
    %c0_15 = arith.constant 0 : index
    %23 = vector.load %arg4[%c96, %c0_15] : memref<288x32xf32, #tpu.memory_space<vmem>>, vector<32x32xf32>
    %cst_16 = arith.constant dense<0.000000e+00> : vector<896x32xf32>
    %24 = tpu.matmul %22, %23, %cst_16 {dimension_numbers = #tpu.dot_dimension_numbers<[1], [0], [0], [1], [0, 0, 1, 1], [], []>} : vector<896x32xf32>, vector<32x32xf32>, vector<896x32xf32> -> vector<896x32xf32>
    %25 = arith.addf %21, %24 : vector<896x32xf32>
    %26 = vector.extract_strided_slice %10 {offsets = [72, 0], sizes = [896, 32], strides = [1, 1]} : vector<1040x32xf32> to vector<896x32xf32>
    %c128 = arith.constant 128 : index
    %c0_17 = arith.constant 0 : index
    %27 = vector.load %arg4[%c128, %c0_17] : memref<288x32xf32, #tpu.memory_space<vmem>>, vector<32x32xf32>
    %cst_18 = arith.constant dense<0.000000e+00> : vector<896x32xf32>
    %28 = tpu.matmul %26, %27, %cst_18 {dimension_numbers = #tpu.dot_dimension_numbers<[1], [0], [0], [1], [0, 0, 1, 1], [], []>} : vector<896x32xf32>, vector<32x32xf32>, vector<896x32xf32> -> vector<896x32xf32>
    %29 = arith.addf %25, %28 : vector<896x32xf32>
    %30 = vector.extract_strided_slice %10 {offsets = [80, 0], sizes = [896, 32], strides = [1, 1]} : vector<1040x32xf32> to vector<896x32xf32>
    %c160 = arith.constant 160 : index
    %c0_19 = arith.constant 0 : index
    %31 = vector.load %arg4[%c160, %c0_19] : memref<288x32xf32, #tpu.memory_space<vmem>>, vector<32x32xf32>
    %cst_20 = arith.constant dense<0.000000e+00> : vector<896x32xf32>
    %32 = tpu.matmul %30, %31, %cst_20 {dimension_numbers = #tpu.dot_dimension_numbers<[1], [0], [0], [1], [0, 0, 1, 1], [], []>} : vector<896x32xf32>, vector<32x32xf32>, vector<896x32xf32> -> vector<896x32xf32>
    %33 = arith.addf %29, %32 : vector<896x32xf32>
    %34 = vector.extract_strided_slice %10 {offsets = [128, 0], sizes = [896, 32], strides = [1, 1]} : vector<1040x32xf32> to vector<896x32xf32>
    %c192 = arith.constant 192 : index
    %c0_21 = arith.constant 0 : index
    %35 = vector.load %arg4[%c192, %c0_21] : memref<288x32xf32, #tpu.memory_space<vmem>>, vector<32x32xf32>
    %cst_22 = arith.constant dense<0.000000e+00> : vector<896x32xf32>
    %36 = tpu.matmul %34, %35, %cst_22 {dimension_numbers = #tpu.dot_dimension_numbers<[1], [0], [0], [1], [0, 0, 1, 1], [], []>} : vector<896x32xf32>, vector<32x32xf32>, vector<896x32xf32> -> vector<896x32xf32>
    %37 = arith.addf %33, %36 : vector<896x32xf32>
    %38 = vector.extract_strided_slice %10 {offsets = [136, 0], sizes = [896, 32], strides = [1, 1]} : vector<1040x32xf32> to vector<896x32xf32>
    %c224 = arith.constant 224 : index
    %c0_23 = arith.constant 0 : index
    %39 = vector.load %arg4[%c224, %c0_23] : memref<288x32xf32, #tpu.memory_space<vmem>>, vector<32x32xf32>
    %cst_24 = arith.constant dense<0.000000e+00> : vector<896x32xf32>
    %40 = tpu.matmul %38, %39, %cst_24 {dimension_numbers = #tpu.dot_dimension_numbers<[1], [0], [0], [1], [0, 0, 1, 1], [], []>} : vector<896x32xf32>, vector<32x32xf32>, vector<896x32xf32> -> vector<896x32xf32>
    %41 = arith.addf %37, %40 : vector<896x32xf32>
    %42 = vector.extract_strided_slice %10 {offsets = [144, 0], sizes = [896, 32], strides = [1, 1]} : vector<1040x32xf32> to vector<896x32xf32>
    %c256 = arith.constant 256 : index
    %c0_25 = arith.constant 0 : index
    %43 = vector.load %arg4[%c256, %c0_25] : memref<288x32xf32, #tpu.memory_space<vmem>>, vector<32x32xf32>
    %cst_26 = arith.constant dense<0.000000e+00> : vector<896x32xf32>
    %44 = tpu.matmul %42, %43, %cst_26 {dimension_numbers = #tpu.dot_dimension_numbers<[1], [0], [0], [1], [0, 0, 1, 1], [], []>} : vector<896x32xf32>, vector<32x32xf32>, vector<896x32xf32> -> vector<896x32xf32>
    %45 = arith.addf %41, %44 : vector<896x32xf32>
    %c0_27 = arith.constant 0 : index
    %c0_28 = arith.constant 0 : index
    %46 = vector.load %arg5[%c0_27, %c0_28] : memref<1x32xf32, #tpu.memory_space<vmem>>, vector<1x32xf32>
    %47 = vector.broadcast %46 : vector<1x32xf32> to vector<896x32xf32>
    %48 = arith.addf %45, %47 : vector<896x32xf32>
    %cst_29 = arith.constant 0.000000e+00 : f32
    %49 = vector.broadcast %cst_29 : f32 to vector<896x32xf32>
    %50 = arith.maximumf %48, %49 : vector<896x32xf32>
    %c0_30 = arith.constant 0 : index
    %c0_31 = arith.constant 0 : index
    %51 = vector.load %arg6[%c0_30, %c0_31] : memref<1x32xf32, #tpu.memory_space<vmem>>, vector<1x32xf32>
    %52 = vector.broadcast %51 : vector<1x32xf32> to vector<896x32xf32>
    %53 = arith.mulf %50, %52 : vector<896x32xf32>
    %c0_32 = arith.constant 0 : index
    %c0_33 = arith.constant 0 : index
    %54 = vector.load %arg7[%c0_32, %c0_33] : memref<1x32xf32, #tpu.memory_space<vmem>>, vector<1x32xf32>
    %55 = vector.broadcast %54 : vector<1x32xf32> to vector<896x32xf32>
    %56 = arith.addf %53, %55 : vector<896x32xf32>
    %57 = vector.extract_strided_slice %56 {offsets = [8, 0], sizes = [888, 32], strides = [1, 1]} : vector<896x32xf32> to vector<888x32xf32>
    %cst_34 = arith.constant 0.000000e+00 : f32
    %58 = vector.broadcast %cst_34 : f32 to vector<8x32xf32>
    %59 = tpu.concatenate %57, %58 in 0 : vector<888x32xf32>, vector<8x32xf32> -> vector<896x32xf32>
    %60 = arith.maximumf %56, %59 : vector<896x32xf32>
    %61 = vector.extract_strided_slice %60 {offsets = [64, 0], sizes = [832, 32], strides = [1, 1]} : vector<896x32xf32> to vector<832x32xf32>
    %cst_35 = arith.constant 0.000000e+00 : f32
    %62 = vector.broadcast %cst_35 : f32 to vector<64x32xf32>
    %63 = tpu.concatenate %61, %62 in 0 : vector<832x32xf32>, vector<64x32xf32> -> vector<896x32xf32>
    %64 = arith.maximumf %60, %63 : vector<896x32xf32>
    %65 = vector.extract_strided_slice %64 {offsets = [0, 0], sizes = [8, 32], strides = [1, 1]} : vector<896x32xf32> to vector<8x32xf32>
    %c0_36 = arith.constant 0 : index
    %c0_37 = arith.constant 0 : index
    %66 = vector.load %arg8[%c0_36, %c0_37] : memref<576x256xf32, #tpu.memory_space<vmem>>, vector<32x256xf32>
    %cst_38 = arith.constant dense<0.000000e+00> : vector<8x256xf32>
    %67 = tpu.matmul %65, %66, %cst_38 {dimension_numbers = #tpu.dot_dimension_numbers<[1], [0], [0], [1], [0, 0, 1, 1], [], []>} : vector<8x32xf32>, vector<32x256xf32>, vector<8x256xf32> -> vector<8x256xf32>
    %68 = vector.extract_strided_slice %64 {offsets = [16, 0], sizes = [8, 32], strides = [1, 1]} : vector<896x32xf32> to vector<8x32xf32>
    %c32_39 = arith.constant 32 : index
    %c0_40 = arith.constant 0 : index
    %69 = vector.load %arg8[%c32_39, %c0_40] : memref<576x256xf32, #tpu.memory_space<vmem>>, vector<32x256xf32>
    %cst_41 = arith.constant dense<0.000000e+00> : vector<8x256xf32>
    %70 = tpu.matmul %68, %69, %cst_41 {dimension_numbers = #tpu.dot_dimension_numbers<[1], [0], [0], [1], [0, 0, 1, 1], [], []>} : vector<8x32xf32>, vector<32x256xf32>, vector<8x256xf32> -> vector<8x256xf32>
    %71 = arith.addf %67, %70 : vector<8x256xf32>
    %72 = vector.extract_strided_slice %64 {offsets = [32, 0], sizes = [8, 32], strides = [1, 1]} : vector<896x32xf32> to vector<8x32xf32>
    %c64_42 = arith.constant 64 : index
    %c0_43 = arith.constant 0 : index
    %73 = vector.load %arg8[%c64_42, %c0_43] : memref<576x256xf32, #tpu.memory_space<vmem>>, vector<32x256xf32>
    %cst_44 = arith.constant dense<0.000000e+00> : vector<8x256xf32>
    %74 = tpu.matmul %72, %73, %cst_44 {dimension_numbers = #tpu.dot_dimension_numbers<[1], [0], [0], [1], [0, 0, 1, 1], [], []>} : vector<8x32xf32>, vector<32x256xf32>, vector<8x256xf32> -> vector<8x256xf32>
    %75 = arith.addf %71, %74 : vector<8x256xf32>
    %76 = vector.extract_strided_slice %64 {offsets = [128, 0], sizes = [8, 32], strides = [1, 1]} : vector<896x32xf32> to vector<8x32xf32>
    %c96_45 = arith.constant 96 : index
    %c0_46 = arith.constant 0 : index
    %77 = vector.load %arg8[%c96_45, %c0_46] : memref<576x256xf32, #tpu.memory_space<vmem>>, vector<32x256xf32>
    %cst_47 = arith.constant dense<0.000000e+00> : vector<8x256xf32>
    %78 = tpu.matmul %76, %77, %cst_47 {dimension_numbers = #tpu.dot_dimension_numbers<[1], [0], [0], [1], [0, 0, 1, 1], [], []>} : vector<8x32xf32>, vector<32x256xf32>, vector<8x256xf32> -> vector<8x256xf32>
    %79 = arith.addf %75, %78 : vector<8x256xf32>
    %80 = vector.extract_strided_slice %64 {offsets = [144, 0], sizes = [8, 32], strides = [1, 1]} : vector<896x32xf32> to vector<8x32xf32>
    %c128_48 = arith.constant 128 : index
    %c0_49 = arith.constant 0 : index
    %81 = vector.load %arg8[%c128_48, %c0_49] : memref<576x256xf32, #tpu.memory_space<vmem>>, vector<32x256xf32>
    %cst_50 = arith.constant dense<0.000000e+00> : vector<8x256xf32>
    %82 = tpu.matmul %80, %81, %cst_50 {dimension_numbers = #tpu.dot_dimension_numbers<[1], [0], [0], [1], [0, 0, 1, 1], [], []>} : vector<8x32xf32>, vector<32x256xf32>, vector<8x256xf32> -> vector<8x256xf32>
    %83 = arith.addf %79, %82 : vector<8x256xf32>
    %84 = vector.extract_strided_slice %64 {offsets = [160, 0], sizes = [8, 32], strides = [1, 1]} : vector<896x32xf32> to vector<8x32xf32>
    %c160_51 = arith.constant 160 : index
    %c0_52 = arith.constant 0 : index
    %85 = vector.load %arg8[%c160_51, %c0_52] : memref<576x256xf32, #tpu.memory_space<vmem>>, vector<32x256xf32>
    %cst_53 = arith.constant dense<0.000000e+00> : vector<8x256xf32>
    %86 = tpu.matmul %84, %85, %cst_53 {dimension_numbers = #tpu.dot_dimension_numbers<[1], [0], [0], [1], [0, 0, 1, 1], [], []>} : vector<8x32xf32>, vector<32x256xf32>, vector<8x256xf32> -> vector<8x256xf32>
    %87 = arith.addf %83, %86 : vector<8x256xf32>
    %88 = vector.extract_strided_slice %64 {offsets = [256, 0], sizes = [8, 32], strides = [1, 1]} : vector<896x32xf32> to vector<8x32xf32>
    %c192_54 = arith.constant 192 : index
    %c0_55 = arith.constant 0 : index
    %89 = vector.load %arg8[%c192_54, %c0_55] : memref<576x256xf32, #tpu.memory_space<vmem>>, vector<32x256xf32>
    %cst_56 = arith.constant dense<0.000000e+00> : vector<8x256xf32>
    %90 = tpu.matmul %88, %89, %cst_56 {dimension_numbers = #tpu.dot_dimension_numbers<[1], [0], [0], [1], [0, 0, 1, 1], [], []>} : vector<8x32xf32>, vector<32x256xf32>, vector<8x256xf32> -> vector<8x256xf32>
    %91 = arith.addf %87, %90 : vector<8x256xf32>
    %92 = vector.extract_strided_slice %64 {offsets = [272, 0], sizes = [8, 32], strides = [1, 1]} : vector<896x32xf32> to vector<8x32xf32>
    %c224_57 = arith.constant 224 : index
    %c0_58 = arith.constant 0 : index
    %93 = vector.load %arg8[%c224_57, %c0_58] : memref<576x256xf32, #tpu.memory_space<vmem>>, vector<32x256xf32>
    %cst_59 = arith.constant dense<0.000000e+00> : vector<8x256xf32>
    %94 = tpu.matmul %92, %93, %cst_59 {dimension_numbers = #tpu.dot_dimension_numbers<[1], [0], [0], [1], [0, 0, 1, 1], [], []>} : vector<8x32xf32>, vector<32x256xf32>, vector<8x256xf32> -> vector<8x256xf32>
    %95 = arith.addf %91, %94 : vector<8x256xf32>
    %96 = vector.extract_strided_slice %64 {offsets = [288, 0], sizes = [8, 32], strides = [1, 1]} : vector<896x32xf32> to vector<8x32xf32>
    %c256_60 = arith.constant 256 : index
    %c0_61 = arith.constant 0 : index
    %97 = vector.load %arg8[%c256_60, %c0_61] : memref<576x256xf32, #tpu.memory_space<vmem>>, vector<32x256xf32>
    %cst_62 = arith.constant dense<0.000000e+00> : vector<8x256xf32>
    %98 = tpu.matmul %96, %97, %cst_62 {dimension_numbers = #tpu.dot_dimension_numbers<[1], [0], [0], [1], [0, 0, 1, 1], [], []>} : vector<8x32xf32>, vector<32x256xf32>, vector<8x256xf32> -> vector<8x256xf32>
    %99 = arith.addf %95, %98 : vector<8x256xf32>
    %100 = vector.extract_strided_slice %64 {offsets = [384, 0], sizes = [8, 32], strides = [1, 1]} : vector<896x32xf32> to vector<8x32xf32>
    %c288 = arith.constant 288 : index
    %c0_63 = arith.constant 0 : index
    %101 = vector.load %arg8[%c288, %c0_63] : memref<576x256xf32, #tpu.memory_space<vmem>>, vector<32x256xf32>
    %cst_64 = arith.constant dense<0.000000e+00> : vector<8x256xf32>
    %102 = tpu.matmul %100, %101, %cst_64 {dimension_numbers = #tpu.dot_dimension_numbers<[1], [0], [0], [1], [0, 0, 1, 1], [], []>} : vector<8x32xf32>, vector<32x256xf32>, vector<8x256xf32> -> vector<8x256xf32>
    %103 = arith.addf %99, %102 : vector<8x256xf32>
    %104 = vector.extract_strided_slice %64 {offsets = [400, 0], sizes = [8, 32], strides = [1, 1]} : vector<896x32xf32> to vector<8x32xf32>
    %c320 = arith.constant 320 : index
    %c0_65 = arith.constant 0 : index
    %105 = vector.load %arg8[%c320, %c0_65] : memref<576x256xf32, #tpu.memory_space<vmem>>, vector<32x256xf32>
    %cst_66 = arith.constant dense<0.000000e+00> : vector<8x256xf32>
    %106 = tpu.matmul %104, %105, %cst_66 {dimension_numbers = #tpu.dot_dimension_numbers<[1], [0], [0], [1], [0, 0, 1, 1], [], []>} : vector<8x32xf32>, vector<32x256xf32>, vector<8x256xf32> -> vector<8x256xf32>
    %107 = arith.addf %103, %106 : vector<8x256xf32>
    %108 = vector.extract_strided_slice %64 {offsets = [416, 0], sizes = [8, 32], strides = [1, 1]} : vector<896x32xf32> to vector<8x32xf32>
    %c352 = arith.constant 352 : index
    %c0_67 = arith.constant 0 : index
    %109 = vector.load %arg8[%c352, %c0_67] : memref<576x256xf32, #tpu.memory_space<vmem>>, vector<32x256xf32>
    %cst_68 = arith.constant dense<0.000000e+00> : vector<8x256xf32>
    %110 = tpu.matmul %108, %109, %cst_68 {dimension_numbers = #tpu.dot_dimension_numbers<[1], [0], [0], [1], [0, 0, 1, 1], [], []>} : vector<8x32xf32>, vector<32x256xf32>, vector<8x256xf32> -> vector<8x256xf32>
    %111 = arith.addf %107, %110 : vector<8x256xf32>
    %112 = vector.extract_strided_slice %64 {offsets = [512, 0], sizes = [8, 32], strides = [1, 1]} : vector<896x32xf32> to vector<8x32xf32>
    %c384 = arith.constant 384 : index
    %c0_69 = arith.constant 0 : index
    %113 = vector.load %arg8[%c384, %c0_69] : memref<576x256xf32, #tpu.memory_space<vmem>>, vector<32x256xf32>
    %cst_70 = arith.constant dense<0.000000e+00> : vector<8x256xf32>
    %114 = tpu.matmul %112, %113, %cst_70 {dimension_numbers = #tpu.dot_dimension_numbers<[1], [0], [0], [1], [0, 0, 1, 1], [], []>} : vector<8x32xf32>, vector<32x256xf32>, vector<8x256xf32> -> vector<8x256xf32>
    %115 = arith.addf %111, %114 : vector<8x256xf32>
    %116 = vector.extract_strided_slice %64 {offsets = [528, 0], sizes = [8, 32], strides = [1, 1]} : vector<896x32xf32> to vector<8x32xf32>
    %c416 = arith.constant 416 : index
    %c0_71 = arith.constant 0 : index
    %117 = vector.load %arg8[%c416, %c0_71] : memref<576x256xf32, #tpu.memory_space<vmem>>, vector<32x256xf32>
    %cst_72 = arith.constant dense<0.000000e+00> : vector<8x256xf32>
    %118 = tpu.matmul %116, %117, %cst_72 {dimension_numbers = #tpu.dot_dimension_numbers<[1], [0], [0], [1], [0, 0, 1, 1], [], []>} : vector<8x32xf32>, vector<32x256xf32>, vector<8x256xf32> -> vector<8x256xf32>
    %119 = arith.addf %115, %118 : vector<8x256xf32>
    %120 = vector.extract_strided_slice %64 {offsets = [544, 0], sizes = [8, 32], strides = [1, 1]} : vector<896x32xf32> to vector<8x32xf32>
    %c448 = arith.constant 448 : index
    %c0_73 = arith.constant 0 : index
    %121 = vector.load %arg8[%c448, %c0_73] : memref<576x256xf32, #tpu.memory_space<vmem>>, vector<32x256xf32>
    %cst_74 = arith.constant dense<0.000000e+00> : vector<8x256xf32>
    %122 = tpu.matmul %120, %121, %cst_74 {dimension_numbers = #tpu.dot_dimension_numbers<[1], [0], [0], [1], [0, 0, 1, 1], [], []>} : vector<8x32xf32>, vector<32x256xf32>, vector<8x256xf32> -> vector<8x256xf32>
    %123 = arith.addf %119, %122 : vector<8x256xf32>
    %124 = vector.extract_strided_slice %64 {offsets = [640, 0], sizes = [8, 32], strides = [1, 1]} : vector<896x32xf32> to vector<8x32xf32>
    %c480 = arith.constant 480 : index
    %c0_75 = arith.constant 0 : index
    %125 = vector.load %arg8[%c480, %c0_75] : memref<576x256xf32, #tpu.memory_space<vmem>>, vector<32x256xf32>
    %cst_76 = arith.constant dense<0.000000e+00> : vector<8x256xf32>
    %126 = tpu.matmul %124, %125, %cst_76 {dimension_numbers = #tpu.dot_dimension_numbers<[1], [0], [0], [1], [0, 0, 1, 1], [], []>} : vector<8x32xf32>, vector<32x256xf32>, vector<8x256xf32> -> vector<8x256xf32>
    %127 = arith.addf %123, %126 : vector<8x256xf32>
    %128 = vector.extract_strided_slice %64 {offsets = [656, 0], sizes = [8, 32], strides = [1, 1]} : vector<896x32xf32> to vector<8x32xf32>
    %c512 = arith.constant 512 : index
    %c0_77 = arith.constant 0 : index
    %129 = vector.load %arg8[%c512, %c0_77] : memref<576x256xf32, #tpu.memory_space<vmem>>, vector<32x256xf32>
    %cst_78 = arith.constant dense<0.000000e+00> : vector<8x256xf32>
    %130 = tpu.matmul %128, %129, %cst_78 {dimension_numbers = #tpu.dot_dimension_numbers<[1], [0], [0], [1], [0, 0, 1, 1], [], []>} : vector<8x32xf32>, vector<32x256xf32>, vector<8x256xf32> -> vector<8x256xf32>
    %131 = arith.addf %127, %130 : vector<8x256xf32>
    %132 = vector.extract_strided_slice %64 {offsets = [672, 0], sizes = [8, 32], strides = [1, 1]} : vector<896x32xf32> to vector<8x32xf32>
    %c544 = arith.constant 544 : index
    %c0_79 = arith.constant 0 : index
    %133 = vector.load %arg8[%c544, %c0_79] : memref<576x256xf32, #tpu.memory_space<vmem>>, vector<32x256xf32>
    %cst_80 = arith.constant dense<0.000000e+00> : vector<8x256xf32>
    %134 = tpu.matmul %132, %133, %cst_80 {dimension_numbers = #tpu.dot_dimension_numbers<[1], [0], [0], [1], [0, 0, 1, 1], [], []>} : vector<8x32xf32>, vector<32x256xf32>, vector<8x256xf32> -> vector<8x256xf32>
    %135 = arith.addf %131, %134 : vector<8x256xf32>
    %c0_81 = arith.constant 0 : index
    %c0_82 = arith.constant 0 : index
    %136 = vector.load %arg9[%c0_81, %c0_82] : memref<1x256xf32, #tpu.memory_space<vmem>>, vector<1x256xf32>
    %137 = vector.broadcast %136 : vector<1x256xf32> to vector<8x256xf32>
    %138 = arith.addf %135, %137 : vector<8x256xf32>
    %139 = vector.extract_strided_slice %138 {offsets = [0, 0], sizes = [8, 64], strides = [1, 1]} : vector<8x256xf32> to vector<8x64xf32>
    %140 = vector.extract_strided_slice %138 {offsets = [0, 128], sizes = [8, 128], strides = [1, 1]} : vector<8x256xf32> to vector<8x128xf32>
    %cst_83 = arith.constant 0.318309873 : f32
    %141 = vector.broadcast %cst_83 : f32 to vector<8x64xf32>
    %142 = arith.mulf %139, %141 : vector<8x64xf32>
    %cst_84 = arith.constant 5.000000e-01 : f32
    %143 = vector.broadcast %cst_84 : f32 to vector<8x64xf32>
    %144 = arith.addf %142, %143 : vector<8x64xf32>
    %145 = math.floor %144 : vector<8x64xf32>
    %cst_85 = arith.constant 3.14159274 : f32
    %146 = vector.broadcast %cst_85 : f32 to vector<8x64xf32>
    %147 = arith.mulf %145, %146 : vector<8x64xf32>
    %148 = arith.subf %139, %147 : vector<8x64xf32>
    %cst_86 = arith.constant 5.000000e-01 : f32
    %149 = vector.broadcast %cst_86 : f32 to vector<8x64xf32>
    %150 = arith.mulf %145, %149 : vector<8x64xf32>
    %151 = math.floor %150 : vector<8x64xf32>
    %cst_87 = arith.constant 2.000000e+00 : f32
    %152 = vector.broadcast %cst_87 : f32 to vector<8x64xf32>
    %153 = arith.mulf %152, %151 : vector<8x64xf32>
    %154 = arith.subf %145, %153 : vector<8x64xf32>
    %cst_88 = arith.constant 2.000000e+00 : f32
    %155 = vector.broadcast %cst_88 : f32 to vector<8x64xf32>
    %156 = arith.mulf %155, %154 : vector<8x64xf32>
    %cst_89 = arith.constant 1.000000e+00 : f32
    %157 = vector.broadcast %cst_89 : f32 to vector<8x64xf32>
    %158 = arith.subf %157, %156 : vector<8x64xf32>
    %159 = arith.mulf %148, %148 : vector<8x64xf32>
    %cst_90 = arith.constant -2.50521079E-8 : f32
    %160 = vector.broadcast %cst_90 : f32 to vector<8x64xf32>
    %161 = arith.mulf %159, %160 : vector<8x64xf32>
    %cst_91 = arith.constant 2.75573188E-6 : f32
    %162 = vector.broadcast %cst_91 : f32 to vector<8x64xf32>
    %163 = arith.addf %162, %161 : vector<8x64xf32>
    %164 = arith.mulf %159, %163 : vector<8x64xf32>
    %cst_92 = arith.constant -1.98412701E-4 : f32
    %165 = vector.broadcast %cst_92 : f32 to vector<8x64xf32>
    %166 = arith.addf %165, %164 : vector<8x64xf32>
    %167 = arith.mulf %159, %166 : vector<8x64xf32>
    %cst_93 = arith.constant 0.00833333377 : f32
    %168 = vector.broadcast %cst_93 : f32 to vector<8x64xf32>
    %169 = arith.addf %168, %167 : vector<8x64xf32>
    %170 = arith.mulf %159, %169 : vector<8x64xf32>
    %cst_94 = arith.constant -0.166666672 : f32
    %171 = vector.broadcast %cst_94 : f32 to vector<8x64xf32>
    %172 = arith.addf %171, %170 : vector<8x64xf32>
    %173 = arith.mulf %159, %172 : vector<8x64xf32>
    %cst_95 = arith.constant 1.000000e+00 : f32
    %174 = vector.broadcast %cst_95 : f32 to vector<8x64xf32>
    %175 = arith.addf %174, %173 : vector<8x64xf32>
    %176 = arith.mulf %148, %175 : vector<8x64xf32>
    %cst_96 = arith.constant 2.08767559E-9 : f32
    %177 = vector.broadcast %cst_96 : f32 to vector<8x64xf32>
    %178 = arith.mulf %159, %177 : vector<8x64xf32>
    %cst_97 = arith.constant -2.755732E-7 : f32
    %179 = vector.broadcast %cst_97 : f32 to vector<8x64xf32>
    %180 = arith.addf %179, %178 : vector<8x64xf32>
    %181 = arith.mulf %159, %180 : vector<8x64xf32>
    %cst_98 = arith.constant 2.48015876E-5 : f32
    %182 = vector.broadcast %cst_98 : f32 to vector<8x64xf32>
    %183 = arith.addf %182, %181 : vector<8x64xf32>
    %184 = arith.mulf %159, %183 : vector<8x64xf32>
    %cst_99 = arith.constant -0.00138888892 : f32
    %185 = vector.broadcast %cst_99 : f32 to vector<8x64xf32>
    %186 = arith.addf %185, %184 : vector<8x64xf32>
    %187 = arith.mulf %159, %186 : vector<8x64xf32>
    %cst_100 = arith.constant 0.0416666679 : f32
    %188 = vector.broadcast %cst_100 : f32 to vector<8x64xf32>
    %189 = arith.addf %188, %187 : vector<8x64xf32>
    %190 = arith.mulf %159, %189 : vector<8x64xf32>
    %cst_101 = arith.constant -5.000000e-01 : f32
    %191 = vector.broadcast %cst_101 : f32 to vector<8x64xf32>
    %192 = arith.addf %191, %190 : vector<8x64xf32>
    %193 = arith.mulf %159, %192 : vector<8x64xf32>
    %cst_102 = arith.constant 1.000000e+00 : f32
    %194 = vector.broadcast %cst_102 : f32 to vector<8x64xf32>
    %195 = arith.addf %194, %193 : vector<8x64xf32>
    %196 = arith.mulf %158, %176 : vector<8x64xf32>
    %197 = arith.mulf %158, %195 : vector<8x64xf32>
    %cst_103 = arith.constant 5.000000e-01 : f32
    %198 = vector.broadcast %cst_103 : f32 to vector<8x128xf32>
    %199 = arith.mulf %198, %140 : vector<8x128xf32>
    %cst_104 = arith.constant 0.707106769 : f32
    %200 = vector.broadcast %cst_104 : f32 to vector<8x128xf32>
    %201 = arith.mulf %140, %200 : vector<8x128xf32>
    %cst_105 = arith.constant 0.000000e+00 : f32
    %202 = vector.broadcast %cst_105 : f32 to vector<8x128xf32>
    %203 = arith.cmpf oge, %201, %202 : vector<8x128xf32>
    %cst_106 = arith.constant 1.000000e+00 : f32
    %cst_107 = arith.constant -1.000000e+00 : f32
    %204 = vector.broadcast %cst_106 : f32 to vector<8x128xf32>
    %205 = vector.broadcast %cst_107 : f32 to vector<8x128xf32>
    %206 = arith.select %203, %204, %205 : vector<8x128xi1>, vector<8x128xf32>
    %207 = math.absf %201 : vector<8x128xf32>
    %cst_108 = arith.constant 0.327591091 : f32
    %208 = vector.broadcast %cst_108 : f32 to vector<8x128xf32>
    %209 = arith.mulf %208, %207 : vector<8x128xf32>
    %cst_109 = arith.constant 1.000000e+00 : f32
    %210 = vector.broadcast %cst_109 : f32 to vector<8x128xf32>
    %211 = arith.addf %210, %209 : vector<8x128xf32>
    %212 = tpu.reciprocal %211 {approx = true} : vector<8x128xf32> -> vector<8x128xf32>
    %cst_110 = arith.constant 1.06140542 : f32
    %213 = vector.broadcast %cst_110 : f32 to vector<8x128xf32>
    %214 = arith.mulf %213, %212 : vector<8x128xf32>
    %cst_111 = arith.constant -1.45315206 : f32
    %215 = vector.broadcast %cst_111 : f32 to vector<8x128xf32>
    %216 = arith.addf %214, %215 : vector<8x128xf32>
    %217 = arith.mulf %216, %212 : vector<8x128xf32>
    %cst_112 = arith.constant 1.42141378 : f32
    %218 = vector.broadcast %cst_112 : f32 to vector<8x128xf32>
    %219 = arith.addf %217, %218 : vector<8x128xf32>
    %220 = arith.mulf %219, %212 : vector<8x128xf32>
    %cst_113 = arith.constant -0.284496725 : f32
    %221 = vector.broadcast %cst_113 : f32 to vector<8x128xf32>
    %222 = arith.addf %220, %221 : vector<8x128xf32>
    %223 = arith.mulf %222, %212 : vector<8x128xf32>
    %cst_114 = arith.constant 0.254829586 : f32
    %224 = vector.broadcast %cst_114 : f32 to vector<8x128xf32>
    %225 = arith.addf %223, %224 : vector<8x128xf32>
    %226 = arith.mulf %225, %212 : vector<8x128xf32>
    %cst_115 = arith.constant 0.000000e+00 : f32
    %227 = vector.broadcast %cst_115 : f32 to vector<8x128xf32>
    %228 = arith.subf %227, %207 : vector<8x128xf32>
    %229 = arith.mulf %228, %207 : vector<8x128xf32>
    %230 = math.exp %229 : vector<8x128xf32>
    %231 = arith.mulf %226, %230 : vector<8x128xf32>
    %cst_116 = arith.constant 1.000000e+00 : f32
    %232 = vector.broadcast %cst_116 : f32 to vector<8x128xf32>
    %233 = arith.subf %232, %231 : vector<8x128xf32>
    %234 = arith.mulf %206, %233 : vector<8x128xf32>
    %cst_117 = arith.constant 1.000000e+00 : f32
    %235 = vector.broadcast %cst_117 : f32 to vector<8x128xf32>
    %236 = arith.addf %235, %234 : vector<8x128xf32>
    %237 = arith.mulf %199, %236 : vector<8x128xf32>
    %c0_118 = arith.constant 0 : index
    %c0_119 = arith.constant 0 : index
    %238 = vector.load %arg10[%c0_118, %c0_119] : memref<256x128xf32, #tpu.memory_space<vmem>>, vector<64x128xf32>
    %cst_120 = arith.constant dense<0.000000e+00> : vector<8x128xf32>
    %239 = tpu.matmul %197, %238, %cst_120 {dimension_numbers = #tpu.dot_dimension_numbers<[1], [0], [0], [1], [0, 0, 1, 1], [], []>} : vector<8x64xf32>, vector<64x128xf32>, vector<8x128xf32> -> vector<8x128xf32>
    %c64_121 = arith.constant 64 : index
    %c0_122 = arith.constant 0 : index
    %240 = vector.load %arg10[%c64_121, %c0_122] : memref<256x128xf32, #tpu.memory_space<vmem>>, vector<64x128xf32>
    %cst_123 = arith.constant dense<0.000000e+00> : vector<8x128xf32>
    %241 = tpu.matmul %196, %240, %cst_123 {dimension_numbers = #tpu.dot_dimension_numbers<[1], [0], [0], [1], [0, 0, 1, 1], [], []>} : vector<8x64xf32>, vector<64x128xf32>, vector<8x128xf32> -> vector<8x128xf32>
    %242 = arith.addf %239, %241 : vector<8x128xf32>
    %c128_124 = arith.constant 128 : index
    %c0_125 = arith.constant 0 : index
    %243 = vector.load %arg10[%c128_124, %c0_125] : memref<256x128xf32, #tpu.memory_space<vmem>>, vector<128x128xf32>
    %cst_126 = arith.constant dense<0.000000e+00> : vector<8x128xf32>
    %244 = tpu.matmul %237, %243, %cst_126 {dimension_numbers = #tpu.dot_dimension_numbers<[1], [0], [0], [1], [0, 0, 1, 1], [], []>} : vector<8x128xf32>, vector<128x128xf32>, vector<8x128xf32> -> vector<8x128xf32>
    %245 = arith.addf %242, %244 : vector<8x128xf32>
    %c0_127 = arith.constant 0 : index
    %c0_128 = arith.constant 0 : index
    %246 = vector.load %arg11[%c0_127, %c0_128] : memref<1x128xf32, #tpu.memory_space<vmem>>, vector<1x128xf32>
    %247 = vector.broadcast %246 : vector<1x128xf32> to vector<8x128xf32>
    %248 = arith.addf %245, %247 : vector<8x128xf32>
    %c0_129 = arith.constant 0 : index
    %c0_130 = arith.constant 0 : index
    %c0_131 = arith.constant 0 : index
    %249 = vector.load %arg12[%c0_129, %c0_130, %c0_131] : memref<1x8x128xf32, #tpu.memory_space<vmem>>, vector<1x8x128xf32>
    %250 = vector.shape_cast %249 : vector<1x8x128xf32> to vector<8x128xf32>
    %251 = vector.shape_cast %248 : vector<8x128xf32> to vector<1x8x128xf32>
    tpu.vector_store %arg12[%c0_129, %c0_130, %c0_131], %251 {strides = array<i32>} : memref<1x8x128xf32, #tpu.memory_space<vmem>>, vector<1x8x128xf32>,
    return
  }
  func.func @transform_0(%arg0: i32) -> (i32, i32, i32) {
    %c0_i32 = arith.constant 0 : i32
    %c0_i32_0 = arith.constant 0 : i32
    %c0_i32_1 = arith.constant 0 : i32
    return %arg0, %c0_i32, %c0_i32_0 : i32, i32, i32
  }
  func.func @transform_1(%arg0: i32) -> (i32, i32) {
    %c0_i32 = arith.constant 0 : i32
    %c0_i32_0 = arith.constant 0 : i32
    %c0_i32_1 = arith.constant 0 : i32
    return %c0_i32, %c0_i32_0 : i32, i32
  }
  func.func @transform_2(%arg0: i32) -> (i32, i32) {
    %c0_i32 = arith.constant 0 : i32
    %c0_i32_0 = arith.constant 0 : i32
    %c0_i32_1 = arith.constant 0 : i32
    return %c0_i32, %c0_i32_0 : i32, i32
  }
  func.func @transform_3(%arg0: i32) -> (i32, i32) {
    %c0_i32 = arith.constant 0 : i32
    %c0_i32_0 = arith.constant 0 : i32
    %c0_i32_1 = arith.constant 0 : i32
    return %c0_i32, %c0_i32_0 : i32, i32
  }
  func.func @transform_4(%arg0: i32) -> (i32, i32) {
    %c0_i32 = arith.constant 0 : i32
    %c0_i32_0 = arith.constant 0 : i32
    %c0_i32_1 = arith.constant 0 : i32
    return %c0_i32, %c0_i32_0 : i32, i32
  }
  func.func @transform_5(%arg0: i32) -> (i32, i32) {
    %c0_i32 = arith.constant 0 : i32
    %c0_i32_0 = arith.constant 0 : i32
    %c0_i32_1 = arith.constant 0 : i32
    return %c0_i32, %c0_i32_0 : i32, i32
  }
  func.func @transform_6(%arg0: i32) -> (i32, i32) {
    %c0_i32 = arith.constant 0 : i32
    %c0_i32_0 = arith.constant 0 : i32
    %c0_i32_1 = arith.constant 0 : i32
    return %c0_i32, %c0_i32_0 : i32, i32
  }
  func.func @transform_7(%arg0: i32) -> (i32, i32) {
    %c0_i32 = arith.constant 0 : i32
    %c0_i32_0 = arith.constant 0 : i32
    %c0_i32_1 = arith.constant 0 : i32
    return %c0_i32, %c0_i32_0 : i32, i32
  }
  func.func @transform_8(%arg0: i32) -> (i32, i32) {
    %c0_i32 = arith.constant 0 : i32
    %c0_i32_0 = arith.constant 0 : i32
    %c0_i32_1 = arith.constant 0 : i32
    return %c0_i32, %c0_i32_0 : i32, i32
  }
  func.func @transform_9(%arg0: i32) -> (i32, i32) {
    %c0_i32 = arith.constant 0 : i32
    %c0_i32_0 = arith.constant 0 : i32
    %c0_i32_1 = arith.constant 0 : i32
    return %c0_i32, %c0_i32_0 : i32, i32
  }
  func.func @transform_10(%arg0: i32) -> (i32, i32) {
    %c0_i32 = arith.constant 0 : i32
    %c0_i32_0 = arith.constant 0 : i32
    %c0_i32_1 = arith.constant 0 : i32
    return %c0_i32, %c0_i32_0 : i32, i32
  }
  func.func @transform_11(%arg0: i32) -> (i32, i32, i32) {
    %c0_i32 = arith.constant 0 : i32
    %c0_i32_0 = arith.constant 0 : i32
    %c0_i32_1 = arith.constant 0 : i32
    return %arg0, %c0_i32, %c0_i32_0 : i32, i32, i32
  }
}

</mosaic_0001>

<bundles_post_ra>
// kernel: emgfan_forward.1
= control target key start
LH: loop header
LB: loop body
LE: loop exit
PB: predicated region body
PF: predicated region fallthrough
CT: control target
= control target key end

     0   :  { %s14175_s17 = smov 0   ;;  %s18720_s0 = inlined_call_operand.vmem [shape: f32[2,896,16], index: 0, kind: input, shape index: {}]   ;;  %s18721_s1 = inlined_call_operand.vmem [shape: f32[16,32], index: 1, kind: input, shape index: {}]   ;;  %s18722_s2 = inlined_call_operand.vmem [shape: f32[1,32], index: 2, kind: input, shape index: {}]   ;;  %s18723_s3 = inlined_call_operand.vmem [shape: f32[288,32], index: 3, kind: input, shape index: {}]   ;;  %s18724_s4 = inlined_call_operand.vmem [shape: f32[1,32], index: 4, kind: input, shape index: {}]   ;;  %s18725_s5 = inlined_call_operand.vmem [shape: f32[1,32], index: 5, kind: input, shape index: {}]   ;;  %s18726_s6 = inlined_call_operand.vmem [shape: f32[1,32], index: 6, kind: input, shape index: {}]   ;;  %s18727_s7 = inlined_call_operand.vmem [shape: f32[576,256], index: 7, kind: input, shape index: {}]   ;;  %s18728_s8 = inlined_call_operand.vmem [shape: f32[1,256], index: 8, kind: input, shape index: {}]   ;;  %s18729_s9 = inlined_call_operand.vmem [shape: f32[256,128], index: 9, kind: input, shape index: {}]   ;;  %s18730_s10 = inlined_call_operand.vmem [shape: f32[1,128], index: 10, kind: input, shape index: {}]   ;;  %s18731_s11 = inlined_call_operand.vmem [shape: f32[2,8,128], index: 11, kind: output, shape index: {}]  }
   0x1 LB: > { %s9985_s18 = sadd.s32 4294967295, %s14110_s17   ;;  %p9989_p0 = scmp.ge.s32.totalorder %s14110_s17, 1  ;;  %s14110_s17 = sphi %s14175_s17, %s21_s17  }
   0x2   : > { %p337_p1 = scmp.lt.s32.totalorder %s14110_s17, 3 }
   0x4   : > { %p338_p2 = pnand %p9989_p0, %p337_p1 }
   0x6   : > { %341 = sbr.rel (%p338_p2) target bundleno = 1974 (0x7b6), region = 64 }
   0xb   : > { %v498_v0 = vld [vmem:[%s18721_s1 + $0x8] sm:$0xff]  ;;  %v497_v1 = vld [vmem:[%s18721_s1] sm:$0xff]  ;;  %p376_p3 = scmp.lt.s32.totalorder %s9985_s18, 1  ;;  %vm506_vm0 = vcmask 130048   ;;  %v1587_v35 = vld [vmem:[%s18723_s3 + $0x38] sm:$0xff]  ;;  %vm1588_vm1 = vcmask 261120  }
   0xc   : > { %12251 = vmatprep.subr.mxu0 %v498_v0  ;;  %14080 = vmatprep.subr.mxu1 %v498_v0  ;;  %v1586_v40 = vld [vmem:[%s18723_s3 + $0x30] sm:$0xff]  ;;  %v1585_v50 = vld [vmem:[%s18723_s3 + $0x28] sm:$0xff]  ;;  %v1583_v52 = vld [vmem:[%s18723_s3 + $0x18] sm:$0xff]  ;;  %vm14113_vm2 = vmmov 0   ;;  %vm9689_vm3 = vcmask 523264  }
   0xd   : > { %12252 = vmatpush3.msra.mxu0 %v498_v0  ;;  %s19826_s18 = smov (!%p376_p3, %s9985_s18), 1  ;;  %14082 = vmatpush3.msra.mxu1 %v498_v0  ;;  %v1584_v53 = vld [vmem:[%s18723_s3 + $0x20] sm:$0xff]  ;;  %v1582_v55 = vld [vmem:[%s18723_s3 + $0x10] sm:$0xff]  ;;  %v1581_v57 = vld [vmem:[%s18723_s3 + $0x8] sm:$0xff] }
   0xe   : > { %12253 = vmatprep.subr.mxu0 %v497_v1  ;;  %14081 = vmatprep.subr.mxu1 %v497_v1  ;;  %s14084_s23 = smul.u32 896, %s19826_s18  ;;  %v14320_v59 = vld [vmem:[%s18723_s3 + $0x58] sm:$0xff]  ;;  %v1580_v61 = vld [vmem:[%s18723_s3] sm:$0xff]  ;;  %s9991_s28 = sshll.u32 %s19826_s18, 3 }
   0xf   : > { %12254 = vmatpush3.msra.mxu0 %v497_v1  ;;  %14083 = vmatpush3.msra.mxu1 %v497_v1 }
  0x10   : > { %s14195_s26 = scalar_lea.vmem %s18720_s0, %s14084_s23  ;;  %12423 = vmatprep.subr.mxu1 %v1587_v35  ;;  %12599 = vmatprep.subr.mxu0 %v1583_v52 }
  0x11   : > { %v385_v2 = vld [vmem:[%s14195_s26] sm:$0xff]  ;;  %v386_v3 = vld [vmem:[%s14195_s26 + $0x8] sm:$0xff]  ;;  %v387_v4 = vld [vmem:[%s14195_s26 + $0x10] sm:$0xff] }
  0x12   : > { %12255 = vmatprep.mubr.msk.f32.mxu0 %vm506_vm0, %v385_v2  ;;  %v388_v5 = vld [vmem:[%s14195_s26 + $0x18] sm:$0xff]  ;;  %v389_v6 = vld [vmem:[%s14195_s26 + $0x20] sm:$0xff]  ;;  %v390_v7 = vld [vmem:[%s14195_s26 + $0x28] sm:$0xff] }
  0x13   : > { %12256 = vmatmul.mubr.msk.f32.vlgmr.msra.gmra.mxu0 %vm506_vm0, %v386_v3  ;;  %v391_v8 = vld [vmem:[%s14195_s26 + $0x30] sm:$0xff]  ;;  %v392_v9 = vld [vmem:[%s14195_s26 + $0x38] sm:$0xff]  ;;  %v393_v10 = vld [vmem:[%s14195_s26 + $0x40] sm:$0xff] }
  0x14   : > { %12258 = vmatprep.mubr.msk.f32.mxu0 %vm506_vm0, %v387_v4  ;;  %v394_v11 = vld [vmem:[%s14195_s26 + $0x48] sm:$0xff]  ;;  %v395_v12 = vld [vmem:[%s14195_s26 + $0x50] sm:$0xff]  ;;  %v396_v13 = vld [vmem:[%s14195_s26 + $0x58] sm:$0xff]  ;;  %12600 = vmatpush3.msra.mxu0 %v1583_v52 }
  0x15   : > { %v397_v14 = vld [vmem:[%s14195_s26 + $0x60] sm:$0xff]  ;;  %v398_v15 = vld [vmem:[%s14195_s26 + $0x68] sm:$0xff]  ;;  %v399_v16 = vld [vmem:[%s14195_s26 + $0x70] sm:$0xff]  ;;  %12601 = vmatprep.subr.mxu0 %v1582_v55 }
  0x16   : > { %v400_v17 = vld [vmem:[%s14195_s26 + $0x78] sm:$0xff]  ;;  %v401_v18 = vld [vmem:[%s14195_s26 + $0x80] sm:$0xff]  ;;  %v402_v19 = vld [vmem:[%s14195_s26 + $0x88] sm:$0xff]  ;;  %12602 = vmatpush3.msra.mxu0 %v1582_v55 }
  0x17   : > { %12259 = vmatmul.mubr.msk.f32.gmra.mxu0 %vm506_vm0, %v388_v5  ;;  %v403_v20 = vld [vmem:[%s14195_s26 + $0x90] sm:$0xff]  ;;  %v404_v21 = vld [vmem:[%s14195_s26 + $0x98] sm:$0xff]  ;;  %v405_v22 = vld [vmem:[%s14195_s26 + $0xa0] sm:$0xff]  ;;  %12603 = vmatprep.subr.mxu0 %v1581_v57 }
  0x18   : > { %12261 = vmatprep.mubr.msk.f32.mxu0 %vm506_vm0, %v389_v6  ;;  %v406_v23 = vld [vmem:[%s14195_s26 + $0xa8] sm:$0xff]  ;;  %v407_v24 = vld [vmem:[%s14195_s26 + $0xb0] sm:$0xff]  ;;  %v408_v25 = vld [vmem:[%s14195_s26 + $0xb8] sm:$0xff]  ;;  %12604 = vmatpush3.msra.mxu0 %v1581_v57 }
  0x19   : > { %v409_v26 = vld [vmem:[%s14195_s26 + $0xc0] sm:$0xff]  ;;  %v410_v27 = vld [vmem:[%s14195_s26 + $0xc8] sm:$0xff]  ;;  %v411_v28 = vld [vmem:[%s14195_s26 + $0xd0] sm:$0xff]  ;;  %12605 = vmatprep.subr.mxu0 %v1580_v61 }
  0x1a   : > { %v412_v29 = vld [vmem:[%s14195_s26 + $0xd8] sm:$0xff]  ;;  %v413_v30 = vld [vmem:[%s14195_s26 + $0xe0] sm:$0xff]  ;;  %v414_v31 = vld [vmem:[%s14195_s26 + $0xe8] sm:$0xff]  ;;  %12606 = vmatpush3.msra.mxu0 %v1580_v61 }
  0x1b   : > { %12262 = vmatmul.mubr.msk.f32.gmra.mxu0 %vm506_vm0, %v390_v7  ;;  %v489_v32 = vld [vmem:[%s14195_s26 + $0x340] sm:$0xff]  ;;  %v415_v33 = vld [vmem:[%s14195_s26 + $0xf0] sm:$0xff]  ;;  %v490_v34 = vld [vmem:[%s14195_s26 + $0x348] sm:$0xff] }
  0x1c   : > { %12264 = vmatprep.mubr.msk.f32.mxu0 %vm506_vm0, %v391_v8  ;;  %12411 = vmatprep.mubr.msk.f32.mxu1 %vm506_vm0, %v489_v32  ;;  %v416_v36 = vld [vmem:[%s14195_s26 + $0xf8] sm:$0xff]  ;;  %v491_v37 = vld [vmem:[%s14195_s26 + $0x350] sm:$0xff]  ;;  %v417_v38 = vld [vmem:[%s14195_s26 + $0x100] sm:$0xff] }
  0x1d   : > { %12412 = vmatmul.mubr.msk.f32.vlgmr.msra.gmra.mxu1 %vm506_vm0, %v490_v34  ;;  %v492_v39 = vld [vmem:[%s14195_s26 + $0x358] sm:$0xff]  ;;  %v418_v41 = vld [vmem:[%s14195_s26 + $0x108] sm:$0xff]  ;;  %v493_v42 = vld [vmem:[%s14195_s26 + $0x360] sm:$0xff] }
  0x1e   : > { %12414 = vmatprep.mubr.msk.f32.mxu1 %vm506_vm0, %v491_v37  ;;  %12424 = vmatpush3.msra.mxu1 %v1587_v35  ;;  %v419_v43 = vld [vmem:[%s14195_s26 + $0x110] sm:$0xff]  ;;  %v494_v44 = vld [vmem:[%s14195_s26 + $0x368] sm:$0xff]  ;;  %v420_v45 = vld [vmem:[%s14195_s26 + $0x118] sm:$0xff] }
  0x1f   : > { %12265 = vmatmul.mubr.msk.f32.gmra.mxu0 %vm506_vm0, %v392_v9  ;;  %12425 = vmatprep.subr.mxu1 %v1586_v40  ;;  %v421_v46 = vld [vmem:[%s14195_s26 + $0x120] sm:$0xff]  ;;  %v495_v47 = vld [vmem:[%s14195_s26 + $0x370] sm:$0xff]  ;;  %v496_v48 = vld [vmem:[%s14195_s26 + $0x378] sm:$0xff] }
  0x20   : > { %12267 = vmatprep.mubr.msk.f32.mxu0 %vm506_vm0, %v393_v10  ;;  %12426 = vmatpush3.msra.mxu1 %v1586_v40  ;;  %v422_v49 = vld [vmem:[%s14195_s26 + $0x128] sm:$0xff]  ;;  %v423_v51 = vld [vmem:[%s14195_s26 + $0x130] sm:$0xff]  ;;  %v424_v54 = vld [vmem:[%s14195_s26 + $0x138] sm:$0xff] }
  0x21   : > { %12415 = vmatmul.mubr.msk.f32.gmra.mxu1 %vm506_vm0, %v492_v39  ;;  %12427 = vmatprep.subr.mxu1 %v1585_v50  ;;  %v425_v56 = vld [vmem:[%s14195_s26 + $0x140] sm:$0xff]  ;;  %v426_v58 = vld [vmem:[%s14195_s26 + $0x148] sm:$0xff]  ;;  %v427_v60 = vld [vmem:[%s14195_s26 + $0x150] sm:$0xff] }
  0x22   : > { %12417 = vmatprep.mubr.msk.f32.mxu1 %vm506_vm0, %v493_v42  ;;  %12428 = vmatpush3.msra.mxu1 %v1585_v50  ;;  %v428_v62 = vld [vmem:[%s14195_s26 + $0x158] sm:$0xff]  ;;  %v429_v63 = vld [vmem:[%s14195_s26 + $0x160] sm:$0xff]  ;;  %v430_v0 = vld [vmem:[%s14195_s26 + $0x168] sm:$0xff] }
  0x23   : > { %12268 = vmatmul.mubr.msk.f32.gmra.mxu0 %vm506_vm0, %v394_v11  ;;  %12429 = vmatprep.subr.mxu1 %v1584_v53  ;;  %v431_v1 = vld [vmem:[%s14195_s26 + $0x170] sm:$0xff]  ;;  %v432_v2 = vld [vmem:[%s14195_s26 + $0x178] sm:$0xff]  ;;  %v433_v3 = vld [vmem:[%s14195_s26 + $0x180] sm:$0xff] }
  0x24   : > { %12270 = vmatprep.mubr.msk.f32.mxu0 %vm506_vm0, %v395_v12  ;;  %12430 = vmatpush3.msra.mxu1 %v1584_v53  ;;  %v434_v4 = vld [vmem:[%s14195_s26 + $0x188] sm:$0xff]  ;;  %v435_v5 = vld [vmem:[%s14195_s26 + $0x190] sm:$0xff]  ;;  %v436_v6 = vld [vmem:[%s14195_s26 + $0x198] sm:$0xff] }
  0x25   : > { %12418 = vmatmul.mubr.msk.f32.gmra.mxu1 %vm506_vm0, %v494_v44  ;;  %12775 = vmatprep.subr.mxu1 %v14320_v59  ;;  %v437_v7 = vld [vmem:[%s14195_s26 + $0x1a0] sm:$0xff]  ;;  %v438_v8 = vld [vmem:[%s14195_s26 + $0x1a8] sm:$0xff]  ;;  %v439_v9 = vld [vmem:[%s14195_s26 + $0x1b0] sm:$0xff] }
  0x26   : > { %12420 = vmatprep.mubr.msk.f32.mxu1 %vm506_vm0, %v495_v47  ;;  %v440_v10 = vld [vmem:[%s14195_s26 + $0x1b8] sm:$0xff]  ;;  %v441_v11 = vld [vmem:[%s14195_s26 + $0x1c0] sm:$0xff]  ;;  %v442_v12 = vld [vmem:[%s14195_s26 + $0x1c8] sm:$0xff] }
  0x27   : > { %12271 = vmatmul.mubr.msk.f32.gmra.mxu0 %vm506_vm0, %v396_v13  ;;  %v443_v13 = vld [vmem:[%s14195_s26 + $0x1d0] sm:$0xff]  ;;  %v462_v32 = vld [vmem:[%s14195_s26 + $0x268] sm:$0xff]  ;;  %v464_v34 = vld [vmem:[%s14195_s26 + $0x278] sm:$0xff] }
  0x28   : > { %12273 = vmatprep.mubr.msk.f32.mxu0 %vm506_vm0, %v397_v14  ;;  %v444_v14 = vld [vmem:[%s14195_s26 + $0x1d8] sm:$0xff]  ;;  %v465_v35 = vld [vmem:[%s14195_s26 + $0x280] sm:$0xff]  ;;  %v467_v37 = vld [vmem:[%s14195_s26 + $0x290] sm:$0xff] }
  0x29   : > { %12421 = vmatmul.mubr.msk.f32.gmra.mxu1 %vm506_vm0, %v496_v48  ;;  %v469_v39 = vld [vmem:[%s14195_s26 + $0x2a0] sm:$0xff]  ;;  %v470_v40 = vld [vmem:[%s14195_s26 + $0x2a8] sm:$0xff]  ;;  %v472_v42 = vld [vmem:[%s14195_s26 + $0x2b8] sm:$0xff] }
  0x2a   : > { %v474_v44 = vld [vmem:[%s14195_s26 + $0x2c8] sm:$0xff]  ;;  %v477_v47 = vld [vmem:[%s14195_s26 + $0x2e0] sm:$0xff]  ;;  %v480_v50 = vld [vmem:[%s14195_s26 + $0x2f8] sm:$0xff] }
  0x2b   : > { %12274 = vmatmul.mubr.msk.f32.gmra.mxu0 %vm506_vm0, %v398_v15  ;;  %v445_v15 = vld [vmem:[%s14195_s26 + $0x1e0] sm:$0xff]  ;;  %v478_v48 = vld [vmem:[%s14195_s26 + $0x2e8] sm:$0xff]  ;;  %v484_v57 = vld [vmem:[%s14195_s26 + $0x318] sm:$0xff] }
  0x2c   : > { %12276 = vmatprep.mubr.msk.f32.mxu0 %vm506_vm0, %v399_v16  ;;  %v446_v16 = vld [vmem:[%s14195_s26 + $0x1e8] sm:$0xff]  ;;  %v14441_v53 = vld [vmem:[%s18722_s2] ss:$0 sm:$0xff] }
  0x2d   : > { %v482_v52 = vld [vmem:[%s14195_s26 + $0x308] sm:$0xff] }
  0x2f   : > { %12277 = vmatmul.mubr.msk.f32.gmra.mxu0 %vm506_vm0, %v400_v17  ;;  %v447_v17 = vld [vmem:[%s14195_s26 + $0x1f0] sm:$0xff] }
  0x30   : > { %12279 = vmatprep.mubr.msk.f32.mxu0 %vm506_vm0, %v401_v18  ;;  %v448_v18 = vld [vmem:[%s14195_s26 + $0x1f8] sm:$0xff] }
  0x33   : > { %12280 = vmatmul.mubr.msk.f32.gmra.mxu0 %vm506_vm0, %v402_v19  ;;  %v449_v19 = vld [vmem:[%s14195_s26 + $0x200] sm:$0xff] }
  0x34   : > { %12282 = vmatprep.mubr.msk.f32.mxu0 %vm506_vm0, %v403_v20  ;;  %v450_v20 = vld [vmem:[%s14195_s26 + $0x208] sm:$0xff] }
  0x37   : > { %12283 = vmatmul.mubr.msk.f32.gmra.mxu0 %vm506_vm0, %v404_v21  ;;  %v451_v21 = vld [vmem:[%s14195_s26 + $0x210] sm:$0xff] }
  0x38   : > { %12285 = vmatprep.mubr.msk.f32.mxu0 %vm506_vm0, %v405_v22  ;;  %v452_v22 = vld [vmem:[%s14195_s26 + $0x218] sm:$0xff] }
  0x3b   : > { %12286 = vmatmul.mubr.msk.f32.gmra.mxu0 %vm506_vm0, %v406_v23  ;;  %v453_v23 = vld [vmem:[%s14195_s26 + $0x220] sm:$0xff] }
  0x3c   : > { %12288 = vmatprep.mubr.msk.f32.mxu0 %vm506_vm0, %v407_v24  ;;  %v454_v24 = vld [vmem:[%s14195_s26 + $0x228] sm:$0xff] }
  0x3f   : > { %12289 = vmatmul.mubr.msk.f32.gmra.mxu0 %vm506_vm0, %v408_v25  ;;  %v455_v25 = vld [vmem:[%s14195_s26 + $0x230] sm:$0xff] }
  0x40   : > { %12291 = vmatprep.mubr.msk.f32.mxu0 %vm506_vm0, %v409_v26  ;;  %v456_v26 = vld [vmem:[%s14195_s26 + $0x238] sm:$0xff] }
  0x43   : > { %12292 = vmatmul.mubr.msk.f32.gmra.mxu0 %vm506_vm0, %v410_v27  ;;  %v457_v27 = vld [vmem:[%s14195_s26 + $0x240] sm:$0xff] }
  0x44   : > { %12294 = vmatprep.mubr.msk.f32.mxu0 %vm506_vm0, %v411_v28  ;;  %v458_v28 = vld [vmem:[%s14195_s26 + $0x248] sm:$0xff] }
  0x47   : > { %12295 = vmatmul.mubr.msk.f32.gmra.mxu0 %vm506_vm0, %v412_v29  ;;  %v459_v29 = vld [vmem:[%s14195_s26 + $0x250] sm:$0xff] }
  0x48   : > { %12297 = vmatprep.mubr.msk.f32.mxu0 %vm506_vm0, %v413_v30  ;;  %v460_v30 = vld [vmem:[%s14195_s26 + $0x258] sm:$0xff] }
  0x4b   : > { %12298 = vmatmul.mubr.msk.f32.gmra.mxu0 %vm506_vm0, %v414_v31  ;;  %v461_v31 = vld [vmem:[%s14195_s26 + $0x260] sm:$0xff] }
  0x4c   : > { %12300 = vmatprep.mubr.msk.f32.mxu0 %vm506_vm0, %v415_v33  ;;  %v463_v33 = vld [vmem:[%s14195_s26 + $0x270] sm:$0xff] }
  0x4f   : > { %12301 = vmatmul.mubr.msk.f32.gmra.mxu0 %vm506_vm0, %v416_v36  ;;  %v466_v36 = vld [vmem:[%s14195_s26 + $0x288] sm:$0xff] }
  0x50   : > { %12303 = vmatprep.mubr.msk.f32.mxu0 %vm506_vm0, %v417_v38  ;;  %v468_v38 = vld [vmem:[%s14195_s26 + $0x298] sm:$0xff] }
  0x53   : > { %12304 = vmatmul.mubr.msk.f32.gmra.mxu0 %vm506_vm0, %v418_v41  ;;  %v471_v41 = vld [vmem:[%s14195_s26 + $0x2b0] sm:$0xff] }
  0x54   : > { %12306 = vmatprep.mubr.msk.f32.mxu0 %vm506_vm0, %v419_v43  ;;  %v473_v43 = vld [vmem:[%s14195_s26 + $0x2c0] sm:$0xff] }
  0x57   : > { %12307 = vmatmul.mubr.msk.f32.gmra.mxu0 %vm506_vm0, %v420_v45  ;;  %v475_v45 = vld [vmem:[%s14195_s26 + $0x2d0] sm:$0xff] }
  0x58   : > { %12309 = vmatprep.mubr.msk.f32.mxu0 %vm506_vm0, %v421_v46  ;;  %v476_v46 = vld [vmem:[%s14195_s26 + $0x2d8] sm:$0xff] }
  0x5b   : > { %12310 = vmatmul.mubr.msk.f32.gmra.mxu0 %vm506_vm0, %v422_v49  ;;  %v479_v49 = vld [vmem:[%s14195_s26 + $0x2f0] sm:$0xff] }
  0x5c   : > { %12312 = vmatprep.mubr.msk.f32.mxu0 %vm506_vm0, %v423_v51  ;;  %v481_v51 = vld [vmem:[%s14195_s26 + $0x300] sm:$0xff] }
  0x5f   : > { %12313 = vmatmul.mubr.msk.f32.gmra.mxu0 %vm506_vm0, %v424_v54  ;;  %v483_v54 = vld [vmem:[%s14195_s26 + $0x310] sm:$0xff] }
  0x60   : > { %12315 = vmatprep.mubr.msk.f32.mxu0 %vm506_vm0, %v425_v56 }
  0x63   : > { %12316 = vmatmul.mubr.msk.f32.gmra.mxu0 %vm506_vm0, %v426_v58 }
  0x64   : > { %12318 = vmatprep.mubr.msk.f32.mxu0 %vm506_vm0, %v427_v60  ;;  %v485_v60 = vld [vmem:[%s14195_s26 + $0x320] sm:$0xff] }
  0x67   : > { %12319 = vmatmul.mubr.msk.f32.gmra.mxu0 %vm506_vm0, %v428_v62 }
  0x68   : > { %12321 = vmatprep.mubr.msk.f32.mxu0 %vm506_vm0, %v429_v63  ;;  %v486_v63 = vld [vmem:[%s14195_s26 + $0x328] sm:$0xff] }
  0x6b   : > { %12322 = vmatmul.mubr.msk.f32.gmra.mxu0 %vm506_vm0, %v430_v0 }
  0x6c   : > { %12324 = vmatprep.mubr.msk.f32.mxu0 %vm506_vm0, %v431_v1  ;;  %v487_v1 = vld [vmem:[%s14195_s26 + $0x330] sm:$0xff] }
  0x6f   : > { %12325 = vmatmul.mubr.msk.f32.gmra.mxu0 %vm506_vm0, %v432_v2 }
  0x70   : > { %12327 = vmatprep.mubr.msk.f32.mxu0 %vm506_vm0, %v433_v3 }
  0x73   : > { %12328 = vmatmul.mubr.msk.f32.gmra.mxu0 %vm506_vm0, %v434_v4 }
  0x74   : > { %12330 = vmatprep.mubr.msk.f32.mxu0 %vm506_vm0, %v435_v5 }
  0x77   : > { %12331 = vmatmul.mubr.msk.f32.gmra.mxu0 %vm506_vm0, %v436_v6 }
  0x78   : > { %12333 = vmatprep.mubr.msk.f32.mxu0 %vm506_vm0, %v437_v7  ;;  %v488_v7 = vld [vmem:[%s14195_s26 + $0x338] sm:$0xff]  ;;  %s384_s26 = scalar_lea.vmem %s18731_s11, %s9991_s28 }
  0x7b   : > { %12334 = vmatmul.mubr.msk.f32.gmra.mxu0 %vm506_vm0, %v438_v8 }
  0x7c   : > { %12336 = vmatprep.mubr.msk.f32.mxu0 %vm506_vm0, %v439_v9 }
  0x7f   : > { %12337 = vmatmul.mubr.msk.f32.gmra.mxu0 %vm506_vm0, %v440_v10 }
  0x80   : > { %12339 = vmatprep.mubr.msk.f32.mxu0 %vm506_vm0, %v441_v11 }
  0x83   : > { %12340 = vmatmul.mubr.msk.f32.gmra.mxu0 %vm506_vm0, %v442_v12 }
  0x84   : > { %12342 = vmatprep.mubr.msk.f32.mxu0 %vm506_vm0, %v443_v13  ;;  %v3100_v13 = vld [vmem:[%s18723_s3 + $0x50] sm:$0xff] }
  0x87   : > { %12343 = vmatmul.mubr.msk.f32.gmra.mxu0 %vm506_vm0, %v444_v14 }
  0x88   : > { %12345 = vmatprep.mubr.msk.f32.mxu0 %vm506_vm0, %v445_v15 }
  0x8b   : > { %12346 = vmatmul.mubr.msk.f32.gmra.mxu0 %vm506_vm0, %v446_v16 }
  0x8c   : > { %12348 = vmatprep.mubr.msk.f32.mxu0 %vm506_vm0, %v447_v17 }
  0x8f   : > { %12349 = vmatmul.mubr.msk.f32.gmra.mxu0 %vm506_vm0, %v448_v18 }
  0x90   : > { %12351 = vmatprep.mubr.msk.f32.mxu0 %vm506_vm0, %v449_v19 }
  0x93   : > { %12352 = vmatmul.mubr.msk.f32.gmra.mxu0 %vm506_vm0, %v450_v20 }
  0x94   : > { %12354 = vmatprep.mubr.msk.f32.mxu0 %vm506_vm0, %v451_v21 }
  0x97   : > { %12355 = vmatmul.mubr.msk.f32.gmra.mxu0 %vm506_vm0, %v452_v22 }
  0x98   : > { %12357 = vmatprep.mubr.msk.f32.mxu0 %vm506_vm0, %v453_v23 }
  0x9b   : > { %12358 = vmatmul.mubr.msk.f32.gmra.mxu0 %vm506_vm0, %v454_v24 }
  0x9c   : > { %12360 = vmatprep.mubr.msk.f32.mxu0 %vm506_vm0, %v455_v25 }
  0x9f   : > { %12361 = vmatmul.mubr.msk.f32.gmra.mxu0 %vm506_vm0, %v456_v26 }
  0xa0   : > { %12363 = vmatprep.mubr.msk.f32.mxu0 %vm506_vm0, %v457_v27 }
  0xa3   : > { %12364 = vmatmul.mubr.msk.f32.gmra.mxu0 %vm506_vm0, %v458_v28 }
  0xa4   : > { %12366 = vmatprep.mubr.msk.f32.mxu0 %vm506_vm0, %v459_v29 }
  0xa7   : > { %12367 = vmatmul.mubr.msk.f32.gmra.mxu0 %vm506_vm0, %v460_v30 }
  0xa8   : > { %12369 = vmatprep.mubr.msk.f32.mxu0 %vm506_vm0, %v461_v31 }
  0xab   : > { %12370 = vmatmul.mubr.msk.f32.gmra.mxu0 %vm506_vm0, %v462_v32 }
  0xac   : > { %12372 = vmatprep.mubr.msk.f32.mxu0 %vm506_vm0, %v463_v33 }
  0xaf   : > { %12373 = vmatmul.mubr.msk.f32.gmra.mxu0 %vm506_vm0, %v464_v34 }
  0xb0   : > { %12375 = vmatprep.mubr.msk.f32.mxu0 %vm506_vm0, %v465_v35 }
  0xb3   : > { %12376 = vmatmul.mubr.msk.f32.gmra.mxu0 %vm506_vm0, %v466_v36 }
  0xb4   : > { %12378 = vmatprep.mubr.msk.f32.mxu0 %vm506_vm0, %v467_v37 }
  0xb7   : > { %12379 = vmatmul.mubr.msk.f32.gmra.mxu0 %vm506_vm0, %v468_v38 }
  0xb8   : > { %12381 = vmatprep.mubr.msk.f32.mxu0 %vm506_vm0, %v469_v39 }
  0xbb   : > { %12382 = vmatmul.mubr.msk.f32.gmra.mxu0 %vm506_vm0, %v470_v40 }
  0xbc   : > { %12384 = vmatprep.mubr.msk.f32.mxu0 %vm506_vm0, %v471_v41 }
  0xbf   : > { %12385 = vmatmul.mubr.msk.f32.gmra.mxu0 %vm506_vm0, %v472_v42 }
  0xc0   : > { %12387 = vmatprep.mubr.msk.f32.mxu0 %vm506_vm0, %v473_v43 }
  0xc3   : > { %12388 = vmatmul.mubr.msk.f32.gmra.mxu0 %vm506_vm0, %v474_v44 }
  0xc4   : > { %12390 = vmatprep.mubr.msk.f32.mxu0 %vm506_vm0, %v475_v45 }
  0xc7   : > { %12391 = vmatmul.mubr.msk.f32.gmra.mxu0 %vm506_vm0, %v476_v46 }
  0xc8   : > { %12393 = vmatprep.mubr.msk.f32.mxu0 %vm506_vm0, %v477_v47 }
  0xcb   : > { %12394 = vmatmul.mubr.msk.f32.gmra.mxu0 %vm506_vm0, %v478_v48 }
  0xcc   : > { %12396 = vmatprep.mubr.msk.f32.mxu0 %vm506_vm0, %v479_v49 }
  0xcf   : > { %12397 = vmatmul.mubr.msk.f32.gmra.mxu0 %vm506_vm0, %v480_v50 }
  0xd0   : > { %12399 = vmatprep.mubr.msk.f32.mxu0 %vm506_vm0, %v481_v51 }
  0xd3   : > { %v12257_v55 = vpop.f32.mrf.mxu0  ;;  %12400 = vmatmul.mubr.msk.f32.gmra.mxu0 %vm506_vm0, %v482_v52 }
  0xd4   : > { %v915_v56 = vadd.f32 %v12257_v55, %v14441_v53  ;;  %12402 = vmatprep.mubr.msk.f32.mxu0 %vm506_vm0, %v483_v54 }
  0xd5   : > { %v909_v58 = vpop.f32.mrf.mxu0 }
  0xd6   : > { %v1469_v61 = vmax.f32 %v915_v56, 0.0  ;;  %v910_v2 = vadd.f32 %v14441_v53, %v909_v58 }
  0xd7   : > { %v12260_v62 = vpop.f32.mrf.mxu0  ;;  %12403 = vmatmul.mubr.msk.f32.gmra.mxu0 %vm506_vm0, %v484_v57 }
  0xd8   : > { %12431 = vmatprep.mubr.msk.f32.mxu1 %vm1588_vm1, %v1469_v61  ;;  %12405 = vmatprep.mubr.msk.f32.mxu0 %vm506_vm0, %v485_v60  ;;  %v925_v3 = vadd.f32 %v12260_v62, %v14441_v53  ;;  %v1468_v10 = vmax.f32 %v910_v2, 0.0 }
  0xd9   : > { %v919_v0 = vpop.f32.mrf.mxu0 }
  0xda   : > { %v920_v4 = vadd.f32 %v14441_v53, %v919_v0  ;;  %v14463_v11 = vmax.f32 %v925_v3, 0.0 }
  0xdb   : > { %v12263_v5 = vpop.f32.mrf.mxu0  ;;  %12406 = vmatmul.mubr.msk.f32.gmra.mxu0 %vm506_vm0, %v486_v63 }
  0xdc   : > { %v14458_v6 = vmax.f32 %v920_v4, 0.0  ;;  %12408 = vmatprep.mubr.msk.f32.mxu0 %vm506_vm0, %v487_v1  ;;  %v935_v8 = vadd.f32 %v12263_v5, %v14441_v53 }
  0xdd   : > { %v929_v9 = vpop.f32.mrf.mxu0 }
  0xde   : > { %v930_v12 = vadd.f32 %v14441_v53, %v929_v9  ;;  %12432 = vmatmul.mubr.msk.f32.vlgmr.msra.gmra.mxu1 %vm1588_vm1, %v14458_v6  ;;  %v14478_v16 = vmax.f32 %v935_v8, 0.0 }
  0xdf   : > { %12776 = vmatpush3.msra.mxu1 %v14320_v59  ;;  %v12266_v14 = vpop.f32.mrf.mxu0  ;;  %12409 = vmatmul.mubr.msk.f32.gmra.mxu0 %vm506_vm0, %v488_v7  ;;  %v3099_v59 = vld [vmem:[%s18723_s3 + $0x48] sm:$0xff] }
  0xe0   : > { %v14473_v15 = vmax.f32 %v930_v12, 0.0  ;;  %12434 = vmatprep.mubr.msk.f32.mxu1 %vm1588_vm1, %v14463_v11  ;;  %12607 = vmatprep.mubr.msk.f32.mxu0 %vm1588_vm1, %v1468_v10  ;;  %v945_v17 = vadd.f32 %v12266_v14, %v14441_v53 }
  0xe1   : > { %v939_v18 = vpop.f32.mrf.mxu0  ;;  %12777 = vmatprep.subr.mxu1 %v3100_v13 }
  0xe2   : > { %v940_v19 = vadd.f32 %v14441_v53, %v939_v18  ;;  %12435 = vmatmul.mubr.msk.f32.gmra.mxu1 %vm1588_vm1, %v14473_v15  ;;  %v14494_v22 = vmax.f32 %v945_v17, 0.0  ;;  %v3098_v18 = vld [vmem:[%s18723_s3 + $0x40] sm:$0xff] }
  0xe3   : > { %v12269_v20 = vpop.f32.mrf.mxu0  ;;  %12437 = vmatprep.mubr.msk.f32.mxu1 %vm1588_vm1, %v14478_v16  ;;  %12608 = vmatmul.mubr.msk.f32.vlgmr.msra.gmra.mxu0 %vm1588_vm1, %v1469_v61 }
  0xe4   : > { %v14490_v21 = vmax.f32 %v940_v19, 0.0  ;;  %12610 = vmatprep.mubr.msk.f32.mxu0 %vm1588_vm1, %v14458_v6  ;;  %12778 = vmatpush3.msra.mxu1 %v3100_v13  ;;  %v955_v23 = vadd.f32 %v12269_v20, %v14441_v53 }
  0xe5   : > { %v949_v24 = vpop.f32.mrf.mxu0  ;;  %12779 = vmatprep.subr.mxu1 %v3099_v59 }
  0xe6   : > { %v950_v25 = vadd.f32 %v14441_v53, %v949_v24  ;;  %12438 = vmatmul.mubr.msk.f32.gmra.mxu1 %vm1588_vm1, %v14490_v21  ;;  %v14508_v28 = vmax.f32 %v955_v23, 0.0 }
  0xe7   : > { %v12272_v26 = vpop.f32.mrf.mxu0  ;;  %12440 = vmatprep.mubr.msk.f32.mxu1 %vm1588_vm1, %v14494_v22  ;;  %12611 = vmatmul.mubr.msk.f32.gmra.mxu0 %vm1588_vm1, %v14463_v11 }
  0xe8   : > { %v14504_v27 = vmax.f32 %v950_v25, 0.0  ;;  %12613 = vmatprep.mubr.msk.f32.mxu0 %vm1588_vm1, %v14473_v15  ;;  %12780 = vmatpush3.msra.mxu1 %v3099_v59  ;;  %v965_v29 = vadd.f32 %v12272_v26, %v14441_v53 }
  0xe9   : > { %v959_v30 = vpop.f32.mrf.mxu0  ;;  %12781 = vmatprep.subr.mxu1 %v3098_v18 }
  0xea   : > { %v960_v31 = vadd.f32 %v14441_v53, %v959_v30  ;;  %12441 = vmatmul.mubr.msk.f32.gmra.mxu1 %vm1588_vm1, %v14504_v27  ;;  %v14522_v34 = vmax.f32 %v965_v29, 0.0 }
  0xeb   : > { %v12275_v32 = vpop.f32.mrf.mxu0  ;;  %12443 = vmatprep.mubr.msk.f32.mxu1 %vm1588_vm1, %v14508_v28  ;;  %12614 = vmatmul.mubr.msk.f32.gmra.mxu0 %vm1588_vm1, %v14478_v16 }
  0xec   : > { %v14518_v33 = vmax.f32 %v960_v31, 0.0  ;;  %12616 = vmatprep.mubr.msk.f32.mxu0 %vm1588_vm1, %v14490_v21  ;;  %v975_v35 = vadd.f32 %v12275_v32, %v14441_v53  ;;  %12782 = vmatpush3.msra.mxu1 %v3098_v18 }
  0xed   : > { %v969_v36 = vpop.f32.mrf.mxu0 }
  0xee   : > { %v970_v37 = vadd.f32 %v14441_v53, %v969_v36  ;;  %12444 = vmatmul.mubr.msk.f32.gmra.mxu1 %vm1588_vm1, %v14518_v33  ;;  %v14536_v40 = vmax.f32 %v975_v35, 0.0 }
  0xef   : > { %v12278_v38 = vpop.f32.mrf.mxu0  ;;  %12446 = vmatprep.mubr.msk.f32.mxu1 %vm1588_vm1, %v14522_v34  ;;  %12617 = vmatmul.mubr.msk.f32.gmra.mxu0 %vm1588_vm1, %v14494_v22 }
  0xf0   : > { %v14532_v39 = vmax.f32 %v970_v37, 0.0  ;;  %12619 = vmatprep.mubr.msk.f32.mxu0 %vm1588_vm1, %v14504_v27  ;;  %v985_v41 = vadd.f32 %v12278_v38, %v14441_v53 }
  0xf1   : > { %v979_v42 = vpop.f32.mrf.mxu0 }
  0xf2   : > { %v980_v43 = vadd.f32 %v14441_v53, %v979_v42  ;;  %12447 = vmatmul.mubr.msk.f32.gmra.mxu1 %vm1588_vm1, %v14532_v39  ;;  %v14550_v46 = vmax.f32 %v985_v41, 0.0 }
  0xf3   : > { %v12281_v44 = vpop.f32.mrf.mxu0  ;;  %12449 = vmatprep.mubr.msk.f32.mxu1 %vm1588_vm1, %v14536_v40  ;;  %12620 = vmatmul.mubr.msk.f32.gmra.mxu0 %vm1588_vm1, %v14508_v28 }
  0xf4   : > { %v14546_v45 = vmax.f32 %v980_v43, 0.0  ;;  %12622 = vmatprep.mubr.msk.f32.mxu0 %vm1588_vm1, %v14518_v33  ;;  %v995_v47 = vadd.f32 %v12281_v44, %v14441_v53 }
  0xf5   : > { %v989_v48 = vpop.f32.mrf.mxu0 }
  0xf6   : > { %v990_v49 = vadd.f32 %v14441_v53, %v989_v48  ;;  %12450 = vmatmul.mubr.msk.f32.gmra.mxu1 %vm1588_vm1, %v14546_v45  ;;  %v14564_v52 = vmax.f32 %v995_v47, 0.0 }
  0xf7   : > { %v12284_v50 = vpop.f32.mrf.mxu0  ;;  %12452 = vmatprep.mubr.msk.f32.mxu1 %vm1588_vm1, %v14550_v46  ;;  %12623 = vmatmul.mubr.msk.f32.gmra.mxu0 %vm1588_vm1, %v14522_v34 }
  0xf8   : > { %v14560_v51 = vmax.f32 %v990_v49, 0.0  ;;  %12625 = vmatprep.mubr.msk.f32.mxu0 %vm1588_vm1, %v14532_v39  ;;  %v1005_v54 = vadd.f32 %v12284_v50, %v14441_v53 }
  0xf9   : > { %v999_v55 = vpop.f32.mrf.mxu0 }
  0xfa   : > { %v1000_v56 = vadd.f32 %v14441_v53, %v999_v55  ;;  %12453 = vmatmul.mubr.msk.f32.gmra.mxu1 %vm1588_vm1, %v14560_v51  ;;  %v14578_v60 = vmax.f32 %v1005_v54, 0.0 }
  0xfb   : > { %v12287_v57 = vpop.f32.mrf.mxu0  ;;  %12455 = vmatprep.mubr.msk.f32.mxu1 %vm1588_vm1, %v14564_v52  ;;  %12626 = vmatmul.mubr.msk.f32.gmra.mxu0 %vm1588_vm1, %v14536_v40 }
  0xfc   : > { %v14574_v58 = vmax.f32 %v1000_v56, 0.0  ;;  %12628 = vmatprep.mubr.msk.f32.mxu0 %vm1588_vm1, %v14546_v45  ;;  %v1015_v61 = vadd.f32 %v12287_v57, %v14441_v53 }
  0xfd   : > { %v1009_v62 = vpop.f32.mrf.mxu0 }
  0xfe   : > { %v1010_v63 = vadd.f32 %v14441_v53, %v1009_v62  ;;  %12456 = vmatmul.mubr.msk.f32.gmra.mxu1 %vm1588_vm1, %v14574_v58  ;;  %v14592_v2 = vmax.f32 %v1015_v61, 0.0 }
  0xff   : > { %v12290_v0 = vpop.f32.mrf.mxu0  ;;  %12458 = vmatprep.mubr.msk.f32.mxu1 %vm1588_vm1, %v14578_v60  ;;  %12629 = vmatmul.mubr.msk.f32.gmra.mxu0 %vm1588_vm1, %v14550_v46 }
 0x100   : > { %v14588_v1 = vmax.f32 %v1010_v63, 0.0  ;;  %12631 = vmatprep.mubr.msk.f32.mxu0 %vm1588_vm1, %v14560_v51  ;;  %v1025_v3 = vadd.f32 %v12290_v0, %v14441_v53 }
 0x101   : > { %v1019_v4 = vpop.f32.mrf.mxu0 }
 0x102   : > { %v1020_v5 = vadd.f32 %v14441_v53, %v1019_v4  ;;  %12459 = vmatmul.mubr.msk.f32.gmra.mxu1 %vm1588_vm1, %v14588_v1  ;;  %v14606_v9 = vmax.f32 %v1025_v3, 0.0 }
 0x103   : > { %v12293_v7 = vpop.f32.mrf.mxu0  ;;  %12461 = vmatprep.mubr.msk.f32.mxu1 %vm1588_vm1, %v14592_v2  ;;  %12632 = vmatmul.mubr.msk.f32.gmra.mxu0 %vm1588_vm1, %v14564_v52 }
 0x104   : > { %v14602_v8 = vmax.f32 %v1020_v5, 0.0  ;;  %12634 = vmatprep.mubr.msk.f32.mxu0 %vm1588_vm1, %v14574_v58  ;;  %v1035_v10 = vadd.f32 %v12293_v7, %v14441_v53 }
 0x105   : > { %v1029_v12 = vpop.f32.mrf.mxu0 }
 0x106   : > { %19065 = vst [vmem:[#allocation2_spill] sm:$0xff] %v14602_v8  ;;  %v1030_v13 = vadd.f32 %v14441_v53, %v1029_v12  ;;  %12462 = vmatmul.mubr.msk.f32.gmra.mxu1 %vm1588_vm1, %v14602_v8  ;;  %v14623_v19 = vmax.f32 %v1035_v10, 0.0 }
 0x107   : > { %v12296_v14 = vpop.f32.mrf.mxu0  ;;  %12464 = vmatprep.mubr.msk.f32.mxu1 %vm1588_vm1, %v14606_v9  ;;  %12635 = vmatmul.mubr.msk.f32.gmra.mxu0 %vm1588_vm1, %v14578_v60 }
 0x108   : > { %v14616_v17 = vmax.f32 %v1030_v13, 0.0  ;;  %12637 = vmatprep.mubr.msk.f32.mxu0 %vm1588_vm1, %v14588_v1  ;;  %19067 = vst [vmem:[#allocation4_spill] sm:$0xff] %v14623_v19  ;;  %v1045_v59 = vadd.f32 %v12296_v14, %v14441_v53 }
 0x109   : > { %v1039_v20 = vpop.f32.mrf.mxu0 }
 0x10a   : > { %19066 = vst [vmem:[#allocation3_spill] sm:$0xff] %v14616_v17  ;;  %v1040_v23 = vadd.f32 %v14441_v53, %v1039_v20  ;;  %12465 = vmatmul.mubr.msk.f32.gmra.mxu1 %vm1588_vm1, %v14616_v17  ;;  %v14637_v26 = vmax.f32 %v1045_v59, 0.0 }
 0x10b   : > { %v12299_v24 = vpop.f32.mrf.mxu0  ;;  %12467 = vmatprep.mubr.msk.f32.mxu1 %vm1588_vm1, %v14623_v19  ;;  %12638 = vmatmul.mubr.msk.f32.gmra.mxu0 %vm1588_vm1, %v14592_v2 }
 0x10c   : > { %v14633_v25 = vmax.f32 %v1040_v23, 0.0  ;;  %12640 = vmatprep.mubr.msk.f32.mxu0 %vm1588_vm1, %v14602_v8  ;;  %19069 = vst [vmem:[#allocation6_spill] sm:$0xff] %v14637_v26  ;;  %v1055_v29 = vadd.f32 %v12299_v24, %v14441_v53 }
 0x10d   : > { %v1049_v30 = vpop.f32.mrf.mxu0 }
 0x10e   : > { %19068 = vst [vmem:[#allocation5_spill] sm:$0xff] %v14633_v25  ;;  %v1050_v31 = vadd.f32 %v14441_v53, %v1049_v30  ;;  %12468 = vmatmul.mubr.msk.f32.gmra.mxu1 %vm1588_vm1, %v14633_v25  ;;  %v14651_v36 = vmax.f32 %v1055_v29, 0.0 }
 0x10f   : > { %v12302_v32 = vpop.f32.mrf.mxu0  ;;  %12470 = vmatprep.mubr.msk.f32.mxu1 %vm1588_vm1, %v14637_v26  ;;  %12641 = vmatmul.mubr.msk.f32.gmra.mxu0 %vm1588_vm1, %v14606_v9 }
 0x110   : > { %v14647_v35 = vmax.f32 %v1050_v31, 0.0  ;;  %12643 = vmatprep.mubr.msk.f32.mxu0 %vm1588_vm1, %v14616_v17  ;;  %19071 = vst [vmem:[#allocation8_spill] sm:$0xff] %v14651_v36  ;;  %v1065_v37 = vadd.f32 %v12302_v32, %v14441_v53 }
 0x111   : > { %v1059_v38 = vpop.f32.mrf.mxu0 }
 0x112   : > { %19070 = vst [vmem:[#allocation7_spill] sm:$0xff] %v14647_v35  ;;  %v1060_v41 = vadd.f32 %v14441_v53, %v1059_v38  ;;  %12471 = vmatmul.mubr.msk.f32.gmra.mxu1 %vm1588_vm1, %v14647_v35  ;;  %v14665_v44 = vmax.f32 %v1065_v37, 0.0 }
 0x113   : > { %v12305_v42 = vpop.f32.mrf.mxu0  ;;  %12473 = vmatprep.mubr.msk.f32.mxu1 %vm1588_vm1, %v14651_v36  ;;  %12644 = vmatmul.mubr.msk.f32.gmra.mxu0 %vm1588_vm1, %v14623_v19 }
 0x114   : > { %v14661_v43 = vmax.f32 %v1060_v41, 0.0  ;;  %12646 = vmatprep.mubr.msk.f32.mxu0 %vm1588_vm1, %v14633_v25  ;;  %19073 = vst [vmem:[#allocation10_spill] sm:$0xff] %v14665_v44  ;;  %v1075_v47 = vadd.f32 %v12305_v42, %v14441_v53 }
 0x115   : > { %v1069_v48 = vpop.f32.mrf.mxu0 }
 0x116   : > { %19072 = vst [vmem:[#allocation9_spill] sm:$0xff] %v14661_v43  ;;  %v1070_v49 = vadd.f32 %v14441_v53, %v1069_v48  ;;  %12474 = vmatmul.mubr.msk.f32.gmra.mxu1 %vm1588_vm1, %v14661_v43  ;;  %v14679_v55 = vmax.f32 %v1075_v47, 0.0 }
 0x117   : > { %v12308_v50 = vpop.f32.mrf.mxu0  ;;  %12476 = vmatprep.mubr.msk.f32.mxu1 %vm1588_vm1, %v14665_v44  ;;  %12647 = vmatmul.mubr.msk.f32.gmra.mxu0 %vm1588_vm1, %v14637_v26 }
 0x118   : > { %v14675_v54 = vmax.f32 %v1070_v49, 0.0  ;;  %12649 = vmatprep.mubr.msk.f32.mxu0 %vm1588_vm1, %v14647_v35  ;;  %19075 = vst [vmem:[#allocation12_spill] sm:$0xff] %v14679_v55  ;;  %v1085_v56 = vadd.f32 %v12308_v50, %v14441_v53 }
 0x119   : > { %v1079_v57 = vpop.f32.mrf.mxu0 }
 0x11a   : > { %19074 = vst [vmem:[#allocation11_spill] sm:$0xff] %v14675_v54  ;;  %v1080_v61 = vadd.f32 %v14441_v53, %v1079_v57  ;;  %12477 = vmatmul.mubr.msk.f32.gmra.mxu1 %vm1588_vm1, %v14675_v54  ;;  %v14693_v0 = vmax.f32 %v1085_v56, 0.0 }
 0x11b   : > { %v12311_v62 = vpop.f32.mrf.mxu0  ;;  %12479 = vmatprep.mubr.msk.f32.mxu1 %vm1588_vm1, %v14679_v55  ;;  %12650 = vmatmul.mubr.msk.f32.gmra.mxu0 %vm1588_vm1, %v14651_v36 }
 0x11c   : > { %v14689_v63 = vmax.f32 %v1080_v61, 0.0  ;;  %12652 = vmatprep.mubr.msk.f32.mxu0 %vm1588_vm1, %v14661_v43  ;;  %19077 = vst [vmem:[#allocation14_spill] sm:$0xff] %v14693_v0  ;;  %v1095_v3 = vadd.f32 %v12311_v62, %v14441_v53 }
 0x11d   : > { %v1089_v4 = vpop.f32.mrf.mxu0 }
 0x11e   : > { %19076 = vst [vmem:[#allocation13_spill] sm:$0xff] %v14689_v63  ;;  %v1090_v5 = vadd.f32 %v14441_v53, %v1089_v4  ;;  %12480 = vmatmul.mubr.msk.f32.gmra.mxu1 %vm1588_vm1, %v14689_v63  ;;  %v14707_v12 = vmax.f32 %v1095_v3, 0.0 }
 0x11f   : > { %v12314_v7 = vpop.f32.mrf.mxu0  ;;  %12482 = vmatprep.mubr.msk.f32.mxu1 %vm1588_vm1, %v14693_v0  ;;  %12653 = vmatmul.mubr.msk.f32.gmra.mxu0 %vm1588_vm1, %v14665_v44 }
 0x120   : > { %v14703_v10 = vmax.f32 %v1090_v5, 0.0  ;;  %12655 = vmatprep.mubr.msk.f32.mxu0 %vm1588_vm1, %v14675_v54  ;;  %19079 = vst [vmem:[#allocation16_spill] sm:$0xff] %v14707_v12  ;;  %v1105_v13 = vadd.f32 %v12314_v7, %v14441_v53 }
 0x121   : > { %v1099_v14 = vpop.f32.mrf.mxu0 }
 0x122   : > { %19078 = vst [vmem:[#allocation15_spill] sm:$0xff] %v14703_v10  ;;  %v1100_v18 = vadd.f32 %v14441_v53, %v1099_v14  ;;  %12483 = vmatmul.mubr.msk.f32.gmra.mxu1 %vm1588_vm1, %v14703_v10  ;;  %v14721_v23 = vmax.f32 %v1105_v13, 0.0 }
 0x123   : > { %v12317_v59 = vpop.f32.mrf.mxu0  ;;  %12485 = vmatprep.mubr.msk.f32.mxu1 %vm1588_vm1, %v14707_v12  ;;  %12656 = vmatmul.mubr.msk.f32.gmra.mxu0 %vm1588_vm1, %v14679_v55 }
 0x124   : > { %v14717_v20 = vmax.f32 %v1100_v18, 0.0  ;;  %12658 = vmatprep.mubr.msk.f32.mxu0 %vm1588_vm1, %v14689_v63  ;;  %19081 = vst [vmem:[#allocation18_spill] sm:$0xff] %v14721_v23  ;;  %v1115_v24 = vadd.f32 %v12317_v59, %v14441_v53 }
 0x125   : > { %v1109_v29 = vpop.f32.mrf.mxu0 }
 0x126   : > { %19080 = vst [vmem:[#allocation17_spill] sm:$0xff] %v14717_v20  ;;  %v1110_v30 = vadd.f32 %v14441_v53, %v1109_v29  ;;  %12486 = vmatmul.mubr.msk.f32.gmra.mxu1 %vm1588_vm1, %v14717_v20  ;;  %v14735_v37 = vmax.f32 %v1115_v24, 0.0 }
 0x127   : > { %v12320_v31 = vpop.f32.mrf.mxu0  ;;  %12488 = vmatprep.mubr.msk.f32.mxu1 %vm1588_vm1, %v14721_v23  ;;  %12659 = vmatmul.mubr.msk.f32.gmra.mxu0 %vm1588_vm1, %v14693_v0 }
 0x128   : > { %v14731_v32 = vmax.f32 %v1110_v30, 0.0  ;;  %12661 = vmatprep.mubr.msk.f32.mxu0 %vm1588_vm1, %v14703_v10  ;;  %19083 = vst [vmem:[#allocation20_spill] sm:$0xff] %v14735_v37  ;;  %v1125_v38 = vadd.f32 %v12320_v31, %v14441_v53 }
 0x129   : > { %v1119_v41 = vpop.f32.mrf.mxu0 }
 0x12a   : > { %19082 = vst [vmem:[#allocation19_spill] sm:$0xff] %v14731_v32  ;;  %v1120_v42 = vadd.f32 %v14441_v53, %v1119_v41  ;;  %12489 = vmatmul.mubr.msk.f32.gmra.mxu1 %vm1588_vm1, %v14731_v32  ;;  %v14749_v49 = vmax.f32 %v1125_v38, 0.0 }
 0x12b   : > { %v12323_v47 = vpop.f32.mrf.mxu0  ;;  %12491 = vmatprep.mubr.msk.f32.mxu1 %vm1588_vm1, %v14735_v37  ;;  %12662 = vmatmul.mubr.msk.f32.gmra.mxu0 %vm1588_vm1, %v14707_v12 }
 0x12c   : > { %v14745_v48 = vmax.f32 %v1120_v42, 0.0  ;;  %12664 = vmatprep.mubr.msk.f32.mxu0 %vm1588_vm1, %v14717_v20  ;;  %19085 = vst [vmem:[#allocation22_spill] sm:$0xff] %v14749_v49  ;;  %v1135_v50 = vadd.f32 %v12323_v47, %v14441_v53 }
 0x12d   : > { %v1129_v56 = vpop.f32.mrf.mxu0 }
 0x12e   : > { %19084 = vst [vmem:[#allocation21_spill] sm:$0xff] %v14745_v48  ;;  %v1130_v57 = vadd.f32 %v14441_v53, %v1129_v56  ;;  %12492 = vmatmul.mubr.msk.f32.gmra.mxu1 %vm1588_vm1, %v14745_v48  ;;  %v14763_v3 = vmax.f32 %v1135_v50, 0.0  ;;  %v3762_v56 = vld [vmem:[%s18723_s3 + $0x78] sm:$0xff] }
 0x12f   : > { %v12326_v61 = vpop.f32.mrf.mxu0  ;;  %12494 = vmatprep.mubr.msk.f32.mxu1 %vm1588_vm1, %v14749_v49  ;;  %12665 = vmatmul.mubr.msk.f32.gmra.mxu0 %vm1588_vm1, %v14721_v23 }
 0x130   : > { %v14759_v62 = vmax.f32 %v1130_v57, 0.0  ;;  %12667 = vmatprep.mubr.msk.f32.mxu0 %vm1588_vm1, %v14731_v32  ;;  %19087 = vst [vmem:[#allocation24_spill] sm:$0xff] %v14763_v3  ;;  %v1145_v4 = vadd.f32 %v12326_v61, %v14441_v53  ;;  %12951 = vmatprep.subr.mxu0 %v3762_v56 }
 0x131   : > { %v1139_v5 = vpop.f32.mrf.mxu0  ;;  %12952 = vmatpush3.msra.mxu0 %v3762_v56  ;;  %v3759_v56 = vld [vmem:[%s18723_s3 + $0x60] sm:$0xff] }
 0x132   : > { %19086 = vst [vmem:[#allocation23_spill] sm:$0xff] %v14759_v62  ;;  %v1140_v7 = vadd.f32 %v14441_v53, %v1139_v5  ;;  %12495 = vmatmul.mubr.msk.f32.gmra.mxu1 %vm1588_vm1, %v14759_v62  ;;  %v14777_v18 = vmax.f32 %v1145_v4, 0.0 }
 0x133   : > { %v12329_v13 = vpop.f32.mrf.mxu0  ;;  %12497 = vmatprep.mubr.msk.f32.mxu1 %vm1588_vm1, %v14763_v3  ;;  %12668 = vmatmul.mubr.msk.f32.gmra.mxu0 %vm1588_vm1, %v14735_v37 }
 0x134   : > { %v14773_v14 = vmax.f32 %v1140_v7, 0.0  ;;  %12670 = vmatprep.mubr.msk.f32.mxu0 %vm1588_vm1, %v14745_v48  ;;  %19089 = vst [vmem:[#allocation26_spill] sm:$0xff] %v14777_v18  ;;  %v1155_v59 = vadd.f32 %v12329_v13, %v14441_v53  ;;  %v3761_v7 = vld [vmem:[%s18723_s3 + $0x70] sm:$0xff] }
 0x135   : > { %v1149_v24 = vpop.f32.mrf.mxu0  ;;  %12953 = vmatprep.subr.mxu0 %v3761_v7 }
 0x136   : > { %19088 = vst [vmem:[#allocation25_spill] sm:$0xff] %v14773_v14  ;;  %v1150_v29 = vadd.f32 %v14441_v53, %v1149_v24  ;;  %12498 = vmatmul.mubr.msk.f32.gmra.mxu1 %vm1588_vm1, %v14773_v14  ;;  %v14791_v38 = vmax.f32 %v1155_v59, 0.0  ;;  %v14820_v59 = vld [vmem:[%s18723_s3 + $0x98] sm:$0xff]  ;;  %12954 = vmatpush3.msra.mxu0 %v3761_v7 }
 0x137   : > { %v12332_v30 = vpop.f32.mrf.mxu0  ;;  %12500 = vmatprep.mubr.msk.f32.mxu1 %vm1588_vm1, %v14777_v18  ;;  %12671 = vmatmul.mubr.msk.f32.gmra.mxu0 %vm1588_vm1, %v14749_v49 }
 0x138   : > { %v14787_v31 = vmax.f32 %v1150_v29, 0.0  ;;  %12673 = vmatprep.mubr.msk.f32.mxu0 %vm1588_vm1, %v14759_v62  ;;  %19091 = vst [vmem:[#allocation28_spill] sm:$0xff] %v14791_v38  ;;  %v1165_v41 = vadd.f32 %v12332_v30, %v14441_v53  ;;  %v3760_v29 = vld [vmem:[%s18723_s3 + $0x68] sm:$0xff]  ;;  %13127 = vmatprep.subr.mxu1 %v14820_v59 }
 0x139   : > { %v1159_v42 = vpop.f32.mrf.mxu0  ;;  %12955 = vmatprep.subr.mxu0 %v3760_v29 }
 0x13a   : > { %19090 = vst [vmem:[#allocation27_spill] sm:$0xff] %v14787_v31  ;;  %v1160_v47 = vadd.f32 %v14441_v53, %v1159_v42  ;;  %12501 = vmatmul.mubr.msk.f32.gmra.mxu1 %vm1588_vm1, %v14787_v31  ;;  %v14808_v61 = vmax.f32 %v1165_v41, 0.0  ;;  %12956 = vmatpush3.msra.mxu0 %v3760_v29 }
 0x13b   : > { %v12335_v50 = vpop.f32.mrf.mxu0  ;;  %12503 = vmatprep.mubr.msk.f32.mxu1 %vm1588_vm1, %v14791_v38  ;;  %12674 = vmatmul.mubr.msk.f32.gmra.mxu0 %vm1588_vm1, %v14763_v3 }
 0x13c   : > { %v14804_v57 = vmax.f32 %v1160_v47, 0.0  ;;  %12676 = vmatprep.mubr.msk.f32.mxu0 %vm1588_vm1, %v14773_v14  ;;  %19093 = vst [vmem:[#allocation30_spill] sm:$0xff] %v14808_v61  ;;  %v1175_v4 = vadd.f32 %v12335_v50, %v14441_v53  ;;  %12957 = vmatprep.subr.mxu0 %v3759_v56 }
 0x13d   : > { %v1169_v5 = vpop.f32.mrf.mxu0  ;;  %12958 = vmatpush3.msra.mxu0 %v3759_v56 }
 0x13e   : > { %19092 = vst [vmem:[#allocation29_spill] sm:$0xff] %v14804_v57  ;;  %v1170_v13 = vadd.f32 %v14441_v53, %v1169_v5  ;;  %12504 = vmatmul.mubr.msk.f32.gmra.mxu1 %vm1588_vm1, %v14804_v57  ;;  %v14834_v41 = vmax.f32 %v1175_v4, 0.0 }
 0x13f   : > { %v12338_v24 = vpop.f32.mrf.mxu0  ;;  %12506 = vmatprep.mubr.msk.f32.mxu1 %vm1588_vm1, %v14808_v61  ;;  %12677 = vmatmul.mubr.msk.f32.gmra.mxu0 %vm1588_vm1, %v14777_v18 }
 0x140   : > { %v14829_v30 = vmax.f32 %v1170_v13, 0.0  ;;  %12679 = vmatprep.mubr.msk.f32.mxu0 %vm1588_vm1, %v14787_v31  ;;  %19095 = vst [vmem:[#allocation32_spill] sm:$0xff] %v14834_v41  ;;  %v1185_v42 = vadd.f32 %v12338_v24, %v14441_v53 }
 0x141   : > { %v1179_v47 = vpop.f32.mrf.mxu0 }
 0x142   : > { %19094 = vst [vmem:[#allocation31_spill] sm:$0xff] %v14829_v30  ;;  %v1180_v50 = vadd.f32 %v14441_v53, %v1179_v47  ;;  %12507 = vmatmul.mubr.msk.f32.gmra.mxu1 %vm1588_vm1, %v14829_v30  ;;  %v14851_v7 = vmax.f32 %v1185_v42, 0.0 }
 0x143   : > { %v12341_v5 = vpop.f32.mrf.mxu0  ;;  %12509 = vmatprep.mubr.msk.f32.mxu1 %vm1588_vm1, %v14834_v41  ;;  %12680 = vmatmul.mubr.msk.f32.gmra.mxu0 %vm1588_vm1, %v14791_v38 }
 0x144   : > { %v14847_v4 = vmax.f32 %v1180_v50, 0.0  ;;  %12682 = vmatprep.mubr.msk.f32.mxu0 %vm1588_vm1, %v14804_v57  ;;  %19097 = vst [vmem:[#allocation34_spill] sm:$0xff] %v14851_v7  ;;  %v1195_v13 = vadd.f32 %v12341_v5, %v14441_v53 }
 0x145   : > { %v1189_v24 = vpop.f32.mrf.mxu0 }
 0x146   : > { %19096 = vst [vmem:[#allocation33_spill] sm:$0xff] %v14847_v4  ;;  %v1190_v47 = vadd.f32 %v14441_v53, %v1189_v24  ;;  %12510 = vmatmul.mubr.msk.f32.gmra.mxu1 %vm1588_vm1, %v14847_v4  ;;  %v14865_v42 = vmax.f32 %v1195_v13, 0.0 }
 0x147   : > { %v12344_v31 = vpop.f32.mrf.mxu0  ;;  %12512 = vmatprep.mubr.msk.f32.mxu1 %vm1588_vm1, %v14851_v7  ;;  %12683 = vmatmul.mubr.msk.f32.gmra.mxu0 %vm1588_vm1, %v14808_v61 }
 0x148   : > { %v14861_v29 = vmax.f32 %v1190_v47, 0.0  ;;  %12685 = vmatprep.mubr.msk.f32.mxu0 %vm1588_vm1, %v14829_v30  ;;  %19099 = vst [vmem:[#allocation36_spill] sm:$0xff] %v14865_v42  ;;  %v1205_v50 = vadd.f32 %v12344_v31, %v14441_v53 }
 0x149   : > { %v1199_v5 = vpop.f32.mrf.mxu0 }
 0x14a   : > { %19098 = vst [vmem:[#allocation35_spill] sm:$0xff] %v14861_v29  ;;  %v1200_v24 = vadd.f32 %v14441_v53, %v1199_v5  ;;  %12513 = vmatmul.mubr.msk.f32.gmra.mxu1 %vm1588_vm1, %v14861_v29  ;;  %v14879_v13 = vmax.f32 %v1205_v50, 0.0 }
 0x14b   : > { %v12347_v56 = vpop.f32.mrf.mxu0  ;;  %12515 = vmatprep.mubr.msk.f32.mxu1 %vm1588_vm1, %v14865_v42  ;;  %12686 = vmatmul.mubr.msk.f32.gmra.mxu0 %vm1588_vm1, %v14834_v41 }
 0x14c   : > { %v14875_v47 = vmax.f32 %v1200_v24, 0.0  ;;  %12688 = vmatprep.mubr.msk.f32.mxu0 %vm1588_vm1, %v14847_v4  ;;  %19101 = vst [vmem:[#allocation38_spill] sm:$0xff] %v14879_v13  ;;  %v1215_v31 = vadd.f32 %v12347_v56, %v14441_v53 }
 0x14d   : > { %v1209_v5 = vpop.f32.mrf.mxu0 }
 0x14e   : > { %19100 = vst [vmem:[#allocation37_spill] sm:$0xff] %v14875_v47  ;;  %v1210_v30 = vadd.f32 %v14441_v53, %v1209_v5  ;;  %12516 = vmatmul.mubr.msk.f32.gmra.mxu1 %vm1588_vm1, %v14875_v47  ;;  %v14893_v50 = vmax.f32 %v1215_v31, 0.0 }
 0x14f   : > { %v12350_v61 = vpop.f32.mrf.mxu0  ;;  %12518 = vmatprep.mubr.msk.f32.mxu1 %vm1588_vm1, %v14879_v13  ;;  %12689 = vmatmul.mubr.msk.f32.gmra.mxu0 %vm1588_vm1, %v14851_v7 }
 0x150   : > { %v14889_v24 = vmax.f32 %v1210_v30, 0.0  ;;  %12691 = vmatprep.mubr.msk.f32.mxu0 %vm1588_vm1, %v14861_v29  ;;  %19103 = vst [vmem:[#allocation40_spill] sm:$0xff] %v14893_v50  ;;  %v1225_v56 = vadd.f32 %v12350_v61, %v14441_v53 }
 0x151   : > { %v1219_v5 = vpop.f32.mrf.mxu0 }
 0x152   : > { %19102 = vst [vmem:[#allocation39_spill] sm:$0xff] %v14889_v24  ;;  %v1220_v4 = vadd.f32 %v14441_v53, %v1219_v5  ;;  %12519 = vmatmul.mubr.msk.f32.gmra.mxu1 %vm1588_vm1, %v14889_v24  ;;  %v14907_v31 = vmax.f32 %v1225_v56, 0.0 }
 0x153   : > { %v12353_v41 = vpop.f32.mrf.mxu0  ;;  %12521 = vmatprep.mubr.msk.f32.mxu1 %vm1588_vm1, %v14893_v50  ;;  %12692 = vmatmul.mubr.msk.f32.gmra.mxu0 %vm1588_vm1, %v14865_v42 }
 0x154   : > { %v14903_v30 = vmax.f32 %v1220_v4, 0.0  ;;  %12694 = vmatprep.mubr.msk.f32.mxu0 %vm1588_vm1, %v14875_v47  ;;  %19105 = vst [vmem:[#allocation42_spill] sm:$0xff] %v14907_v31  ;;  %v1235_v61 = vadd.f32 %v12353_v41, %v14441_v53 }
 0x155   : > { %v1229_v5 = vpop.f32.mrf.mxu0 }
 0x156   : > { %19104 = vst [vmem:[#allocation41_spill] sm:$0xff] %v14903_v30  ;;  %v1230_v29 = vadd.f32 %v14441_v53, %v1229_v5  ;;  %12522 = vmatmul.mubr.msk.f32.gmra.mxu1 %vm1588_vm1, %v14903_v30  ;;  %v14921_v56 = vmax.f32 %v1235_v61, 0.0 }
 0x157   : > { %v12356_v7 = vpop.f32.mrf.mxu0  ;;  %12524 = vmatprep.mubr.msk.f32.mxu1 %vm1588_vm1, %v14907_v31  ;;  %12695 = vmatmul.mubr.msk.f32.gmra.mxu0 %vm1588_vm1, %v14879_v13 }
 0x158   : > { %v14917_v4 = vmax.f32 %v1230_v29, 0.0  ;;  %12697 = vmatprep.mubr.msk.f32.mxu0 %vm1588_vm1, %v14889_v24  ;;  %19107 = vst [vmem:[#allocation44_spill] sm:$0xff] %v14921_v56  ;;  %v1245_v41 = vadd.f32 %v12356_v7, %v14441_v53 }
 0x159   : > { %v1239_v5 = vpop.f32.mrf.mxu0 }
 0x15a   : > { %19106 = vst [vmem:[#allocation43_spill] sm:$0xff] %v14917_v4  ;;  %v1240_v47 = vadd.f32 %v14441_v53, %v1239_v5  ;;  %12525 = vmatmul.mubr.msk.f32.gmra.mxu1 %vm1588_vm1, %v14917_v4  ;;  %v14935_v61 = vmax.f32 %v1245_v41, 0.0 }
 0x15b   : > { %v12359_v42 = vpop.f32.mrf.mxu0  ;;  %12527 = vmatprep.mubr.msk.f32.mxu1 %vm1588_vm1, %v14921_v56  ;;  %12698 = vmatmul.mubr.msk.f32.gmra.mxu0 %vm1588_vm1, %v14893_v50 }
 0x15c   : > { %v14931_v29 = vmax.f32 %v1240_v47, 0.0  ;;  %12700 = vmatprep.mubr.msk.f32.mxu0 %vm1588_vm1, %v14903_v30  ;;  %19109 = vst [vmem:[#allocation46_spill] sm:$0xff] %v14935_v61  ;;  %v1255_v7 = vadd.f32 %v12359_v42, %v14441_v53 }
 0x15d   : > { %v1249_v5 = vpop.f32.mrf.mxu0 }
 0x15e   : > { %19108 = vst [vmem:[#allocation45_spill] sm:$0xff] %v14931_v29  ;;  %v1250_v24 = vadd.f32 %v14441_v53, %v1249_v5  ;;  %12528 = vmatmul.mubr.msk.f32.gmra.mxu1 %vm1588_vm1, %v14931_v29  ;;  %v14949_v41 = vmax.f32 %v1255_v7, 0.0 }
 0x15f   : > { %v12362_v13 = vpop.f32.mrf.mxu0  ;;  %12530 = vmatprep.mubr.msk.f32.mxu1 %vm1588_vm1, %v14935_v61  ;;  %12701 = vmatmul.mubr.msk.f32.gmra.mxu0 %vm1588_vm1, %v14907_v31 }
 0x160   : > { %v14945_v47 = vmax.f32 %v1250_v24, 0.0  ;;  %12703 = vmatprep.mubr.msk.f32.mxu0 %vm1588_vm1, %v14917_v4  ;;  %19111 = vst [vmem:[#allocation48_spill] sm:$0xff] %v14949_v41  ;;  %v1265_v42 = vadd.f32 %v12362_v13, %v14441_v53 }
 0x161   : > { %v1259_v5 = vpop.f32.mrf.mxu0 }
 0x162   : > { %19110 = vst [vmem:[#allocation47_spill] sm:$0xff] %v14945_v47  ;;  %v1260_v30 = vadd.f32 %v14441_v53, %v1259_v5  ;;  %12531 = vmatmul.mubr.msk.f32.gmra.mxu1 %vm1588_vm1, %v14945_v47  ;;  %v14963_v7 = vmax.f32 %v1265_v42, 0.0 }
 0x163   : > { %v12365_v50 = vpop.f32.mrf.mxu0  ;;  %12533 = vmatprep.mubr.msk.f32.mxu1 %vm1588_vm1, %v14949_v41  ;;  %12704 = vmatmul.mubr.msk.f32.gmra.mxu0 %vm1588_vm1, %v14921_v56 }
 0x164   : > { %v14959_v24 = vmax.f32 %v1260_v30, 0.0  ;;  %12706 = vmatprep.mubr.msk.f32.mxu0 %vm1588_vm1, %v14931_v29  ;;  %19113 = vst [vmem:[#allocation50_spill] sm:$0xff] %v14963_v7  ;;  %v1275_v13 = vadd.f32 %v12365_v50, %v14441_v53 }
 0x165   : > { %v1269_v5 = vpop.f32.mrf.mxu0 }
 0x166   : > { %19112 = vst [vmem:[#allocation49_spill] sm:$0xff] %v14959_v24  ;;  %v1270_v4 = vadd.f32 %v14441_v53, %v1269_v5  ;;  %12534 = vmatmul.mubr.msk.f32.gmra.mxu1 %vm1588_vm1, %v14959_v24  ;;  %v14977_v42 = vmax.f32 %v1275_v13, 0.0 }
 0x167   : > { %v12368_v31 = vpop.f32.mrf.mxu0  ;;  %12536 = vmatprep.mubr.msk.f32.mxu1 %vm1588_vm1, %v14963_v7  ;;  %12707 = vmatmul.mubr.msk.f32.gmra.mxu0 %vm1588_vm1, %v14935_v61 }
 0x168   : > { %v14973_v30 = vmax.f32 %v1270_v4, 0.0  ;;  %12709 = vmatprep.mubr.msk.f32.mxu0 %vm1588_vm1, %v14945_v47  ;;  %19115 = vst [vmem:[#allocation52_spill] sm:$0xff] %v14977_v42  ;;  %v1285_v50 = vadd.f32 %v12368_v31, %v14441_v53 }
 0x169   : > { %v1279_v5 = vpop.f32.mrf.mxu0 }
 0x16a   : > { %19114 = vst [vmem:[#allocation51_spill] sm:$0xff] %v14973_v30  ;;  %v1280_v29 = vadd.f32 %v14441_v53, %v1279_v5  ;;  %12537 = vmatmul.mubr.msk.f32.gmra.mxu1 %vm1588_vm1, %v14973_v30  ;;  %v14991_v13 = vmax.f32 %v1285_v50, 0.0 }
 0x16b   : > { %v12371_v56 = vpop.f32.mrf.mxu0  ;;  %12539 = vmatprep.mubr.msk.f32.mxu1 %vm1588_vm1, %v14977_v42  ;;  %12710 = vmatmul.mubr.msk.f32.gmra.mxu0 %vm1588_vm1, %v14949_v41 }
 0x16c   : > { %v14987_v4 = vmax.f32 %v1280_v29, 0.0  ;;  %12712 = vmatprep.mubr.msk.f32.mxu0 %vm1588_vm1, %v14959_v24  ;;  %19117 = vst [vmem:[#allocation54_spill] sm:$0xff] %v14991_v13  ;;  %v1295_v31 = vadd.f32 %v12371_v56, %v14441_v53 }
 0x16d   : > { %v1289_v5 = vpop.f32.mrf.mxu0 }
 0x16e   : > { %19116 = vst [vmem:[#allocation53_spill] sm:$0xff] %v14987_v4  ;;  %v1290_v47 = vadd.f32 %v14441_v53, %v1289_v5  ;;  %12540 = vmatmul.mubr.msk.f32.gmra.mxu1 %vm1588_vm1, %v14987_v4  ;;  %v15005_v50 = vmax.f32 %v1295_v31, 0.0 }
 0x16f   : > { %v12374_v61 = vpop.f32.mrf.mxu0  ;;  %12542 = vmatprep.mubr.msk.f32.mxu1 %vm1588_vm1, %v14991_v13  ;;  %12713 = vmatmul.mubr.msk.f32.gmra.mxu0 %vm1588_vm1, %v14963_v7 }
 0x170   : > { %v15001_v29 = vmax.f32 %v1290_v47, 0.0  ;;  %12715 = vmatprep.mubr.msk.f32.mxu0 %vm1588_vm1, %v14973_v30  ;;  %19119 = vst [vmem:[#allocation56_spill] sm:$0xff] %v15005_v50  ;;  %v1305_v56 = vadd.f32 %v12374_v61, %v14441_v53 }
 0x171   : > { %v1299_v5 = vpop.f32.mrf.mxu0 }
 0x172   : > { %19118 = vst [vmem:[#allocation55_spill] sm:$0xff] %v15001_v29  ;;  %v1300_v24 = vadd.f32 %v14441_v53, %v1299_v5  ;;  %12543 = vmatmul.mubr.msk.f32.gmra.mxu1 %vm1588_vm1, %v15001_v29  ;;  %v15019_v31 = vmax.f32 %v1305_v56, 0.0 }
 0x173   : > { %v12377_v41 = vpop.f32.mrf.mxu0  ;;  %12545 = vmatprep.mubr.msk.f32.mxu1 %vm1588_vm1, %v15005_v50  ;;  %12716 = vmatmul.mubr.msk.f32.gmra.mxu0 %vm1588_vm1, %v14977_v42 }
 0x174   : > { %v15015_v47 = vmax.f32 %v1300_v24, 0.0  ;;  %12718 = vmatprep.mubr.msk.f32.mxu0 %vm1588_vm1, %v14987_v4  ;;  %19121 = vst [vmem:[#allocation58_spill] sm:$0xff] %v15019_v31  ;;  %v1315_v61 = vadd.f32 %v12377_v41, %v14441_v53 }
 0x175   : > { %v1309_v5 = vpop.f32.mrf.mxu0 }
 0x176   : > { %19120 = vst [vmem:[#allocation57_spill] sm:$0xff] %v15015_v47  ;;  %v1310_v30 = vadd.f32 %v14441_v53, %v1309_v5  ;;  %12546 = vmatmul.mubr.msk.f32.gmra.mxu1 %vm1588_vm1, %v15015_v47  ;;  %v15033_v56 = vmax.f32 %v1315_v61, 0.0 }
 0x177   : > { %v12380_v7 = vpop.f32.mrf.mxu0  ;;  %12548 = vmatprep.mubr.msk.f32.mxu1 %vm1588_vm1, %v15019_v31  ;;  %12719 = vmatmul.mubr.msk.f32.gmra.mxu0 %vm1588_vm1, %v14991_v13 }
 0x178   : > { %v15029_v24 = vmax.f32 %v1310_v30, 0.0  ;;  %12721 = vmatprep.mubr.msk.f32.mxu0 %vm1588_vm1, %v15001_v29  ;;  %19123 = vst [vmem:[#allocation60_spill] sm:$0xff] %v15033_v56  ;;  %v1325_v41 = vadd.f32 %v12380_v7, %v14441_v53 }
 0x179   : > { %v1319_v5 = vpop.f32.mrf.mxu0 }
 0x17a   : > { %19122 = vst [vmem:[#allocation59_spill] sm:$0xff] %v15029_v24  ;;  %v1320_v4 = vadd.f32 %v14441_v53, %v1319_v5  ;;  %12549 = vmatmul.mubr.msk.f32.gmra.mxu1 %vm1588_vm1, %v15029_v24  ;;  %v15047_v61 = vmax.f32 %v1325_v41, 0.0  ;;  %v15061_v41 = vpop.f32.mrf.mxu1 }
 0x17b   : > { %v12383_v42 = vpop.f32.mrf.mxu0  ;;  %12551 = vmatprep.mubr.msk.f32.mxu1 %vm1588_vm1, %v15033_v56  ;;  %12722 = vmatmul.mubr.msk.f32.gmra.mxu0 %vm1588_vm1, %v15005_v50 }
 0x17c   : > { %v15043_v30 = vmax.f32 %v1320_v4, 0.0  ;;  %12724 = vmatprep.mubr.msk.f32.mxu0 %vm1588_vm1, %v15015_v47  ;;  %19125 = vst [vmem:[#allocation62_spill] sm:$0xff] %v15047_v61  ;;  %v1335_v7 = vadd.f32 %v12383_v42, %v14441_v53 }
 0x17d   : > { %v1329_v5 = vpop.f32.mrf.mxu0 }
 0x17e   : > { %19124 = vst [vmem:[#allocation61_spill] sm:$0xff] %v15043_v30  ;;  %v1330_v29 = vadd.f32 %v14441_v53, %v1329_v5  ;;  %12552 = vmatmul.mubr.msk.f32.gmra.mxu1 %vm1588_vm1, %v15043_v30  ;;  %v15063_v42 = vmax.f32 %v1335_v7, 0.0  ;;  %v15077_v7 = vpop.f32.mrf.mxu1 }
 0x17f   : > { %v12386_v13 = vpop.f32.mrf.mxu0  ;;  %12554 = vmatprep.mubr.msk.f32.mxu1 %vm1588_vm1, %v15047_v61  ;;  %12725 = vmatmul.mubr.msk.f32.gmra.mxu0 %vm1588_vm1, %v15019_v31 }
 0x180   : > { %v15057_v4 = vmax.f32 %v1330_v29, 0.0  ;;  %12727 = vmatprep.mubr.msk.f32.mxu0 %vm1588_vm1, %v15029_v24  ;;  %19127 = vst [vmem:[#allocation64_spill] sm:$0xff] %v15063_v42  ;;  %v1345_v5 = vadd.f32 %v12386_v13, %v14441_v53 }
 0x181   : > { %v1339_v47 = vpop.f32.mrf.mxu0 }
 0x182   : > { %19126 = vst [vmem:[#allocation63_spill] sm:$0xff] %v15057_v4  ;;  %v1340_v50 = vadd.f32 %v14441_v53, %v1339_v47  ;;  %12555 = vmatmul.mubr.msk.f32.gmra.mxu1 %vm1588_vm1, %v15057_v4  ;;  %v15079_v13 = vmax.f32 %v1345_v5, 0.0  ;;  %v15093_v5 = vpop.f32.mrf.mxu1 }
 0x183   : > { %v12389_v57 = vpop.f32.mrf.mxu0  ;;  %12557 = vmatprep.mubr.msk.f32.mxu1 %vm1588_vm1, %v15063_v42  ;;  %12728 = vmatmul.mubr.msk.f32.gmra.mxu0 %vm1588_vm1, %v15033_v56 }
 0x184   : > { %v15073_v29 = vmax.f32 %v1340_v50, 0.0  ;;  %12730 = vmatprep.mubr.msk.f32.mxu0 %vm1588_vm1, %v15043_v30  ;;  %19129 = vst [vmem:[#allocation66_spill] sm:$0xff] %v15079_v13  ;;  %v1355_v47 = vadd.f32 %v12389_v57, %v14441_v53 }
 0x185   : > { %v1349_v24 = vpop.f32.mrf.mxu0 }
 0x186   : > { %19128 = vst [vmem:[#allocation65_spill] sm:$0xff] %v15073_v29  ;;  %v1350_v31 = vadd.f32 %v14441_v53, %v1349_v24  ;;  %12558 = vmatmul.mubr.msk.f32.gmra.mxu1 %vm1588_vm1, %v15073_v29  ;;  %v15095_v57 = vmax.f32 %v1355_v47, 0.0  ;;  %v15109_v47 = vpop.f32.mrf.mxu1 }
 0x187   : > { %v12392_v38 = vpop.f32.mrf.mxu0  ;;  %12560 = vmatprep.mubr.msk.f32.mxu1 %vm1588_vm1, %v15079_v13  ;;  %12731 = vmatmul.mubr.msk.f32.gmra.mxu0 %vm1588_vm1, %v15047_v61 }
 0x188   : > { %v15089_v50 = vmax.f32 %v1350_v31, 0.0  ;;  %12733 = vmatprep.mubr.msk.f32.mxu0 %vm1588_vm1, %v15057_v4  ;;  %19131 = vst [vmem:[#allocation68_spill] sm:$0xff] %v15095_v57  ;;  %v1365_v24 = vadd.f32 %v12392_v38, %v14441_v53 }
 0x189   : > { %v1359_v30 = vpop.f32.mrf.mxu0 }
 0x18a   : > { %19130 = vst [vmem:[#allocation67_spill] sm:$0xff] %v15089_v50  ;;  %v1360_v56 = vadd.f32 %v14441_v53, %v1359_v30  ;;  %12561 = vmatmul.mubr.msk.f32.gmra.mxu1 %vm1588_vm1, %v15089_v50  ;;  %v15111_v38 = vmax.f32 %v1365_v24, 0.0  ;;  %v15125_v24 = vpop.f32.mrf.mxu1 }
 0x18b   : > { %v12395_v18 = vpop.f32.mrf.mxu0  ;;  %12563 = vmatprep.mubr.msk.f32.mxu1 %vm1588_vm1, %v15095_v57  ;;  %12734 = vmatmul.mubr.msk.f32.gmra.mxu0 %vm1588_vm1, %v15063_v42 }
 0x18c   : > { %v15105_v31 = vmax.f32 %v1360_v56, 0.0  ;;  %12736 = vmatprep.mubr.msk.f32.mxu0 %vm1588_vm1, %v15073_v29  ;;  %19133 = vst [vmem:[#allocation70_spill] sm:$0xff] %v15111_v38  ;;  %v1375_v30 = vadd.f32 %v12395_v18, %v14441_v53 }
 0x18d   : > { %v1369_v4 = vpop.f32.mrf.mxu0 }
 0x18e   : > { %19132 = vst [vmem:[#allocation69_spill] sm:$0xff] %v15105_v31  ;;  %v1370_v61 = vadd.f32 %v14441_v53, %v1369_v4  ;;  %12564 = vmatmul.mubr.msk.f32.gmra.mxu1 %vm1588_vm1, %v15105_v31  ;;  %v15127_v18 = vmax.f32 %v1375_v30, 0.0  ;;  %v15141_v30 = vpop.f32.mrf.mxu1 }
 0x18f   : > { %v12398_v14 = vpop.f32.mrf.mxu0  ;;  %12566 = vmatprep.mubr.msk.f32.mxu1 %vm1588_vm1, %v15111_v38  ;;  %12737 = vmatmul.mubr.msk.f32.gmra.mxu0 %vm1588_vm1, %v15079_v13 }
 0x190   : > { %v15121_v56 = vmax.f32 %v1370_v61, 0.0  ;;  %12739 = vmatprep.mubr.msk.f32.mxu0 %vm1588_vm1, %v15089_v50  ;;  %19135 = vst [vmem:[#allocation72_spill] sm:$0xff] %v15127_v18  ;;  %v1385_v4 = vadd.f32 %v12398_v14, %v14441_v53 }
 0x191   : > { %v1379_v29 = vpop.f32.mrf.mxu0 }
 0x192   : > { %19134 = vst [vmem:[#allocation71_spill] sm:$0xff] %v15121_v56  ;;  %v1380_v42 = vadd.f32 %v14441_v53, %v1379_v29  ;;  %12567 = vmatmul.mubr.msk.f32.gmra.mxu1 %vm1588_vm1, %v15121_v56  ;;  %v15143_v14 = vmax.f32 %v1385_v4, 0.0  ;;  %v15148_v53 = vld [vmem:[%s18722_s2] ss:$0 sm:$0xff] }
 0x193   : > { %v12401_v3 = vpop.f32.mrf.mxu0  ;;  %12569 = vmatprep.mubr.msk.f32.mxu1 %vm1588_vm1, %v15127_v18  ;;  %12740 = vmatmul.mubr.msk.f32.gmra.mxu0 %vm1588_vm1, %v15095_v57 }
 0x194   : > { %v15137_v61 = vmax.f32 %v1380_v42, 0.0  ;;  %12742 = vmatprep.mubr.msk.f32.mxu0 %vm1588_vm1, %v15105_v31  ;;  %19137 = vst [vmem:[#allocation74_spill] sm:$0xff] %v15143_v14  ;;  %v1395_v29 = vadd.f32 %v15148_v53, %v12401_v3  ;;  %v15160_v31 = vpop.f32.mrf.mxu1 }
 0x195   : > { %v1389_v50 = vpop.f32.mrf.mxu0 }
 0x196   : > { %19136 = vst [vmem:[#allocation73_spill] sm:$0xff] %v15137_v61  ;;  %v1390_v13 = vadd.f32 %v15148_v53, %v1389_v50  ;;  %12570 = vmatmul.mubr.msk.f32.gmra.mxu1 %vm1588_vm1, %v15137_v61  ;;  %v15164_v3 = vmax.f32 %v1395_v29, 0.0 }
 0x197   : > { %v12404_v42 = vpop.f32.mrf.mxu0  ;;  %12572 = vmatprep.mubr.msk.f32.mxu1 %vm1588_vm1, %v15143_v14  ;;  %12743 = vmatmul.mubr.msk.f32.gmra.mxu0 %vm1588_vm1, %v15111_v38 }
 0x198   : > { %v15158_v4 = vmax.f32 %v1390_v13, 0.0  ;;  %12745 = vmatprep.mubr.msk.f32.mxu0 %vm1588_vm1, %v15121_v56  ;;  %19139 = vst [vmem:[#allocation76_spill] sm:$0xff] %v15164_v3  ;;  %v1405_v50 = vadd.f32 %v15148_v53, %v12404_v42  ;;  %v15176_v56 = vpop.f32.mrf.mxu1 }
 0x199   : > { %v1399_v57 = vpop.f32.mrf.mxu0 }
 0x19a   : > { %19138 = vst [vmem:[#allocation75_spill] sm:$0xff] %v15158_v4  ;;  %v1400_v62 = vadd.f32 %v15148_v53, %v1399_v57  ;;  %12573 = vmatmul.mubr.msk.f32.gmra.mxu1 %vm1588_vm1, %v15158_v4  ;;  %v15180_v29 = vmax.f32 %v1405_v50, 0.0 }
 0x19b   : > { %v12407_v49 = vpop.f32.mrf.mxu0  ;;  %12575 = vmatprep.mubr.msk.f32.mxu1 %vm1588_vm1, %v15164_v3  ;;  %12746 = vmatmul.mubr.msk.f32.gmra.mxu0 %vm1588_vm1, %v15127_v18 }
 0x19c   : > { %v15174_v13 = vmax.f32 %v1400_v62, 0.0  ;;  %12748 = vmatprep.mubr.msk.f32.mxu0 %vm1588_vm1, %v15137_v61  ;;  %19141 = vst [vmem:[#allocation78_spill] sm:$0xff] %v15180_v29  ;;  %v1415_v57 = vadd.f32 %v15148_v53, %v12407_v49 }
 0x19d   : > { %v1409_v42 = vpop.f32.mrf.mxu0 }
 0x19e   : > { %19140 = vst [vmem:[#allocation77_spill] sm:$0xff] %v15174_v13  ;;  %v1410_v38 = vadd.f32 %v15148_v53, %v1409_v42  ;;  %v12433_v48 = vpop.f32.mrf.mxu1  ;;  %12576 = vmatmul.mubr.msk.f32.gmra.mxu1 %vm1588_vm1, %v15174_v13  ;;  %v15194_v49 = vmax.f32 %v1415_v57, 0.0  ;;  %v1430_v57 = vadd.f32 %v15148_v53, %v15077_v7 }
 0x19f   : > { %v12410_v37 = vpop.f32.mrf.mxu0  ;;  %12578 = vmatprep.mubr.msk.f32.mxu1 %vm1588_vm1, %v15180_v29  ;;  %12749 = vmatmul.mubr.msk.f32.gmra.mxu0 %vm1588_vm1, %v15143_v14 }
 0x1a0   : > { %v15190_v62 = vmax.f32 %v1410_v38, 0.0  ;;  %v1991_v50 = vpop.f32.mrf.mxu1  ;;  %12751 = vmatprep.mubr.msk.f32.mxu0 %vm1588_vm1, %v15158_v4  ;;  %19143 = vst [vmem:[#allocation80_spill] sm:$0xff] %v15194_v49  ;;  %v1425_v42 = vadd.f32 %v15148_v53, %v12410_v37  ;;  %v15224_v7 = vmax.f32 %v1430_v57, 0.0  ;;  %v1450_v57 = vadd.f32 %v15148_v53, %v15141_v30 }
 0x1a1   : > { %v1419_v61 = vpop.f32.mrf.mxu0 }
 0x1a2   : > { %19142 = vst [vmem:[#allocation79_spill] sm:$0xff] %v15190_v62  ;;  %v1420_v18 = vadd.f32 %v15148_v53, %v1419_v61  ;;  %v12436_v32 = vpop.f32.mrf.mxu1  ;;  %12579 = vmatmul.mubr.msk.f32.gmra.mxu1 %vm1588_vm1, %v15190_v62  ;;  %v1435_v61 = vadd.f32 %v15148_v53, %v15061_v41  ;;  %v15214_v23 = vmax.f32 %v1425_v42, 0.0  ;;  %19148 = vst [vmem:[#allocation85_spill] sm:$0xff] %v15224_v7 }
 0x1a3   : > { %12581 = vmatprep.mubr.msk.f32.mxu1 %vm1588_vm1, %v15194_v49  ;;  %v12609_v38 = vpop.f32.mrf.mxu0  ;;  %12752 = vmatmul.mubr.msk.f32.gmra.mxu0 %vm1588_vm1, %v15164_v3  ;;  %v1440_v41 = vadd.f32 %v15148_v53, %v15109_v47  ;;  %v1445_v42 = vadd.f32 %v15148_v53, %v15093_v5 }
 0x1a4   : > { %v15206_v4 = vmax.f32 %v1420_v18, 0.0  ;;  %v15208_v37 = vadd.f32 %v12609_v38, %v12433_v48  ;;  %v2001_v14 = vpop.f32.mrf.mxu1  ;;  %12754 = vmatprep.mubr.msk.f32.mxu0 %vm1588_vm1, %v15174_v13  ;;  %19146 = vst [vmem:[#allocation83_spill] sm:$0xff] %v15214_v23 }
 0x1a5   : > { %v2579_v20 = vpop.f32.mrf.mxu0  ;;  %v15244_v47 = vmax.f32 %v1440_v41, 0.0  ;;  %v1460_v41 = vadd.f32 %v15148_v53, %v15176_v56 }
 0x1a6   : > { %19144 = vst [vmem:[#allocation81_spill] sm:$0xff] %v15206_v4  ;;  %19145 = vst [vmem:[#allocation82_spill] sm:$0xff] %v15208_v37  ;;  %v15216_v12 = vadd.f32 %v2579_v20, %v1991_v50  ;;  %v12439_v3 = vpop.f32.mrf.mxu1  ;;  %12582 = vmatmul.mubr.msk.f32.gmra.mxu1 %vm1588_vm1, %v15206_v4  ;;  %v15232_v50 = vmax.f32 %v1435_v61, 0.0  ;;  %v1455_v61 = vadd.f32 %v15148_v53, %v15125_v24 }
 0x1a7   : > { %12584 = vmatprep.mubr.msk.f32.mxu1 %vm1588_vm1, %v15214_v23  ;;  %v12612_v48 = vpop.f32.mrf.mxu0  ;;  %12755 = vmatmul.mubr.msk.f32.gmra.mxu0 %vm1588_vm1, %v15180_v29  ;;  %19151 = vst [vmem:[#allocation88_spill] sm:$0xff] %v15244_v47  ;;  %v15280_v56 = vmax.f32 %v1460_v41, 0.0 }
 0x1a8   : > { %19147 = vst [vmem:[#allocation84_spill] sm:$0xff] %v15216_v12  ;;  %v15228_v18 = vadd.f32 %v12612_v48, %v12436_v32  ;;  %v2011_v20 = vpop.f32.mrf.mxu1  ;;  %12757 = vmatprep.mubr.msk.f32.mxu0 %vm1588_vm1, %v15190_v62  ;;  %19149 = vst [vmem:[#allocation86_spill] sm:$0xff] %v15232_v50 }
 0x1a9   : > { %v2589_v38 = vpop.f32.mrf.mxu0  ;;  %19155 = vst [vmem:[#allocation92_spill] sm:$0xff] %v15280_v56 }
 0x1aa   : > { %v15236_v12 = vadd.f32 %v2589_v38, %v2001_v14  ;;  %v12442_v37 = vpop.f32.mrf.mxu1  ;;  %12585 = vmatmul.mubr.msk.f32.gmra.mxu1 %vm1588_vm1, %v15224_v7 }
 0x1ab   : > { %12587 = vmatprep.mubr.msk.f32.mxu1 %vm1588_vm1, %v15232_v50  ;;  %v12615_v32 = vpop.f32.mrf.mxu0  ;;  %12758 = vmatmul.mubr.msk.f32.gmra.mxu0 %vm1588_vm1, %v15194_v49  ;;  %v15252_v37 = vmax.f32 %v1445_v42, 0.0  ;;  %v1465_v42 = vadd.f32 %v15148_v53, %v15160_v31 }
 0x1ac   : > { %19150 = vst [vmem:[#allocation87_spill] sm:$0xff] %v15236_v12  ;;  %v15248_v5 = vadd.f32 %v12615_v32, %v12439_v3  ;;  %v2021_v14 = vpop.f32.mrf.mxu1  ;;  %12760 = vmatprep.mubr.msk.f32.mxu0 %vm1588_vm1, %v15206_v4  ;;  %v15264_v3 = vmax.f32 %v1450_v57, 0.0 }
 0x1ad   : > { %19152 = vst [vmem:[#allocation89_spill] sm:$0xff] %v15252_v37  ;;  %v2599_v48 = vpop.f32.mrf.mxu0  ;;  %v15286_v31 = vmax.f32 %v1465_v42, 0.0 }
 0x1ae   : > { %v15256_v38 = vadd.f32 %v2599_v48, %v2011_v20  ;;  %v12445_v12 = vpop.f32.mrf.mxu1  ;;  %12588 = vmatmul.mubr.msk.f32.gmra.mxu1 %vm1588_vm1, %v15244_v47  ;;  %19153 = vst [vmem:[#allocation90_spill] sm:$0xff] %v15264_v3  ;;  %v15270_v20 = vmax.f32 %v1455_v61, 0.0 }
 0x1af   : > { %12590 = vmatprep.mubr.msk.f32.mxu1 %vm1588_vm1, %v15252_v37  ;;  %v12618_v30 = vpop.f32.mrf.mxu0  ;;  %12761 = vmatmul.mubr.msk.f32.gmra.mxu0 %vm1588_vm1, %v15214_v23  ;;  %19157 = vst [vmem:[#allocation94_spill] sm:$0xff] %v15286_v31 }
 0x1b0   : > { %v2029_v24 = vpop.f32.mrf.mxu1  ;;  %12763 = vmatprep.mubr.msk.f32.mxu0 %vm1588_vm1, %v15224_v7  ;;  %19154 = vst [vmem:[#allocation91_spill] sm:$0xff] %v15270_v20 }
 0x1b1   : > { %v2609_v32 = vpop.f32.mrf.mxu0 }
 0x1b2   : > { %v12448_v14 = vpop.f32.mrf.mxu1  ;;  %12591 = vmatmul.mubr.msk.f32.gmra.mxu1 %vm1588_vm1, %v15264_v3 }
 0x1b3   : > { %12593 = vmatprep.mubr.msk.f32.mxu1 %vm1588_vm1, %v15270_v20  ;;  %v12621_v57 = vpop.f32.mrf.mxu0  ;;  %12764 = vmatmul.mubr.msk.f32.gmra.mxu0 %vm1588_vm1, %v15232_v50 }
 0x1b4   : > { %v15282_v48 = vadd.f32 %v12621_v57, %v12445_v12  ;;  %v2039_v61 = vpop.f32.mrf.mxu1  ;;  %12766 = vmatprep.mubr.msk.f32.mxu0 %vm1588_vm1, %v15244_v47 }
 0x1b5   : > { %v2617_v53 = vpop.f32.mrf.mxu0 }
 0x1b6   : > { %19156 = vst [vmem:[#allocation93_spill] sm:$0xff] %v15282_v48  ;;  %v15288_v30 = vadd.f32 %v2617_v53, %v2029_v24  ;;  %v12451_v32 = vpop.f32.mrf.mxu1  ;;  %12594 = vmatmul.mubr.msk.f32.gmra.mxu1 %vm1588_vm1, %v15280_v56 }
 0x1b7   : > { %12596 = vmatprep.mubr.msk.f32.mxu1 %vm1588_vm1, %v15286_v31  ;;  %v12624_v41 = vpop.f32.mrf.mxu0  ;;  %12767 = vmatmul.mubr.msk.f32.gmra.mxu0 %vm1588_vm1, %v15252_v37 }
 0x1b8   : > { %19158 = vst [vmem:[#allocation95_spill] sm:$0xff] %v15288_v30  ;;  %v15296_v12 = vadd.f32 %v12624_v41, %v12448_v14  ;;  %v2049_v57 = vpop.f32.mrf.mxu1  ;;  %12769 = vmatprep.mubr.msk.f32.mxu0 %vm1588_vm1, %v15264_v3  ;;  %v18854_v30 = vmov 0.0  }
 0x1b9   : > { %v2627_v42 = vpop.f32.mrf.mxu0 }
 0x1ba   : > { %19159 = vst [vmem:[#allocation96_spill] sm:$0xff] %v15296_v12  ;;  %v15300_v24 = vadd.f32 %v2627_v42, %v2039_v61  ;;  %v12454_v53 = vpop.f32.mrf.mxu1  ;;  %12597 = vmatmul.mubr.f32.gmra.mxu1 %v18854_v30 }
 0x1bb   : > { %v12627_v48 = vpop.f32.mrf.mxu0  ;;  %12770 = vmatmul.mubr.msk.f32.gmra.mxu0 %vm1588_vm1, %v15270_v20  ;;  %12783 = vmatprep.mubr.msk.f32.mxu1 %vm1588_vm1, %v14458_v6  ;;  %v4422_v53 = vld [vmem:[%s18723_s3 + $0x90] sm:$0xff] }
 0x1bc   : > { %v15307_v14 = vadd.f32 %v12627_v48, %v12451_v32  ;;  %v2059_v41 = vpop.f32.mrf.mxu1  ;;  %12772 = vmatprep.mubr.msk.f32.mxu0 %vm1588_vm1, %v15280_v56 }
 0x1bd   : > { %v2637_v12 = vpop.f32.mrf.mxu0 }
 0x1be   : > { %v15311_v61 = vadd.f32 %v2637_v12, %v2049_v57  ;;  %v12457_v42 = vpop.f32.mrf.mxu1  ;;  %12784 = vmatmul.mubr.msk.f32.vlgmr.msra.gmra.mxu1 %vm1588_vm1, %v14463_v11 }
 0x1bf   : > { %13128 = vmatpush3.msra.mxu1 %v14820_v59  ;;  %v12630_v6 = vpop.f32.mrf.mxu0  ;;  %12773 = vmatmul.mubr.msk.f32.gmra.mxu0 %vm1588_vm1, %v15286_v31  ;;  %v4421_v59 = vld [vmem:[%s18723_s3 + $0x88] sm:$0xff] }
 0x1c0   : > { %12786 = vmatprep.mubr.msk.f32.mxu1 %vm1588_vm1, %v14473_v15  ;;  %v2067_v48 = vpop.f32.mrf.mxu1  ;;  %12959 = vmatprep.mubr.msk.f32.mxu0 %vm1588_vm1, %v14504_v27 }
 0x1c1   : > { %v2647_v32 = vpop.f32.mrf.mxu0  ;;  %13129 = vmatprep.subr.mxu1 %v4422_v53 }
 0x1c2   : > { %v12460_v11 = vpop.f32.mrf.mxu1  ;;  %12787 = vmatmul.mubr.msk.f32.gmra.mxu1 %vm1588_vm1, %v14478_v16 }
 0x1c3   : > { %v12633_v12 = vpop.f32.mrf.mxu0  ;;  %12789 = vmatprep.mubr.msk.f32.mxu1 %vm1588_vm1, %v14490_v21  ;;  %12960 = vmatmul.mubr.msk.f32.vlgmr.msra.gmra.mxu0 %vm1588_vm1, %v14508_v28 }
 0x1c4   : > { %v15334_v15 = vadd.f32 %v12633_v12, %v12457_v42  ;;  %v2077_v57 = vpop.f32.mrf.mxu1  ;;  %12962 = vmatprep.mubr.msk.f32.mxu0 %vm1588_vm1, %v14518_v33  ;;  %13130 = vmatpush3.msra.mxu1 %v4422_v53 }
 0x1c5   : > { %v2655_v41 = vpop.f32.mrf.mxu0  ;;  %13131 = vmatprep.subr.mxu1 %v4421_v59 }
 0x1c6   : > { %v15338_v16 = vadd.f32 %v2655_v41, %v2067_v48  ;;  %v12463_v6 = vpop.f32.mrf.mxu1  ;;  %12790 = vmatmul.mubr.msk.f32.gmra.mxu1 %vm1588_vm1, %v14494_v22 }
 0x1c7   : > { %v12636_v32 = vpop.f32.mrf.mxu0  ;;  %12792 = vmatprep.mubr.msk.f32.mxu1 %vm1588_vm1, %v14504_v27  ;;  %12963 = vmatmul.mubr.msk.f32.gmra.mxu0 %vm1588_vm1, %v14522_v34 }
 0x1c8   : > { %v15346_v21 = vadd.f32 %v12636_v32, %v12460_v11  ;;  %v2087_v42 = vpop.f32.mrf.mxu1  ;;  %12965 = vmatprep.mubr.msk.f32.mxu0 %vm1588_vm1, %v14532_v39  ;;  %13132 = vmatpush3.msra.mxu1 %v4421_v59 }
 0x1c9   : > { %v2665_v53 = vpop.f32.mrf.mxu0 }
 0x1ca   : > { %v15350_v48 = vadd.f32 %v2665_v53, %v2077_v57  ;;  %v12466_v12 = vpop.f32.mrf.mxu1  ;;  %12793 = vmatmul.mubr.msk.f32.gmra.mxu1 %vm1588_vm1, %v14508_v28 }
 0x1cb   : > { %v12639_v22 = vpop.f32.mrf.mxu0  ;;  %12795 = vmatprep.mubr.msk.f32.mxu1 %vm1588_vm1, %v14518_v33  ;;  %12966 = vmatmul.mubr.msk.f32.gmra.mxu0 %vm1588_vm1, %v14536_v40 }
 0x1cc   : > { %v15358_v27 = vadd.f32 %v12639_v22, %v12463_v6  ;;  %v2097_v11 = vpop.f32.mrf.mxu1  ;;  %12968 = vmatprep.mubr.msk.f32.mxu0 %vm1588_vm1, %v14546_v45 }
 0x1cd   : > { %v2675_v59 = vpop.f32.mrf.mxu0 }
 0x1ce   : > { %v15362_v57 = vadd.f32 %v2675_v59, %v2087_v42  ;;  %v12469_v41 = vpop.f32.mrf.mxu1  ;;  %12796 = vmatmul.mubr.msk.f32.gmra.mxu1 %vm1588_vm1, %v14522_v34 }
 0x1cf   : > { %v12642_v32 = vpop.f32.mrf.mxu0  ;;  %12798 = vmatprep.mubr.msk.f32.mxu1 %vm1588_vm1, %v14532_v39  ;;  %12969 = vmatmul.mubr.msk.f32.gmra.mxu0 %vm1588_vm1, %v14550_v46 }
 0x1d0   : > { %v2105_v6 = vpop.f32.mrf.mxu1  ;;  %12971 = vmatprep.mubr.msk.f32.mxu0 %vm1588_vm1, %v14560_v51 }
 0x1d1   : > { %v2685_v53 = vpop.f32.mrf.mxu0 }
 0x1d2   : > { %v12472_v12 = vpop.f32.mrf.mxu1  ;;  %12799 = vmatmul.mubr.msk.f32.gmra.mxu1 %vm1588_vm1, %v14536_v40 }
 0x1d3   : > { %v12645_v42 = vpop.f32.mrf.mxu0  ;;  %12801 = vmatprep.mubr.msk.f32.mxu1 %vm1588_vm1, %v14546_v45  ;;  %12972 = vmatmul.mubr.msk.f32.gmra.mxu0 %vm1588_vm1, %v14564_v52 }
 0x1d4   : > { %v15378_v22 = vadd.f32 %v12645_v42, %v12469_v41  ;;  %v2115_v11 = vpop.f32.mrf.mxu1  ;;  %12974 = vmatprep.mubr.msk.f32.mxu0 %vm1588_vm1, %v14574_v58 }
 0x1d5   : > { %v2693_v59 = vpop.f32.mrf.mxu0 }
 0x1d6   : > { %19160 = vst [vmem:[#allocation97_spill] sm:$0xff] %v15378_v22  ;;  %v15382_v32 = vadd.f32 %v2693_v59, %v2105_v6  ;;  %v12475_v53 = vpop.f32.mrf.mxu1  ;;  %12802 = vmatmul.mubr.msk.f32.gmra.mxu1 %vm1588_vm1, %v14550_v46 }
 0x1d7   : > { %v12648_v30 = vpop.f32.mrf.mxu0  ;;  %12804 = vmatprep.mubr.msk.f32.mxu1 %vm1588_vm1, %v14560_v51  ;;  %12975 = vmatmul.mubr.msk.f32.gmra.mxu0 %vm1588_vm1, %v14578_v60 }
 0x1d8   : > { %19161 = vst [vmem:[#allocation98_spill] sm:$0xff] %v15382_v32  ;;  %v15390_v41 = vadd.f32 %v12648_v30, %v12472_v12  ;;  %v2125_v42 = vpop.f32.mrf.mxu1  ;;  %12977 = vmatprep.mubr.msk.f32.mxu0 %vm1588_vm1, %v14588_v1 }
 0x1d9   : > { %v2703_v22 = vpop.f32.mrf.mxu0 }
 0x1da   : > { %19162 = vst [vmem:[#allocation99_spill] sm:$0xff] %v15390_v41  ;;  %v15394_v6 = vadd.f32 %v2703_v22, %v2115_v11  ;;  %v12478_v59 = vpop.f32.mrf.mxu1  ;;  %12805 = vmatmul.mubr.msk.f32.gmra.mxu1 %vm1588_vm1, %v14564_v52 }
 0x1db   : > { %v12651_v32 = vpop.f32.mrf.mxu0  ;;  %12807 = vmatprep.mubr.msk.f32.mxu1 %vm1588_vm1, %v14574_v58  ;;  %12978 = vmatmul.mubr.msk.f32.gmra.mxu0 %vm1588_vm1, %v14592_v2 }
 0x1dc   : > { %19163 = vst [vmem:[#allocation100_spill] sm:$0xff] %v15394_v6  ;;  %v15402_v30 = vadd.f32 %v12651_v32, %v12475_v53  ;;  %v2135_v12 = vpop.f32.mrf.mxu1  ;;  %12980 = vmatprep.mubr.msk.f32.mxu0 %vm1588_vm1, %v14602_v8 }
 0x1dd   : > { %v2713_v41 = vpop.f32.mrf.mxu0 }
 0x1de   : > { %19164 = vst [vmem:[#allocation101_spill] sm:$0xff] %v15402_v30  ;;  %v15406_v22 = vadd.f32 %v2713_v41, %v2125_v42  ;;  %v12481_v11 = vpop.f32.mrf.mxu1  ;;  %12808 = vmatmul.mubr.msk.f32.gmra.mxu1 %vm1588_vm1, %v14578_v60 }
 0x1df   : > { %v12654_v59 = vpop.f32.mrf.mxu0  ;;  %12810 = vmatprep.mubr.msk.f32.mxu1 %vm1588_vm1, %v14588_v1  ;;  %12981 = vmatmul.mubr.msk.f32.gmra.mxu0 %vm1588_vm1, %v14606_v9 }
 0x1e0   : > { %19165 = vst [vmem:[#allocation102_spill] sm:$0xff] %v15406_v22  ;;  %v2143_v32 = vpop.f32.mrf.mxu1  ;;  %12983 = vmatprep.mubr.msk.f32.mxu0 %vm1588_vm1, %v14616_v17 }
 0x1e1   : > { %v2723_v53 = vpop.f32.mrf.mxu0 }
 0x1e2   : > { %v12484_v12 = vpop.f32.mrf.mxu1  ;;  %12811 = vmatmul.mubr.msk.f32.gmra.mxu1 %vm1588_vm1, %v14592_v2  ;;  %v4420_v53 = vld [vmem:[%s18723_s3 + $0x80] sm:$0xff] }
 0x1e3   : > { %v12657_v41 = vpop.f32.mrf.mxu0  ;;  %12813 = vmatprep.mubr.msk.f32.mxu1 %vm1588_vm1, %v14602_v8  ;;  %12984 = vmatmul.mubr.msk.f32.gmra.mxu0 %vm1588_vm1, %v14623_v19 }
 0x1e4   : > { %v15422_v42 = vadd.f32 %v12657_v41, %v12481_v11  ;;  %v2153_v59 = vpop.f32.mrf.mxu1  ;;  %12986 = vmatprep.mubr.msk.f32.mxu0 %vm1588_vm1, %v14633_v25  ;;  %13133 = vmatprep.subr.mxu1 %v4420_v53 }
 0x1e5   : > { %v2731_v22 = vpop.f32.mrf.mxu0  ;;  %13134 = vmatpush3.msra.mxu1 %v4420_v53 }
 0x1e6   : > { %19166 = vst [vmem:[#allocation103_spill] sm:$0xff] %v15422_v42  ;;  %v15429_v30 = vadd.f32 %v2731_v22, %v2143_v32  ;;  %v12487_v6 = vpop.f32.mrf.mxu1  ;;  %12814 = vmatmul.mubr.msk.f32.gmra.mxu1 %vm1588_vm1, %v14606_v9 }
 0x1e7   : > { %v12660_v8 = vpop.f32.mrf.mxu0  ;;  %12816 = vmatprep.mubr.msk.f32.mxu1 %vm1588_vm1, %v14616_v17  ;;  %12987 = vmatmul.mubr.msk.f32.gmra.mxu0 %vm1588_vm1, %v14637_v26 }
 0x1e8   : > { %19167 = vst [vmem:[#allocation104_spill] sm:$0xff] %v15429_v30  ;;  %v15437_v11 = vadd.f32 %v12660_v8, %v12484_v12  ;;  %v2163_v41 = vpop.f32.mrf.mxu1  ;;  %12989 = vmatprep.mubr.msk.f32.mxu0 %vm1588_vm1, %v14647_v35 }
 0x1e9   : > { %v2741_v22 = vpop.f32.mrf.mxu0 }
 0x1ea   : > { %v15441_v32 = vadd.f32 %v2741_v22, %v2153_v59  ;;  %v12490_v30 = vpop.f32.mrf.mxu1  ;;  %12817 = vmatmul.mubr.msk.f32.gmra.mxu1 %vm1588_vm1, %v14623_v19 }
 0x1eb   : > { %v12663_v42 = vpop.f32.mrf.mxu0  ;;  %12819 = vmatprep.mubr.msk.f32.mxu1 %vm1588_vm1, %v14633_v25  ;;  %12990 = vmatmul.mubr.msk.f32.gmra.mxu0 %vm1588_vm1, %v14651_v36 }
 0x1ec   : > { %19168 = vst [vmem:[#allocation105_spill] sm:$0xff] %v15441_v32  ;;  %v15449_v8 = vadd.f32 %v12663_v42, %v12487_v6  ;;  %v2173_v12 = vpop.f32.mrf.mxu1  ;;  %12992 = vmatprep.mubr.msk.f32.mxu0 %vm1588_vm1, %v14661_v43 }
 0x1ed   : > { %v2751_v53 = vpop.f32.mrf.mxu0 }
 0x1ee   : > { %19169 = vst [vmem:[#allocation106_spill] sm:$0xff] %v15449_v8  ;;  %v15453_v59 = vadd.f32 %v2751_v53, %v2163_v41  ;;  %v12493_v30 = vpop.f32.mrf.mxu1  ;;  %12820 = vmatmul.mubr.msk.f32.gmra.mxu1 %vm1588_vm1, %v14637_v26 }
 0x1ef   : > { %v12666_v22 = vpop.f32.mrf.mxu0  ;;  %12822 = vmatprep.mubr.msk.f32.mxu1 %vm1588_vm1, %v14647_v35  ;;  %12993 = vmatmul.mubr.msk.f32.gmra.mxu0 %vm1588_vm1, %v14665_v44 }
 0x1f0   : > { %19170 = vst [vmem:[#allocation107_spill] sm:$0xff] %v15453_v59  ;;  %v2181_v6 = vpop.f32.mrf.mxu1  ;;  %12995 = vmatprep.mubr.msk.f32.mxu0 %vm1588_vm1, %v14675_v54 }
 0x1f1   : > { %v2761_v42 = vpop.f32.mrf.mxu0 }
 0x1f2   : > { %v12496_v12 = vpop.f32.mrf.mxu1  ;;  %12823 = vmatmul.mubr.msk.f32.gmra.mxu1 %vm1588_vm1, %v14651_v36 }
 0x1f3   : > { %v12669_v41 = vpop.f32.mrf.mxu0  ;;  %12825 = vmatprep.mubr.msk.f32.mxu1 %vm1588_vm1, %v14661_v43  ;;  %12996 = vmatmul.mubr.msk.f32.gmra.mxu0 %vm1588_vm1, %v14679_v55 }
 0x1f4   : > { %v15469_v53 = vadd.f32 %v12669_v41, %v12493_v30  ;;  %v2191_v22 = vpop.f32.mrf.mxu1  ;;  %12998 = vmatprep.mubr.msk.f32.mxu0 %vm1588_vm1, %v14689_v63 }
 0x1f5   : > { %v2769_v59 = vpop.f32.mrf.mxu0 }
 0x1f6   : > { %19171 = vst [vmem:[#allocation108_spill] sm:$0xff] %v15469_v53  ;;  %v15473_v8 = vadd.f32 %v2769_v59, %v2181_v6  ;;  %v12499_v42 = vpop.f32.mrf.mxu1  ;;  %12826 = vmatmul.mubr.msk.f32.gmra.mxu1 %vm1588_vm1, %v14665_v44 }
 0x1f7   : > { %v12672_v32 = vpop.f32.mrf.mxu0  ;;  %12828 = vmatprep.mubr.msk.f32.mxu1 %vm1588_vm1, %v14675_v54  ;;  %12999 = vmatmul.mubr.msk.f32.gmra.mxu0 %vm1588_vm1, %v14693_v0  ;;  %v19175_v54 = vld [vmem:[#allocation16_spill] sm:$0xff] }
 0x1f8   : > { %19172 = vst [vmem:[#allocation109_spill] sm:$0xff] %v15473_v8  ;;  %v15481_v30 = vadd.f32 %v12672_v32, %v12496_v12  ;;  %v2201_v41 = vpop.f32.mrf.mxu1  ;;  %13001 = vmatprep.mubr.msk.f32.mxu0 %vm1588_vm1, %v14703_v10 }
 0x1f9   : > { %v2779_v53 = vpop.f32.mrf.mxu0 }
 0x1fa   : > { %19173 = vst [vmem:[#allocation110_spill] sm:$0xff] %v15481_v30  ;;  %v15485_v59 = vadd.f32 %v2779_v53, %v2191_v22  ;;  %v12502_v6 = vpop.f32.mrf.mxu1  ;;  %12829 = vmatmul.mubr.msk.f32.gmra.mxu1 %vm1588_vm1, %v14679_v55  ;;  %v19177_v30 = vld [vmem:[#allocation17_spill] sm:$0xff] }
 0x1fb   : > { %v12675_v8 = vpop.f32.mrf.mxu0  ;;  %12831 = vmatprep.mubr.msk.f32.mxu1 %vm1588_vm1, %v14689_v63  ;;  %13002 = vmatmul.mubr.msk.f32.gmra.mxu0 %vm1588_vm1, %v19175_v54 }
 0x1fc   : > { %19174 = vst [vmem:[#allocation111_spill] sm:$0xff] %v15485_v59  ;;  %v15493_v32 = vadd.f32 %v12675_v8, %v12499_v42  ;;  %v2211_v12 = vpop.f32.mrf.mxu1  ;;  %13004 = vmatprep.mubr.msk.f32.mxu0 %vm1588_vm1, %v19177_v30  ;;  %v19179_v59 = vld [vmem:[#allocation18_spill] sm:$0xff]  ;;  %v19180_v42 = vld [vmem:[#allocation19_spill] sm:$0xff] }
 0x1fd   : > { %v2789_v44 = vpop.f32.mrf.mxu0 }
 0x1fe   : > { %19176 = vst [vmem:[#allocation112_spill] sm:$0xff] %v15493_v32  ;;  %v15497_v53 = vadd.f32 %v2789_v44, %v2201_v41  ;;  %v12505_v22 = vpop.f32.mrf.mxu1  ;;  %12832 = vmatmul.mubr.msk.f32.gmra.mxu1 %vm1588_vm1, %v14693_v0  ;;  %v19181_v41 = vld [vmem:[#allocation20_spill] sm:$0xff] }
 0x1ff   : > { %v12678_v6 = vpop.f32.mrf.mxu0  ;;  %12834 = vmatprep.mubr.msk.f32.mxu1 %vm1588_vm1, %v14703_v10  ;;  %13005 = vmatmul.mubr.msk.f32.gmra.mxu0 %vm1588_vm1, %v19179_v59  ;;  %v19183_v10 = vld [vmem:[#allocation21_spill] sm:$0xff] }
 0x200   : > { %19178 = vst [vmem:[#allocation113_spill] sm:$0xff] %v15497_v53  ;;  %v2219_v8 = vpop.f32.mrf.mxu1  ;;  %13007 = vmatprep.mubr.msk.f32.mxu0 %vm1588_vm1, %v19180_v42 }
 0x201   : > { %v2799_v12 = vpop.f32.mrf.mxu0 }
 0x202   : > { %v12508_v32 = vpop.f32.mrf.mxu1  ;;  %12835 = vmatmul.mubr.msk.f32.gmra.mxu1 %vm1588_vm1, %v19175_v54 }
 0x203   : > { %v12681_v44 = vpop.f32.mrf.mxu0  ;;  %12837 = vmatprep.mubr.msk.f32.mxu1 %vm1588_vm1, %v19177_v30  ;;  %13008 = vmatmul.mubr.msk.f32.gmra.mxu0 %vm1588_vm1, %v19181_v41  ;;  %v19185_v30 = vld [vmem:[#allocation22_spill] sm:$0xff] }
 0x204   : > { %v15513_v6 = vadd.f32 %v12681_v44, %v12505_v22  ;;  %v2229_v53 = vpop.f32.mrf.mxu1  ;;  %13010 = vmatprep.mubr.msk.f32.mxu0 %vm1588_vm1, %v19183_v10 }
 0x205   : > { %v2807_v0 = vpop.f32.mrf.mxu0 }
 0x206   : > { %19182 = vst [vmem:[#allocation114_spill] sm:$0xff] %v15513_v6  ;;  %v15517_v63 = vadd.f32 %v2807_v0, %v2219_v8  ;;  %v12511_v12 = vpop.f32.mrf.mxu1  ;;  %12838 = vmatmul.mubr.msk.f32.gmra.mxu1 %vm1588_vm1, %v19179_v59  ;;  %v19187_v6 = vld [vmem:[#allocation23_spill] sm:$0xff] }
 0x207   : > { %v12684_v54 = vpop.f32.mrf.mxu0  ;;  %12840 = vmatprep.mubr.msk.f32.mxu1 %vm1588_vm1, %v19180_v42  ;;  %13011 = vmatmul.mubr.msk.f32.gmra.mxu0 %vm1588_vm1, %v19185_v30  ;;  %v19189_v42 = vld [vmem:[#allocation24_spill] sm:$0xff] }
 0x208   : > { %19184 = vst [vmem:[#allocation115_spill] sm:$0xff] %v15517_v63  ;;  %v15525_v22 = vadd.f32 %v12684_v54, %v12508_v32  ;;  %v2239_v44 = vpop.f32.mrf.mxu1  ;;  %13013 = vmatprep.mubr.msk.f32.mxu0 %vm1588_vm1, %v19187_v6 }
 0x209   : > { %v2817_v55 = vpop.f32.mrf.mxu0 }
 0x20a   : > { %19186 = vst [vmem:[#allocation116_spill] sm:$0xff] %v15525_v22  ;;  %v15529_v0 = vadd.f32 %v2817_v55, %v2229_v53  ;;  %v12514_v8 = vpop.f32.mrf.mxu1  ;;  %12841 = vmatmul.mubr.msk.f32.gmra.mxu1 %vm1588_vm1, %v19181_v41  ;;  %v19191_v22 = vld [vmem:[#allocation25_spill] sm:$0xff] }
 0x20b   : > { %v12687_v63 = vpop.f32.mrf.mxu0  ;;  %12843 = vmatprep.mubr.msk.f32.mxu1 %vm1588_vm1, %v19183_v10  ;;  %13014 = vmatmul.mubr.msk.f32.gmra.mxu0 %vm1588_vm1, %v19189_v42 }
 0x20c   : > { %19188 = vst [vmem:[#allocation117_spill] sm:$0xff] %v15529_v0  ;;  %v15537_v54 = vadd.f32 %v12687_v63, %v12511_v12  ;;  %v2249_v32 = vpop.f32.mrf.mxu1  ;;  %13016 = vmatprep.mubr.msk.f32.mxu0 %vm1588_vm1, %v19191_v22  ;;  %v19193_v0 = vld [vmem:[#allocation26_spill] sm:$0xff]  ;;  %v19194_v12 = vld [vmem:[#allocation27_spill] sm:$0xff] }
 0x20d   : > { %v2827_v59 = vpop.f32.mrf.mxu0 }
 0x20e   : > { %19190 = vst [vmem:[#allocation118_spill] sm:$0xff] %v15537_v54  ;;  %v15541_v55 = vadd.f32 %v2827_v59, %v2239_v44  ;;  %v12517_v53 = vpop.f32.mrf.mxu1  ;;  %12844 = vmatmul.mubr.msk.f32.gmra.mxu1 %vm1588_vm1, %v19185_v30  ;;  %v19195_v44 = vld [vmem:[#allocation28_spill] sm:$0xff] }
 0x20f   : > { %v12690_v8 = vpop.f32.mrf.mxu0  ;;  %12846 = vmatprep.mubr.msk.f32.mxu1 %vm1588_vm1, %v19187_v6  ;;  %13017 = vmatmul.mubr.msk.f32.gmra.mxu0 %vm1588_vm1, %v19193_v0  ;;  %v19197_v6 = vld [vmem:[#allocation29_spill] sm:$0xff] }
 0x210   : > { %19192 = vst [vmem:[#allocation119_spill] sm:$0xff] %v15541_v55  ;;  %v2257_v63 = vpop.f32.mrf.mxu1  ;;  %13019 = vmatprep.mubr.msk.f32.mxu0 %vm1588_vm1, %v19194_v12 }
 0x211   : > { %v2837_v32 = vpop.f32.mrf.mxu0 }
 0x212   : > { %v12520_v54 = vpop.f32.mrf.mxu1  ;;  %12847 = vmatmul.mubr.msk.f32.gmra.mxu1 %vm1588_vm1, %v19189_v42 }
 0x213   : > { %v12693_v59 = vpop.f32.mrf.mxu0  ;;  %12849 = vmatprep.mubr.msk.f32.mxu1 %vm1588_vm1, %v19191_v22  ;;  %13020 = vmatmul.mubr.msk.f32.gmra.mxu0 %vm1588_vm1, %v19195_v44  ;;  %v19199_v22 = vld [vmem:[#allocation30_spill] sm:$0xff] }
 0x214   : > { %v15557_v8 = vadd.f32 %v12693_v59, %v12517_v53  ;;  %v2267_v55 = vpop.f32.mrf.mxu1  ;;  %13022 = vmatprep.mubr.msk.f32.mxu0 %vm1588_vm1, %v19197_v6 }
 0x215   : > { %v2845_v30 = vpop.f32.mrf.mxu0 }
 0x216   : > { %19196 = vst [vmem:[#allocation120_spill] sm:$0xff] %v15557_v8  ;;  %v15561_v10 = vadd.f32 %v2845_v30, %v2257_v63  ;;  %v12523_v32 = vpop.f32.mrf.mxu1  ;;  %12850 = vmatmul.mubr.msk.f32.gmra.mxu1 %vm1588_vm1, %v19193_v0  ;;  %v19201_v8 = vld [vmem:[#allocation31_spill] sm:$0xff] }
 0x217   : > { %v12696_v42 = vpop.f32.mrf.mxu0  ;;  %12852 = vmatprep.mubr.msk.f32.mxu1 %vm1588_vm1, %v19194_v12  ;;  %13023 = vmatmul.mubr.msk.f32.gmra.mxu0 %vm1588_vm1, %v19199_v22  ;;  %v19203_v12 = vld [vmem:[#allocation32_spill] sm:$0xff] }
 0x218   : > { %19198 = vst [vmem:[#allocation121_spill] sm:$0xff] %v15561_v10  ;;  %v15569_v53 = vadd.f32 %v12696_v42, %v12520_v54  ;;  %v2277_v59 = vpop.f32.mrf.mxu1  ;;  %13025 = vmatprep.mubr.msk.f32.mxu0 %vm1588_vm1, %v19201_v8  ;;  %v5084_v42 = vld [vmem:[%s18723_s3 + $0xb8] sm:$0xff] }
 0x219   : > { %v2855_v41 = vpop.f32.mrf.mxu0  ;;  %13303 = vmatprep.subr.mxu0 %v5084_v42 }
 0x21a   : > { %19200 = vst [vmem:[#allocation122_spill] sm:$0xff] %v15569_v53  ;;  %v15573_v30 = vadd.f32 %v2855_v41, %v2267_v55  ;;  %v12526_v63 = vpop.f32.mrf.mxu1  ;;  %12853 = vmatmul.mubr.msk.f32.gmra.mxu1 %vm1588_vm1, %v19195_v44  ;;  %v19205_v41 = vld [vmem:[#allocation33_spill] sm:$0xff]  ;;  %13304 = vmatpush3.msra.mxu0 %v5084_v42 }
 0x21b   : > { %v12699_v10 = vpop.f32.mrf.mxu0  ;;  %12855 = vmatprep.mubr.msk.f32.mxu1 %vm1588_vm1, %v19197_v6  ;;  %13026 = vmatmul.mubr.msk.f32.gmra.mxu0 %vm1588_vm1, %v19203_v12  ;;  %v5083_v63 = vld [vmem:[%s18723_s3 + $0xb0] sm:$0xff] }
 0x21c   : > { %19202 = vst [vmem:[#allocation123_spill] sm:$0xff] %v15573_v30  ;;  %v15584_v54 = vadd.f32 %v12699_v10, %v12523_v32  ;;  %v2287_v53 = vpop.f32.mrf.mxu1  ;;  %13028 = vmatprep.mubr.msk.f32.mxu0 %vm1588_vm1, %v19205_v41  ;;  %13305 = vmatprep.subr.mxu0 %v5083_v63  ;;  %v15598_v10 = vld [vmem:[%s18723_s3 + $0xd8] sm:$0xff] }
 0x21d   : > { %v2865_v55 = vpop.f32.mrf.mxu0  ;;  %v19207_v53 = vld [vmem:[#allocation34_spill] sm:$0xff]  ;;  %13479 = vmatprep.subr.mxu1 %v15598_v10  ;;  %13306 = vmatpush3.msra.mxu0 %v5083_v63  ;;  %v19211_v63 = vld [vmem:[#allocation37_spill] sm:$0xff] }
 0x21e   : > { %19204 = vst [vmem:[#allocation124_spill] sm:$0xff] %v15584_v54  ;;  %v15591_v30 = vadd.f32 %v2865_v55, %v2277_v59  ;;  %v12529_v6 = vpop.f32.mrf.mxu1  ;;  %12856 = vmatmul.mubr.msk.f32.gmra.mxu1 %vm1588_vm1, %v19199_v22  ;;  %v5082_v59 = vld [vmem:[%s18723_s3 + $0xa8] sm:$0xff]  ;;  %v19209_v22 = vld [vmem:[#allocation36_spill] sm:$0xff] }
 0x21f   : > { %v12702_v32 = vpop.f32.mrf.mxu0  ;;  %12858 = vmatprep.mubr.msk.f32.mxu1 %vm1588_vm1, %v19201_v8  ;;  %13029 = vmatmul.mubr.msk.f32.gmra.mxu0 %vm1588_vm1, %v19207_v53  ;;  %v19208_v55 = vld [vmem:[#allocation35_spill] sm:$0xff] }
 0x220   : > { %19206 = vst [vmem:[#allocation125_spill] sm:$0xff] %v15591_v30  ;;  %v2295_v42 = vpop.f32.mrf.mxu1  ;;  %13031 = vmatprep.mubr.msk.f32.mxu0 %vm1588_vm1, %v19208_v55  ;;  %13307 = vmatprep.subr.mxu0 %v5082_v59  ;;  %v5081_v32 = vld [vmem:[%s18723_s3 + $0xa0] sm:$0xff] }
 0x221   : > { %v2875_v30 = vpop.f32.mrf.mxu0  ;;  %13308 = vmatpush3.msra.mxu0 %v5082_v59  ;;  %v19215_v59 = vld [vmem:[#allocation39_spill] sm:$0xff] }
 0x222   : > { %v12532_v54 = vpop.f32.mrf.mxu1  ;;  %12859 = vmatmul.mubr.msk.f32.gmra.mxu1 %vm1588_vm1, %v19203_v12  ;;  %13309 = vmatprep.subr.mxu0 %v5081_v32 }
 0x223   : > { %v12705_v8 = vpop.f32.mrf.mxu0  ;;  %12861 = vmatprep.mubr.msk.f32.mxu1 %vm1588_vm1, %v19205_v41  ;;  %13032 = vmatmul.mubr.msk.f32.gmra.mxu0 %vm1588_vm1, %v19209_v22 }
 0x224   : > { %v15619_v44 = vadd.f32 %v12705_v8, %v12529_v6  ;;  %v2305_v30 = vpop.f32.mrf.mxu1  ;;  %13034 = vmatprep.mubr.msk.f32.mxu0 %vm1588_vm1, %v19211_v63  ;;  %13310 = vmatpush3.msra.mxu0 %v5081_v32  ;;  %v19213_v6 = vld [vmem:[#allocation38_spill] sm:$0xff] }
 0x225   : > { %v2883_v12 = vpop.f32.mrf.mxu0 }
 0x226   : > { %19210 = vst [vmem:[#allocation126_spill] sm:$0xff] %v15619_v44  ;;  %v15623_v0 = vadd.f32 %v2883_v12, %v2295_v42  ;;  %v12535_v43 = vpop.f32.mrf.mxu1  ;;  %12862 = vmatmul.mubr.msk.f32.gmra.mxu1 %vm1588_vm1, %v19207_v53 }
 0x227   : > { %v12708_v41 = vpop.f32.mrf.mxu0  ;;  %12864 = vmatprep.mubr.msk.f32.mxu1 %vm1588_vm1, %v19208_v55  ;;  %13035 = vmatmul.mubr.msk.f32.gmra.mxu0 %vm1588_vm1, %v19213_v6  ;;  %v19217_v55 = vld [vmem:[#allocation40_spill] sm:$0xff] }
 0x228   : > { %19212 = vst [vmem:[#allocation127_spill] sm:$0xff] %v15623_v0  ;;  %v15631_v8 = vadd.f32 %v12708_v41, %v12532_v54  ;;  %v2315_v44 = vpop.f32.mrf.mxu1  ;;  %13037 = vmatprep.mubr.msk.f32.mxu0 %vm1588_vm1, %v19215_v59 }
 0x229   : > { %v2893_v12 = vpop.f32.mrf.mxu0 }
 0x22a   : > { %19214 = vst [vmem:[#allocation128_spill] sm:$0xff] %v15631_v8  ;;  %v15635_v42 = vadd.f32 %v2893_v12, %v2305_v30  ;;  %v12538_v0 = vpop.f32.mrf.mxu1  ;;  %12865 = vmatmul.mubr.msk.f32.gmra.mxu1 %vm1588_vm1, %v19209_v22  ;;  %v19219_v8 = vld [vmem:[#allocation41_spill] sm:$0xff] }
 0x22b   : > { %v12711_v32 = vpop.f32.mrf.mxu0  ;;  %12867 = vmatprep.mubr.msk.f32.mxu1 %vm1588_vm1, %v19211_v63  ;;  %13038 = vmatmul.mubr.msk.f32.gmra.mxu0 %vm1588_vm1, %v19217_v55 }
 0x22c   : > { %19216 = vst [vmem:[#allocation129_spill] sm:$0xff] %v15635_v42  ;;  %v15643_v54 = vadd.f32 %v12711_v32, %v12535_v43  ;;  %v2325_v41 = vpop.f32.mrf.mxu1  ;;  %13040 = vmatprep.mubr.msk.f32.mxu0 %vm1588_vm1, %v19219_v8  ;;  %v19221_v42 = vld [vmem:[#allocation42_spill] sm:$0xff]  ;;  %v19222_v32 = vld [vmem:[#allocation43_spill] sm:$0xff] }
 0x22d   : > { %v2903_v53 = vpop.f32.mrf.mxu0 }
 0x22e   : > { %19218 = vst [vmem:[#allocation130_spill] sm:$0xff] %v15643_v54  ;;  %v15647_v30 = vadd.f32 %v2903_v53, %v2315_v44  ;;  %v12541_v0 = vpop.f32.mrf.mxu1  ;;  %12868 = vmatmul.mubr.msk.f32.gmra.mxu1 %vm1588_vm1, %v19213_v6  ;;  %v19223_v53 = vld [vmem:[#allocation44_spill] sm:$0xff] }
 0x22f   : > { %v12714_v12 = vpop.f32.mrf.mxu0  ;;  %12870 = vmatprep.mubr.msk.f32.mxu1 %vm1588_vm1, %v19215_v59  ;;  %13041 = vmatmul.mubr.msk.f32.gmra.mxu0 %vm1588_vm1, %v19221_v42  ;;  %v19225_v59 = vld [vmem:[#allocation45_spill] sm:$0xff] }
 0x230   : > { %19220 = vst [vmem:[#allocation131_spill] sm:$0xff] %v15647_v30  ;;  %v2333_v43 = vpop.f32.mrf.mxu1  ;;  %13043 = vmatprep.mubr.msk.f32.mxu0 %vm1588_vm1, %v19222_v32 }
 0x231   : > { %v2913_v41 = vpop.f32.mrf.mxu0 }
 0x232   : > { %v12544_v54 = vpop.f32.mrf.mxu1  ;;  %12871 = vmatmul.mubr.msk.f32.gmra.mxu1 %vm1588_vm1, %v19217_v55 }
 0x233   : > { %v12717_v44 = vpop.f32.mrf.mxu0  ;;  %12873 = vmatprep.mubr.msk.f32.mxu1 %vm1588_vm1, %v19219_v8  ;;  %13044 = vmatmul.mubr.msk.f32.gmra.mxu0 %vm1588_vm1, %v19223_v53  ;;  %v19227_v8 = vld [vmem:[#allocation46_spill] sm:$0xff] }
 0x234   : > { %v15663_v12 = vadd.f32 %v12717_v44, %v12541_v0  ;;  %v2343_v30 = vpop.f32.mrf.mxu1  ;;  %13046 = vmatprep.mubr.msk.f32.mxu0 %vm1588_vm1, %v19225_v59 }
 0x235   : > { %v2921_v6 = vpop.f32.mrf.mxu0 }
 0x236   : > { %19224 = vst [vmem:[#allocation132_spill] sm:$0xff] %v15663_v12  ;;  %v15667_v63 = vadd.f32 %v2921_v6, %v2333_v43  ;;  %v12547_v41 = vpop.f32.mrf.mxu1  ;;  %12874 = vmatmul.mubr.msk.f32.gmra.mxu1 %vm1588_vm1, %v19221_v42  ;;  %v19229_v12 = vld [vmem:[#allocation47_spill] sm:$0xff] }
 0x237   : > { %v12720_v55 = vpop.f32.mrf.mxu0  ;;  %12876 = vmatprep.mubr.msk.f32.mxu1 %vm1588_vm1, %v19222_v32  ;;  %13047 = vmatmul.mubr.msk.f32.gmra.mxu0 %vm1588_vm1, %v19227_v8  ;;  %v19231_v32 = vld [vmem:[#allocation48_spill] sm:$0xff] }
 0x238   : > { %19226 = vst [vmem:[#allocation133_spill] sm:$0xff] %v15667_v63  ;;  %v15675_v0 = vadd.f32 %v12720_v55, %v12544_v54  ;;  %v2353_v44 = vpop.f32.mrf.mxu1  ;;  %13049 = vmatprep.mubr.msk.f32.mxu0 %vm1588_vm1, %v19229_v12 }
 0x239   : > { %v2931_v22 = vpop.f32.mrf.mxu0 }
 0x23a   : > { %19228 = vst [vmem:[#allocation134_spill] sm:$0xff] %v15675_v0  ;;  %v15679_v6 = vadd.f32 %v2931_v22, %v2343_v30  ;;  %v12550_v43 = vpop.f32.mrf.mxu1  ;;  %12877 = vmatmul.mubr.msk.f32.gmra.mxu1 %vm1588_vm1, %v19223_v53  ;;  %v19233_v0 = vld [vmem:[#allocation49_spill] sm:$0xff] }
 0x23b   : > { %v12723_v63 = vpop.f32.mrf.mxu0  ;;  %12879 = vmatprep.mubr.msk.f32.mxu1 %vm1588_vm1, %v19225_v59  ;;  %13050 = vmatmul.mubr.msk.f32.gmra.mxu0 %vm1588_vm1, %v19231_v32 }
 0x23c   : > { %19230 = vst [vmem:[#allocation135_spill] sm:$0xff] %v15679_v6  ;;  %v15687_v55 = vadd.f32 %v12723_v63, %v12547_v41  ;;  %v2363_v54 = vpop.f32.mrf.mxu1  ;;  %13052 = vmatprep.mubr.msk.f32.mxu0 %vm1588_vm1, %v19233_v0  ;;  %v19235_v6 = vld [vmem:[#allocation50_spill] sm:$0xff]  ;;  %v19236_v41 = vld [vmem:[#allocation51_spill] sm:$0xff] }
 0x23d   : > { %v2941_v42 = vpop.f32.mrf.mxu0 }
 0x23e   : > { %19232 = vst [vmem:[#allocation136_spill] sm:$0xff] %v15687_v55  ;;  %v15691_v22 = vadd.f32 %v2941_v42, %v2353_v44  ;;  %v12553_v30 = vpop.f32.mrf.mxu1  ;;  %12880 = vmatmul.mubr.msk.f32.gmra.mxu1 %vm1588_vm1, %v19227_v8  ;;  %v19237_v44 = vld [vmem:[#allocation52_spill] sm:$0xff] }
 0x23f   : > { %v12726_v43 = vpop.f32.mrf.mxu0  ;;  %12882 = vmatprep.mubr.msk.f32.mxu1 %vm1588_vm1, %v19229_v12  ;;  %13053 = vmatmul.mubr.msk.f32.gmra.mxu0 %vm1588_vm1, %v19235_v6  ;;  %v19239_v12 = vld [vmem:[#allocation53_spill] sm:$0xff] }
 0x240   : > { %19234 = vst [vmem:[#allocation137_spill] sm:$0xff] %v15691_v22  ;;  %v2371_v63 = vpop.f32.mrf.mxu1  ;;  %13055 = vmatprep.mubr.msk.f32.mxu0 %vm1588_vm1, %v19236_v41 }
 0x241   : > { %v2951_v54 = vpop.f32.mrf.mxu0 }
 0x242   : > { %v12556_v55 = vpop.f32.mrf.mxu1  ;;  %12883 = vmatmul.mubr.msk.f32.gmra.mxu1 %vm1588_vm1, %v19231_v32 }
 0x243   : > { %v12729_v42 = vpop.f32.mrf.mxu0  ;;  %12885 = vmatprep.mubr.msk.f32.mxu1 %vm1588_vm1, %v19233_v0  ;;  %13056 = vmatmul.mubr.msk.f32.gmra.mxu0 %vm1588_vm1, %v19237_v44  ;;  %v19241_v0 = vld [vmem:[#allocation54_spill] sm:$0xff] }
 0x244   : > { %v15707_v43 = vadd.f32 %v12729_v42, %v12553_v30  ;;  %v2381_v22 = vpop.f32.mrf.mxu1  ;;  %13058 = vmatprep.mubr.msk.f32.mxu0 %vm1588_vm1, %v19239_v12 }
 0x245   : > { %v2959_v8 = vpop.f32.mrf.mxu0 }
 0x246   : > { %19238 = vst [vmem:[#allocation138_spill] sm:$0xff] %v15707_v43  ;;  %v15711_v59 = vadd.f32 %v2959_v8, %v2371_v63  ;;  %v12559_v54 = vpop.f32.mrf.mxu1  ;;  %12886 = vmatmul.mubr.msk.f32.gmra.mxu1 %vm1588_vm1, %v19235_v6  ;;  %v19243_v43 = vld [vmem:[#allocation55_spill] sm:$0xff] }
 0x247   : > { %v12732_v32 = vpop.f32.mrf.mxu0  ;;  %12888 = vmatprep.mubr.msk.f32.mxu1 %vm1588_vm1, %v19236_v41  ;;  %13059 = vmatmul.mubr.msk.f32.gmra.mxu0 %vm1588_vm1, %v19241_v0  ;;  %v19245_v41 = vld [vmem:[#allocation56_spill] sm:$0xff] }
 0x248   : > { %19240 = vst [vmem:[#allocation139_spill] sm:$0xff] %v15711_v59  ;;  %v15719_v30 = vadd.f32 %v12732_v32, %v12556_v55  ;;  %v2391_v42 = vpop.f32.mrf.mxu1  ;;  %13061 = vmatprep.mubr.msk.f32.mxu0 %vm1588_vm1, %v19243_v43 }
 0x249   : > { %v2969_v53 = vpop.f32.mrf.mxu0 }
 0x24a   : > { %19242 = vst [vmem:[#allocation140_spill] sm:$0xff] %v15719_v30  ;;  %v15723_v8 = vadd.f32 %v2969_v53, %v2381_v22  ;;  %v12562_v63 = vpop.f32.mrf.mxu1  ;;  %12889 = vmatmul.mubr.msk.f32.gmra.mxu1 %vm1588_vm1, %v19237_v44  ;;  %v19247_v30 = vld [vmem:[#allocation57_spill] sm:$0xff] }
 0x24b   : > { %v12735_v59 = vpop.f32.mrf.mxu0  ;;  %12891 = vmatprep.mubr.msk.f32.mxu1 %vm1588_vm1, %v19239_v12  ;;  %13062 = vmatmul.mubr.msk.f32.gmra.mxu0 %vm1588_vm1, %v19245_v41 }
 0x24c   : > { %19244 = vst [vmem:[#allocation141_spill] sm:$0xff] %v15723_v8  ;;  %v15731_v32 = vadd.f32 %v12735_v59, %v12559_v54  ;;  %v2401_v55 = vpop.f32.mrf.mxu1  ;;  %13064 = vmatprep.mubr.msk.f32.mxu0 %vm1588_vm1, %v19247_v30  ;;  %v19249_v8 = vld [vmem:[#allocation58_spill] sm:$0xff]  ;;  %v19250_v54 = vld [vmem:[#allocation59_spill] sm:$0xff] }
 0x24d   : > { %v2979_v6 = vpop.f32.mrf.mxu0 }
 0x24e   : > { %19246 = vst [vmem:[#allocation142_spill] sm:$0xff] %v15731_v32  ;;  %v15735_v53 = vadd.f32 %v2979_v6, %v2391_v42  ;;  %v12565_v22 = vpop.f32.mrf.mxu1  ;;  %12892 = vmatmul.mubr.msk.f32.gmra.mxu1 %vm1588_vm1, %v19241_v0  ;;  %v19251_v42 = vld [vmem:[#allocation60_spill] sm:$0xff] }
 0x24f   : > { %v12738_v63 = vpop.f32.mrf.mxu0  ;;  %12894 = vmatprep.mubr.msk.f32.mxu1 %vm1588_vm1, %v19243_v43  ;;  %13065 = vmatmul.mubr.msk.f32.gmra.mxu0 %vm1588_vm1, %v19249_v8  ;;  %v19253_v43 = vld [vmem:[#allocation61_spill] sm:$0xff] }
 0x250   : > { %19248 = vst [vmem:[#allocation143_spill] sm:$0xff] %v15735_v53  ;;  %v2409_v59 = vpop.f32.mrf.mxu1  ;;  %13067 = vmatprep.mubr.msk.f32.mxu0 %vm1588_vm1, %v19250_v54 }
 0x251   : > { %v2989_v55 = vpop.f32.mrf.mxu0 }
 0x252   : > { %v12568_v32 = vpop.f32.mrf.mxu1  ;;  %12895 = vmatmul.mubr.msk.f32.gmra.mxu1 %vm1588_vm1, %v19245_v41 }
 0x253   : > { %v12741_v6 = vpop.f32.mrf.mxu0  ;;  %12897 = vmatprep.mubr.msk.f32.mxu1 %vm1588_vm1, %v19247_v30  ;;  %13068 = vmatmul.mubr.msk.f32.gmra.mxu0 %vm1588_vm1, %v19251_v42  ;;  %v19255_v30 = vld [vmem:[#allocation62_spill] sm:$0xff] }
 0x254   : > { %v15751_v63 = vadd.f32 %v12741_v6, %v12565_v22  ;;  %v2419_v53 = vpop.f32.mrf.mxu1  ;;  %13070 = vmatprep.mubr.msk.f32.mxu0 %vm1588_vm1, %v19253_v43 }
 0x255   : > { %v2997_v0 = vpop.f32.mrf.mxu0 }
 0x256   : > { %19252 = vst [vmem:[#allocation144_spill] sm:$0xff] %v15751_v63  ;;  %v15755_v12 = vadd.f32 %v2997_v0, %v2409_v59  ;;  %v12571_v55 = vpop.f32.mrf.mxu1  ;;  %12898 = vmatmul.mubr.msk.f32.gmra.mxu1 %vm1588_vm1, %v19249_v8  ;;  %v19257_v63 = vld [vmem:[#allocation63_spill] sm:$0xff] }
 0x257   : > { %v12744_v41 = vpop.f32.mrf.mxu0  ;;  %12900 = vmatprep.mubr.msk.f32.mxu1 %vm1588_vm1, %v19250_v54  ;;  %13071 = vmatmul.mubr.msk.f32.gmra.mxu0 %vm1588_vm1, %v19255_v30  ;;  %v19259_v54 = vld [vmem:[#allocation64_spill] sm:$0xff] }
 0x258   : > { %19254 = vst [vmem:[#allocation145_spill] sm:$0xff] %v15755_v12  ;;  %v15763_v22 = vadd.f32 %v12744_v41, %v12568_v32  ;;  %v2429_v6 = vpop.f32.mrf.mxu1  ;;  %13073 = vmatprep.mubr.msk.f32.mxu0 %vm1588_vm1, %v19257_v63 }
 0x259   : > { %v3007_v44 = vpop.f32.mrf.mxu0 }
 0x25a   : > { %19256 = vst [vmem:[#allocation62_spill] sm:$0xff] %v15763_v22  ;;  %v15767_v0 = vadd.f32 %v3007_v44, %v2419_v53  ;;  %v12574_v59 = vpop.f32.mrf.mxu1  ;;  %12901 = vmatmul.mubr.msk.f32.gmra.mxu1 %vm1588_vm1, %v19251_v42  ;;  %v19261_v22 = vld [vmem:[#allocation65_spill] sm:$0xff] }
 0x25b   : > { %v12747_v12 = vpop.f32.mrf.mxu0  ;;  %12903 = vmatprep.mubr.msk.f32.mxu1 %vm1588_vm1, %v19253_v43  ;;  %13074 = vmatmul.mubr.msk.f32.gmra.mxu0 %vm1588_vm1, %v19259_v54 }
 0x25c   : > { %19258 = vst [vmem:[#allocation63_spill] sm:$0xff] %v15767_v0  ;;  %v15775_v41 = vadd.f32 %v12747_v12, %v12571_v55  ;;  %v2439_v32 = vpop.f32.mrf.mxu1  ;;  %13076 = vmatprep.mubr.msk.f32.mxu0 %vm1588_vm1, %v19261_v22  ;;  %v19263_v0 = vld [vmem:[#allocation66_spill] sm:$0xff]  ;;  %v19264_v55 = vld [vmem:[#allocation67_spill] sm:$0xff] }
 0x25d   : > { %v3017_v8 = vpop.f32.mrf.mxu0 }
 0x25e   : > { %19260 = vst [vmem:[#allocation146_spill] sm:$0xff] %v15775_v41  ;;  %v15779_v44 = vadd.f32 %v3017_v8, %v2429_v6  ;;  %v12577_v53 = vpop.f32.mrf.mxu1  ;;  %12904 = vmatmul.mubr.msk.f32.gmra.mxu1 %vm1588_vm1, %v19255_v30  ;;  %v19265_v6 = vld [vmem:[#allocation68_spill] sm:$0xff] }
 0x25f   : > { %v12750_v59 = vpop.f32.mrf.mxu0  ;;  %12906 = vmatprep.mubr.msk.f32.mxu1 %vm1588_vm1, %v19257_v63  ;;  %13077 = vmatmul.mubr.msk.f32.gmra.mxu0 %vm1588_vm1, %v19263_v0 }
 0x260   : > { %19262 = vst [vmem:[#allocation147_spill] sm:$0xff] %v15779_v44  ;;  %v2447_v12 = vpop.f32.mrf.mxu1  ;;  %13079 = vmatprep.mubr.msk.f32.mxu0 %vm1588_vm1, %v19264_v55  ;;  %v19266_v59 = vld [vmem:[#allocation69_spill] sm:$0xff] }
 0x261   : > { %v3027_v32 = vpop.f32.mrf.mxu0 }
 0x262   : > { %v12580_v41 = vpop.f32.mrf.mxu1  ;;  %12907 = vmatmul.mubr.msk.f32.gmra.mxu1 %vm1588_vm1, %v19259_v54  ;;  %v19267_v32 = vld [vmem:[#allocation70_spill] sm:$0xff] }
 0x263   : > { %v12753_v8 = vpop.f32.mrf.mxu0  ;;  %12909 = vmatprep.mubr.msk.f32.mxu1 %vm1588_vm1, %v19261_v22  ;;  %13080 = vmatmul.mubr.msk.f32.gmra.mxu0 %vm1588_vm1, %v19265_v6  ;;  %v19268_v22 = vld [vmem:[#allocation71_spill] sm:$0xff] }
 0x264   : > { %v2455_v53 = vpop.f32.mrf.mxu1  ;;  %13082 = vmatprep.mubr.msk.f32.mxu0 %vm1588_vm1, %v19266_v59 }
 0x265   : > { %v3035_v12 = vpop.f32.mrf.mxu0 }
 0x266   : > { %v12583_v44 = vpop.f32.mrf.mxu1  ;;  %12910 = vmatmul.mubr.msk.f32.gmra.mxu1 %vm1588_vm1, %v19263_v0  ;;  %v19269_v12 = vld [vmem:[#allocation72_spill] sm:$0xff] }
 0x267   : > { %v12756_v41 = vpop.f32.mrf.mxu0  ;;  %12912 = vmatprep.mubr.msk.f32.mxu1 %vm1588_vm1, %v19264_v55  ;;  %13083 = vmatmul.mubr.msk.f32.gmra.mxu0 %vm1588_vm1, %v19267_v32  ;;  %v19270_v55 = vld [vmem:[#allocation73_spill] sm:$0xff] }
 0x268   : > { %v2463_v8 = vpop.f32.mrf.mxu1  ;;  %13085 = vmatprep.mubr.msk.f32.mxu0 %vm1588_vm1, %v19268_v22 }
 0x269   : > { %v3043_v53 = vpop.f32.mrf.mxu0 }
 0x26a   : > { %v12586_v54 = vpop.f32.mrf.mxu1  ;;  %12913 = vmatmul.mubr.msk.f32.gmra.mxu1 %vm1588_vm1, %v19265_v6  ;;  %v19271_v53 = vld [vmem:[#allocation74_spill] sm:$0xff] }
 0x26b   : > { %v12759_v44 = vpop.f32.mrf.mxu0  ;;  %12915 = vmatprep.mubr.msk.f32.mxu1 %vm1588_vm1, %v19266_v59  ;;  %13086 = vmatmul.mubr.msk.f32.gmra.mxu0 %vm1588_vm1, %v19269_v12  ;;  %v19272_v59 = vld [vmem:[#allocation75_spill] sm:$0xff] }
 0x26c   : > { %v2471_v41 = vpop.f32.mrf.mxu1  ;;  %13088 = vmatprep.mubr.msk.f32.mxu0 %vm1588_vm1, %v19270_v55 }
 0x26d   : > { %v3051_v8 = vpop.f32.mrf.mxu0 }
 0x26e   : > { %v12589_v0 = vpop.f32.mrf.mxu1  ;;  %12916 = vmatmul.mubr.msk.f32.gmra.mxu1 %vm1588_vm1, %v19267_v32  ;;  %v19273_v8 = vld [vmem:[#allocation76_spill] sm:$0xff] }
 0x26f   : > { %v12762_v54 = vpop.f32.mrf.mxu0  ;;  %12918 = vmatprep.mubr.msk.f32.mxu1 %vm1588_vm1, %v19268_v22  ;;  %13089 = vmatmul.mubr.msk.f32.gmra.mxu0 %vm1588_vm1, %v19271_v53 }
 0x270   : > { %v2479_v44 = vpop.f32.mrf.mxu1  ;;  %13091 = vmatprep.mubr.msk.f32.mxu0 %vm1588_vm1, %v19272_v59 }
 0x271   : > { %v3059_v41 = vpop.f32.mrf.mxu0 }
 0x272   : > { %v12592_v6 = vpop.f32.mrf.mxu1  ;;  %12919 = vmatmul.mubr.msk.f32.gmra.mxu1 %vm1588_vm1, %v19269_v12 }
 0x273   : > { %v12765_v0 = vpop.f32.mrf.mxu0  ;;  %12921 = vmatprep.mubr.msk.f32.mxu1 %vm1588_vm1, %v19270_v55  ;;  %13092 = vmatmul.mubr.msk.f32.gmra.mxu0 %vm1588_vm1, %v19273_v8 }
 0x274   : > { %v2487_v54 = vpop.f32.mrf.mxu1  ;;  %13094 = vmatprep.mubr.msk.f32.mxu0 %vm1588_vm1, %v15174_v13 }
 0x275   : > { %v3067_v44 = vpop.f32.mrf.mxu0 }
 0x276   : > { %v12595_v22 = vpop.f32.mrf.mxu1  ;;  %12922 = vmatmul.mubr.msk.f32.gmra.mxu1 %vm1588_vm1, %v19271_v53 }
 0x277   : > { %v12768_v6 = vpop.f32.mrf.mxu0  ;;  %12924 = vmatprep.mubr.msk.f32.mxu1 %vm1588_vm1, %v19272_v59  ;;  %13095 = vmatmul.mubr.msk.f32.gmra.mxu0 %vm1588_vm1, %v15180_v29 }
 0x278   : > { %v2495_v41 = vpop.f32.mrf.mxu1  ;;  %13097 = vmatprep.mubr.msk.f32.mxu0 %vm1588_vm1, %v15190_v62 }
 0x279   : > { %v3075_v0 = vpop.f32.mrf.mxu0 }
 0x27a   : > { %v12598_v54 = vpop.f32.mrf.mxu1  ;;  %12925 = vmatmul.mubr.msk.f32.gmra.mxu1 %vm1588_vm1, %v19273_v8  ;;  %v19274_v0 = vld [vmem:[#allocation82_spill] sm:$0xff] }
 0x27b   : > { %v12771_v22 = vpop.f32.mrf.mxu0  ;;  %12927 = vmatprep.mubr.msk.f32.mxu1 %vm1588_vm1, %v15174_v13  ;;  %13098 = vmatmul.mubr.msk.f32.gmra.mxu0 %vm1588_vm1, %v15194_v49 }
 0x27c   : > { %v2503_v44 = vpop.f32.mrf.mxu1  ;;  %13100 = vmatprep.mubr.msk.f32.mxu0 %vm1588_vm1, %v15206_v4 }
 0x27d   : > { %v3083_v6 = vpop.f32.mrf.mxu0  ;;  %v19275_v44 = vld [vmem:[#allocation84_spill] sm:$0xff] }
 0x27e   : > { %v12785_v41 = vpop.f32.mrf.mxu1  ;;  %12928 = vmatmul.mubr.msk.f32.gmra.mxu1 %vm1588_vm1, %v15180_v29 }
 0x27f   : > { %v3688_v54 = vadd.f32 %v12785_v41, %v19274_v0  ;;  %v12774_v59 = vpop.f32.mrf.mxu0  ;;  %12930 = vmatprep.mubr.msk.f32.mxu1 %vm1588_vm1, %v15190_v62  ;;  %13101 = vmatmul.mubr.msk.f32.gmra.mxu0 %vm1588_vm1, %v15214_v23 }
 0x280   : > { %v3168_v22 = vpop.f32.mrf.mxu1  ;;  %13103 = vmatprep.mubr.msk.f32.mxu0 %vm1588_vm1, %v15224_v7 }
 0x281   : > { %v3687_v13 = vadd.f32 %v3168_v22, %v19275_v44  ;;  %v3091_v6 = vpop.f32.mrf.mxu0  ;;  %v19276_v22 = vld [vmem:[#allocation87_spill] sm:$0xff] }
 0x282   : > { %v12788_v8 = vpop.f32.mrf.mxu1  ;;  %12931 = vmatmul.mubr.msk.f32.gmra.mxu1 %vm1588_vm1, %v15194_v49 }
 0x283   : > { %v3690_v41 = vadd.f32 %v12788_v8, %v15228_v18  ;;  %12933 = vmatprep.mubr.msk.f32.mxu1 %vm1588_vm1, %v15206_v4  ;;  %v12961_v59 = vpop.f32.mrf.mxu0  ;;  %13104 = vmatmul.mubr.msk.f32.gmra.mxu0 %vm1588_vm1, %v15232_v50 }
 0x284   : > { %v15862_v0 = vadd.f32 %v12961_v59, %v3688_v54  ;;  %v3178_v62 = vpop.f32.mrf.mxu1  ;;  %13106 = vmatprep.mubr.msk.f32.mxu0 %vm1588_vm1, %v15244_v47 }
 0x285   : > { %v3689_v44 = vadd.f32 %v3178_v62, %v19276_v22  ;;  %v3829_v6 = vpop.f32.mrf.mxu0 }
 0x286   : > { %v15867_v29 = vadd.f32 %v3829_v6, %v3687_v13  ;;  %v12791_v49 = vpop.f32.mrf.mxu1  ;;  %12934 = vmatmul.mubr.msk.f32.gmra.mxu1 %vm1588_vm1, %v15214_v23 }
 0x287   : > { %v3692_v18 = vadd.f32 %v12791_v49, %v15248_v5  ;;  %12936 = vmatprep.mubr.msk.f32.mxu1 %vm1588_vm1, %v15224_v7  ;;  %v12964_v8 = vpop.f32.mrf.mxu0  ;;  %13107 = vmatmul.mubr.msk.f32.gmra.mxu0 %vm1588_vm1, %v15252_v37 }
 0x288   : > { %v15876_v54 = vadd.f32 %v12964_v8, %v3690_v41  ;;  %v3188_v59 = vpop.f32.mrf.mxu1  ;;  %13109 = vmatprep.mubr.msk.f32.mxu0 %vm1588_vm1, %v15264_v3 }
 0x289   : > { %v3691_v13 = vadd.f32 %v3188_v59, %v15256_v38  ;;  %v3839_v62 = vpop.f32.mrf.mxu0  ;;  %v19281_v59 = vld [vmem:[#allocation93_spill] sm:$0xff] }
 0x28a   : > { %19277 = vst [vmem:[#allocation70_spill] sm:$0xff] %v15876_v54  ;;  %v15881_v22 = vadd.f32 %v3839_v62, %v3689_v44  ;;  %v12794_v6 = vpop.f32.mrf.mxu1  ;;  %12937 = vmatmul.mubr.msk.f32.gmra.mxu1 %vm1588_vm1, %v15232_v50 }
 0x28b   : > { %12939 = vmatprep.mubr.msk.f32.mxu1 %vm1588_vm1, %v15244_v47  ;;  %v12967_v49 = vpop.f32.mrf.mxu0  ;;  %13110 = vmatmul.mubr.msk.f32.gmra.mxu0 %vm1588_vm1, %v15270_v20 }
 0x28c   : > { %19278 = vst [vmem:[#allocation82_spill] sm:$0xff] %v15881_v22  ;;  %v15889_v5 = vadd.f32 %v12967_v49, %v3692_v18  ;;  %v3198_v41 = vpop.f32.mrf.mxu1  ;;  %13112 = vmatprep.mubr.msk.f32.mxu0 %vm1588_vm1, %v15280_v56  ;;  %v19282_v49 = vmov 0.0  }
 0x28d   : > { %v3849_v38 = vpop.f32.mrf.mxu0  ;;  %v19283_v41 = vld [vmem:[#allocation95_spill] sm:$0xff] }
 0x28e   : > { %19279 = vst [vmem:[#allocation84_spill] sm:$0xff] %v15889_v5  ;;  %v15893_v44 = vadd.f32 %v3849_v38, %v3691_v13  ;;  %v12797_v8 = vpop.f32.mrf.mxu1  ;;  %12940 = vmatmul.mubr.msk.f32.gmra.mxu1 %vm1588_vm1, %v15252_v37 }
 0x28f   : > { %v3694_v62 = vadd.f32 %v12797_v8, %v19281_v59  ;;  %12942 = vmatprep.mubr.msk.f32.mxu1 %vm1588_vm1, %v15264_v3  ;;  %v12970_v6 = vpop.f32.mrf.mxu0  ;;  %13113 = vmatmul.mubr.msk.f32.gmra.mxu0 %vm1588_vm1, %v15286_v31 }
 0x290   : > { %19280 = vst [vmem:[#allocation87_spill] sm:$0xff] %v15893_v44  ;;  %v3206_v18 = vpop.f32.mrf.mxu1  ;;  %13115 = vmatprep.mubr.f32.mxu0 %v19282_v49  ;;  %v19284_v44 = vld [vmem:[#allocation96_spill] sm:$0xff] }
 0x291   : > { %v3693_v5 = vadd.f32 %v3206_v18, %v19283_v41  ;;  %v3859_v13 = vpop.f32.mrf.mxu0 }
 0x292   : > { %v12800_v38 = vpop.f32.mrf.mxu1  ;;  %12943 = vmatmul.mubr.msk.f32.gmra.mxu1 %vm1588_vm1, %v15270_v20 }
 0x293   : > { %v3696_v22 = vadd.f32 %v12800_v38, %v19284_v44  ;;  %12945 = vmatprep.mubr.msk.f32.mxu1 %vm1588_vm1, %v15280_v56  ;;  %v12973_v8 = vpop.f32.mrf.mxu0  ;;  %13116 = vmatmul.mubr.f32.gmra.mxu0 %v19282_v49 }
 0x294   : > { %v15910_v59 = vadd.f32 %v12973_v8, %v3694_v62  ;;  %v3216_v6 = vpop.f32.mrf.mxu1  ;;  %13118 = vmatprep.mubr.f32.mxu0 %v19282_v49 }
 0x295   : > { %v3695_v18 = vadd.f32 %v3216_v6, %v15300_v24  ;;  %v3867_v41 = vpop.f32.mrf.mxu0 }
 0x296   : > { %v15914_v13 = vadd.f32 %v3867_v41, %v3693_v5  ;;  %v12803_v54 = vpop.f32.mrf.mxu1  ;;  %12946 = vmatmul.mubr.msk.f32.gmra.mxu1 %vm1588_vm1, %v15286_v31 }
 0x297   : > { %v3698_v44 = vadd.f32 %v12803_v54, %v15307_v14  ;;  %v12976_v38 = vpop.f32.mrf.mxu0  ;;  %13119 = vmatmul.mubr.f32.gmra.mxu0 %v19282_v49  ;;  %12948 = vmatprep.mubr.f32.mxu1 %v19282_v49 }
 0x298   : > { %19285 = vst [vmem:[#allocation93_spill] sm:$0xff] %v15914_v13  ;;  %v15921_v62 = vadd.f32 %v12976_v38, %v3696_v22  ;;  %v3226_v8 = vpop.f32.mrf.mxu1  ;;  %13121 = vmatprep.mubr.f32.mxu0 %v19282_v49 }
 0x299   : > { %v3697_v24 = vadd.f32 %v3226_v8, %v15311_v61  ;;  %v3877_v5 = vpop.f32.mrf.mxu0 }
 0x29a   : > { %v15925_v6 = vadd.f32 %v3877_v5, %v3695_v18  ;;  %v12806_v41 = vpop.f32.mrf.mxu1  ;;  %12949 = vmatmul.mubr.f32.gmra.mxu1 %v19282_v49  ;;  %v5744_v18 = vld [vmem:[%s18723_s3 + $0xd0] sm:$0xff] }
 0x29b   : > { %v12979_v13 = vpop.f32.mrf.mxu0  ;;  %13122 = vmatmul.mubr.f32.gmra.mxu0 %v19282_v49  ;;  %13135 = vmatprep.mubr.msk.f32.mxu1 %vm1588_vm1, %v14508_v28 }
 0x29c   : > { %v15931_v14 = vadd.f32 %v12979_v13, %v3698_v44  ;;  %v3236_v54 = vpop.f32.mrf.mxu1  ;;  %13124 = vmatprep.mubr.f32.mxu0 %v19282_v49 }
 0x29d   : > { %v3887_v22 = vpop.f32.mrf.mxu0 }
 0x29e   : > { %v15934_v38 = vadd.f32 %v3887_v22, %v3697_v24  ;;  %v12809_v61 = vpop.f32.mrf.mxu1  ;;  %13136 = vmatmul.mubr.msk.f32.vlgmr.msra.gmra.mxu1 %vm1588_vm1, %v14518_v33 }
 0x29f   : > { %v3700_v8 = vadd.f32 %v12809_v61, %v15334_v15  ;;  %13480 = vmatpush3.msra.mxu1 %v15598_v10  ;;  %v12982_v28 = vpop.f32.mrf.mxu0  ;;  %13125 = vmatmul.mubr.f32.gmra.mxu0 %v19282_v49  ;;  %v5743_v15 = vld [vmem:[%s18723_s3 + $0xc8] sm:$0xff] }
 0x2a0   : > { %13138 = vmatprep.mubr.msk.f32.mxu1 %vm1588_vm1, %v14522_v34  ;;  %v3244_v13 = vpop.f32.mrf.mxu1  ;;  %13311 = vmatprep.mubr.msk.f32.mxu0 %vm1588_vm1, %v14518_v33 }
 0x2a1   : > { %v3699_v44 = vadd.f32 %v3244_v13, %v15338_v16  ;;  %v3897_v24 = vpop.f32.mrf.mxu0  ;;  %13481 = vmatprep.subr.mxu1 %v5744_v18 }
 0x2a2   : > { %v12812_v5 = vpop.f32.mrf.mxu1  ;;  %13139 = vmatmul.mubr.msk.f32.gmra.mxu1 %vm1588_vm1, %v14532_v39 }
 0x2a3   : > { %v3702_v10 = vadd.f32 %v12812_v5, %v15346_v21  ;;  %v12985_v41 = vpop.f32.mrf.mxu0  ;;  %13141 = vmatprep.mubr.msk.f32.mxu1 %vm1588_vm1, %v14536_v40  ;;  %13312 = vmatmul.mubr.msk.f32.vlgmr.msra.gmra.mxu0 %vm1588_vm1, %v14522_v34 }
 0x2a4   : > { %v15959_v33 = vadd.f32 %v12985_v41, %v3700_v8  ;;  %v3254_v16 = vpop.f32.mrf.mxu1  ;;  %13314 = vmatprep.mubr.msk.f32.mxu0 %vm1588_vm1, %v14532_v39  ;;  %13482 = vmatpush3.msra.mxu1 %v5744_v18 }
 0x2a5   : > { %v3701_v54 = vadd.f32 %v3254_v16, %v15350_v48  ;;  %v3905_v22 = vpop.f32.mrf.mxu0  ;;  %13483 = vmatprep.subr.mxu1 %v5743_v15  ;;  %v19287_v16 = vld [vmem:[#allocation98_spill] sm:$0xff] }
 0x2a6   : > { %v15964_v61 = vadd.f32 %v3905_v22, %v3699_v44  ;;  %v12815_v21 = vpop.f32.mrf.mxu1  ;;  %13142 = vmatmul.mubr.msk.f32.gmra.mxu1 %vm1588_vm1, %v14546_v45 }
 0x2a7   : > { %v3704_v28 = vadd.f32 %v12815_v21, %v15358_v27  ;;  %v12988_v34 = vpop.f32.mrf.mxu0  ;;  %13144 = vmatprep.mubr.msk.f32.mxu1 %vm1588_vm1, %v14550_v46  ;;  %13315 = vmatmul.mubr.msk.f32.gmra.mxu0 %vm1588_vm1, %v14536_v40 }
 0x2a8   : > { %v15973_v39 = vadd.f32 %v12988_v34, %v3702_v10  ;;  %v3264_v48 = vpop.f32.mrf.mxu1  ;;  %13317 = vmatprep.mubr.msk.f32.mxu0 %vm1588_vm1, %v14546_v45  ;;  %13484 = vmatpush3.msra.mxu1 %v5743_v15  ;;  %v19286_v15 = vld [vmem:[#allocation97_spill] sm:$0xff] }
 0x2a9   : > { %v3703_v18 = vadd.f32 %v3264_v48, %v15362_v57  ;;  %v3915_v8 = vpop.f32.mrf.mxu0 }
 0x2aa   : > { %v15978_v13 = vadd.f32 %v3915_v8, %v3701_v54  ;;  %v12818_v27 = vpop.f32.mrf.mxu1  ;;  %13145 = vmatmul.mubr.msk.f32.gmra.mxu1 %vm1588_vm1, %v14560_v51 }
 0x2ab   : > { %v12991_v44 = vpop.f32.mrf.mxu0  ;;  %13147 = vmatprep.mubr.msk.f32.mxu1 %vm1588_vm1, %v14564_v52  ;;  %13318 = vmatmul.mubr.msk.f32.gmra.mxu0 %vm1588_vm1, %v14550_v46  ;;  %v19289_v27 = vld [vmem:[#allocation100_spill] sm:$0xff] }
 0x2ac   : > { %v15986_v40 = vadd.f32 %v12991_v44, %v3704_v28  ;;  %v3274_v45 = vpop.f32.mrf.mxu1  ;;  %13320 = vmatprep.mubr.msk.f32.mxu0 %vm1588_vm1, %v14560_v51  ;;  %v19288_v28 = vld [vmem:[#allocation99_spill] sm:$0xff] }
 0x2ad   : > { %v3925_v57 = vpop.f32.mrf.mxu0 }
 0x2ae   : > { %v15990_v24 = vadd.f32 %v3925_v57, %v3703_v18  ;;  %v12821_v5 = vpop.f32.mrf.mxu1  ;;  %13148 = vmatmul.mubr.msk.f32.gmra.mxu1 %vm1588_vm1, %v14574_v58 }
 0x2af   : > { %v3706_v10 = vadd.f32 %v12821_v5, %v19286_v15  ;;  %v12994_v41 = vpop.f32.mrf.mxu0  ;;  %13150 = vmatprep.mubr.msk.f32.mxu1 %vm1588_vm1, %v14578_v60  ;;  %13321 = vmatmul.mubr.msk.f32.gmra.mxu0 %vm1588_vm1, %v14564_v52  ;;  %v19291_v15 = vld [vmem:[#allocation2_spill] sm:$0xff] }
 0x2b0   : > { %v3282_v46 = vpop.f32.mrf.mxu1  ;;  %13323 = vmatprep.mubr.msk.f32.mxu0 %vm1588_vm1, %v14574_v58  ;;  %v19292_v41 = vld [vmem:[#allocation101_spill] sm:$0xff] }
 0x2b1   : > { %v3705_v54 = vadd.f32 %v3282_v46, %v19287_v16  ;;  %v3935_v22 = vpop.f32.mrf.mxu0 }
 0x2b2   : > { %v12824_v21 = vpop.f32.mrf.mxu1  ;;  %13151 = vmatmul.mubr.msk.f32.gmra.mxu1 %vm1588_vm1, %v14588_v1 }
 0x2b3   : > { %v3708_v34 = vadd.f32 %v12824_v21, %v19288_v28  ;;  %v12997_v48 = vpop.f32.mrf.mxu0  ;;  %13153 = vmatprep.mubr.msk.f32.mxu1 %vm1588_vm1, %v14592_v2  ;;  %13324 = vmatmul.mubr.msk.f32.gmra.mxu0 %vm1588_vm1, %v14578_v60 }
 0x2b4   : > { %v16009_v18 = vadd.f32 %v12997_v48, %v3706_v10  ;;  %v3292_v8 = vpop.f32.mrf.mxu1  ;;  %13326 = vmatprep.mubr.msk.f32.mxu0 %vm1588_vm1, %v14588_v1 }
 0x2b5   : > { %v3707_v44 = vadd.f32 %v3292_v8, %v19289_v27  ;;  %v3943_v45 = vpop.f32.mrf.mxu0 }
 0x2b6   : > { %v16014_v57 = vadd.f32 %v3943_v45, %v3705_v54  ;;  %v12827_v5 = vpop.f32.mrf.mxu1  ;;  %13154 = vmatmul.mubr.msk.f32.gmra.mxu1 %vm1588_vm1, %v19291_v15  ;;  %v19294_v54 = vld [vmem:[#allocation102_spill] sm:$0xff] }
 0x2b7   : > { %v3710_v46 = vadd.f32 %v12827_v5, %v19292_v41  ;;  %v13000_v16 = vpop.f32.mrf.mxu0  ;;  %13156 = vmatprep.mubr.msk.f32.mxu1 %vm1588_vm1, %v14606_v9  ;;  %13327 = vmatmul.mubr.msk.f32.gmra.mxu0 %vm1588_vm1, %v14592_v2 }
 0x2b8   : > { %19290 = vst [vmem:[#allocation95_spill] sm:$0xff] %v16014_v57  ;;  %v16023_v10 = vadd.f32 %v13000_v16, %v3708_v34  ;;  %v3302_v22 = vpop.f32.mrf.mxu1  ;;  %13329 = vmatprep.mubr.msk.f32.mxu0 %vm1588_vm1, %v19291_v15  ;;  %v19298_v16 = vld [vmem:[#allocation103_spill] sm:$0xff]  ;;  %v19405_v57 = vld [vmem:[#allocation50_spill] sm:$0xff] }
 0x2b9   : > { %v3709_v21 = vadd.f32 %v3302_v22, %v19294_v54  ;;  %v3953_v28 = vpop.f32.mrf.mxu0 }
 0x2ba   : > { %19293 = vst [vmem:[#allocation96_spill] sm:$0xff] %v16023_v10  ;;  %v16028_v48 = vadd.f32 %v3953_v28, %v3707_v44  ;;  %v12830_v8 = vpop.f32.mrf.mxu1  ;;  %13157 = vmatmul.mubr.msk.f32.gmra.mxu1 %vm1588_vm1, %v14616_v17  ;;  %v19299_v28 = vld [vmem:[#allocation104_spill] sm:$0xff] }
 0x2bb   : > { %v13003_v27 = vpop.f32.mrf.mxu0  ;;  %13159 = vmatprep.mubr.msk.f32.mxu1 %vm1588_vm1, %v14623_v19  ;;  %13330 = vmatmul.mubr.msk.f32.gmra.mxu0 %vm1588_vm1, %v14606_v9  ;;  %v19310_v10 = vld [vmem:[#allocation12_spill] sm:$0xff] }
 0x2bc   : > { %19295 = vst [vmem:[#allocation97_spill] sm:$0xff] %v16028_v48  ;;  %v16036_v34 = vadd.f32 %v13003_v27, %v3710_v46  ;;  %v3312_v45 = vpop.f32.mrf.mxu1  ;;  %13332 = vmatprep.mubr.msk.f32.mxu0 %vm1588_vm1, %v14616_v17 }
 0x2bd   : > { %v3963_v5 = vpop.f32.mrf.mxu0 }
 0x2be   : > { %19296 = vst [vmem:[#allocation98_spill] sm:$0xff] %v16036_v34  ;;  %v16040_v44 = vadd.f32 %v3963_v5, %v3709_v21  ;;  %v12833_v41 = vpop.f32.mrf.mxu1  ;;  %13160 = vmatmul.mubr.msk.f32.gmra.mxu1 %vm1588_vm1, %v14633_v25  ;;  %v19305_v34 = vld [vmem:[#allocation10_spill] sm:$0xff] }
 0x2bf   : > { %v3712_v22 = vadd.f32 %v12833_v41, %v19298_v16  ;;  %v13006_v54 = vpop.f32.mrf.mxu0  ;;  %13162 = vmatprep.mubr.msk.f32.mxu1 %vm1588_vm1, %v14637_v26  ;;  %13333 = vmatmul.mubr.msk.f32.gmra.mxu0 %vm1588_vm1, %v14623_v19 }
 0x2c0   : > { %19297 = vst [vmem:[#allocation99_spill] sm:$0xff] %v16040_v44  ;;  %v3320_v46 = vpop.f32.mrf.mxu1  ;;  %13335 = vmatprep.mubr.msk.f32.mxu0 %vm1588_vm1, %v14633_v25  ;;  %v19301_v54 = vld [vmem:[#allocation105_spill] sm:$0xff] }
 0x2c1   : > { %v3711_v21 = vadd.f32 %v3320_v46, %v19299_v28  ;;  %v3973_v8 = vpop.f32.mrf.mxu0  ;;  %v19303_v44 = vld [vmem:[#allocation9_spill] sm:$0xff] }
 0x2c2   : > { %v12836_v27 = vpop.f32.mrf.mxu1  ;;  %13163 = vmatmul.mubr.msk.f32.gmra.mxu1 %vm1588_vm1, %v14647_v35 }
 0x2c3   : > { %v3714_v45 = vadd.f32 %v12836_v27, %v15437_v11  ;;  %v13009_v5 = vpop.f32.mrf.mxu0  ;;  %13165 = vmatprep.mubr.msk.f32.mxu1 %vm1588_vm1, %v14651_v36  ;;  %13336 = vmatmul.mubr.msk.f32.gmra.mxu0 %vm1588_vm1, %v14637_v26  ;;  %v5742_v11 = vld [vmem:[%s18723_s3 + $0xc0] sm:$0xff] }
 0x2c4   : > { %v16059_v41 = vadd.f32 %v13009_v5, %v3712_v22  ;;  %v3330_v16 = vpop.f32.mrf.mxu1  ;;  %13338 = vmatprep.mubr.msk.f32.mxu0 %vm1588_vm1, %v14647_v35  ;;  %13485 = vmatprep.subr.mxu1 %v5742_v11  ;;  %v19304_v22 = vld [vmem:[#allocation106_spill] sm:$0xff] }
 0x2c5   : > { %v3713_v46 = vadd.f32 %v3330_v16, %v19301_v54  ;;  %v3981_v28 = vpop.f32.mrf.mxu0  ;;  %13486 = vmatpush3.msra.mxu1 %v5742_v11  ;;  %v19325_v26 = vld [vmem:[#allocation18_spill] sm:$0xff] }
 0x2c6   : > { %19300 = vst [vmem:[#allocation100_spill] sm:$0xff] %v16059_v41  ;;  %v16067_v8 = vadd.f32 %v3981_v28, %v3711_v21  ;;  %v12839_v27 = vpop.f32.mrf.mxu1  ;;  %13166 = vmatmul.mubr.msk.f32.gmra.mxu1 %vm1588_vm1, %v19303_v44  ;;  %v19307_v21 = vld [vmem:[#allocation107_spill] sm:$0xff] }
 0x2c7   : > { %v3716_v5 = vadd.f32 %v12839_v27, %v19304_v22  ;;  %v13012_v41 = vpop.f32.mrf.mxu0  ;;  %13168 = vmatprep.mubr.msk.f32.mxu1 %vm1588_vm1, %v19305_v34  ;;  %13339 = vmatmul.mubr.msk.f32.gmra.mxu0 %vm1588_vm1, %v14651_v36  ;;  %v19309_v22 = vld [vmem:[#allocation11_spill] sm:$0xff] }
 0x2c8   : > { %19302 = vst [vmem:[#allocation2_spill] sm:$0xff] %v16067_v8  ;;  %v16076_v16 = vadd.f32 %v13012_v41, %v3714_v45  ;;  %v3340_v54 = vpop.f32.mrf.mxu1  ;;  %13341 = vmatprep.mubr.msk.f32.mxu0 %vm1588_vm1, %v19303_v44 }
 0x2c9   : > { %v3715_v28 = vadd.f32 %v3340_v54, %v19307_v21  ;;  %v3991_v8 = vpop.f32.mrf.mxu0  ;;  %v19313_v54 = vld [vmem:[#allocation13_spill] sm:$0xff]  ;;  %v19314_v21 = vld [vmem:[#allocation108_spill] sm:$0xff] }
 0x2ca   : > { %19306 = vst [vmem:[#allocation101_spill] sm:$0xff] %v16076_v16  ;;  %v16081_v48 = vadd.f32 %v3991_v8, %v3713_v46  ;;  %v12842_v27 = vpop.f32.mrf.mxu1  ;;  %13169 = vmatmul.mubr.msk.f32.gmra.mxu1 %vm1588_vm1, %v19309_v22  ;;  %v19315_v16 = vld [vmem:[#allocation14_spill] sm:$0xff] }
 0x2cb   : > { %v13015_v35 = vpop.f32.mrf.mxu0  ;;  %13171 = vmatprep.mubr.msk.f32.mxu1 %vm1588_vm1, %v19310_v10  ;;  %13342 = vmatmul.mubr.msk.f32.gmra.mxu0 %vm1588_vm1, %v19305_v34 }
 0x2cc   : > { %19308 = vst [vmem:[#allocation102_spill] sm:$0xff] %v16081_v48  ;;  %v16089_v45 = vadd.f32 %v13015_v35, %v3716_v5  ;;  %v3350_v41 = vpop.f32.mrf.mxu1  ;;  %13344 = vmatprep.mubr.msk.f32.mxu0 %vm1588_vm1, %v19309_v22  ;;  %v19316_v5 = vld [vmem:[#allocation109_spill] sm:$0xff] }
 0x2cd   : > { %v4001_v11 = vpop.f32.mrf.mxu0 }
 0x2ce   : > { %19311 = vst [vmem:[#allocation103_spill] sm:$0xff] %v16089_v45  ;;  %v16093_v46 = vadd.f32 %v4001_v11, %v3715_v28  ;;  %v12845_v8 = vpop.f32.mrf.mxu1  ;;  %13172 = vmatmul.mubr.msk.f32.gmra.mxu1 %vm1588_vm1, %v19313_v54  ;;  %v19318_v45 = vld [vmem:[#allocation110_spill] sm:$0xff] }
 0x2cf   : > { %v3718_v27 = vadd.f32 %v12845_v8, %v19314_v21  ;;  %v13018_v48 = vpop.f32.mrf.mxu0  ;;  %13174 = vmatprep.mubr.msk.f32.mxu1 %vm1588_vm1, %v19315_v16  ;;  %13345 = vmatmul.mubr.msk.f32.gmra.mxu0 %vm1588_vm1, %v19310_v10  ;;  %v19319_v21 = vld [vmem:[#allocation16_spill] sm:$0xff] }
 0x2d0   : > { %19312 = vst [vmem:[#allocation104_spill] sm:$0xff] %v16093_v46  ;;  %v3358_v35 = vpop.f32.mrf.mxu1  ;;  %13347 = vmatprep.mubr.msk.f32.mxu0 %vm1588_vm1, %v19313_v54  ;;  %v19317_v46 = vld [vmem:[#allocation15_spill] sm:$0xff] }
 0x2d1   : > { %v3717_v28 = vadd.f32 %v3358_v35, %v19316_v5  ;;  %v4011_v41 = vpop.f32.mrf.mxu0  ;;  %v19321_v35 = vld [vmem:[#allocation111_spill] sm:$0xff] }
 0x2d2   : > { %v12848_v11 = vpop.f32.mrf.mxu1  ;;  %13175 = vmatmul.mubr.msk.f32.gmra.mxu1 %vm1588_vm1, %v19317_v46 }
 0x2d3   : > { %v3720_v8 = vadd.f32 %v12848_v11, %v19318_v45  ;;  %v13021_v48 = vpop.f32.mrf.mxu0  ;;  %13177 = vmatprep.mubr.msk.f32.mxu1 %vm1588_vm1, %v19319_v21  ;;  %13348 = vmatmul.mubr.msk.f32.gmra.mxu0 %vm1588_vm1, %v19315_v16  ;;  %v19323_v45 = vld [vmem:[#allocation17_spill] sm:$0xff]  ;;  %v19324_v11 = vld [vmem:[#allocation112_spill] sm:$0xff]  ;;  %v19345_v16 = vld [vmem:[#allocation26_spill] sm:$0xff] }
 0x2d4   : > { %v16112_v10 = vadd.f32 %v13021_v48, %v3718_v27  ;;  %v3368_v22 = vpop.f32.mrf.mxu1  ;;  %13350 = vmatprep.mubr.msk.f32.mxu0 %vm1588_vm1, %v19317_v46 }
 0x2d5   : > { %v3719_v5 = vadd.f32 %v3368_v22, %v19321_v35  ;;  %v4019_v41 = vpop.f32.mrf.mxu0  ;;  %v19327_v22 = vld [vmem:[#allocation113_spill] sm:$0xff] }
 0x2d6   : > { %19320 = vst [vmem:[#allocation105_spill] sm:$0xff] %v16112_v10  ;;  %v16117_v54 = vadd.f32 %v4019_v41, %v3717_v28  ;;  %v12851_v34 = vpop.f32.mrf.mxu1  ;;  %13178 = vmatmul.mubr.msk.f32.gmra.mxu1 %vm1588_vm1, %v19323_v45  ;;  %v19330_v10 = vld [vmem:[#allocation20_spill] sm:$0xff] }
 0x2d7   : > { %v3722_v44 = vadd.f32 %v12851_v34, %v19324_v11  ;;  %v13024_v36 = vpop.f32.mrf.mxu0  ;;  %13180 = vmatprep.mubr.msk.f32.mxu1 %vm1588_vm1, %v19325_v26  ;;  %13351 = vmatmul.mubr.msk.f32.gmra.mxu0 %vm1588_vm1, %v19319_v21  ;;  %v19329_v34 = vld [vmem:[#allocation19_spill] sm:$0xff] }
 0x2d8   : > { %19322 = vst [vmem:[#allocation106_spill] sm:$0xff] %v16117_v54  ;;  %v16126_v27 = vadd.f32 %v13024_v36, %v3720_v8  ;;  %v3378_v48 = vpop.f32.mrf.mxu1  ;;  %13353 = vmatprep.mubr.msk.f32.mxu0 %vm1588_vm1, %v19323_v45  ;;  %v19335_v45 = vld [vmem:[#allocation22_spill] sm:$0xff] }
 0x2d9   : > { %v3721_v28 = vadd.f32 %v3378_v48, %v19327_v22  ;;  %v4029_v35 = vpop.f32.mrf.mxu0  ;;  %v19333_v22 = vld [vmem:[#allocation21_spill] sm:$0xff] }
 0x2da   : > { %19326 = vst [vmem:[#allocation107_spill] sm:$0xff] %v16126_v27  ;;  %v16131_v41 = vadd.f32 %v4029_v35, %v3719_v5  ;;  %v12854_v54 = vpop.f32.mrf.mxu1  ;;  %13181 = vmatmul.mubr.msk.f32.gmra.mxu1 %vm1588_vm1, %v19329_v34  ;;  %v19334_v35 = vld [vmem:[#allocation114_spill] sm:$0xff] }
 0x2db   : > { %v13027_v11 = vpop.f32.mrf.mxu0  ;;  %13183 = vmatprep.mubr.msk.f32.mxu1 %vm1588_vm1, %v19330_v10  ;;  %13354 = vmatmul.mubr.msk.f32.gmra.mxu0 %vm1588_vm1, %v19325_v26 }
 0x2dc   : > { %19328 = vst [vmem:[#allocation108_spill] sm:$0xff] %v16131_v41  ;;  %v16139_v36 = vadd.f32 %v13027_v11, %v3722_v44  ;;  %v3388_v8 = vpop.f32.mrf.mxu1  ;;  %13356 = vmatprep.mubr.msk.f32.mxu0 %vm1588_vm1, %v19329_v34  ;;  %v19336_v11 = vld [vmem:[#allocation115_spill] sm:$0xff] }
 0x2dd   : > { %v4039_v48 = vpop.f32.mrf.mxu0 }
 0x2de   : > { %19331 = vst [vmem:[#allocation109_spill] sm:$0xff] %v16139_v36  ;;  %v16143_v5 = vadd.f32 %v4039_v48, %v3721_v28  ;;  %v12857_v54 = vpop.f32.mrf.mxu1  ;;  %13184 = vmatmul.mubr.msk.f32.gmra.mxu1 %vm1588_vm1, %v19333_v22  ;;  %v19338_v36 = vld [vmem:[#allocation116_spill] sm:$0xff] }
 0x2df   : > { %v3724_v41 = vadd.f32 %v12857_v54, %v19334_v35  ;;  %v13030_v27 = vpop.f32.mrf.mxu0  ;;  %13186 = vmatprep.mubr.msk.f32.mxu1 %vm1588_vm1, %v19335_v45  ;;  %13357 = vmatmul.mubr.msk.f32.gmra.mxu0 %vm1588_vm1, %v19330_v10  ;;  %v19339_v35 = vld [vmem:[#allocation24_spill] sm:$0xff] }
 0x2e0   : > { %19332 = vst [vmem:[#allocation110_spill] sm:$0xff] %v16143_v5  ;;  %v3396_v44 = vpop.f32.mrf.mxu1  ;;  %13359 = vmatprep.mubr.msk.f32.mxu0 %vm1588_vm1, %v19333_v22  ;;  %v19337_v5 = vld [vmem:[#allocation23_spill] sm:$0xff] }
 0x2e1   : > { %v3723_v28 = vadd.f32 %v3396_v44, %v19336_v11  ;;  %v4049_v8 = vpop.f32.mrf.mxu0  ;;  %v19341_v44 = vld [vmem:[#allocation117_spill] sm:$0xff] }
 0x2e2   : > { %v12860_v48 = vpop.f32.mrf.mxu1  ;;  %13187 = vmatmul.mubr.msk.f32.gmra.mxu1 %vm1588_vm1, %v19337_v5 }
 0x2e3   : > { %v3726_v54 = vadd.f32 %v12860_v48, %v19338_v36  ;;  %v13033_v27 = vpop.f32.mrf.mxu0  ;;  %13189 = vmatprep.mubr.msk.f32.mxu1 %vm1588_vm1, %v19339_v35  ;;  %13360 = vmatmul.mubr.msk.f32.gmra.mxu0 %vm1588_vm1, %v19335_v45  ;;  %v19343_v36 = vld [vmem:[#allocation25_spill] sm:$0xff]  ;;  %v19344_v48 = vld [vmem:[#allocation118_spill] sm:$0xff] }
 0x2e4   : > { %v16162_v10 = vadd.f32 %v13033_v27, %v3724_v41  ;;  %v3406_v34 = vpop.f32.mrf.mxu1  ;;  %13362 = vmatprep.mubr.msk.f32.mxu0 %vm1588_vm1, %v19337_v5  ;;  %v19365_v45 = vld [vmem:[#allocation34_spill] sm:$0xff] }
 0x2e5   : > { %v3725_v11 = vadd.f32 %v3406_v34, %v19341_v44  ;;  %v4057_v8 = vpop.f32.mrf.mxu0  ;;  %v19347_v34 = vld [vmem:[#allocation119_spill] sm:$0xff] }
 0x2e6   : > { %19340 = vst [vmem:[#allocation111_spill] sm:$0xff] %v16162_v10  ;;  %v16167_v22 = vadd.f32 %v4057_v8, %v3723_v28  ;;  %v12863_v26 = vpop.f32.mrf.mxu1  ;;  %13190 = vmatmul.mubr.msk.f32.gmra.mxu1 %vm1588_vm1, %v19343_v36  ;;  %v19350_v10 = vld [vmem:[#allocation28_spill] sm:$0xff] }
 0x2e7   : > { %v3728_v21 = vadd.f32 %v12863_v26, %v19344_v48  ;;  %v13036_v46 = vpop.f32.mrf.mxu0  ;;  %13192 = vmatprep.mubr.msk.f32.mxu1 %vm1588_vm1, %v19345_v16  ;;  %13363 = vmatmul.mubr.msk.f32.gmra.mxu0 %vm1588_vm1, %v19339_v35  ;;  %v19349_v26 = vld [vmem:[#allocation27_spill] sm:$0xff] }
 0x2e8   : > { %19342 = vst [vmem:[#allocation112_spill] sm:$0xff] %v16167_v22  ;;  %v16176_v41 = vadd.f32 %v13036_v46, %v3726_v54  ;;  %v3416_v27 = vpop.f32.mrf.mxu1  ;;  %13365 = vmatprep.mubr.msk.f32.mxu0 %vm1588_vm1, %v19343_v36  ;;  %v19355_v36 = vld [vmem:[#allocation30_spill] sm:$0xff] }
 0x2e9   : > { %v3727_v28 = vadd.f32 %v3416_v27, %v19347_v34  ;;  %v4067_v44 = vpop.f32.mrf.mxu0  ;;  %v19353_v34 = vld [vmem:[#allocation29_spill] sm:$0xff] }
 0x2ea   : > { %19346 = vst [vmem:[#allocation113_spill] sm:$0xff] %v16176_v41  ;;  %v16181_v8 = vadd.f32 %v4067_v44, %v3725_v11  ;;  %v12866_v22 = vpop.f32.mrf.mxu1  ;;  %13193 = vmatmul.mubr.msk.f32.gmra.mxu1 %vm1588_vm1, %v19349_v26  ;;  %v19354_v44 = vld [vmem:[#allocation120_spill] sm:$0xff] }
 0x2eb   : > { %v13039_v48 = vpop.f32.mrf.mxu0  ;;  %13195 = vmatprep.mubr.msk.f32.mxu1 %vm1588_vm1, %v19350_v10  ;;  %13366 = vmatmul.mubr.msk.f32.gmra.mxu0 %vm1588_vm1, %v19345_v16 }
 0x2ec   : > { %19348 = vst [vmem:[#allocation114_spill] sm:$0xff] %v16181_v8  ;;  %v16189_v46 = vadd.f32 %v13039_v48, %v3728_v21  ;;  %v3426_v54 = vpop.f32.mrf.mxu1  ;;  %13368 = vmatprep.mubr.msk.f32.mxu0 %vm1588_vm1, %v19349_v26  ;;  %v19356_v48 = vld [vmem:[#allocation121_spill] sm:$0xff] }
 0x2ed   : > { %v4077_v27 = vpop.f32.mrf.mxu0 }
 0x2ee   : > { %19351 = vst [vmem:[#allocation115_spill] sm:$0xff] %v16189_v46  ;;  %v16193_v11 = vadd.f32 %v4077_v27, %v3727_v28  ;;  %v12869_v22 = vpop.f32.mrf.mxu1  ;;  %13196 = vmatmul.mubr.msk.f32.gmra.mxu1 %vm1588_vm1, %v19353_v34  ;;  %v19358_v46 = vld [vmem:[#allocation122_spill] sm:$0xff] }
 0x2ef   : > { %v3730_v8 = vadd.f32 %v12869_v22, %v19354_v44  ;;  %v13042_v41 = vpop.f32.mrf.mxu0  ;;  %13198 = vmatprep.mubr.msk.f32.mxu1 %vm1588_vm1, %v19355_v36  ;;  %13369 = vmatmul.mubr.msk.f32.gmra.mxu0 %vm1588_vm1, %v19350_v10  ;;  %v19359_v44 = vld [vmem:[#allocation32_spill] sm:$0xff] }
 0x2f0   : > { %19352 = vst [vmem:[#allocation116_spill] sm:$0xff] %v16193_v11  ;;  %v3434_v21 = vpop.f32.mrf.mxu1  ;;  %13371 = vmatprep.mubr.msk.f32.mxu0 %vm1588_vm1, %v19353_v34  ;;  %v19357_v11 = vld [vmem:[#allocation31_spill] sm:$0xff] }
 0x2f1   : > { %v3729_v28 = vadd.f32 %v3434_v21, %v19356_v48  ;;  %v4087_v54 = vpop.f32.mrf.mxu0  ;;  %v19361_v21 = vld [vmem:[#allocation123_spill] sm:$0xff] }
 0x2f2   : > { %v12872_v27 = vpop.f32.mrf.mxu1  ;;  %13199 = vmatmul.mubr.msk.f32.gmra.mxu1 %vm1588_vm1, %v19357_v11 }
 0x2f3   : > { %v3732_v22 = vadd.f32 %v12872_v27, %v19358_v46  ;;  %v13045_v41 = vpop.f32.mrf.mxu0  ;;  %13201 = vmatprep.mubr.msk.f32.mxu1 %vm1588_vm1, %v19359_v44  ;;  %13372 = vmatmul.mubr.msk.f32.gmra.mxu0 %vm1588_vm1, %v19355_v36  ;;  %v19363_v46 = vld [vmem:[#allocation33_spill] sm:$0xff]  ;;  %v19364_v27 = vld [vmem:[#allocation124_spill] sm:$0xff]  ;;  %v19384_v36 = vld [vmem:[#allocation130_spill] sm:$0xff] }
 0x2f4   : > { %v16212_v10 = vadd.f32 %v13045_v41, %v3730_v8  ;;  %v3444_v26 = vpop.f32.mrf.mxu1  ;;  %13374 = vmatprep.mubr.msk.f32.mxu0 %vm1588_vm1, %v19357_v11 }
 0x2f5   : > { %v3731_v48 = vadd.f32 %v3444_v26, %v19361_v21  ;;  %v4095_v54 = vpop.f32.mrf.mxu0  ;;  %v19367_v26 = vld [vmem:[#allocation125_spill] sm:$0xff] }
 0x2f6   : > { %19360 = vst [vmem:[#allocation117_spill] sm:$0xff] %v16212_v10  ;;  %v16217_v34 = vadd.f32 %v4095_v54, %v3729_v28  ;;  %v12875_v16 = vpop.f32.mrf.mxu1  ;;  %13202 = vmatmul.mubr.msk.f32.gmra.mxu1 %vm1588_vm1, %v19363_v46  ;;  %v19370_v10 = vld [vmem:[#allocation36_spill] sm:$0xff] }
 0x2f7   : > { %v3734_v35 = vadd.f32 %v12875_v16, %v19364_v27  ;;  %v13048_v5 = vpop.f32.mrf.mxu0  ;;  %13204 = vmatprep.mubr.msk.f32.mxu1 %vm1588_vm1, %v19365_v45  ;;  %13375 = vmatmul.mubr.msk.f32.gmra.mxu0 %vm1588_vm1, %v19359_v44  ;;  %v19369_v16 = vld [vmem:[#allocation35_spill] sm:$0xff]  ;;  %v19379_v44 = vld [vmem:[#allocation40_spill] sm:$0xff] }
 0x2f8   : > { %19362 = vst [vmem:[#allocation118_spill] sm:$0xff] %v16217_v34  ;;  %v16226_v8 = vadd.f32 %v13048_v5, %v3732_v22  ;;  %v3454_v41 = vpop.f32.mrf.mxu1  ;;  %13377 = vmatprep.mubr.msk.f32.mxu0 %vm1588_vm1, %v19363_v46  ;;  %v6406_v5 = vld [vmem:[%s18723_s3 + $0xf8] sm:$0xff] }
 0x2f9   : > { %v3733_v28 = vadd.f32 %v3454_v41, %v19367_v26  ;;  %v4105_v21 = vpop.f32.mrf.mxu0  ;;  %13655 = vmatprep.subr.mxu0 %v6406_v5 }
 0x2fa   : > { %19366 = vst [vmem:[#allocation119_spill] sm:$0xff] %v16226_v8  ;;  %v16231_v54 = vadd.f32 %v4105_v21, %v3731_v48  ;;  %v12878_v34 = vpop.f32.mrf.mxu1  ;;  %13205 = vmatmul.mubr.msk.f32.gmra.mxu1 %vm1588_vm1, %v19369_v16  ;;  %13656 = vmatpush3.msra.mxu0 %v6406_v5  ;;  %v6405_v48 = vld [vmem:[%s18723_s3 + $0xf0] sm:$0xff]  ;;  %v19375_v5 = vld [vmem:[#allocation38_spill] sm:$0xff] }
 0x2fb   : > { %v13051_v27 = vpop.f32.mrf.mxu0  ;;  %13207 = vmatprep.mubr.msk.f32.mxu1 %vm1588_vm1, %v19370_v10  ;;  %13378 = vmatmul.mubr.msk.f32.gmra.mxu0 %vm1588_vm1, %v19365_v45 }
 0x2fc   : > { %19368 = vst [vmem:[#allocation120_spill] sm:$0xff] %v16231_v54  ;;  %v16242_v22 = vadd.f32 %v13051_v27, %v3734_v35  ;;  %v3464_v41 = vpop.f32.mrf.mxu1  ;;  %13380 = vmatprep.mubr.msk.f32.mxu0 %vm1588_vm1, %v19369_v16  ;;  %v19373_v54 = vld [vmem:[#allocation37_spill] sm:$0xff]  ;;  %13657 = vmatprep.subr.mxu0 %v6405_v48  ;;  %v19374_v27 = vld [vmem:[#allocation126_spill] sm:$0xff]  ;;  %v19378_v16 = vld [vmem:[#allocation128_spill] sm:$0xff] }
 0x2fd   : > { %v4115_v34 = vpop.f32.mrf.mxu0  ;;  %v16256_v35 = vld [vmem:[%s18723_s3 + $0x118] sm:$0xff]  ;;  %13658 = vmatpush3.msra.mxu0 %v6405_v48 }
 0x2fe   : > { %19371 = vst [vmem:[#allocation121_spill] sm:$0xff] %v16242_v22  ;;  %v16249_v26 = vadd.f32 %v4115_v34, %v3733_v28  ;;  %v12881_v21 = vpop.f32.mrf.mxu1  ;;  %13208 = vmatmul.mubr.msk.f32.gmra.mxu1 %vm1588_vm1, %v19373_v54  ;;  %v6404_v28 = vld [vmem:[%s18723_s3 + $0xe8] sm:$0xff]  ;;  %13831 = vmatprep.subr.mxu1 %v16256_v35 }
 0x2ff   : > { %v3736_v41 = vadd.f32 %v12881_v21, %v19374_v27  ;;  %v13054_v22 = vpop.f32.mrf.mxu0  ;;  %13210 = vmatprep.mubr.msk.f32.mxu1 %vm1588_vm1, %v19375_v5  ;;  %13381 = vmatmul.mubr.msk.f32.gmra.mxu0 %vm1588_vm1, %v19370_v10  ;;  %v19377_v27 = vld [vmem:[#allocation39_spill] sm:$0xff]  ;;  %v6403_v10 = vld [vmem:[%s18723_s3 + $0xe0] sm:$0xff] }
 0x300   : > { %19372 = vst [vmem:[#allocation122_spill] sm:$0xff] %v16249_v26  ;;  %v3472_v34 = vpop.f32.mrf.mxu1  ;;  %13383 = vmatprep.mubr.msk.f32.mxu0 %vm1588_vm1, %v19373_v54  ;;  %v19376_v26 = vld [vmem:[#allocation127_spill] sm:$0xff]  ;;  %13659 = vmatprep.subr.mxu0 %v6404_v28 }
 0x301   : > { %v3735_v8 = vadd.f32 %v3472_v34, %v19376_v26  ;;  %v4125_v21 = vpop.f32.mrf.mxu0  ;;  %13660 = vmatpush3.msra.mxu0 %v6404_v28  ;;  %v19381_v34 = vld [vmem:[#allocation129_spill] sm:$0xff] }
 0x302   : > { %v12884_v22 = vpop.f32.mrf.mxu1  ;;  %13211 = vmatmul.mubr.msk.f32.gmra.mxu1 %vm1588_vm1, %v19377_v27  ;;  %13661 = vmatprep.subr.mxu0 %v6403_v10 }
 0x303   : > { %v3738_v45 = vadd.f32 %v12884_v22, %v19378_v16  ;;  %v13057_v46 = vpop.f32.mrf.mxu0  ;;  %13213 = vmatprep.mubr.msk.f32.mxu1 %vm1588_vm1, %v19379_v44  ;;  %13384 = vmatmul.mubr.msk.f32.gmra.mxu0 %vm1588_vm1, %v19375_v5  ;;  %v19383_v22 = vld [vmem:[#allocation41_spill] sm:$0xff] }
 0x304   : > { %v16280_v26 = vadd.f32 %v13057_v46, %v3736_v41  ;;  %v3482_v48 = vpop.f32.mrf.mxu1  ;;  %13386 = vmatprep.mubr.msk.f32.mxu0 %vm1588_vm1, %v19377_v27  ;;  %13662 = vmatpush3.msra.mxu0 %v6403_v10  ;;  %v19385_v41 = vld [vmem:[#allocation42_spill] sm:$0xff] }
 0x305   : > { %v3737_v21 = vadd.f32 %v3482_v48, %v19381_v34  ;;  %v4133_v54 = vpop.f32.mrf.mxu0 }
 0x306   : > { %19380 = vst [vmem:[#allocation123_spill] sm:$0xff] %v16280_v26  ;;  %v16285_v11 = vadd.f32 %v4133_v54, %v3735_v8  ;;  %v12887_v16 = vpop.f32.mrf.mxu1  ;;  %13214 = vmatmul.mubr.msk.f32.gmra.mxu1 %vm1588_vm1, %v19383_v22  ;;  %v19387_v8 = vld [vmem:[#allocation131_spill] sm:$0xff]  ;;  %v19390_v26 = vld [vmem:[#allocation44_spill] sm:$0xff] }
 0x307   : > { %v3740_v5 = vadd.f32 %v12887_v16, %v19384_v36  ;;  %v13060_v46 = vpop.f32.mrf.mxu0  ;;  %13216 = vmatprep.mubr.msk.f32.mxu1 %vm1588_vm1, %v19385_v41  ;;  %13387 = vmatmul.mubr.msk.f32.gmra.mxu0 %vm1588_vm1, %v19379_v44  ;;  %v19389_v36 = vld [vmem:[#allocation43_spill] sm:$0xff] }
 0x308   : > { %19382 = vst [vmem:[#allocation124_spill] sm:$0xff] %v16285_v11  ;;  %v16294_v28 = vadd.f32 %v13060_v46, %v3738_v45  ;;  %v3492_v48 = vpop.f32.mrf.mxu1  ;;  %13389 = vmatprep.mubr.msk.f32.mxu0 %vm1588_vm1, %v19383_v22  ;;  %v19395_v22 = vld [vmem:[#allocation46_spill] sm:$0xff] }
 0x309   : > { %v3739_v54 = vadd.f32 %v3492_v48, %v19387_v8  ;;  %v4143_v34 = vpop.f32.mrf.mxu0 }
 0x30a   : > { %19386 = vst [vmem:[#allocation125_spill] sm:$0xff] %v16294_v28  ;;  %v16299_v11 = vadd.f32 %v4143_v34, %v3737_v21  ;;  %v12890_v10 = vpop.f32.mrf.mxu1  ;;  %13217 = vmatmul.mubr.msk.f32.gmra.mxu1 %vm1588_vm1, %v19389_v36  ;;  %v19393_v34 = vld [vmem:[#allocation45_spill] sm:$0xff] }
 0x30b   : > { %v13063_v16 = vpop.f32.mrf.mxu0  ;;  %13219 = vmatprep.mubr.msk.f32.mxu1 %vm1588_vm1, %v19390_v26  ;;  %13390 = vmatmul.mubr.msk.f32.gmra.mxu0 %vm1588_vm1, %v19385_v41  ;;  %v19394_v10 = vld [vmem:[#allocation132_spill] sm:$0xff] }
 0x30c   : > { %19388 = vst [vmem:[#allocation126_spill] sm:$0xff] %v16299_v11  ;;  %v16307_v45 = vadd.f32 %v13063_v16, %v3740_v5  ;;  %v3502_v46 = vpop.f32.mrf.mxu1  ;;  %13392 = vmatprep.mubr.msk.f32.mxu0 %vm1588_vm1, %v19389_v36  ;;  %v19396_v16 = vld [vmem:[#allocation133_spill] sm:$0xff] }
 0x30d   : > { %v4153_v48 = vpop.f32.mrf.mxu0 }
 0x30e   : > { %19391 = vst [vmem:[#allocation127_spill] sm:$0xff] %v16307_v45  ;;  %v16311_v21 = vadd.f32 %v4153_v48, %v3739_v54  ;;  %v12893_v8 = vpop.f32.mrf.mxu1  ;;  %13220 = vmatmul.mubr.msk.f32.gmra.mxu1 %vm1588_vm1, %v19393_v34  ;;  %v19398_v45 = vld [vmem:[#allocation134_spill] sm:$0xff] }
 0x30f   : > { %v3742_v11 = vadd.f32 %v12893_v8, %v19394_v10  ;;  %v13066_v28 = vpop.f32.mrf.mxu0  ;;  %13222 = vmatprep.mubr.msk.f32.mxu1 %vm1588_vm1, %v19395_v22  ;;  %13393 = vmatmul.mubr.msk.f32.gmra.mxu0 %vm1588_vm1, %v19390_v26  ;;  %v19399_v10 = vld [vmem:[#allocation48_spill] sm:$0xff] }
 0x310   : > { %19392 = vst [vmem:[#allocation128_spill] sm:$0xff] %v16311_v21  ;;  %v3510_v5 = vpop.f32.mrf.mxu1  ;;  %13395 = vmatprep.mubr.msk.f32.mxu0 %vm1588_vm1, %v19393_v34  ;;  %v19397_v21 = vld [vmem:[#allocation47_spill] sm:$0xff] }
 0x311   : > { %v3741_v54 = vadd.f32 %v3510_v5, %v19396_v16  ;;  %v4163_v46 = vpop.f32.mrf.mxu0  ;;  %v19401_v5 = vld [vmem:[#allocation135_spill] sm:$0xff] }
 0x312   : > { %v12896_v48 = vpop.f32.mrf.mxu1  ;;  %13223 = vmatmul.mubr.msk.f32.gmra.mxu1 %vm1588_vm1, %v19397_v21 }
 0x313   : > { %v3744_v8 = vadd.f32 %v12896_v48, %v19398_v45  ;;  %v13069_v28 = vpop.f32.mrf.mxu0  ;;  %13225 = vmatprep.mubr.msk.f32.mxu1 %vm1588_vm1, %v19399_v10  ;;  %13396 = vmatmul.mubr.msk.f32.gmra.mxu0 %vm1588_vm1, %v19395_v22  ;;  %v19403_v45 = vld [vmem:[#allocation49_spill] sm:$0xff]  ;;  %v19404_v48 = vld [vmem:[#allocation136_spill] sm:$0xff]  ;;  %v19425_v22 = vld [vmem:[#allocation58_spill] sm:$0xff] }
 0x314   : > { %v16330_v26 = vadd.f32 %v13069_v28, %v3742_v11  ;;  %v3520_v36 = vpop.f32.mrf.mxu1  ;;  %13398 = vmatprep.mubr.msk.f32.mxu0 %vm1588_vm1, %v19397_v21 }
 0x315   : > { %v3743_v16 = vadd.f32 %v3520_v36, %v19401_v5  ;;  %v4171_v46 = vpop.f32.mrf.mxu0  ;;  %v19407_v36 = vld [vmem:[#allocation137_spill] sm:$0xff] }
 0x316   : > { %19400 = vst [vmem:[#allocation129_spill] sm:$0xff] %v16330_v26  ;;  %v16335_v34 = vadd.f32 %v4171_v46, %v3741_v54  ;;  %v12899_v41 = vpop.f32.mrf.mxu1  ;;  %13226 = vmatmul.mubr.msk.f32.gmra.mxu1 %vm1588_vm1, %v19403_v45  ;;  %v19410_v26 = vld [vmem:[#allocation52_spill] sm:$0xff] }
 0x317   : > { %v3746_v44 = vadd.f32 %v12899_v41, %v19404_v48  ;;  %v13072_v27 = vpop.f32.mrf.mxu0  ;;  %13228 = vmatprep.mubr.msk.f32.mxu1 %vm1588_vm1, %v19405_v57  ;;  %13399 = vmatmul.mubr.msk.f32.gmra.mxu0 %vm1588_vm1, %v19399_v10  ;;  %v19409_v41 = vld [vmem:[#allocation51_spill] sm:$0xff] }
 0x318   : > { %19402 = vst [vmem:[#allocation130_spill] sm:$0xff] %v16335_v34  ;;  %v16344_v11 = vadd.f32 %v13072_v27, %v3744_v8  ;;  %v3530_v28 = vpop.f32.mrf.mxu1  ;;  %13401 = vmatprep.mubr.msk.f32.mxu0 %vm1588_vm1, %v19403_v45  ;;  %v19415_v45 = vld [vmem:[#allocation54_spill] sm:$0xff] }
 0x319   : > { %v3745_v54 = vadd.f32 %v3530_v28, %v19407_v36  ;;  %v4181_v5 = vpop.f32.mrf.mxu0  ;;  %v19413_v36 = vld [vmem:[#allocation53_spill] sm:$0xff] }
 0x31a   : > { %19406 = vst [vmem:[#allocation131_spill] sm:$0xff] %v16344_v11  ;;  %v16349_v46 = vadd.f32 %v4181_v5, %v3743_v16  ;;  %v12902_v34 = vpop.f32.mrf.mxu1  ;;  %13229 = vmatmul.mubr.msk.f32.gmra.mxu1 %vm1588_vm1, %v19409_v41  ;;  %v19414_v5 = vld [vmem:[#allocation138_spill] sm:$0xff] }
 0x31b   : > { %v13075_v48 = vpop.f32.mrf.mxu0  ;;  %13231 = vmatprep.mubr.msk.f32.mxu1 %vm1588_vm1, %v19410_v26  ;;  %13402 = vmatmul.mubr.msk.f32.gmra.mxu0 %vm1588_vm1, %v19405_v57 }
 0x31c   : > { %19408 = vst [vmem:[#allocation132_spill] sm:$0xff] %v16349_v46  ;;  %v16357_v27 = vadd.f32 %v13075_v48, %v3746_v44  ;;  %v3540_v8 = vpop.f32.mrf.mxu1  ;;  %13404 = vmatprep.mubr.msk.f32.mxu0 %vm1588_vm1, %v19409_v41  ;;  %v19416_v48 = vld [vmem:[#allocation139_spill] sm:$0xff] }
 0x31d   : > { %v4191_v28 = vpop.f32.mrf.mxu0 }
 0x31e   : > { %19411 = vst [vmem:[#allocation133_spill] sm:$0xff] %v16357_v27  ;;  %v16361_v16 = vadd.f32 %v4191_v28, %v3745_v54  ;;  %v12905_v34 = vpop.f32.mrf.mxu1  ;;  %13232 = vmatmul.mubr.msk.f32.gmra.mxu1 %vm1588_vm1, %v19413_v36  ;;  %v19418_v27 = vld [vmem:[#allocation140_spill] sm:$0xff] }
 0x31f   : > { %v3748_v46 = vadd.f32 %v12905_v34, %v19414_v5  ;;  %v13078_v11 = vpop.f32.mrf.mxu0  ;;  %13234 = vmatprep.mubr.msk.f32.mxu1 %vm1588_vm1, %v19415_v45  ;;  %13405 = vmatmul.mubr.msk.f32.gmra.mxu0 %vm1588_vm1, %v19410_v26  ;;  %v19419_v5 = vld [vmem:[#allocation56_spill] sm:$0xff] }
 0x320   : > { %19412 = vst [vmem:[#allocation134_spill] sm:$0xff] %v16361_v16  ;;  %v3548_v44 = vpop.f32.mrf.mxu1  ;;  %13407 = vmatprep.mubr.msk.f32.mxu0 %vm1588_vm1, %v19413_v36  ;;  %v19417_v16 = vld [vmem:[#allocation55_spill] sm:$0xff] }
 0x321   : > { %v3747_v54 = vadd.f32 %v3548_v44, %v19416_v48  ;;  %v4201_v8 = vpop.f32.mrf.mxu0  ;;  %v19421_v44 = vld [vmem:[#allocation141_spill] sm:$0xff] }
 0x322   : > { %v12908_v28 = vpop.f32.mrf.mxu1  ;;  %13235 = vmatmul.mubr.msk.f32.gmra.mxu1 %vm1588_vm1, %v19417_v16 }
 0x323   : > { %v3750_v34 = vadd.f32 %v12908_v28, %v19418_v27  ;;  %v13081_v11 = vpop.f32.mrf.mxu0  ;;  %13237 = vmatprep.mubr.msk.f32.mxu1 %vm1588_vm1, %v19419_v5  ;;  %13408 = vmatmul.mubr.msk.f32.gmra.mxu0 %vm1588_vm1, %v19415_v45  ;;  %v19423_v27 = vld [vmem:[#allocation57_spill] sm:$0xff]  ;;  %v19424_v28 = vld [vmem:[#allocation142_spill] sm:$0xff] }
 0x324   : > { %v16380_v26 = vadd.f32 %v13081_v11, %v3748_v46  ;;  %v3558_v41 = vpop.f32.mrf.mxu1  ;;  %13410 = vmatprep.mubr.msk.f32.mxu0 %vm1588_vm1, %v19417_v16 }
 0x325   : > { %v3749_v48 = vadd.f32 %v3558_v41, %v19421_v44  ;;  %v4209_v8 = vpop.f32.mrf.mxu0  ;;  %v19427_v41 = vld [vmem:[#allocation143_spill] sm:$0xff] }
 0x326   : > { %19420 = vst [vmem:[#allocation135_spill] sm:$0xff] %v16380_v26  ;;  %v16385_v36 = vadd.f32 %v4209_v8, %v3747_v54  ;;  %v12911_v57 = vpop.f32.mrf.mxu1  ;;  %13238 = vmatmul.mubr.msk.f32.gmra.mxu1 %vm1588_vm1, %v19423_v27 }
 0x327   : > { %v3752_v10 = vadd.f32 %v12911_v57, %v19424_v28  ;;  %v13084_v21 = vpop.f32.mrf.mxu0  ;;  %13240 = vmatprep.mubr.msk.f32.mxu1 %vm1588_vm1, %v19425_v22  ;;  %13411 = vmatmul.mubr.msk.f32.gmra.mxu0 %vm1588_vm1, %v19419_v5  ;;  %v19429_v57 = vld [vmem:[#allocation59_spill] sm:$0xff] }
 0x328   : > { %19422 = vst [vmem:[#allocation136_spill] sm:$0xff] %v16385_v36  ;;  %v16394_v46 = vadd.f32 %v13084_v21, %v3750_v34  ;;  %v3568_v11 = vpop.f32.mrf.mxu1  ;;  %13413 = vmatprep.mubr.msk.f32.mxu0 %vm1588_vm1, %v19423_v27 }
 0x329   : > { %v3751_v54 = vadd.f32 %v3568_v11, %v19427_v41  ;;  %v4219_v44 = vpop.f32.mrf.mxu0  ;;  %v19432_v41 = vld [vmem:[#allocation144_spill] sm:$0xff] }
 0x32a   : > { %19426 = vst [vmem:[#allocation137_spill] sm:$0xff] %v16394_v46  ;;  %v16399_v8 = vadd.f32 %v4219_v44, %v3749_v48  ;;  %v12914_v36 = vpop.f32.mrf.mxu1  ;;  %13241 = vmatmul.mubr.msk.f32.gmra.mxu1 %vm1588_vm1, %v19429_v57 }
 0x32b   : > { %v13087_v28 = vpop.f32.mrf.mxu0  ;;  %13243 = vmatprep.mubr.msk.f32.mxu1 %vm1588_vm1, %v19251_v42  ;;  %13414 = vmatmul.mubr.msk.f32.gmra.mxu0 %vm1588_vm1, %v19425_v22  ;;  %v19441_v22 = vld [vmem:[#allocation66_spill] sm:$0xff] }
 0x32c   : > { %19428 = vst [vmem:[#allocation138_spill] sm:$0xff] %v16399_v8  ;;  %v16407_v21 = vadd.f32 %v13087_v28, %v3752_v10  ;;  %v3578_v34 = vpop.f32.mrf.mxu1  ;;  %13416 = vmatprep.mubr.msk.f32.mxu0 %vm1588_vm1, %v19429_v57  ;;  %v19433_v28 = vld [vmem:[#allocation145_spill] sm:$0xff] }
 0x32d   : > { %v4229_v11 = vpop.f32.mrf.mxu0 }
 0x32e   : > { %19430 = vst [vmem:[#allocation54_spill] sm:$0xff] %v16407_v21  ;;  %v16411_v48 = vadd.f32 %v4229_v11, %v3751_v54  ;;  %v12917_v36 = vpop.f32.mrf.mxu1  ;;  %13244 = vmatmul.mubr.msk.f32.gmra.mxu1 %vm1588_vm1, %v19253_v43 }
 0x32f   : > { %v3754_v44 = vadd.f32 %v12917_v36, %v19432_v41  ;;  %v13090_v8 = vpop.f32.mrf.mxu0  ;;  %13246 = vmatprep.mubr.msk.f32.mxu1 %vm1588_vm1, %v19255_v30  ;;  %13417 = vmatmul.mubr.msk.f32.gmra.mxu0 %vm1588_vm1, %v19251_v42  ;;  %v19435_v41 = vld [vmem:[#allocation64_spill] sm:$0xff] }
 0x330   : > { %19431 = vst [vmem:[#allocation139_spill] sm:$0xff] %v16411_v48  ;;  %v3586_v10 = vpop.f32.mrf.mxu1  ;;  %13419 = vmatprep.mubr.msk.f32.mxu0 %vm1588_vm1, %v19253_v43  ;;  %v19434_v48 = vld [vmem:[#allocation62_spill] sm:$0xff] }
 0x331   : > { %v3753_v54 = vadd.f32 %v3586_v10, %v19433_v28  ;;  %v4239_v34 = vpop.f32.mrf.mxu0  ;;  %v19437_v10 = vld [vmem:[#allocation63_spill] sm:$0xff] }
 0x332   : > { %v12920_v11 = vpop.f32.mrf.mxu1  ;;  %13247 = vmatmul.mubr.msk.f32.gmra.mxu1 %vm1588_vm1, %v19257_v63 }
 0x333   : > { %v3756_v36 = vadd.f32 %v12920_v11, %v19434_v48  ;;  %v13093_v8 = vpop.f32.mrf.mxu0  ;;  %13249 = vmatprep.mubr.msk.f32.mxu1 %vm1588_vm1, %v19435_v41  ;;  %13420 = vmatmul.mubr.msk.f32.gmra.mxu0 %vm1588_vm1, %v19255_v30  ;;  %v19439_v48 = vld [vmem:[#allocation65_spill] sm:$0xff]  ;;  %v19440_v11 = vld [vmem:[#allocation146_spill] sm:$0xff] }
 0x334   : > { %v16430_v21 = vadd.f32 %v13093_v8, %v3754_v44  ;;  %v3596_v46 = vpop.f32.mrf.mxu1  ;;  %13422 = vmatprep.mubr.msk.f32.mxu0 %vm1588_vm1, %v19257_v63 }
 0x335   : > { %v3755_v28 = vadd.f32 %v3596_v46, %v19437_v10  ;;  %v4247_v34 = vpop.f32.mrf.mxu0  ;;  %v19442_v46 = vld [vmem:[#allocation147_spill] sm:$0xff] }
 0x336   : > { %19436 = vst [vmem:[#allocation55_spill] sm:$0xff] %v16430_v21  ;;  %v16435_v43 = vadd.f32 %v4247_v34, %v3753_v54  ;;  %v12923_v26 = vpop.f32.mrf.mxu1  ;;  %13250 = vmatmul.mubr.msk.f32.gmra.mxu1 %vm1588_vm1, %v19439_v48  ;;  %v19444_v21 = vld [vmem:[#allocation68_spill] sm:$0xff] }
 0x337   : > { %v3758_v42 = vadd.f32 %v12923_v26, %v19440_v11  ;;  %v13096_v57 = vpop.f32.mrf.mxu0  ;;  %13252 = vmatprep.mubr.msk.f32.mxu1 %vm1588_vm1, %v19441_v22  ;;  %13423 = vmatmul.mubr.msk.f32.gmra.mxu0 %vm1588_vm1, %v19435_v41  ;;  %v19443_v26 = vld [vmem:[#allocation67_spill] sm:$0xff] }
 0x338   : > { %19438 = vst [vmem:[#allocation140_spill] sm:$0xff] %v16435_v43  ;;  %v16444_v44 = vadd.f32 %v13096_v57, %v3756_v36  ;;  %v3606_v8 = vpop.f32.mrf.mxu1  ;;  %13425 = vmatprep.mubr.msk.f32.mxu0 %vm1588_vm1, %v19439_v48 }
 0x339   : > { %v3757_v54 = vadd.f32 %v3606_v8, %v19442_v46  ;;  %v4257_v10 = vpop.f32.mrf.mxu0  ;;  %v19447_v46 = vld [vmem:[#allocation69_spill] sm:$0xff] }
 0x33a   : > { %v16449_v34 = vadd.f32 %v4257_v10, %v3755_v28  ;;  %v12926_v43 = vpop.f32.mrf.mxu1  ;;  %13253 = vmatmul.mubr.msk.f32.gmra.mxu1 %vm1588_vm1, %v19443_v26 }
 0x33b   : > { %v13099_v11 = vpop.f32.mrf.mxu0  ;;  %13255 = vmatprep.mubr.msk.f32.mxu1 %vm1588_vm1, %v19444_v21  ;;  %13426 = vmatmul.mubr.msk.f32.gmra.mxu0 %vm1588_vm1, %v19441_v22 }
 0x33c   : > { %v16457_v57 = vadd.f32 %v13099_v11, %v3758_v42  ;;  %v3616_v36 = vpop.f32.mrf.mxu1  ;;  %13428 = vmatprep.mubr.msk.f32.mxu0 %vm1588_vm1, %v19443_v26 }
 0x33d   : > { %v4267_v8 = vpop.f32.mrf.mxu0 }
 0x33e   : > { %19445 = vst [vmem:[#allocation141_spill] sm:$0xff] %v16457_v57  ;;  %v16461_v28 = vadd.f32 %v4267_v8, %v3757_v54  ;;  %v12929_v43 = vpop.f32.mrf.mxu1  ;;  %13256 = vmatmul.mubr.msk.f32.gmra.mxu1 %vm1588_vm1, %v19447_v46  ;;  %v19448_v57 = vld [vmem:[#allocation71_spill] sm:$0xff] }
 0x33f   : > { %v13102_v10 = vpop.f32.mrf.mxu0  ;;  %13258 = vmatprep.mubr.msk.f32.mxu1 %vm1588_vm1, %v19267_v32  ;;  %13429 = vmatmul.mubr.msk.f32.gmra.mxu0 %vm1588_vm1, %v19444_v21 }
 0x340   : > { %19446 = vst [vmem:[#allocation57_spill] sm:$0xff] %v16461_v28  ;;  %v3624_v42 = vpop.f32.mrf.mxu1  ;;  %13431 = vmatprep.mubr.msk.f32.mxu0 %vm1588_vm1, %v19447_v46 }
 0x341   : > { %v4277_v11 = vpop.f32.mrf.mxu0 }
 0x342   : > { %v12932_v36 = vpop.f32.mrf.mxu1  ;;  %13259 = vmatmul.mubr.msk.f32.gmra.mxu1 %vm1588_vm1, %v19448_v57 }
 0x343   : > { %v13105_v54 = vpop.f32.mrf.mxu0  ;;  %13261 = vmatprep.mubr.msk.f32.mxu1 %vm1588_vm1, %v19269_v12  ;;  %13432 = vmatmul.mubr.msk.f32.gmra.mxu0 %vm1588_vm1, %v19267_v32 }
 0x344   : > { %v3632_v8 = vpop.f32.mrf.mxu1  ;;  %13434 = vmatprep.mubr.msk.f32.mxu0 %vm1588_vm1, %v19448_v57 }
 0x345   : > { %v4285_v43 = vpop.f32.mrf.mxu0  ;;  %v19449_v8 = vld [vmem:[#allocation75_spill] sm:$0xff] }
 0x346   : > { %v12935_v10 = vpop.f32.mrf.mxu1  ;;  %13262 = vmatmul.mubr.msk.f32.gmra.mxu1 %vm1588_vm1, %v19270_v55 }
 0x347   : > { %v13108_v42 = vpop.f32.mrf.mxu0  ;;  %13264 = vmatprep.mubr.msk.f32.mxu1 %vm1588_vm1, %v19271_v53  ;;  %13435 = vmatmul.mubr.msk.f32.gmra.mxu0 %vm1588_vm1, %v19269_v12  ;;  %v19450_v10 = vld [vmem:[#allocation76_spill] sm:$0xff]  ;;  %v19451_v12 = vld [vmem:[#allocation77_spill] sm:$0xff] }
 0x348   : > { %v3640_v11 = vpop.f32.mrf.mxu1  ;;  %13437 = vmatprep.mubr.msk.f32.mxu0 %vm1588_vm1, %v19270_v55  ;;  %v19453_v55 = vld [vmem:[#allocation79_spill] sm:$0xff] }
 0x349   : > { %v4293_v36 = vpop.f32.mrf.mxu0 }
 0x34a   : > { %v12938_v54 = vpop.f32.mrf.mxu1  ;;  %13265 = vmatmul.mubr.msk.f32.gmra.mxu1 %vm1588_vm1, %v19449_v8 }
 0x34b   : > { %v13111_v43 = vpop.f32.mrf.mxu0  ;;  %13267 = vmatprep.mubr.msk.f32.mxu1 %vm1588_vm1, %v19450_v10  ;;  %13438 = vmatmul.mubr.msk.f32.gmra.mxu0 %vm1588_vm1, %v19271_v53  ;;  %v19452_v54 = vld [vmem:[#allocation78_spill] sm:$0xff] }
 0x34c   : > { %v3648_v42 = vpop.f32.mrf.mxu1  ;;  %13440 = vmatprep.mubr.msk.f32.mxu0 %vm1588_vm1, %v19449_v8 }
 0x34d   : > { %v4301_v11 = vpop.f32.mrf.mxu0 }
 0x34e   : > { %v12941_v28 = vpop.f32.mrf.mxu1  ;;  %13268 = vmatmul.mubr.msk.f32.gmra.mxu1 %vm1588_vm1, %v19451_v12  ;;  %v19454_v11 = vld [vmem:[#allocation80_spill] sm:$0xff] }
 0x34f   : > { %v13114_v36 = vpop.f32.mrf.mxu0  ;;  %13270 = vmatprep.mubr.msk.f32.mxu1 %vm1588_vm1, %v19452_v54  ;;  %13441 = vmatmul.mubr.msk.f32.gmra.mxu0 %vm1588_vm1, %v19450_v10 }
 0x350   : > { %v3656_v43 = vpop.f32.mrf.mxu1  ;;  %13443 = vmatprep.mubr.msk.f32.mxu0 %vm1588_vm1, %v19451_v12 }
 0x351   : > { %v4309_v42 = vpop.f32.mrf.mxu0 }
 0x352   : > { %v12944_v53 = vpop.f32.mrf.mxu1  ;;  %13271 = vmatmul.mubr.msk.f32.gmra.mxu1 %vm1588_vm1, %v19453_v55 }
 0x353   : > { %v13117_v28 = vpop.f32.mrf.mxu0  ;;  %13273 = vmatprep.mubr.msk.f32.mxu1 %vm1588_vm1, %v19454_v11  ;;  %13444 = vmatmul.mubr.msk.f32.gmra.mxu0 %vm1588_vm1, %v19452_v54 }
 0x354   : > { %v3664_v36 = vpop.f32.mrf.mxu1  ;;  %13446 = vmatprep.mubr.msk.f32.mxu0 %vm1588_vm1, %v19453_v55 }
 0x355   : > { %v4317_v43 = vpop.f32.mrf.mxu0 }
 0x356   : > { %v12947_v10 = vpop.f32.mrf.mxu1  ;;  %13274 = vmatmul.mubr.msk.f32.gmra.mxu1 %vm1588_vm1, %v15206_v4 }
 0x357   : > { %v13120_v53 = vpop.f32.mrf.mxu0  ;;  %13276 = vmatprep.mubr.msk.f32.mxu1 %vm1588_vm1, %v15214_v23  ;;  %13447 = vmatmul.mubr.msk.f32.gmra.mxu0 %vm1588_vm1, %v19454_v11 }
 0x358   : > { %v3672_v42 = vpop.f32.mrf.mxu1  ;;  %13449 = vmatprep.mubr.msk.f32.mxu0 %vm1588_vm1, %v15206_v4 }
 0x359   : > { %v4325_v28 = vpop.f32.mrf.mxu0 }
 0x35a   : > { %v12950_v36 = vpop.f32.mrf.mxu1  ;;  %13277 = vmatmul.mubr.msk.f32.gmra.mxu1 %vm1588_vm1, %v15224_v7 }
 0x35b   : > { %v13123_v10 = vpop.f32.mrf.mxu0  ;;  %13279 = vmatprep.mubr.msk.f32.mxu1 %vm1588_vm1, %v15232_v50  ;;  %13450 = vmatmul.mubr.msk.f32.gmra.mxu0 %vm1588_vm1, %v15214_v23  ;;  %v19455_v23 = vld [vmem:[#allocation70_spill] sm:$0xff] }
 0x35c   : > { %v3680_v43 = vpop.f32.mrf.mxu1  ;;  %13452 = vmatprep.mubr.msk.f32.mxu0 %vm1588_vm1, %v15224_v7 }
 0x35d   : > { %v4333_v53 = vpop.f32.mrf.mxu0 }
 0x35e   : > { %v13137_v42 = vpop.f32.mrf.mxu1  ;;  %13280 = vmatmul.mubr.msk.f32.gmra.mxu1 %vm1588_vm1, %v15244_v47 }
 0x35f   : > { %v5010_v28 = vadd.f32 %v13137_v42, %v15862_v0  ;;  %v13126_v36 = vpop.f32.mrf.mxu0  ;;  %13282 = vmatprep.mubr.msk.f32.mxu1 %vm1588_vm1, %v15252_v37  ;;  %13453 = vmatmul.mubr.msk.f32.gmra.mxu0 %vm1588_vm1, %v15232_v50 }
 0x360   : > { %v4490_v10 = vpop.f32.mrf.mxu1  ;;  %13455 = vmatprep.mubr.msk.f32.mxu0 %vm1588_vm1, %v15244_v47 }
 0x361   : > { %v5009_v43 = vadd.f32 %v4490_v10, %v15867_v29  ;;  %v4341_v53 = vpop.f32.mrf.mxu0  ;;  %v19457_v29 = vld [vmem:[#allocation82_spill] sm:$0xff] }
 0x362   : > { %v13140_v7 = vpop.f32.mrf.mxu1  ;;  %13283 = vmatmul.mubr.msk.f32.gmra.mxu1 %vm1588_vm1, %v15264_v3 }
 0x363   : > { %v5012_v0 = vadd.f32 %v13140_v7, %v19455_v23  ;;  %13285 = vmatprep.mubr.msk.f32.mxu1 %vm1588_vm1, %v15270_v20  ;;  %v13313_v42 = vpop.f32.mrf.mxu0  ;;  %13456 = vmatmul.mubr.msk.f32.gmra.mxu0 %vm1588_vm1, %v15252_v37  ;;  %v19459_v23 = vld [vmem:[#allocation84_spill] sm:$0xff] }
 0x364   : > { %v16544_v36 = vadd.f32 %v13313_v42, %v5010_v28  ;;  %v4500_v50 = vpop.f32.mrf.mxu1  ;;  %13458 = vmatprep.mubr.msk.f32.mxu0 %vm1588_vm1, %v15264_v3 }
 0x365   : > { %v5011_v10 = vadd.f32 %v4500_v50, %v19457_v29  ;;  %v5151_v53 = vpop.f32.mrf.mxu0  ;;  %v19461_v50 = vld [vmem:[#allocation87_spill] sm:$0xff] }
 0x366   : > { %19456 = vst [vmem:[#allocation142_spill] sm:$0xff] %v16544_v36  ;;  %v16549_v47 = vadd.f32 %v5151_v53, %v5009_v43  ;;  %v13143_v4 = vpop.f32.mrf.mxu1  ;;  %13286 = vmatmul.mubr.msk.f32.gmra.mxu1 %vm1588_vm1, %v15280_v56 }
 0x367   : > { %v5014_v7 = vadd.f32 %v13143_v4, %v19459_v23  ;;  %13288 = vmatprep.mubr.msk.f32.mxu1 %vm1588_vm1, %v15286_v31  ;;  %v13316_v28 = vpop.f32.mrf.mxu0  ;;  %13459 = vmatmul.mubr.msk.f32.gmra.mxu0 %vm1588_vm1, %v15270_v20 }
 0x368   : > { %19458 = vst [vmem:[#allocation143_spill] sm:$0xff] %v16549_v47  ;;  %v16558_v42 = vadd.f32 %v13316_v28, %v5012_v0  ;;  %v4510_v36 = vpop.f32.mrf.mxu1  ;;  %13461 = vmatprep.mubr.msk.f32.mxu0 %vm1588_vm1, %v15280_v56 }
 0x369   : > { %v5013_v43 = vadd.f32 %v4510_v36, %v19461_v50  ;;  %v5161_v29 = vpop.f32.mrf.mxu0 }
 0x36a   : > { %19460 = vst [vmem:[#allocation144_spill] sm:$0xff] %v16558_v42  ;;  %v16563_v53 = vadd.f32 %v5161_v29, %v5011_v10  ;;  %v13146_v47 = vpop.f32.mrf.mxu1  ;;  %13289 = vmatmul.mubr.f32.gmra.mxu1 %v19282_v49 }
 0x36b   : > { %v13319_v4 = vpop.f32.mrf.mxu0  ;;  %13462 = vmatmul.mubr.msk.f32.gmra.mxu0 %vm1588_vm1, %v15286_v31  ;;  %13291 = vmatprep.mubr.f32.mxu1 %v19282_v49 }
 0x36c   : > { %v16569_v0 = vadd.f32 %v13319_v4, %v5014_v7  ;;  %v4520_v23 = vpop.f32.mrf.mxu1  ;;  %13464 = vmatprep.mubr.f32.mxu0 %v19282_v49  ;;  %v19463_v7 = vld [vmem:[#allocation93_spill] sm:$0xff] }
 0x36d   : > { %v5171_v28 = vpop.f32.mrf.mxu0 }
 0x36e   : > { %v16572_v42 = vadd.f32 %v5171_v28, %v5013_v43  ;;  %v13149_v36 = vpop.f32.mrf.mxu1  ;;  %13292 = vmatmul.mubr.f32.gmra.mxu1 %v19282_v49 }
 0x36f   : > { %v5016_v47 = vadd.f32 %v13149_v36, %v15910_v59  ;;  %v13322_v10 = vpop.f32.mrf.mxu0  ;;  %13465 = vmatmul.mubr.f32.gmra.mxu0 %v19282_v49  ;;  %13294 = vmatprep.mubr.f32.mxu1 %v19282_v49 }
 0x370   : > { %19462 = vst [vmem:[#allocation145_spill] sm:$0xff] %v16572_v42  ;;  %v4528_v50 = vpop.f32.mrf.mxu1  ;;  %13467 = vmatprep.mubr.f32.mxu0 %v19282_v49 }
 0x371   : > { %v5015_v29 = vadd.f32 %v4528_v50, %v19463_v7  ;;  %v5181_v4 = vpop.f32.mrf.mxu0 }
 0x372   : > { %v13152_v23 = vpop.f32.mrf.mxu1  ;;  %13295 = vmatmul.mubr.f32.gmra.mxu1 %v19282_v49 }
 0x373   : > { %v5018_v43 = vadd.f32 %v13152_v23, %v15921_v62  ;;  %v13325_v28 = vpop.f32.mrf.mxu0  ;;  %13468 = vmatmul.mubr.f32.gmra.mxu0 %v19282_v49  ;;  %13297 = vmatprep.mubr.f32.mxu1 %v19282_v49 }
 0x374   : > { %v16584_v59 = vadd.f32 %v13325_v28, %v5016_v47  ;;  %v4538_v36 = vpop.f32.mrf.mxu1  ;;  %13470 = vmatprep.mubr.f32.mxu0 %v19282_v49 }
 0x375   : > { %v5017_v10 = vadd.f32 %v4538_v36, %v15925_v6  ;;  %v5189_v42 = vpop.f32.mrf.mxu0 }
 0x376   : > { %v16588_v50 = vadd.f32 %v5189_v42, %v5015_v29  ;;  %v13155_v7 = vpop.f32.mrf.mxu1  ;;  %13298 = vmatmul.mubr.f32.gmra.mxu1 %v19282_v49 }
 0x377   : > { %v5020_v62 = vadd.f32 %v13155_v7, %v15931_v14  ;;  %v13328_v4 = vpop.f32.mrf.mxu0  ;;  %13471 = vmatmul.mubr.f32.gmra.mxu0 %v19282_v49  ;;  %13300 = vmatprep.mubr.f32.mxu1 %v19282_v49 }
 0x378   : > { %v16594_v47 = vadd.f32 %v13328_v4, %v5018_v43  ;;  %v4548_v23 = vpop.f32.mrf.mxu1  ;;  %13473 = vmatprep.mubr.f32.mxu0 %v19282_v49 }
 0x379   : > { %v5019_v6 = vadd.f32 %v4548_v23, %v15934_v38  ;;  %v5199_v28 = vpop.f32.mrf.mxu0 }
 0x37a   : > { %v16598_v42 = vadd.f32 %v5199_v28, %v5017_v10  ;;  %v13158_v29 = vpop.f32.mrf.mxu1  ;;  %13301 = vmatmul.mubr.f32.gmra.mxu1 %v19282_v49  ;;  %v7066_v10 = vld [vmem:[%s18723_s3 + $0x110] sm:$0xff] }
 0x37b   : > { %v13331_v36 = vpop.f32.mrf.mxu0  ;;  %13474 = vmatmul.mubr.f32.gmra.mxu0 %v19282_v49  ;;  %13487 = vmatprep.mubr.msk.f32.mxu1 %vm1588_vm1, %v14560_v51 }
 0x37c   : > { %v16604_v14 = vadd.f32 %v13331_v36, %v5020_v62  ;;  %v4558_v43 = vpop.f32.mrf.mxu1  ;;  %13476 = vmatprep.mubr.f32.mxu0 %v19282_v49 }
 0x37d   : > { %v5209_v7 = vpop.f32.mrf.mxu0 }
 0x37e   : > { %v16607_v4 = vadd.f32 %v5209_v7, %v5019_v6  ;;  %v13161_v38 = vpop.f32.mrf.mxu1  ;;  %13488 = vmatmul.mubr.msk.f32.vlgmr.msra.gmra.mxu1 %vm1588_vm1, %v14564_v52 }
 0x37f   : > { %v5022_v23 = vadd.f32 %v13161_v38, %v15959_v33  ;;  %13832 = vmatpush3.msra.mxu1 %v16256_v35  ;;  %v13334_v51 = vpop.f32.mrf.mxu0  ;;  %13477 = vmatmul.mubr.f32.gmra.mxu0 %v19282_v49  ;;  %v7065_v33 = vld [vmem:[%s18723_s3 + $0x108] sm:$0xff] }
 0x380   : > { %13490 = vmatprep.mubr.msk.f32.mxu1 %vm1588_vm1, %v14574_v58  ;;  %v4566_v62 = vpop.f32.mrf.mxu1  ;;  %13663 = vmatprep.mubr.msk.f32.mxu0 %vm1588_vm1, %v14564_v52 }
 0x381   : > { %v5021_v6 = vadd.f32 %v4566_v62, %v15964_v61  ;;  %v5219_v28 = vpop.f32.mrf.mxu0  ;;  %13833 = vmatprep.subr.mxu1 %v7066_v10 }
 0x382   : > { %v13164_v29 = vpop.f32.mrf.mxu1  ;;  %13491 = vmatmul.mubr.msk.f32.gmra.mxu1 %vm1588_vm1, %v14578_v60 }
 0x383   : > { %v5024_v35 = vadd.f32 %v13164_v29, %v15973_v39  ;;  %v13337_v36 = vpop.f32.mrf.mxu0  ;;  %13493 = vmatprep.mubr.msk.f32.mxu1 %vm1588_vm1, %v14588_v1  ;;  %13664 = vmatmul.mubr.msk.f32.vlgmr.msra.gmra.mxu0 %vm1588_vm1, %v14574_v58 }
 0x384   : > { %v16632_v52 = vadd.f32 %v13337_v36, %v5022_v23  ;;  %v4576_v61 = vpop.f32.mrf.mxu1  ;;  %13666 = vmatprep.mubr.msk.f32.mxu0 %vm1588_vm1, %v14578_v60  ;;  %13834 = vmatpush3.msra.mxu1 %v7066_v10 }
 0x385   : > { %v5023_v43 = vadd.f32 %v4576_v61, %v15978_v13  ;;  %v5227_v7 = vpop.f32.mrf.mxu0  ;;  %13835 = vmatprep.subr.mxu1 %v7065_v33 }
 0x386   : > { %v16637_v38 = vadd.f32 %v5227_v7, %v5021_v6  ;;  %v13167_v39 = vpop.f32.mrf.mxu1  ;;  %13494 = vmatmul.mubr.msk.f32.gmra.mxu1 %vm1588_vm1, %v14592_v2 }
 0x387   : > { %v5026_v51 = vadd.f32 %v13167_v39, %v15986_v40  ;;  %v13340_v62 = vpop.f32.mrf.mxu0  ;;  %13496 = vmatprep.mubr.msk.f32.mxu1 %vm1588_vm1, %v19291_v15  ;;  %13667 = vmatmul.mubr.msk.f32.gmra.mxu0 %vm1588_vm1, %v14588_v1 }
 0x388   : > { %v16646_v10 = vadd.f32 %v13340_v62, %v5024_v35  ;;  %v4586_v13 = vpop.f32.mrf.mxu1  ;;  %13669 = vmatprep.mubr.msk.f32.mxu0 %vm1588_vm1, %v14592_v2  ;;  %13836 = vmatpush3.msra.mxu1 %v7065_v33 }
 0x389   : > { %v5025_v23 = vadd.f32 %v4586_v13, %v15990_v24  ;;  %v5237_v6 = vpop.f32.mrf.mxu0 }
 0x38a   : > { %v16651_v28 = vadd.f32 %v5237_v6, %v5023_v43  ;;  %v13170_v40 = vpop.f32.mrf.mxu1  ;;  %13497 = vmatmul.mubr.msk.f32.gmra.mxu1 %vm1588_vm1, %v14606_v9  ;;  %v19467_v6 = vld [vmem:[#allocation6_spill] sm:$0xff] }
 0x38b   : > { %v13343_v29 = vpop.f32.mrf.mxu0  ;;  %13499 = vmatprep.mubr.msk.f32.mxu1 %vm1588_vm1, %v14616_v17  ;;  %13670 = vmatmul.mubr.msk.f32.gmra.mxu0 %vm1588_vm1, %v19291_v15  ;;  %v19468_v40 = vld [vmem:[#allocation96_spill] sm:$0xff] }
 0x38c   : > { %v16659_v35 = vadd.f32 %v13343_v29, %v5026_v51  ;;  %v4596_v36 = vpop.f32.mrf.mxu1  ;;  %13672 = vmatprep.mubr.msk.f32.mxu0 %vm1588_vm1, %v14606_v9  ;;  %v19466_v51 = vld [vmem:[#allocation95_spill] sm:$0xff] }
 0x38d   : > { %v5247_v24 = vpop.f32.mrf.mxu0  ;;  %v19469_v36 = vld [vmem:[#allocation7_spill] sm:$0xff] }
 0x38e   : > { %19464 = vst [vmem:[#allocation62_spill] sm:$0xff] %v16659_v35  ;;  %v16663_v33 = vadd.f32 %v5247_v24, %v5025_v23  ;;  %v13173_v61 = vpop.f32.mrf.mxu1  ;;  %13500 = vmatmul.mubr.msk.f32.gmra.mxu1 %vm1588_vm1, %v14623_v19  ;;  %v19475_v35 = vld [vmem:[#allocation9_spill] sm:$0xff] }
 0x38f   : > { %v5028_v43 = vadd.f32 %v13173_v61, %v16009_v18  ;;  %v13346_v7 = vpop.f32.mrf.mxu0  ;;  %13502 = vmatprep.mubr.msk.f32.mxu1 %vm1588_vm1, %v14633_v25  ;;  %13673 = vmatmul.mubr.msk.f32.gmra.mxu0 %vm1588_vm1, %v14616_v17 }
 0x390   : > { %19465 = vst [vmem:[#allocation64_spill] sm:$0xff] %v16663_v33  ;;  %v4604_v39 = vpop.f32.mrf.mxu1  ;;  %13675 = vmatprep.mubr.msk.f32.mxu0 %vm1588_vm1, %v14623_v19  ;;  %v19471_v7 = vld [vmem:[#allocation97_spill] sm:$0xff] }
 0x391   : > { %v5027_v62 = vadd.f32 %v4604_v39, %v19466_v51  ;;  %v5257_v13 = vpop.f32.mrf.mxu0 }
 0x392   : > { %v13176_v23 = vpop.f32.mrf.mxu1  ;;  %13503 = vmatmul.mubr.msk.f32.gmra.mxu1 %vm1588_vm1, %v19467_v6 }
 0x393   : > { %v5030_v18 = vadd.f32 %v13176_v23, %v19468_v40  ;;  %v13349_v29 = vpop.f32.mrf.mxu0  ;;  %13505 = vmatprep.mubr.msk.f32.mxu1 %vm1588_vm1, %v19469_v36  ;;  %13676 = vmatmul.mubr.msk.f32.gmra.mxu0 %vm1588_vm1, %v14633_v25  ;;  %v19473_v23 = vld [vmem:[#allocation8_spill] sm:$0xff]  ;;  %v19474_v40 = vld [vmem:[#allocation98_spill] sm:$0xff]  ;;  %v19515_v25 = vld [vmem:[#allocation25_spill] sm:$0xff] }
 0x394   : > { %v16682_v24 = vadd.f32 %v13349_v29, %v5028_v43  ;;  %v4614_v61 = vpop.f32.mrf.mxu1  ;;  %13678 = vmatprep.mubr.msk.f32.mxu0 %vm1588_vm1, %v19467_v6  ;;  %v19500_v6 = vld [vmem:[#allocation19_spill] sm:$0xff] }
 0x395   : > { %v5029_v39 = vadd.f32 %v4614_v61, %v19471_v7  ;;  %v5265_v51 = vpop.f32.mrf.mxu0 }
 0x396   : > { %19470 = vst [vmem:[#allocation63_spill] sm:$0xff] %v16682_v24  ;;  %v16687_v13 = vadd.f32 %v5265_v51, %v5027_v62  ;;  %v13179_v19 = vpop.f32.mrf.mxu1  ;;  %13506 = vmatmul.mubr.msk.f32.gmra.mxu1 %vm1588_vm1, %v19473_v23  ;;  %v19477_v62 = vld [vmem:[#allocation99_spill] sm:$0xff] }
 0x397   : > { %v5032_v33 = vadd.f32 %v13179_v19, %v19474_v40  ;;  %v13352_v17 = vpop.f32.mrf.mxu0  ;;  %13508 = vmatprep.mubr.msk.f32.mxu1 %vm1588_vm1, %v19475_v35  ;;  %13679 = vmatmul.mubr.msk.f32.gmra.mxu0 %vm1588_vm1, %v19469_v36  ;;  %v19479_v19 = vld [vmem:[#allocation10_spill] sm:$0xff]  ;;  %v19480_v24 = vld [vmem:[#allocation11_spill] sm:$0xff] }
 0x398   : > { %19472 = vst [vmem:[#allocation65_spill] sm:$0xff] %v16687_v13  ;;  %v16696_v43 = vadd.f32 %v13352_v17, %v5030_v18  ;;  %v4624_v29 = vpop.f32.mrf.mxu1  ;;  %13681 = vmatprep.mubr.msk.f32.mxu0 %vm1588_vm1, %v19473_v23  ;;  %v19485_v23 = vld [vmem:[#allocation13_spill] sm:$0xff] }
 0x399   : > { %v5031_v61 = vadd.f32 %v4624_v29, %v19477_v62  ;;  %v5275_v7 = vpop.f32.mrf.mxu0  ;;  %v19483_v62 = vld [vmem:[#allocation12_spill] sm:$0xff] }
 0x39a   : > { %19476 = vst [vmem:[#allocation146_spill] sm:$0xff] %v16696_v43  ;;  %v16701_v51 = vadd.f32 %v5275_v7, %v5029_v39  ;;  %v13182_v13 = vpop.f32.mrf.mxu1  ;;  %13509 = vmatmul.mubr.msk.f32.gmra.mxu1 %vm1588_vm1, %v19479_v19  ;;  %v19484_v7 = vld [vmem:[#allocation100_spill] sm:$0xff] }
 0x39b   : > { %v13355_v40 = vpop.f32.mrf.mxu0  ;;  %13511 = vmatprep.mubr.msk.f32.mxu1 %vm1588_vm1, %v19480_v24  ;;  %13682 = vmatmul.mubr.msk.f32.gmra.mxu0 %vm1588_vm1, %v19475_v35  ;;  %v19493_v35 = vld [vmem:[#allocation16_spill] sm:$0xff] }
 0x39c   : > { %19478 = vst [vmem:[#allocation147_spill] sm:$0xff] %v16701_v51  ;;  %v16709_v17 = vadd.f32 %v13355_v40, %v5032_v33  ;;  %v4634_v18 = vpop.f32.mrf.mxu1  ;;  %13684 = vmatprep.mubr.msk.f32.mxu0 %vm1588_vm1, %v19479_v19  ;;  %v19486_v40 = vld [vmem:[#allocation2_spill] sm:$0xff] }
 0x39d   : > { %v5285_v29 = vpop.f32.mrf.mxu0 }
 0x39e   : > { %19481 = vst [vmem:[#allocation69_spill] sm:$0xff] %v16709_v17  ;;  %v16713_v39 = vadd.f32 %v5285_v29, %v5031_v61  ;;  %v13185_v13 = vpop.f32.mrf.mxu1  ;;  %13512 = vmatmul.mubr.msk.f32.gmra.mxu1 %vm1588_vm1, %v19483_v62  ;;  %v19488_v17 = vld [vmem:[#allocation101_spill] sm:$0xff] }
 0x39f   : > { %v5034_v51 = vadd.f32 %v13185_v13, %v19484_v7  ;;  %v13358_v43 = vpop.f32.mrf.mxu0  ;;  %13514 = vmatprep.mubr.msk.f32.mxu1 %vm1588_vm1, %v19485_v23  ;;  %13685 = vmatmul.mubr.msk.f32.gmra.mxu0 %vm1588_vm1, %v19480_v24  ;;  %v19489_v7 = vld [vmem:[#allocation15_spill] sm:$0xff] }
 0x3a0   : > { %19482 = vst [vmem:[#allocation71_spill] sm:$0xff] %v16713_v39  ;;  %v4642_v33 = vpop.f32.mrf.mxu1  ;;  %13687 = vmatprep.mubr.msk.f32.mxu0 %vm1588_vm1, %v19483_v62  ;;  %v19487_v39 = vld [vmem:[#allocation14_spill] sm:$0xff] }
 0x3a1   : > { %v5033_v61 = vadd.f32 %v4642_v33, %v19486_v40  ;;  %v5295_v18 = vpop.f32.mrf.mxu0  ;;  %v19491_v33 = vld [vmem:[#allocation102_spill] sm:$0xff] }
 0x3a2   : > { %v13188_v29 = vpop.f32.mrf.mxu1  ;;  %13515 = vmatmul.mubr.msk.f32.gmra.mxu1 %vm1588_vm1, %v19487_v39 }
 0x3a3   : > { %v5036_v13 = vadd.f32 %v13188_v29, %v19488_v17  ;;  %v13361_v43 = vpop.f32.mrf.mxu0  ;;  %13517 = vmatprep.mubr.msk.f32.mxu1 %vm1588_vm1, %v19489_v7  ;;  %13688 = vmatmul.mubr.msk.f32.gmra.mxu0 %vm1588_vm1, %v19485_v23  ;;  %v7064_v17 = vld [vmem:[%s18723_s3 + $0x100] sm:$0xff]  ;;  %v19495_v23 = vld [vmem:[#allocation17_spill] sm:$0xff] }
 0x3a4   : > { %v16732_v24 = vadd.f32 %v13361_v43, %v5034_v51  ;;  %v4652_v19 = vpop.f32.mrf.mxu1  ;;  %13690 = vmatprep.mubr.msk.f32.mxu0 %vm1588_vm1, %v19487_v39  ;;  %13837 = vmatprep.subr.mxu1 %v7064_v17  ;;  %v19494_v51 = vld [vmem:[#allocation103_spill] sm:$0xff] }
 0x3a5   : > { %v5035_v40 = vadd.f32 %v4652_v19, %v19491_v33  ;;  %v5303_v18 = vpop.f32.mrf.mxu0  ;;  %13838 = vmatpush3.msra.mxu1 %v7064_v17 }
 0x3a6   : > { %19490 = vst [vmem:[#allocation75_spill] sm:$0xff] %v16732_v24  ;;  %v16740_v29 = vadd.f32 %v5303_v18, %v5033_v61  ;;  %v13191_v62 = vpop.f32.mrf.mxu1  ;;  %13518 = vmatmul.mubr.msk.f32.gmra.mxu1 %vm1588_vm1, %v19493_v35  ;;  %v19497_v61 = vld [vmem:[#allocation104_spill] sm:$0xff] }
 0x3a7   : > { %v5038_v43 = vadd.f32 %v13191_v62, %v19494_v51  ;;  %v13364_v24 = vpop.f32.mrf.mxu0  ;;  %13520 = vmatprep.mubr.msk.f32.mxu1 %vm1588_vm1, %v19495_v23  ;;  %13691 = vmatmul.mubr.msk.f32.gmra.mxu0 %vm1588_vm1, %v19489_v7  ;;  %v19499_v51 = vld [vmem:[#allocation18_spill] sm:$0xff] }
 0x3a8   : > { %19492 = vst [vmem:[#allocation80_spill] sm:$0xff] %v16740_v29  ;;  %v16749_v19 = vadd.f32 %v13364_v24, %v5036_v13  ;;  %v4662_v33 = vpop.f32.mrf.mxu1  ;;  %13693 = vmatprep.mubr.msk.f32.mxu0 %vm1588_vm1, %v19493_v35 }
 0x3a9   : > { %v5037_v18 = vadd.f32 %v4662_v33, %v19497_v61  ;;  %v5313_v29 = vpop.f32.mrf.mxu0  ;;  %v19503_v33 = vld [vmem:[#allocation20_spill] sm:$0xff]  ;;  %v19504_v61 = vld [vmem:[#allocation105_spill] sm:$0xff] }
 0x3aa   : > { %19496 = vst [vmem:[#allocation70_spill] sm:$0xff] %v16749_v19  ;;  %v16754_v39 = vadd.f32 %v5313_v29, %v5035_v40  ;;  %v13194_v62 = vpop.f32.mrf.mxu1  ;;  %13521 = vmatmul.mubr.msk.f32.gmra.mxu1 %vm1588_vm1, %v19499_v51  ;;  %v19505_v19 = vld [vmem:[#allocation21_spill] sm:$0xff] }
 0x3ab   : > { %v13367_v36 = vpop.f32.mrf.mxu0  ;;  %13523 = vmatprep.mubr.msk.f32.mxu1 %vm1588_vm1, %v19500_v6  ;;  %13694 = vmatmul.mubr.msk.f32.gmra.mxu0 %vm1588_vm1, %v19495_v23 }
 0x3ac   : > { %19498 = vst [vmem:[#allocation82_spill] sm:$0xff] %v16754_v39  ;;  %v16762_v24 = vadd.f32 %v13367_v36, %v5038_v43  ;;  %v4672_v13 = vpop.f32.mrf.mxu1  ;;  %13696 = vmatprep.mubr.msk.f32.mxu0 %vm1588_vm1, %v19499_v51  ;;  %v19506_v43 = vld [vmem:[#allocation106_spill] sm:$0xff] }
 0x3ad   : > { %v5323_v17 = vpop.f32.mrf.mxu0 }
 0x3ae   : > { %19501 = vst [vmem:[#allocation84_spill] sm:$0xff] %v16762_v24  ;;  %v16766_v40 = vadd.f32 %v5323_v17, %v5037_v18  ;;  %v13197_v29 = vpop.f32.mrf.mxu1  ;;  %13524 = vmatmul.mubr.msk.f32.gmra.mxu1 %vm1588_vm1, %v19503_v33  ;;  %v19508_v24 = vld [vmem:[#allocation107_spill] sm:$0xff] }
 0x3af   : > { %v5040_v62 = vadd.f32 %v13197_v29, %v19504_v61  ;;  %v13370_v39 = vpop.f32.mrf.mxu0  ;;  %13526 = vmatprep.mubr.msk.f32.mxu1 %vm1588_vm1, %v19505_v19  ;;  %13697 = vmatmul.mubr.msk.f32.gmra.mxu0 %vm1588_vm1, %v19500_v6  ;;  %v19509_v61 = vld [vmem:[#allocation23_spill] sm:$0xff] }
 0x3b0   : > { %19502 = vst [vmem:[#allocation87_spill] sm:$0xff] %v16766_v40  ;;  %v4680_v36 = vpop.f32.mrf.mxu1  ;;  %13699 = vmatprep.mubr.msk.f32.mxu0 %vm1588_vm1, %v19503_v33  ;;  %v19507_v40 = vld [vmem:[#allocation22_spill] sm:$0xff] }
 0x3b1   : > { %v5039_v18 = vadd.f32 %v4680_v36, %v19506_v43  ;;  %v5333_v13 = vpop.f32.mrf.mxu0  ;;  %v19511_v36 = vld [vmem:[#allocation108_spill] sm:$0xff] }
 0x3b2   : > { %v13200_v17 = vpop.f32.mrf.mxu1  ;;  %13527 = vmatmul.mubr.msk.f32.gmra.mxu1 %vm1588_vm1, %v19507_v40 }
 0x3b3   : > { %v5042_v29 = vadd.f32 %v13200_v17, %v19508_v24  ;;  %v13373_v39 = vpop.f32.mrf.mxu0  ;;  %13529 = vmatprep.mubr.msk.f32.mxu1 %vm1588_vm1, %v19509_v61  ;;  %13700 = vmatmul.mubr.msk.f32.gmra.mxu0 %vm1588_vm1, %v19505_v19  ;;  %v19513_v24 = vld [vmem:[#allocation24_spill] sm:$0xff]  ;;  %v19514_v17 = vld [vmem:[#allocation109_spill] sm:$0xff] }
 0x3b4   : > { %v16785_v6 = vadd.f32 %v13373_v39, %v5040_v62  ;;  %v4690_v51 = vpop.f32.mrf.mxu1  ;;  %13702 = vmatprep.mubr.msk.f32.mxu0 %vm1588_vm1, %v19507_v40  ;;  %v19535_v19 = vld [vmem:[#allocation33_spill] sm:$0xff] }
 0x3b5   : > { %v5041_v43 = vadd.f32 %v4690_v51, %v19511_v36  ;;  %v5341_v13 = vpop.f32.mrf.mxu0  ;;  %v19517_v51 = vld [vmem:[#allocation110_spill] sm:$0xff] }
 0x3b6   : > { %19510 = vst [vmem:[#allocation93_spill] sm:$0xff] %v16785_v6  ;;  %v16790_v33 = vadd.f32 %v5341_v13, %v5039_v18  ;;  %v13203_v23 = vpop.f32.mrf.mxu1  ;;  %13530 = vmatmul.mubr.msk.f32.gmra.mxu1 %vm1588_vm1, %v19513_v24  ;;  %v19520_v6 = vld [vmem:[#allocation27_spill] sm:$0xff] }
 0x3b7   : > { %v5044_v35 = vadd.f32 %v13203_v23, %v19514_v17  ;;  %v13376_v7 = vpop.f32.mrf.mxu0  ;;  %13532 = vmatprep.mubr.msk.f32.mxu1 %vm1588_vm1, %v19515_v25  ;;  %13703 = vmatmul.mubr.msk.f32.gmra.mxu0 %vm1588_vm1, %v19509_v61  ;;  %v19519_v23 = vld [vmem:[#allocation26_spill] sm:$0xff] }
 0x3b8   : > { %19512 = vst [vmem:[#allocation95_spill] sm:$0xff] %v16790_v33  ;;  %v16799_v62 = vadd.f32 %v13376_v7, %v5042_v29  ;;  %v4700_v39 = vpop.f32.mrf.mxu1  ;;  %13705 = vmatprep.mubr.msk.f32.mxu0 %vm1588_vm1, %v19513_v24  ;;  %v19525_v24 = vld [vmem:[#allocation29_spill] sm:$0xff] }
 0x3b9   : > { %v5043_v18 = vadd.f32 %v4700_v39, %v19517_v51  ;;  %v5351_v36 = vpop.f32.mrf.mxu0  ;;  %v19523_v51 = vld [vmem:[#allocation28_spill] sm:$0xff] }
 0x3ba   : > { %19516 = vst [vmem:[#allocation96_spill] sm:$0xff] %v16799_v62  ;;  %v16804_v13 = vadd.f32 %v5351_v36, %v5041_v43  ;;  %v13206_v33 = vpop.f32.mrf.mxu1  ;;  %13533 = vmatmul.mubr.msk.f32.gmra.mxu1 %vm1588_vm1, %v19519_v23  ;;  %v19524_v36 = vld [vmem:[#allocation111_spill] sm:$0xff] }
 0x3bb   : > { %v13379_v17 = vpop.f32.mrf.mxu0  ;;  %13535 = vmatprep.mubr.msk.f32.mxu1 %vm1588_vm1, %v19520_v6  ;;  %13706 = vmatmul.mubr.msk.f32.gmra.mxu0 %vm1588_vm1, %v19515_v25 }
 0x3bc   : > { %19518 = vst [vmem:[#allocation97_spill] sm:$0xff] %v16804_v13  ;;  %v16812_v7 = vadd.f32 %v13379_v17, %v5044_v35  ;;  %v4710_v29 = vpop.f32.mrf.mxu1  ;;  %13708 = vmatprep.mubr.msk.f32.mxu0 %vm1588_vm1, %v19519_v23  ;;  %v19526_v17 = vld [vmem:[#allocation112_spill] sm:$0xff] }
 0x3bd   : > { %v5361_v39 = vpop.f32.mrf.mxu0 }
 0x3be   : > { %19521 = vst [vmem:[#allocation98_spill] sm:$0xff] %v16812_v7  ;;  %v16816_v43 = vadd.f32 %v5361_v39, %v5043_v18  ;;  %v13209_v33 = vpop.f32.mrf.mxu1  ;;  %13536 = vmatmul.mubr.msk.f32.gmra.mxu1 %vm1588_vm1, %v19523_v51  ;;  %v19528_v7 = vld [vmem:[#allocation113_spill] sm:$0xff] }
 0x3bf   : > { %v5046_v13 = vadd.f32 %v13209_v33, %v19524_v36  ;;  %v13382_v62 = vpop.f32.mrf.mxu0  ;;  %13538 = vmatprep.mubr.msk.f32.mxu1 %vm1588_vm1, %v19525_v24  ;;  %13709 = vmatmul.mubr.msk.f32.gmra.mxu0 %vm1588_vm1, %v19520_v6  ;;  %v19529_v36 = vld [vmem:[#allocation31_spill] sm:$0xff] }
 0x3c0   : > { %19522 = vst [vmem:[#allocation99_spill] sm:$0xff] %v16816_v43  ;;  %v4718_v35 = vpop.f32.mrf.mxu1  ;;  %13711 = vmatprep.mubr.msk.f32.mxu0 %vm1588_vm1, %v19523_v51  ;;  %v19527_v43 = vld [vmem:[#allocation30_spill] sm:$0xff] }
 0x3c1   : > { %v5045_v18 = vadd.f32 %v4718_v35, %v19526_v17  ;;  %v5371_v29 = vpop.f32.mrf.mxu0  ;;  %v19531_v35 = vld [vmem:[#allocation114_spill] sm:$0xff] }
 0x3c2   : > { %v13212_v39 = vpop.f32.mrf.mxu1  ;;  %13539 = vmatmul.mubr.msk.f32.gmra.mxu1 %vm1588_vm1, %v19527_v43 }
 0x3c3   : > { %v5048_v33 = vadd.f32 %v13212_v39, %v19528_v7  ;;  %v13385_v62 = vpop.f32.mrf.mxu0  ;;  %13541 = vmatprep.mubr.msk.f32.mxu1 %vm1588_vm1, %v19529_v36  ;;  %13712 = vmatmul.mubr.msk.f32.gmra.mxu0 %vm1588_vm1, %v19525_v24  ;;  %v19533_v7 = vld [vmem:[#allocation32_spill] sm:$0xff]  ;;  %v19534_v39 = vld [vmem:[#allocation115_spill] sm:$0xff]  ;;  %v19555_v24 = vld [vmem:[#allocation41_spill] sm:$0xff] }
 0x3c4   : > { %v16835_v6 = vadd.f32 %v13385_v62, %v5046_v13  ;;  %v4728_v23 = vpop.f32.mrf.mxu1  ;;  %13714 = vmatprep.mubr.msk.f32.mxu0 %vm1588_vm1, %v19527_v43 }
 0x3c5   : > { %v5047_v17 = vadd.f32 %v4728_v23, %v19531_v35  ;;  %v5379_v29 = vpop.f32.mrf.mxu0  ;;  %v19537_v23 = vld [vmem:[#allocation116_spill] sm:$0xff] }
 0x3c6   : > { %19530 = vst [vmem:[#allocation100_spill] sm:$0xff] %v16835_v6  ;;  %v16840_v51 = vadd.f32 %v5379_v29, %v5045_v18  ;;  %v13215_v25 = vpop.f32.mrf.mxu1  ;;  %13542 = vmatmul.mubr.msk.f32.gmra.mxu1 %vm1588_vm1, %v19533_v7  ;;  %v19540_v6 = vld [vmem:[#allocation35_spill] sm:$0xff] }
 0x3c7   : > { %v5050_v61 = vadd.f32 %v13215_v25, %v19534_v39  ;;  %v13388_v40 = vpop.f32.mrf.mxu0  ;;  %13544 = vmatprep.mubr.msk.f32.mxu1 %vm1588_vm1, %v19535_v19  ;;  %13715 = vmatmul.mubr.msk.f32.gmra.mxu0 %vm1588_vm1, %v19529_v36  ;;  %v19539_v25 = vld [vmem:[#allocation34_spill] sm:$0xff] }
 0x3c8   : > { %19532 = vst [vmem:[#allocation2_spill] sm:$0xff] %v16840_v51  ;;  %v16849_v13 = vadd.f32 %v13388_v40, %v5048_v33  ;;  %v4738_v62 = vpop.f32.mrf.mxu1  ;;  %13717 = vmatprep.mubr.msk.f32.mxu0 %vm1588_vm1, %v19533_v7  ;;  %v19545_v7 = vld [vmem:[#allocation37_spill] sm:$0xff] }
 0x3c9   : > { %v5049_v18 = vadd.f32 %v4738_v62, %v19537_v23  ;;  %v5389_v35 = vpop.f32.mrf.mxu0  ;;  %v19543_v23 = vld [vmem:[#allocation36_spill] sm:$0xff] }
 0x3ca   : > { %19536 = vst [vmem:[#allocation101_spill] sm:$0xff] %v16849_v13  ;;  %v16854_v29 = vadd.f32 %v5389_v35, %v5047_v17  ;;  %v13218_v51 = vpop.f32.mrf.mxu1  ;;  %13545 = vmatmul.mubr.msk.f32.gmra.mxu1 %vm1588_vm1, %v19539_v25  ;;  %v19544_v35 = vld [vmem:[#allocation117_spill] sm:$0xff] }
 0x3cb   : > { %v13391_v39 = vpop.f32.mrf.mxu0  ;;  %13547 = vmatprep.mubr.msk.f32.mxu1 %vm1588_vm1, %v19540_v6  ;;  %13718 = vmatmul.mubr.msk.f32.gmra.mxu0 %vm1588_vm1, %v19535_v19 }
 0x3cc   : > { %19538 = vst [vmem:[#allocation102_spill] sm:$0xff] %v16854_v29  ;;  %v16862_v40 = vadd.f32 %v13391_v39, %v5050_v61  ;;  %v4748_v33 = vpop.f32.mrf.mxu1  ;;  %13720 = vmatprep.mubr.msk.f32.mxu0 %vm1588_vm1, %v19539_v25  ;;  %v19546_v39 = vld [vmem:[#allocation118_spill] sm:$0xff] }
 0x3cd   : > { %v5399_v62 = vpop.f32.mrf.mxu0 }
 0x3ce   : > { %19541 = vst [vmem:[#allocation103_spill] sm:$0xff] %v16862_v40  ;;  %v16866_v17 = vadd.f32 %v5399_v62, %v5049_v18  ;;  %v13221_v51 = vpop.f32.mrf.mxu1  ;;  %13548 = vmatmul.mubr.msk.f32.gmra.mxu1 %vm1588_vm1, %v19543_v23  ;;  %v19548_v40 = vld [vmem:[#allocation119_spill] sm:$0xff] }
 0x3cf   : > { %v5052_v29 = vadd.f32 %v13221_v51, %v19544_v35  ;;  %v13394_v13 = vpop.f32.mrf.mxu0  ;;  %13550 = vmatprep.mubr.msk.f32.mxu1 %vm1588_vm1, %v19545_v7  ;;  %13721 = vmatmul.mubr.msk.f32.gmra.mxu0 %vm1588_vm1, %v19540_v6  ;;  %v19549_v35 = vld [vmem:[#allocation39_spill] sm:$0xff] }
 0x3d0   : > { %19542 = vst [vmem:[#allocation104_spill] sm:$0xff] %v16866_v17  ;;  %v4756_v61 = vpop.f32.mrf.mxu1  ;;  %13723 = vmatprep.mubr.msk.f32.mxu0 %vm1588_vm1, %v19543_v23  ;;  %v19547_v17 = vld [vmem:[#allocation38_spill] sm:$0xff] }
 0x3d1   : > { %v5051_v18 = vadd.f32 %v4756_v61, %v19546_v39  ;;  %v5409_v33 = vpop.f32.mrf.mxu0  ;;  %v19551_v61 = vld [vmem:[#allocation120_spill] sm:$0xff] }
 0x3d2   : > { %v13224_v62 = vpop.f32.mrf.mxu1  ;;  %13551 = vmatmul.mubr.msk.f32.gmra.mxu1 %vm1588_vm1, %v19547_v17 }
 0x3d3   : > { %v5054_v51 = vadd.f32 %v13224_v62, %v19548_v40  ;;  %v13397_v13 = vpop.f32.mrf.mxu0  ;;  %13553 = vmatprep.mubr.msk.f32.mxu1 %vm1588_vm1, %v19549_v35  ;;  %13724 = vmatmul.mubr.msk.f32.gmra.mxu0 %vm1588_vm1, %v19545_v7  ;;  %v19553_v40 = vld [vmem:[#allocation40_spill] sm:$0xff]  ;;  %v19554_v62 = vld [vmem:[#allocation121_spill] sm:$0xff] }
 0x3d4   : > { %v16885_v6 = vadd.f32 %v13397_v13, %v5052_v29  ;;  %v4766_v25 = vpop.f32.mrf.mxu1  ;;  %13726 = vmatprep.mubr.msk.f32.mxu0 %vm1588_vm1, %v19547_v17  ;;  %v19575_v7 = vld [vmem:[#allocation49_spill] sm:$0xff] }
 0x3d5   : > { %v5053_v39 = vadd.f32 %v4766_v25, %v19551_v61  ;;  %v5417_v33 = vpop.f32.mrf.mxu0  ;;  %v19557_v25 = vld [vmem:[#allocation122_spill] sm:$0xff] }
 0x3d6   : > { %19550 = vst [vmem:[#allocation105_spill] sm:$0xff] %v16885_v6  ;;  %v16890_v23 = vadd.f32 %v5417_v33, %v5051_v18  ;;  %v13227_v19 = vpop.f32.mrf.mxu1  ;;  %13554 = vmatmul.mubr.msk.f32.gmra.mxu1 %vm1588_vm1, %v19553_v40  ;;  %v19560_v6 = vld [vmem:[#allocation43_spill] sm:$0xff] }
 0x3d7   : > { %v5056_v36 = vadd.f32 %v13227_v19, %v19554_v62  ;;  %v13400_v43 = vpop.f32.mrf.mxu0  ;;  %13556 = vmatprep.mubr.msk.f32.mxu1 %vm1588_vm1, %v19555_v24  ;;  %13727 = vmatmul.mubr.msk.f32.gmra.mxu0 %vm1588_vm1, %v19549_v35  ;;  %v19559_v19 = vld [vmem:[#allocation42_spill] sm:$0xff] }
 0x3d8   : > { %19552 = vst [vmem:[#allocation106_spill] sm:$0xff] %v16890_v23  ;;  %v16899_v29 = vadd.f32 %v13400_v43, %v5054_v51  ;;  %v4776_v13 = vpop.f32.mrf.mxu1  ;;  %13729 = vmatprep.mubr.msk.f32.mxu0 %vm1588_vm1, %v19553_v40  ;;  %v19565_v40 = vld [vmem:[#allocation45_spill] sm:$0xff] }
 0x3d9   : > { %v5055_v18 = vadd.f32 %v4776_v13, %v19557_v25  ;;  %v5427_v61 = vpop.f32.mrf.mxu0  ;;  %v19563_v25 = vld [vmem:[#allocation44_spill] sm:$0xff] }
 0x3da   : > { %19556 = vst [vmem:[#allocation107_spill] sm:$0xff] %v16899_v29  ;;  %v16904_v33 = vadd.f32 %v5427_v61, %v5053_v39  ;;  %v13230_v23 = vpop.f32.mrf.mxu1  ;;  %13557 = vmatmul.mubr.msk.f32.gmra.mxu1 %vm1588_vm1, %v19559_v19  ;;  %v19564_v61 = vld [vmem:[#allocation123_spill] sm:$0xff] }
 0x3db   : > { %v13403_v62 = vpop.f32.mrf.mxu0  ;;  %13559 = vmatprep.mubr.msk.f32.mxu1 %vm1588_vm1, %v19560_v6  ;;  %13730 = vmatmul.mubr.msk.f32.gmra.mxu0 %vm1588_vm1, %v19555_v24 }
 0x3dc   : > { %19558 = vst [vmem:[#allocation108_spill] sm:$0xff] %v16904_v33  ;;  %v16912_v43 = vadd.f32 %v13403_v62, %v5056_v36  ;;  %v4786_v51 = vpop.f32.mrf.mxu1  ;;  %13732 = vmatprep.mubr.msk.f32.mxu0 %vm1588_vm1, %v19559_v19  ;;  %v19566_v62 = vld [vmem:[#allocation124_spill] sm:$0xff] }
 0x3dd   : > { %v5437_v13 = vpop.f32.mrf.mxu0 }
 0x3de   : > { %19561 = vst [vmem:[#allocation109_spill] sm:$0xff] %v16912_v43  ;;  %v16916_v39 = vadd.f32 %v5437_v13, %v5055_v18  ;;  %v13233_v23 = vpop.f32.mrf.mxu1  ;;  %13560 = vmatmul.mubr.msk.f32.gmra.mxu1 %vm1588_vm1, %v19563_v25  ;;  %v19568_v43 = vld [vmem:[#allocation125_spill] sm:$0xff] }
 0x3df   : > { %v5058_v33 = vadd.f32 %v13233_v23, %v19564_v61  ;;  %v13406_v29 = vpop.f32.mrf.mxu0  ;;  %13562 = vmatprep.mubr.msk.f32.mxu1 %vm1588_vm1, %v19565_v40  ;;  %13733 = vmatmul.mubr.msk.f32.gmra.mxu0 %vm1588_vm1, %v19560_v6  ;;  %v19569_v61 = vld [vmem:[#allocation47_spill] sm:$0xff] }
 0x3e0   : > { %19562 = vst [vmem:[#allocation110_spill] sm:$0xff] %v16916_v39  ;;  %v4794_v36 = vpop.f32.mrf.mxu1  ;;  %13735 = vmatprep.mubr.msk.f32.mxu0 %vm1588_vm1, %v19563_v25  ;;  %v19567_v39 = vld [vmem:[#allocation46_spill] sm:$0xff] }
 0x3e1   : > { %v5057_v18 = vadd.f32 %v4794_v36, %v19566_v62  ;;  %v5447_v51 = vpop.f32.mrf.mxu0  ;;  %v19571_v36 = vld [vmem:[#allocation126_spill] sm:$0xff] }
 0x3e2   : > { %v13236_v13 = vpop.f32.mrf.mxu1  ;;  %13563 = vmatmul.mubr.msk.f32.gmra.mxu1 %vm1588_vm1, %v19567_v39 }
 0x3e3   : > { %v5060_v23 = vadd.f32 %v13236_v13, %v19568_v43  ;;  %v13409_v29 = vpop.f32.mrf.mxu0  ;;  %13565 = vmatprep.mubr.msk.f32.mxu1 %vm1588_vm1, %v19569_v61  ;;  %13736 = vmatmul.mubr.msk.f32.gmra.mxu0 %vm1588_vm1, %v19565_v40  ;;  %v19573_v43 = vld [vmem:[#allocation48_spill] sm:$0xff]  ;;  %v19574_v13 = vld [vmem:[#allocation127_spill] sm:$0xff] }
 0x3e4   : > { %v16935_v6 = vadd.f32 %v13409_v29, %v5058_v33  ;;  %v4804_v19 = vpop.f32.mrf.mxu1  ;;  %13738 = vmatprep.mubr.msk.f32.mxu0 %vm1588_vm1, %v19567_v39 }
 0x3e5   : > { %v5059_v62 = vadd.f32 %v4804_v19, %v19571_v36  ;;  %v5455_v51 = vpop.f32.mrf.mxu0  ;;  %v19577_v19 = vld [vmem:[#allocation128_spill] sm:$0xff] }
 0x3e6   : > { %19570 = vst [vmem:[#allocation111_spill] sm:$0xff] %v16935_v6  ;;  %v16940_v25 = vadd.f32 %v5455_v51, %v5057_v18  ;;  %v13239_v24 = vpop.f32.mrf.mxu1  ;;  %13566 = vmatmul.mubr.msk.f32.gmra.mxu1 %vm1588_vm1, %v19573_v43  ;;  %v19580_v6 = vld [vmem:[#allocation51_spill] sm:$0xff] }
 0x3e7   : > { %v5062_v35 = vadd.f32 %v13239_v24, %v19574_v13  ;;  %v13412_v17 = vpop.f32.mrf.mxu0  ;;  %13568 = vmatprep.mubr.msk.f32.mxu1 %vm1588_vm1, %v19575_v7  ;;  %13739 = vmatmul.mubr.msk.f32.gmra.mxu0 %vm1588_vm1, %v19569_v61  ;;  %v19579_v24 = vld [vmem:[#allocation50_spill] sm:$0xff] }
 0x3e8   : > { %19572 = vst [vmem:[#allocation112_spill] sm:$0xff] %v16940_v25  ;;  %v16949_v33 = vadd.f32 %v13412_v17, %v5060_v23  ;;  %v4814_v29 = vpop.f32.mrf.mxu1  ;;  %13741 = vmatprep.mubr.msk.f32.mxu0 %vm1588_vm1, %v19573_v43  ;;  %v19585_v43 = vld [vmem:[#allocation53_spill] sm:$0xff] }
 0x3e9   : > { %v5061_v18 = vadd.f32 %v4814_v29, %v19577_v19  ;;  %v5465_v36 = vpop.f32.mrf.mxu0  ;;  %v19583_v19 = vld [vmem:[#allocation52_spill] sm:$0xff] }
 0x3ea   : > { %19576 = vst [vmem:[#allocation113_spill] sm:$0xff] %v16949_v33  ;;  %v16954_v51 = vadd.f32 %v5465_v36, %v5059_v62  ;;  %v13242_v25 = vpop.f32.mrf.mxu1  ;;  %13569 = vmatmul.mubr.msk.f32.gmra.mxu1 %vm1588_vm1, %v19579_v24  ;;  %v19584_v36 = vld [vmem:[#allocation129_spill] sm:$0xff] }
 0x3eb   : > { %v13415_v13 = vpop.f32.mrf.mxu0  ;;  %13571 = vmatprep.mubr.msk.f32.mxu1 %vm1588_vm1, %v19580_v6  ;;  %13742 = vmatmul.mubr.msk.f32.gmra.mxu0 %vm1588_vm1, %v19575_v7 }
 0x3ec   : > { %19578 = vst [vmem:[#allocation114_spill] sm:$0xff] %v16954_v51  ;;  %v16962_v17 = vadd.f32 %v13415_v13, %v5062_v35  ;;  %v4824_v23 = vpop.f32.mrf.mxu1  ;;  %13744 = vmatprep.mubr.msk.f32.mxu0 %vm1588_vm1, %v19579_v24  ;;  %v19586_v13 = vld [vmem:[#allocation130_spill] sm:$0xff] }
 0x3ed   : > { %v5475_v29 = vpop.f32.mrf.mxu0 }
 0x3ee   : > { %19581 = vst [vmem:[#allocation115_spill] sm:$0xff] %v16962_v17  ;;  %v16966_v62 = vadd.f32 %v5475_v29, %v5061_v18  ;;  %v13245_v25 = vpop.f32.mrf.mxu1  ;;  %13572 = vmatmul.mubr.msk.f32.gmra.mxu1 %vm1588_vm1, %v19583_v19 }
 0x3ef   : > { %v5064_v51 = vadd.f32 %v13245_v25, %v19584_v36  ;;  %v13418_v33 = vpop.f32.mrf.mxu0  ;;  %13574 = vmatprep.mubr.msk.f32.mxu1 %vm1588_vm1, %v19585_v43  ;;  %13745 = vmatmul.mubr.msk.f32.gmra.mxu0 %vm1588_vm1, %v19580_v6 }
 0x3f0   : > { %19582 = vst [vmem:[#allocation116_spill] sm:$0xff] %v16966_v62  ;;  %v4832_v35 = vpop.f32.mrf.mxu1  ;;  %13747 = vmatprep.mubr.msk.f32.mxu0 %vm1588_vm1, %v19583_v19  ;;  %v19587_v62 = vld [vmem:[#allocation131_spill] sm:$0xff] }
 0x3f1   : > { %v5063_v18 = vadd.f32 %v4832_v35, %v19586_v13  ;;  %v5485_v23 = vpop.f32.mrf.mxu0  ;;  %v19589_v35 = vld [vmem:[#allocation132_spill] sm:$0xff] }
 0x3f2   : > { %v13248_v29 = vpop.f32.mrf.mxu1  ;;  %13575 = vmatmul.mubr.msk.f32.gmra.mxu1 %vm1588_vm1, %v19415_v45 }
 0x3f3   : > { %v5066_v25 = vadd.f32 %v13248_v29, %v19587_v62  ;;  %v13421_v33 = vpop.f32.mrf.mxu0  ;;  %13577 = vmatprep.mubr.msk.f32.mxu1 %vm1588_vm1, %v19417_v16  ;;  %13748 = vmatmul.mubr.msk.f32.gmra.mxu0 %vm1588_vm1, %v19585_v43  ;;  %v19591_v62 = vld [vmem:[#allocation133_spill] sm:$0xff] }
 0x3f4   : > { %v16985_v36 = vadd.f32 %v13421_v33, %v5064_v51  ;;  %v4842_v6 = vpop.f32.mrf.mxu1  ;;  %13750 = vmatprep.mubr.msk.f32.mxu0 %vm1588_vm1, %v19415_v45 }
 0x3f5   : > { %v5065_v13 = vadd.f32 %v4842_v6, %v19589_v35  ;;  %v5493_v23 = vpop.f32.mrf.mxu0  ;;  %v19593_v6 = vld [vmem:[#allocation134_spill] sm:$0xff] }
 0x3f6   : > { %19588 = vst [vmem:[#allocation117_spill] sm:$0xff] %v16985_v36  ;;  %v16990_v19 = vadd.f32 %v5493_v23, %v5063_v18  ;;  %v13251_v17 = vpop.f32.mrf.mxu1  ;;  %13578 = vmatmul.mubr.msk.f32.gmra.mxu1 %vm1588_vm1, %v19419_v5  ;;  %v19596_v36 = vld [vmem:[#allocation59_spill] sm:$0xff] }
 0x3f7   : > { %v5068_v29 = vadd.f32 %v13251_v17, %v19591_v62  ;;  %v13424_v24 = vpop.f32.mrf.mxu0  ;;  %13580 = vmatprep.mubr.msk.f32.mxu1 %vm1588_vm1, %v19423_v27  ;;  %13751 = vmatmul.mubr.msk.f32.gmra.mxu0 %vm1588_vm1, %v19417_v16  ;;  %v19595_v17 = vld [vmem:[#allocation58_spill] sm:$0xff] }
 0x3f8   : > { %19590 = vst [vmem:[#allocation118_spill] sm:$0xff] %v16990_v19  ;;  %v16999_v51 = vadd.f32 %v13424_v24, %v5066_v25  ;;  %v4852_v33 = vpop.f32.mrf.mxu1  ;;  %13753 = vmatprep.mubr.msk.f32.mxu0 %vm1588_vm1, %v19419_v5  ;;  %v19601_v5 = vld [vmem:[#allocation61_spill] sm:$0xff] }
 0x3f9   : > { %v5067_v18 = vadd.f32 %v4852_v33, %v19593_v6  ;;  %v5503_v35 = vpop.f32.mrf.mxu0  ;;  %v19599_v6 = vld [vmem:[#allocation60_spill] sm:$0xff] }
 0x3fa   : > { %19592 = vst [vmem:[#allocation119_spill] sm:$0xff] %v16999_v51  ;;  %v17004_v23 = vadd.f32 %v5503_v35, %v5065_v13  ;;  %v13254_v19 = vpop.f32.mrf.mxu1  ;;  %13581 = vmatmul.mubr.msk.f32.gmra.mxu1 %vm1588_vm1, %v19595_v17  ;;  %v19600_v35 = vld [vmem:[#allocation135_spill] sm:$0xff] }
 0x3fb   : > { %v13427_v62 = vpop.f32.mrf.mxu0  ;;  %13583 = vmatprep.mubr.msk.f32.mxu1 %vm1588_vm1, %v19596_v36  ;;  %13754 = vmatmul.mubr.msk.f32.gmra.mxu0 %vm1588_vm1, %v19423_v27 }
 0x3fc   : > { %19594 = vst [vmem:[#allocation120_spill] sm:$0xff] %v17004_v23  ;;  %v17012_v24 = vadd.f32 %v13427_v62, %v5068_v29  ;;  %v4862_v25 = vpop.f32.mrf.mxu1  ;;  %13756 = vmatprep.mubr.msk.f32.mxu0 %vm1588_vm1, %v19595_v17  ;;  %v19602_v62 = vld [vmem:[#allocation136_spill] sm:$0xff] }
 0x3fd   : > { %v5513_v33 = vpop.f32.mrf.mxu0 }
 0x3fe   : > { %19597 = vst [vmem:[#allocation121_spill] sm:$0xff] %v17012_v24  ;;  %v17016_v13 = vadd.f32 %v5513_v33, %v5067_v18  ;;  %v13257_v19 = vpop.f32.mrf.mxu1  ;;  %13584 = vmatmul.mubr.msk.f32.gmra.mxu1 %vm1588_vm1, %v19599_v6 }
 0x3ff   : > { %v5070_v23 = vadd.f32 %v13257_v19, %v19600_v35  ;;  %v13430_v51 = vpop.f32.mrf.mxu0  ;;  %13586 = vmatprep.mubr.msk.f32.mxu1 %vm1588_vm1, %v19601_v5  ;;  %13757 = vmatmul.mubr.msk.f32.gmra.mxu0 %vm1588_vm1, %v19596_v36 }
 0x400   : > { %19598 = vst [vmem:[#allocation122_spill] sm:$0xff] %v17016_v13  ;;  %v4870_v29 = vpop.f32.mrf.mxu1  ;;  %13759 = vmatprep.mubr.msk.f32.mxu0 %vm1588_vm1, %v19599_v6  ;;  %v19603_v13 = vld [vmem:[#allocation137_spill] sm:$0xff] }
 0x401   : > { %v5069_v18 = vadd.f32 %v4870_v29, %v19602_v62  ;;  %v5523_v25 = vpop.f32.mrf.mxu0  ;;  %v19604_v29 = vld [vmem:[#allocation138_spill] sm:$0xff] }
 0x402   : > { %v13260_v33 = vpop.f32.mrf.mxu1  ;;  %13587 = vmatmul.mubr.msk.f32.gmra.mxu1 %vm1588_vm1, %v19255_v30 }
 0x403   : > { %v5072_v19 = vadd.f32 %v13260_v33, %v19603_v13  ;;  %v13433_v51 = vpop.f32.mrf.mxu0  ;;  %13589 = vmatprep.mubr.msk.f32.mxu1 %vm1588_vm1, %v19257_v63  ;;  %13760 = vmatmul.mubr.msk.f32.gmra.mxu0 %vm1588_vm1, %v19601_v5  ;;  %v19606_v13 = vld [vmem:[#allocation54_spill] sm:$0xff] }
 0x404   : > { %v17035_v35 = vadd.f32 %v13433_v51, %v5070_v23  ;;  %v4880_v36 = vpop.f32.mrf.mxu1  ;;  %13762 = vmatprep.mubr.msk.f32.mxu0 %vm1588_vm1, %v19255_v30 }
 0x405   : > { %v5071_v62 = vadd.f32 %v4880_v36, %v19604_v29  ;;  %v5531_v25 = vpop.f32.mrf.mxu0  ;;  %v19607_v36 = vld [vmem:[#allocation139_spill] sm:$0xff] }
 0x406   : > { %v17040_v6 = vadd.f32 %v5531_v25, %v5069_v18  ;;  %v13263_v24 = vpop.f32.mrf.mxu1  ;;  %13590 = vmatmul.mubr.msk.f32.gmra.mxu1 %vm1588_vm1, %v19435_v41 }
 0x407   : > { %v5074_v33 = vadd.f32 %v13263_v24, %v19606_v13  ;;  %v13436_v17 = vpop.f32.mrf.mxu0  ;;  %13592 = vmatprep.mubr.msk.f32.mxu1 %vm1588_vm1, %v19439_v48  ;;  %13763 = vmatmul.mubr.msk.f32.gmra.mxu0 %vm1588_vm1, %v19257_v63 }
 0x408   : > { %19605 = vst [vmem:[#allocation123_spill] sm:$0xff] %v17040_v6  ;;  %v17049_v23 = vadd.f32 %v13436_v17, %v5072_v19  ;;  %v4890_v51 = vpop.f32.mrf.mxu1  ;;  %13765 = vmatprep.mubr.msk.f32.mxu0 %vm1588_vm1, %v19435_v41 }
 0x409   : > { %v5073_v18 = vadd.f32 %v4890_v51, %v19607_v36  ;;  %v5541_v29 = vpop.f32.mrf.mxu0  ;;  %v19610_v51 = vld [vmem:[#allocation55_spill] sm:$0xff] }
 0x40a   : > { %v17054_v25 = vadd.f32 %v5541_v29, %v5071_v62  ;;  %v13266_v6 = vpop.f32.mrf.mxu1  ;;  %13593 = vmatmul.mubr.msk.f32.gmra.mxu1 %vm1588_vm1, %v19441_v22 }
 0x40b   : > { %v13439_v24 = vpop.f32.mrf.mxu0  ;;  %13595 = vmatprep.mubr.msk.f32.mxu1 %vm1588_vm1, %v19443_v26  ;;  %13766 = vmatmul.mubr.msk.f32.gmra.mxu0 %vm1588_vm1, %v19439_v48 }
 0x40c   : > { %v17062_v17 = vadd.f32 %v13439_v24, %v5074_v33  ;;  %v4900_v19 = vpop.f32.mrf.mxu1  ;;  %13768 = vmatprep.mubr.msk.f32.mxu0 %vm1588_vm1, %v19441_v22  ;;  %v19611_v24 = vld [vmem:[#allocation140_spill] sm:$0xff]  ;;  %v19615_v22 = vld [vmem:[#allocation73_spill] sm:$0xff] }
 0x40d   : > { %v5551_v13 = vpop.f32.mrf.mxu0 }
 0x40e   : > { %19608 = vst [vmem:[#allocation45_spill] sm:$0xff] %v17062_v17  ;;  %v17066_v62 = vadd.f32 %v5551_v13, %v5073_v18  ;;  %v13269_v6 = vpop.f32.mrf.mxu1  ;;  %13596 = vmatmul.mubr.msk.f32.gmra.mxu1 %vm1588_vm1, %v19444_v21 }
 0x40f   : > { %v5076_v36 = vadd.f32 %v13269_v6, %v19610_v51  ;;  %v13442_v29 = vpop.f32.mrf.mxu0  ;;  %13598 = vmatprep.mubr.msk.f32.mxu1 %vm1588_vm1, %v19447_v46  ;;  %13769 = vmatmul.mubr.msk.f32.gmra.mxu0 %vm1588_vm1, %v19443_v26 }
 0x410   : > { %19609 = vst [vmem:[#allocation124_spill] sm:$0xff] %v17066_v62  ;;  %v4908_v33 = vpop.f32.mrf.mxu1  ;;  %13771 = vmatprep.mubr.msk.f32.mxu0 %vm1588_vm1, %v19444_v21 }
 0x411   : > { %v5075_v18 = vadd.f32 %v4908_v33, %v19611_v24  ;;  %v5561_v19 = vpop.f32.mrf.mxu0 }
 0x412   : > { %v13272_v13 = vpop.f32.mrf.mxu1  ;;  %13599 = vmatmul.mubr.msk.f32.gmra.mxu1 %vm1588_vm1, %v19267_v32 }
 0x413   : > { %v5078_v6 = vadd.f32 %v13272_v13, %v16444_v44  ;;  %v13445_v51 = vpop.f32.mrf.mxu0  ;;  %13601 = vmatprep.mubr.msk.f32.mxu1 %vm1588_vm1, %v19448_v57  ;;  %13772 = vmatmul.mubr.msk.f32.gmra.mxu0 %vm1588_vm1, %v19447_v46  ;;  %v19613_v44 = vld [vmem:[#allocation72_spill] sm:$0xff]  ;;  %v19614_v13 = vld [vmem:[#allocation141_spill] sm:$0xff] }
 0x414   : > { %v17085_v29 = vadd.f32 %v13445_v51, %v5076_v36  ;;  %v4918_v62 = vpop.f32.mrf.mxu1  ;;  %13774 = vmatprep.mubr.msk.f32.mxu0 %vm1588_vm1, %v19267_v32 }
 0x415   : > { %v5077_v33 = vadd.f32 %v4918_v62, %v16449_v34  ;;  %v5569_v24 = vpop.f32.mrf.mxu0  ;;  %v19616_v34 = vld [vmem:[#allocation57_spill] sm:$0xff] }
 0x416   : > { %v17090_v19 = vadd.f32 %v5569_v24, %v5075_v18  ;;  %v13275_v21 = vpop.f32.mrf.mxu1  ;;  %13602 = vmatmul.mubr.msk.f32.gmra.mxu1 %vm1588_vm1, %v19613_v44 }
 0x417   : > { %v5080_v26 = vadd.f32 %v13275_v21, %v19614_v13  ;;  %v13448_v17 = vpop.f32.mrf.mxu0  ;;  %13604 = vmatprep.mubr.msk.f32.mxu1 %vm1588_vm1, %v19615_v22  ;;  %13775 = vmatmul.mubr.msk.f32.gmra.mxu0 %vm1588_vm1, %v19448_v57  ;;  %v19617_v21 = vld [vmem:[#allocation74_spill] sm:$0xff] }
 0x418   : > { %19612 = vst [vmem:[#allocation46_spill] sm:$0xff] %v17090_v19  ;;  %v17099_v36 = vadd.f32 %v13448_v17, %v5078_v6  ;;  %v4928_v51 = vpop.f32.mrf.mxu1  ;;  %13777 = vmatprep.mubr.msk.f32.mxu0 %vm1588_vm1, %v19613_v44 }
 0x419   : > { %v5079_v62 = vadd.f32 %v4928_v51, %v19616_v34  ;;  %v5579_v18 = vpop.f32.mrf.mxu0  ;;  %v19618_v34 = vld [vmem:[#allocation76_spill] sm:$0xff] }
 0x41a   : > { %v17104_v24 = vadd.f32 %v5579_v18, %v5077_v33  ;;  %v13278_v19 = vpop.f32.mrf.mxu1  ;;  %13605 = vmatmul.mubr.msk.f32.gmra.mxu1 %vm1588_vm1, %v19617_v21 }
 0x41b   : > { %v13451_v13 = vpop.f32.mrf.mxu0  ;;  %13607 = vmatprep.mubr.msk.f32.mxu1 %vm1588_vm1, %v19449_v8  ;;  %13778 = vmatmul.mubr.msk.f32.gmra.mxu0 %vm1588_vm1, %v19615_v22 }
 0x41c   : > { %v17112_v17 = vadd.f32 %v13451_v13, %v5080_v26  ;;  %v4938_v6 = vpop.f32.mrf.mxu1  ;;  %13780 = vmatprep.mubr.msk.f32.mxu0 %vm1588_vm1, %v19617_v21 }
 0x41d   : > { %v5589_v51 = vpop.f32.mrf.mxu0 }
 0x41e   : > { %v17116_v33 = vadd.f32 %v5589_v51, %v5079_v62  ;;  %v13281_v19 = vpop.f32.mrf.mxu1  ;;  %13608 = vmatmul.mubr.msk.f32.gmra.mxu1 %vm1588_vm1, %v19618_v34 }
 0x41f   : > { %v13454_v18 = vpop.f32.mrf.mxu0  ;;  %13610 = vmatprep.mubr.msk.f32.mxu1 %vm1588_vm1, %v19451_v12  ;;  %13781 = vmatmul.mubr.msk.f32.gmra.mxu0 %vm1588_vm1, %v19449_v8 }
 0x420   : > { %v4946_v26 = vpop.f32.mrf.mxu1  ;;  %13783 = vmatprep.mubr.msk.f32.mxu0 %vm1588_vm1, %v19618_v34 }
 0x421   : > { %v5599_v13 = vpop.f32.mrf.mxu0 }
 0x422   : > { %v13284_v6 = vpop.f32.mrf.mxu1  ;;  %13611 = vmatmul.mubr.msk.f32.gmra.mxu1 %vm1588_vm1, %v19452_v54  ;;  %v19619_v13 = vld [vmem:[#allocation81_spill] sm:$0xff] }
 0x423   : > { %v13457_v62 = vpop.f32.mrf.mxu0  ;;  %13613 = vmatprep.mubr.msk.f32.mxu1 %vm1588_vm1, %v19453_v55  ;;  %13784 = vmatmul.mubr.msk.f32.gmra.mxu0 %vm1588_vm1, %v19451_v12  ;;  %v19620_v12 = vld [vmem:[#allocation83_spill] sm:$0xff] }
 0x424   : > { %v4954_v51 = vpop.f32.mrf.mxu1  ;;  %13786 = vmatprep.mubr.msk.f32.mxu0 %vm1588_vm1, %v19452_v54  ;;  %v19622_v54 = vld [vmem:[#allocation86_spill] sm:$0xff] }
 0x425   : > { %v5607_v19 = vpop.f32.mrf.mxu0 }
 0x426   : > { %v13287_v18 = vpop.f32.mrf.mxu1  ;;  %13614 = vmatmul.mubr.msk.f32.gmra.mxu1 %vm1588_vm1, %v19454_v11 }
 0x427   : > { %v13460_v26 = vpop.f32.mrf.mxu0  ;;  %13616 = vmatprep.mubr.msk.f32.mxu1 %vm1588_vm1, %v19619_v13  ;;  %13787 = vmatmul.mubr.msk.f32.gmra.mxu0 %vm1588_vm1, %v19453_v55  ;;  %v19621_v18 = vld [vmem:[#allocation85_spill] sm:$0xff] }
 0x428   : > { %v4962_v6 = vpop.f32.mrf.mxu1  ;;  %13789 = vmatprep.mubr.msk.f32.mxu0 %vm1588_vm1, %v19454_v11 }
 0x429   : > { %v5615_v62 = vpop.f32.mrf.mxu0 }
 0x42a   : > { %v13290_v51 = vpop.f32.mrf.mxu1  ;;  %13617 = vmatmul.mubr.msk.f32.gmra.mxu1 %vm1588_vm1, %v19620_v12 }
 0x42b   : > { %v13463_v19 = vpop.f32.mrf.mxu0  ;;  %13619 = vmatprep.mubr.msk.f32.mxu1 %vm1588_vm1, %v19621_v18  ;;  %13790 = vmatmul.mubr.msk.f32.gmra.mxu0 %vm1588_vm1, %v19619_v13  ;;  %v19623_v51 = vld [vmem:[#allocation88_spill] sm:$0xff] }
 0x42c   : > { %v4970_v26 = vpop.f32.mrf.mxu1  ;;  %13792 = vmatprep.mubr.msk.f32.mxu0 %vm1588_vm1, %v19620_v12 }
 0x42d   : > { %v5623_v6 = vpop.f32.mrf.mxu0 }
 0x42e   : > { %v13293_v55 = vpop.f32.mrf.mxu1  ;;  %13620 = vmatmul.mubr.msk.f32.gmra.mxu1 %vm1588_vm1, %v19622_v54 }
 0x42f   : > { %v13466_v62 = vpop.f32.mrf.mxu0  ;;  %13622 = vmatprep.mubr.msk.f32.mxu1 %vm1588_vm1, %v19623_v51  ;;  %13793 = vmatmul.mubr.msk.f32.gmra.mxu0 %vm1588_vm1, %v19621_v18 }
 0x430   : > { %v4978_v19 = vpop.f32.mrf.mxu1  ;;  %13795 = vmatprep.mubr.msk.f32.mxu0 %vm1588_vm1, %v19622_v54 }
 0x431   : > { %v5631_v26 = vpop.f32.mrf.mxu0 }
 0x432   : > { %v13296_v13 = vpop.f32.mrf.mxu1  ;;  %13623 = vmatmul.mubr.msk.f32.gmra.mxu1 %vm1588_vm1, %v15252_v37 }
 0x433   : > { %v13469_v55 = vpop.f32.mrf.mxu0  ;;  %13625 = vmatprep.mubr.msk.f32.mxu1 %vm1588_vm1, %v15264_v3  ;;  %13796 = vmatmul.mubr.msk.f32.gmra.mxu0 %vm1588_vm1, %v19623_v51 }
 0x434   : > { %v4986_v6 = vpop.f32.mrf.mxu1  ;;  %13798 = vmatprep.mubr.msk.f32.mxu0 %vm1588_vm1, %v15252_v37 }
 0x435   : > { %v5639_v62 = vpop.f32.mrf.mxu0 }
 0x436   : > { %v13299_v19 = vpop.f32.mrf.mxu1  ;;  %13626 = vmatmul.mubr.msk.f32.gmra.mxu1 %vm1588_vm1, %v15270_v20 }
 0x437   : > { %v13472_v13 = vpop.f32.mrf.mxu0  ;;  %13628 = vmatprep.mubr.msk.f32.mxu1 %vm1588_vm1, %v15280_v56  ;;  %13799 = vmatmul.mubr.msk.f32.gmra.mxu0 %vm1588_vm1, %v15264_v3 }
 0x438   : > { %v4994_v26 = vpop.f32.mrf.mxu1  ;;  %13801 = vmatprep.mubr.msk.f32.mxu0 %vm1588_vm1, %v15270_v20  ;;  %v19624_v20 = vld [vmem:[#allocation142_spill] sm:$0xff] }
 0x439   : > { %v5647_v55 = vpop.f32.mrf.mxu0 }
 0x43a   : > { %v13302_v6 = vpop.f32.mrf.mxu1  ;;  %13629 = vmatmul.mubr.msk.f32.gmra.mxu1 %vm1588_vm1, %v15286_v31 }
 0x43b   : > { %v13475_v62 = vpop.f32.mrf.mxu0  ;;  %13802 = vmatmul.mubr.msk.f32.gmra.mxu0 %vm1588_vm1, %v15280_v56  ;;  %13631 = vmatprep.mubr.f32.mxu1 %v19282_v49  ;;  %v19625_v56 = vld [vmem:[#allocation143_spill] sm:$0xff] }
 0x43c   : > { %v5002_v19 = vpop.f32.mrf.mxu1  ;;  %13804 = vmatprep.mubr.msk.f32.mxu0 %vm1588_vm1, %v15286_v31 }
 0x43d   : > { %v5655_v13 = vpop.f32.mrf.mxu0 }
 0x43e   : > { %v13489_v26 = vpop.f32.mrf.mxu1  ;;  %13632 = vmatmul.mubr.f32.gmra.mxu1 %v19282_v49  ;;  %v19626_v13 = vld [vmem:[#allocation144_spill] sm:$0xff] }
 0x43f   : > { %v6332_v55 = vadd.f32 %v13489_v26, %v19624_v20  ;;  %v13478_v6 = vpop.f32.mrf.mxu0  ;;  %13634 = vmatprep.mubr.f32.mxu1 %v19282_v49  ;;  %13805 = vmatmul.mubr.f32.gmra.mxu0 %v19282_v49 }
 0x440   : > { %v5812_v62 = vpop.f32.mrf.mxu1  ;;  %13807 = vmatprep.mubr.f32.mxu0 %v19282_v49 }
 0x441   : > { %v17187_v3 = vadd.f32 %v5812_v62, %v19625_v56  ;;  %v5663_v19 = vpop.f32.mrf.mxu0 }
 0x442   : > { %v13492_v37 = vpop.f32.mrf.mxu1  ;;  %13635 = vmatmul.mubr.f32.gmra.mxu1 %v19282_v49 }
 0x443   : > { %v6334_v31 = vadd.f32 %v13492_v37, %v19626_v13  ;;  %v13665_v51 = vpop.f32.mrf.mxu0  ;;  %13637 = vmatprep.mubr.f32.mxu1 %v19282_v49  ;;  %13808 = vmatmul.mubr.f32.gmra.mxu0 %v19282_v49  ;;  %v8103_v37 = vld [vmem:[%s18727_s7 + $0x78] sm:$0xff] }
 0x444   : > { %v17193_v20 = vadd.f32 %v13665_v51, %v6332_v55  ;;  %v5822_v26 = vpop.f32.mrf.mxu1  ;;  %13810 = vmatprep.mubr.f32.mxu0 %v19282_v49  ;;  %8131 = vmatprep.subr.mxu0 %v8103_v37 }
 0x445   : > { %v17197_v6 = vadd.f32 %v5822_v26, %v16563_v53  ;;  %v17199_v56 = vpop.f32.mrf.mxu0  ;;  %v8102_v53 = vld [vmem:[%s18727_s7 + $0x70] sm:$0xff]  ;;  %v8095_v26 = vld [vmem:[%s18727_s7 + $0x38] sm:$0xff] }
 0x446   : > { %19627 = vst [vmem:[#allocation125_spill] sm:$0xff] %v17193_v20  ;;  %v13495_v62 = vpop.f32.mrf.mxu1  ;;  %13638 = vmatmul.mubr.f32.gmra.mxu1 %v19282_v49  ;;  %8132 = vmatpush1.msra.mxu0 %v8102_v53 }
 0x447   : > { %19628 = vst [vmem:[#allocation47_spill] sm:$0xff] %v17197_v6  ;;  %v6336_v19 = vadd.f32 %v13495_v62, %v16569_v0  ;;  %v13668_v13 = vpop.f32.mrf.mxu0  ;;  %13640 = vmatprep.mubr.f32.mxu1 %v19282_v49  ;;  %v19629_v6 = vld [vmem:[#allocation145_spill] sm:$0xff]  ;;  %8205 = vmatprep.subr.mxu1 %v8095_v26 }
 0x448   : > { %v17210_v51 = vadd.f32 %v13668_v13, %v6334_v31  ;;  %v5832_v55 = vpop.f32.mrf.mxu1  ;;  %13811 = vmatmul.mubr.f32.gmra.mxu0 %v19282_v49 }
 0x449   : > { %v17216_v20 = vadd.f32 %v5832_v55, %v19629_v6  ;;  %v17218_v0 = vpop.f32.mrf.mxu0  ;;  %13813 = vmatprep.mubr.f32.mxu0 %v19282_v49 }
 0x44a   : > { %v13498_v62 = vpop.f32.mrf.mxu1  ;;  %13641 = vmatmul.mubr.f32.gmra.mxu1 %v19282_v49 }
 0x44b   : > { %19630 = vst [vmem:[#allocation126_spill] sm:$0xff] %v17216_v20  ;;  %v13671_v31 = vpop.f32.mrf.mxu0  ;;  %13643 = vmatprep.mubr.f32.mxu1 %v19282_v49 }
 0x44c   : > { %v17224_v37 = vadd.f32 %v13671_v31, %v6336_v19  ;;  %v5842_v13 = vpop.f32.mrf.mxu1  ;;  %13814 = vmatmul.mubr.f32.gmra.mxu0 %v19282_v49 }
 0x44d   : > { %v17226_v53 = vpop.f32.mrf.mxu0  ;;  %13816 = vmatprep.mubr.f32.mxu0 %v19282_v49 }
 0x44e   : > { %19631 = vst [vmem:[#allocation127_spill] sm:$0xff] %v17224_v37  ;;  %v13501_v6 = vpop.f32.mrf.mxu1  ;;  %13644 = vmatmul.mubr.f32.gmra.mxu1 %v19282_v49 }
 0x44f   : > { %v6338_v55 = vadd.f32 %v13501_v6, %v16584_v59  ;;  %v13674_v26 = vpop.f32.mrf.mxu0  ;;  %13646 = vmatprep.mubr.f32.mxu1 %v19282_v49 }
 0x450   : > { %v5850_v62 = vpop.f32.mrf.mxu1  ;;  %13817 = vmatmul.mubr.f32.gmra.mxu0 %v19282_v49 }
 0x451   : > { %v17234_v20 = vadd.f32 %v5850_v62, %v16588_v50  ;;  %v6503_v19 = vpop.f32.mrf.mxu0  ;;  %13819 = vmatprep.mubr.f32.mxu0 %v19282_v49 }
 0x452   : > { %v13504_v31 = vpop.f32.mrf.mxu1  ;;  %13647 = vmatmul.mubr.f32.gmra.mxu1 %v19282_v49 }
 0x453   : > { %v6340_v13 = vadd.f32 %v13504_v31, %v16594_v47  ;;  %v13677_v37 = vpop.f32.mrf.mxu0  ;;  %13649 = vmatprep.mubr.f32.mxu1 %v19282_v49 }
 0x454   : > { %v17241_v59 = vadd.f32 %v13677_v37, %v6338_v55  ;;  %v5860_v6 = vpop.f32.mrf.mxu1  ;;  %13820 = vmatmul.mubr.f32.gmra.mxu0 %v19282_v49 }
 0x455   : > { %v17244_v26 = vadd.f32 %v5860_v6, %v16598_v42  ;;  %v17246_v50 = vpop.f32.mrf.mxu0  ;;  %13822 = vmatprep.mubr.f32.mxu0 %v19282_v49 }
 0x456   : > { %v13507_v62 = vpop.f32.mrf.mxu1  ;;  %13650 = vmatmul.mubr.f32.gmra.mxu1 %v19282_v49 }
 0x457   : > { %19632 = vst [vmem:[#allocation49_spill] sm:$0xff] %v17244_v26  ;;  %v6342_v47 = vadd.f32 %v13507_v62, %v16604_v14  ;;  %v13680_v19 = vpop.f32.mrf.mxu0  ;;  %13652 = vmatprep.mubr.f32.mxu1 %v19282_v49 }
 0x458   : > { %v17253_v37 = vadd.f32 %v13680_v19, %v6340_v13  ;;  %v5870_v55 = vpop.f32.mrf.mxu1  ;;  %13823 = vmatmul.mubr.f32.gmra.mxu0 %v19282_v49 }
 0x459   : > { %v17256_v42 = vadd.f32 %v5870_v55, %v16607_v4  ;;  %v17258_v31 = vpop.f32.mrf.mxu0  ;;  %13825 = vmatprep.mubr.f32.mxu0 %v19282_v49  ;;  %v8094_v4 = vld [vmem:[%s18727_s7 + $0x30] sm:$0xff] }
 0x45a   : > { %v13510_v6 = vpop.f32.mrf.mxu1  ;;  %13653 = vmatmul.mubr.f32.gmra.mxu1 %v19282_v49 }
 0x45b   : > { %v13683_v26 = vpop.f32.mrf.mxu0  ;;  %13839 = vmatprep.mubr.msk.f32.mxu1 %vm1588_vm1, %v14574_v58 }
 0x45c   : > { %v17265_v14 = vadd.f32 %v13683_v26, %v6342_v47  ;;  %v5880_v13 = vpop.f32.mrf.mxu1  ;;  %13826 = vmatmul.mubr.f32.gmra.mxu0 %v19282_v49 }
 0x45d   : > { %v17270_v62 = vpop.f32.mrf.mxu0  ;;  %13828 = vmatprep.mubr.f32.mxu0 %v19282_v49 }
 0x45e   : > { %19633 = vst [vmem:[#allocation128_spill] sm:$0xff] %v17265_v14  ;;  %v13513_v19 = vpop.f32.mrf.mxu1  ;;  %13840 = vmatmul.mubr.msk.f32.vlgmr.msra.gmra.mxu1 %vm1588_vm1, %v14578_v60 }
 0x45f   : > { %v6344_v55 = vadd.f32 %v13513_v19, %v16632_v52  ;;  %v13686_v58 = vpop.f32.mrf.mxu0  ;;  %13842 = vmatprep.mubr.msk.f32.mxu1 %vm1588_vm1, %v14588_v1  ;;  %8206 = vmatpush1.msra.mxu1 %v8094_v4 }
 0x460   : > { %v5888_v26 = vpop.f32.mrf.mxu1  ;;  %13829 = vmatmul.mubr.f32.gmra.mxu0 %v19282_v49 }
 0x461   : > { %v17280_v47 = vadd.f32 %v5888_v26, %v16637_v38  ;;  %v6541_v6 = vpop.f32.mrf.mxu0  ;;  %8171 = vmatprep.mubr.f32.mxu0 %v19282_v49 }
 0x462   : > { %v13516_v13 = vpop.f32.mrf.mxu1  ;;  %13843 = vmatmul.mubr.msk.f32.gmra.mxu1 %vm1588_vm1, %v14592_v2  ;;  %v19638_v2 = vld [vmem:[#allocation62_spill] sm:$0xff] }
 0x463   : > { %19634 = vst [vmem:[#allocation129_spill] sm:$0xff] %v17280_v47  ;;  %v6346_v60 = vadd.f32 %v13516_v13, %v16646_v10  ;;  %v13689_v52 = vpop.f32.mrf.mxu0  ;;  %13845 = vmatprep.mubr.msk.f32.mxu1 %vm1588_vm1, %v19291_v15  ;;  %v19639_v10 = vld [vmem:[#allocation3_spill] sm:$0xff] }
 0x464   : > { %v17289_v1 = vadd.f32 %v13689_v52, %v6344_v55  ;;  %v5898_v4 = vpop.f32.mrf.mxu1  ;;  %v19641_v55 = vld [vmem:[#allocation64_spill] sm:$0xff] }
 0x465   : > { %v17292_v38 = vadd.f32 %v5898_v4, %v16651_v28  ;;  %v17294_v19 = vpop.f32.mrf.mxu0 }
 0x466   : > { %19635 = vst [vmem:[#allocation53_spill] sm:$0xff] %v17289_v1  ;;  %19637 = vst [vmem:[#allocation131_spill] sm:$0xff] %v17294_v19  ;;  %v13519_v58 = vpop.f32.mrf.mxu1  ;;  %13846 = vmatmul.mubr.msk.f32.gmra.mxu1 %vm1588_vm1, %v14606_v9  ;;  %v19645_v9 = vld [vmem:[#allocation5_spill] sm:$0xff] }
 0x467   : > { %19636 = vst [vmem:[#allocation130_spill] sm:$0xff] %v17292_v38  ;;  %v6348_v26 = vadd.f32 %v13519_v58, %v19638_v2  ;;  %v13692_v6 = vpop.f32.mrf.mxu0  ;;  %13848 = vmatprep.mubr.msk.f32.mxu1 %vm1588_vm1, %v19639_v10  ;;  %v19644_v38 = vld [vmem:[#allocation4_spill] sm:$0xff] }
 0x468   : > { %v17301_v13 = vadd.f32 %v13692_v6, %v6346_v60  ;;  %v5908_v15 = vpop.f32.mrf.mxu1  ;;  %v19648_v6 = vld [vmem:[#allocation6_spill] sm:$0xff] }
 0x469   : > { %v17304_v52 = vadd.f32 %v5908_v15, %v19641_v55  ;;  %v17306_v28 = vpop.f32.mrf.mxu0  ;;  %v19649_v15 = vld [vmem:[#allocation63_spill] sm:$0xff] }
 0x46a   : > { %19640 = vst [vmem:[#allocation132_spill] sm:$0xff] %v17301_v13  ;;  %19643 = vst [vmem:[#allocation134_spill] sm:$0xff] %v17306_v28  ;;  %v13522_v4 = vpop.f32.mrf.mxu1  ;;  %13849 = vmatmul.mubr.msk.f32.gmra.mxu1 %vm1588_vm1, %v19644_v38  ;;  %v19651_v28 = vld [vmem:[#allocation65_spill] sm:$0xff] }
 0x46b   : > { %19642 = vst [vmem:[#allocation133_spill] sm:$0xff] %v17304_v52  ;;  %v13695_v1 = vpop.f32.mrf.mxu0  ;;  %13851 = vmatprep.mubr.msk.f32.mxu1 %vm1588_vm1, %v19645_v9  ;;  %v19650_v4 = vld [vmem:[#allocation7_spill] sm:$0xff] }
 0x46c   : > { %v17312_v58 = vadd.f32 %v13695_v1, %v6348_v26  ;;  %v5918_v2 = vpop.f32.mrf.mxu1  ;;  %v19652_v1 = vld [vmem:[#allocation8_spill] sm:$0xff]  ;;  %v19653_v26 = vld [vmem:[#allocation146_spill] sm:$0xff] }
 0x46d   : > { %v17314_v10 = vpop.f32.mrf.mxu0 }
 0x46e   : > { %19646 = vst [vmem:[#allocation135_spill] sm:$0xff] %v17312_v58  ;;  %19647 = vst [vmem:[#allocation61_spill] sm:$0xff] %v17314_v10  ;;  %v13525_v60 = vpop.f32.mrf.mxu1  ;;  %13852 = vmatmul.mubr.msk.f32.gmra.mxu1 %vm1588_vm1, %v19648_v6  ;;  %v19654_v10 = vld [vmem:[#allocation9_spill] sm:$0xff] }
 0x46f   : > { %v6350_v55 = vadd.f32 %v13525_v60, %v19649_v15  ;;  %v13698_v52 = vpop.f32.mrf.mxu0  ;;  %13854 = vmatprep.mubr.msk.f32.mxu1 %vm1588_vm1, %v19650_v4  ;;  %v19656_v60 = vld [vmem:[#allocation147_spill] sm:$0xff] }
 0x470   : > { %v5926_v38 = vpop.f32.mrf.mxu1 }
 0x471   : > { %v6349_v13 = vadd.f32 %v5926_v38, %v19651_v28  ;;  %v6579_v19 = vpop.f32.mrf.mxu0  ;;  %v19659_v38 = vld [vmem:[#allocation69_spill] sm:$0xff] }
 0x472   : > { %v13528_v9 = vpop.f32.mrf.mxu1  ;;  %13855 = vmatmul.mubr.msk.f32.gmra.mxu1 %vm1588_vm1, %v19652_v1  ;;  %v19658_v19 = vld [vmem:[#allocation10_spill] sm:$0xff] }
 0x473   : > { %v6352_v2 = vadd.f32 %v13528_v9, %v19653_v26  ;;  %v13701_v58 = vpop.f32.mrf.mxu0  ;;  %13857 = vmatprep.mubr.msk.f32.mxu1 %vm1588_vm1, %v19654_v10  ;;  %v19660_v9 = vld [vmem:[#allocation11_spill] sm:$0xff] }
 0x474   : > { %v17327_v6 = vadd.f32 %v13701_v58, %v6350_v55  ;;  %v5936_v52 = vpop.f32.mrf.mxu1  ;;  %v19662_v10 = vld [vmem:[#allocation71_spill] sm:$0xff] }
 0x475   : > { %v6351_v15 = vadd.f32 %v5936_v52, %v19656_v60  ;;  %v6587_v4 = vpop.f32.mrf.mxu0  ;;  %v19664_v60 = vld [vmem:[#allocation12_spill] sm:$0xff] }
 0x476   : > { %19655 = vst [vmem:[#allocation136_spill] sm:$0xff] %v17327_v6  ;;  %v17330_v47 = vadd.f32 %v6587_v4, %v6349_v13  ;;  %v13531_v28 = vpop.f32.mrf.mxu1  ;;  %13858 = vmatmul.mubr.msk.f32.gmra.mxu1 %vm1588_vm1, %v19658_v19  ;;  %v19665_v19 = vld [vmem:[#allocation13_spill] sm:$0xff] }
 0x477   : > { %v6354_v1 = vadd.f32 %v13531_v28, %v19659_v38  ;;  %v13704_v14 = vpop.f32.mrf.mxu0  ;;  %13860 = vmatprep.mubr.msk.f32.mxu1 %vm1588_vm1, %v19660_v9 }
 0x478   : > { %19657 = vst [vmem:[#allocation137_spill] sm:$0xff] %v17330_v47  ;;  %v17337_v26 = vadd.f32 %v13704_v14, %v6352_v2  ;;  %v5946_v58 = vpop.f32.mrf.mxu1 }
 0x479   : > { %v6353_v55 = vadd.f32 %v5946_v58, %v19662_v10  ;;  %v6597_v6 = vpop.f32.mrf.mxu0  ;;  %v19669_v58 = vld [vmem:[#allocation75_spill] sm:$0xff] }
 0x47a   : > { %19661 = vst [vmem:[#allocation138_spill] sm:$0xff] %v17337_v26  ;;  %v17340_v52 = vadd.f32 %v6597_v6, %v6351_v15  ;;  %v13534_v13 = vpop.f32.mrf.mxu1  ;;  %13861 = vmatmul.mubr.msk.f32.gmra.mxu1 %vm1588_vm1, %v19664_v60  ;;  %v19668_v26 = vld [vmem:[#allocation14_spill] sm:$0xff]  ;;  %v8101_v6 = vld [vmem:[%s18727_s7 + $0x68] sm:$0xff] }
 0x47b   : > { %v13707_v4 = vpop.f32.mrf.mxu0  ;;  %13863 = vmatprep.mubr.msk.f32.mxu1 %vm1588_vm1, %v19665_v19  ;;  %v8100_v15 = vld [vmem:[%s18727_s7 + $0x60] sm:$0xff]  ;;  %v19670_v13 = vld [vmem:[#allocation15_spill] sm:$0xff]  ;;  %8133 = vmatprep.subr.mxu0 %v8101_v6 }
 0x47c   : > { %19663 = vst [vmem:[#allocation54_spill] sm:$0xff] %v17340_v52  ;;  %v17346_v28 = vadd.f32 %v13707_v4, %v6354_v1  ;;  %v5956_v38 = vpop.f32.mrf.mxu1  ;;  %8134 = vmatpush1.msra.mxu0 %v8100_v15  ;;  %v8092_v60 = vld [vmem:[%s18727_s7 + $0x20] sm:$0xff]  ;;  %v19671_v4 = vld [vmem:[#allocation80_spill] sm:$0xff] }
 0x47d   : > { %v6607_v9 = vpop.f32.mrf.mxu0  ;;  %v19673_v6 = vld [vmem:[#allocation70_spill] sm:$0xff] }
 0x47e   : > { %19666 = vst [vmem:[#allocation139_spill] sm:$0xff] %v17346_v28  ;;  %v17348_v14 = vadd.f32 %v6607_v9, %v6353_v55  ;;  %v13537_v2 = vpop.f32.mrf.mxu1  ;;  %13864 = vmatmul.mubr.msk.f32.gmra.mxu1 %vm1588_vm1, %v19668_v26  ;;  %v8093_v55 = vld [vmem:[%s18727_s7 + $0x28] sm:$0xff] }
 0x47f   : > { %v6356_v10 = vadd.f32 %v13537_v2, %v19669_v58  ;;  %v13710_v1 = vpop.f32.mrf.mxu0  ;;  %13866 = vmatprep.mubr.msk.f32.mxu1 %vm1588_vm1, %v19670_v13  ;;  %8207 = vmatprep.subr.mxu1 %v8093_v55  ;;  %v19672_v2 = vld [vmem:[#allocation16_spill] sm:$0xff]  ;;  %v19674_v13 = vld [vmem:[#allocation17_spill] sm:$0xff] }
 0x480   : > { %19667 = vst [vmem:[#allocation55_spill] sm:$0xff] %v17348_v14  ;;  %v5964_v26 = vpop.f32.mrf.mxu1  ;;  %8208 = vmatpush1.msra.mxu1 %v8092_v60  ;;  %v19676_v14 = vld [vmem:[#allocation82_spill] sm:$0xff] }
 0x481   : > { %v6355_v19 = vadd.f32 %v5964_v26, %v19671_v4  ;;  %v6617_v38 = vpop.f32.mrf.mxu0  ;;  %v19678_v60 = vld [vmem:[#allocation18_spill] sm:$0xff]  ;;  %v19679_v4 = vld [vmem:[#allocation84_spill] sm:$0xff] }
 0x482   : > { %v13540_v9 = vpop.f32.mrf.mxu1  ;;  %13867 = vmatmul.mubr.msk.f32.gmra.mxu1 %vm1588_vm1, %v19672_v2 }
 0x483   : > { %v6358_v58 = vadd.f32 %v13540_v9, %v19673_v6  ;;  %v13713_v1 = vpop.f32.mrf.mxu0  ;;  %13869 = vmatprep.mubr.msk.f32.mxu1 %vm1588_vm1, %v19674_v13  ;;  %v19680_v9 = vld [vmem:[#allocation19_spill] sm:$0xff] }
 0x484   : > { %v17373_v15 = vadd.f32 %v13713_v1, %v6356_v10  ;;  %v5974_v55 = vpop.f32.mrf.mxu1  ;;  %v19682_v1 = vld [vmem:[#allocation87_spill] sm:$0xff] }
 0x485   : > { %v6357_v28 = vadd.f32 %v5974_v55, %v19676_v14  ;;  %v6625_v52 = vpop.f32.mrf.mxu0 }
 0x486   : > { %19675 = vst [vmem:[#allocation140_spill] sm:$0xff] %v17373_v15  ;;  %v17376_v47 = vadd.f32 %v6625_v52, %v6355_v19  ;;  %v13543_v26 = vpop.f32.mrf.mxu1  ;;  %13870 = vmatmul.mubr.msk.f32.gmra.mxu1 %vm1588_vm1, %v19678_v60  ;;  %v19684_v19 = vld [vmem:[#allocation20_spill] sm:$0xff]  ;;  %v19685_v60 = vld [vmem:[#allocation21_spill] sm:$0xff] }
 0x487   : > { %v6360_v38 = vadd.f32 %v13543_v26, %v19679_v4  ;;  %v13716_v2 = vpop.f32.mrf.mxu0  ;;  %13872 = vmatprep.mubr.msk.f32.mxu1 %vm1588_vm1, %v19680_v9 }
 0x488   : > { %19677 = vst [vmem:[#allocation72_spill] sm:$0xff] %v17376_v47  ;;  %v17383_v6 = vadd.f32 %v13716_v2, %v6358_v58  ;;  %v5984_v10 = vpop.f32.mrf.mxu1 }
 0x489   : > { %v6359_v13 = vadd.f32 %v5984_v10, %v19682_v1  ;;  %v6635_v15 = vpop.f32.mrf.mxu0  ;;  %v19690_v1 = vld [vmem:[#allocation23_spill] sm:$0xff] }
 0x48a   : > { %19681 = vst [vmem:[#allocation141_spill] sm:$0xff] %v17383_v6  ;;  %v17386_v14 = vadd.f32 %v6635_v15, %v6357_v28  ;;  %v13546_v52 = vpop.f32.mrf.mxu1  ;;  %13873 = vmatmul.mubr.msk.f32.gmra.mxu1 %vm1588_vm1, %v19684_v19  ;;  %v19688_v6 = vld [vmem:[#allocation22_spill] sm:$0xff]  ;;  %v19689_v28 = vld [vmem:[#allocation93_spill] sm:$0xff]  ;;  %v19691_v19 = vld [vmem:[#allocation95_spill] sm:$0xff] }
 0x48b   : > { %v13719_v55 = vpop.f32.mrf.mxu0  ;;  %13875 = vmatprep.mubr.msk.f32.mxu1 %vm1588_vm1, %v19685_v60 }
 0x48c   : > { %19683 = vst [vmem:[#allocation73_spill] sm:$0xff] %v17386_v14  ;;  %v17392_v26 = vadd.f32 %v13719_v55, %v6360_v38  ;;  %v5994_v4 = vpop.f32.mrf.mxu1  ;;  %v19692_v55 = vld [vmem:[#allocation24_spill] sm:$0xff] }
 0x48d   : > { %v6645_v9 = vpop.f32.mrf.mxu0 }
 0x48e   : > { %19686 = vst [vmem:[#allocation57_spill] sm:$0xff] %v17392_v26  ;;  %v17394_v58 = vadd.f32 %v6645_v9, %v6359_v13  ;;  %v13549_v2 = vpop.f32.mrf.mxu1  ;;  %13876 = vmatmul.mubr.msk.f32.gmra.mxu1 %vm1588_vm1, %v19688_v6  ;;  %v19693_v13 = vld [vmem:[#allocation96_spill] sm:$0xff] }
 0x48f   : > { %v6362_v15 = vadd.f32 %v13549_v2, %v19689_v28  ;;  %v13722_v10 = vpop.f32.mrf.mxu0  ;;  %13878 = vmatprep.mubr.msk.f32.mxu1 %vm1588_vm1, %v19690_v1  ;;  %v19696_v28 = vld [vmem:[#allocation97_spill] sm:$0xff] }
 0x490   : > { %19687 = vst [vmem:[#allocation74_spill] sm:$0xff] %v17394_v58  ;;  %v6002_v52 = vpop.f32.mrf.mxu1  ;;  %v19694_v58 = vld [vmem:[#allocation25_spill] sm:$0xff] }
 0x491   : > { %v6361_v14 = vadd.f32 %v6002_v52, %v19691_v19  ;;  %v6655_v60 = vpop.f32.mrf.mxu0  ;;  %v19698_v19 = vld [vmem:[#allocation26_spill] sm:$0xff] }
 0x492   : > { %v13552_v38 = vpop.f32.mrf.mxu1  ;;  %13879 = vmatmul.mubr.msk.f32.gmra.mxu1 %vm1588_vm1, %v19692_v55  ;;  %v19699_v60 = vld [vmem:[#allocation98_spill] sm:$0xff] }
 0x493   : > { %v6364_v4 = vadd.f32 %v13552_v38, %v19693_v13  ;;  %v13725_v9 = vpop.f32.mrf.mxu0  ;;  %13881 = vmatprep.mubr.msk.f32.mxu1 %vm1588_vm1, %v19694_v58  ;;  %v19700_v38 = vld [vmem:[#allocation27_spill] sm:$0xff] }
 0x494   : > { %v17407_v6 = vadd.f32 %v13725_v9, %v6362_v15  ;;  %v6012_v2 = vpop.f32.mrf.mxu1  ;;  %v19702_v15 = vld [vmem:[#allocation99_spill] sm:$0xff] }
 0x495   : > { %v6363_v10 = vadd.f32 %v6012_v2, %v19696_v28  ;;  %v6663_v1 = vpop.f32.mrf.mxu0  ;;  %v19704_v28 = vld [vmem:[#allocation28_spill] sm:$0xff] }
 0x496   : > { %19695 = vst [vmem:[#allocation76_spill] sm:$0xff] %v17407_v6  ;;  %v17410_v26 = vadd.f32 %v6663_v1, %v6361_v14  ;;  %v13555_v52 = vpop.f32.mrf.mxu1  ;;  %13882 = vmatmul.mubr.msk.f32.gmra.mxu1 %vm1588_vm1, %v19698_v19  ;;  %v19705_v19 = vld [vmem:[#allocation29_spill] sm:$0xff] }
 0x497   : > { %v6366_v55 = vadd.f32 %v13555_v52, %v19699_v60  ;;  %v13728_v47 = vpop.f32.mrf.mxu0  ;;  %13884 = vmatprep.mubr.msk.f32.mxu1 %vm1588_vm1, %v19700_v38 }
 0x498   : > { %19697 = vst [vmem:[#allocation83_spill] sm:$0xff] %v17410_v26  ;;  %v17417_v13 = vadd.f32 %v13728_v47, %v6364_v4  ;;  %v6022_v58 = vpop.f32.mrf.mxu1 }
 0x499   : > { %v6365_v9 = vadd.f32 %v6022_v58, %v19702_v15  ;;  %v6673_v6 = vpop.f32.mrf.mxu0  ;;  %v19710_v15 = vld [vmem:[#allocation31_spill] sm:$0xff] }
 0x49a   : > { %19701 = vst [vmem:[#allocation85_spill] sm:$0xff] %v17417_v13  ;;  %v17420_v2 = vadd.f32 %v6673_v6, %v6363_v10  ;;  %v13558_v14 = vpop.f32.mrf.mxu1  ;;  %13885 = vmatmul.mubr.msk.f32.gmra.mxu1 %vm1588_vm1, %v19704_v28  ;;  %v19708_v13 = vld [vmem:[#allocation30_spill] sm:$0xff]  ;;  %v19709_v6 = vld [vmem:[#allocation100_spill] sm:$0xff] }
 0x49b   : > { %v13731_v1 = vpop.f32.mrf.mxu0  ;;  %13887 = vmatprep.mubr.msk.f32.mxu1 %vm1588_vm1, %v19705_v19  ;;  %v19711_v28 = vld [vmem:[#allocation2_spill] sm:$0xff] }
 0x49c   : > { %19703 = vst [vmem:[#allocation86_spill] sm:$0xff] %v17420_v2  ;;  %v17426_v52 = vadd.f32 %v13731_v1, %v6366_v55  ;;  %v6032_v60 = vpop.f32.mrf.mxu1  ;;  %v19712_v1 = vld [vmem:[#allocation32_spill] sm:$0xff] }
 0x49d   : > { %v6683_v38 = vpop.f32.mrf.mxu0 }
 0x49e   : > { %19706 = vst [vmem:[#allocation142_spill] sm:$0xff] %v17426_v52  ;;  %v17428_v47 = vadd.f32 %v6683_v38, %v6365_v9  ;;  %v13561_v4 = vpop.f32.mrf.mxu1  ;;  %13888 = vmatmul.mubr.msk.f32.gmra.mxu1 %vm1588_vm1, %v19708_v13  ;;  %v19713_v9 = vld [vmem:[#allocation101_spill] sm:$0xff] }
 0x49f   : > { %v6368_v10 = vadd.f32 %v13561_v4, %v19709_v6  ;;  %v13734_v58 = vpop.f32.mrf.mxu0  ;;  %13890 = vmatprep.mubr.msk.f32.mxu1 %vm1588_vm1, %v19710_v15  ;;  %v19716_v6 = vld [vmem:[#allocation102_spill] sm:$0xff] }
 0x4a0   : > { %19707 = vst [vmem:[#allocation143_spill] sm:$0xff] %v17428_v47  ;;  %v6040_v14 = vpop.f32.mrf.mxu1  ;;  %v19714_v47 = vld [vmem:[#allocation33_spill] sm:$0xff] }
 0x4a1   : > { %v6367_v2 = vadd.f32 %v6040_v14, %v19711_v28  ;;  %v6693_v19 = vpop.f32.mrf.mxu0  ;;  %v19718_v28 = vld [vmem:[#allocation34_spill] sm:$0xff] }
 0x4a2   : > { %v13564_v55 = vpop.f32.mrf.mxu1  ;;  %13891 = vmatmul.mubr.msk.f32.gmra.mxu1 %vm1588_vm1, %v19712_v1  ;;  %v19719_v19 = vld [vmem:[#allocation103_spill] sm:$0xff] }
 0x4a3   : > { %v6370_v60 = vadd.f32 %v13564_v55, %v19713_v9  ;;  %v13737_v38 = vpop.f32.mrf.mxu0  ;;  %13893 = vmatprep.mubr.msk.f32.mxu1 %vm1588_vm1, %v19714_v47  ;;  %v19720_v55 = vld [vmem:[#allocation35_spill] sm:$0xff] }
 0x4a4   : > { %v17441_v13 = vadd.f32 %v13737_v38, %v6368_v10  ;;  %v6050_v4 = vpop.f32.mrf.mxu1  ;;  %v19722_v10 = vld [vmem:[#allocation104_spill] sm:$0xff] }
 0x4a5   : > { %v6369_v58 = vadd.f32 %v6050_v4, %v19716_v6  ;;  %v6701_v15 = vpop.f32.mrf.mxu0  ;;  %v19724_v6 = vld [vmem:[#allocation36_spill] sm:$0xff] }
 0x4a6   : > { %19715 = vst [vmem:[#allocation144_spill] sm:$0xff] %v17441_v13  ;;  %v17444_v52 = vadd.f32 %v6701_v15, %v6367_v2  ;;  %v13567_v14 = vpop.f32.mrf.mxu1  ;;  %13894 = vmatmul.mubr.msk.f32.gmra.mxu1 %vm1588_vm1, %v19718_v28  ;;  %v19725_v28 = vld [vmem:[#allocation37_spill] sm:$0xff] }
 0x4a7   : > { %v6372_v1 = vadd.f32 %v13567_v14, %v19719_v19  ;;  %v13740_v26 = vpop.f32.mrf.mxu0  ;;  %13896 = vmatprep.mubr.msk.f32.mxu1 %vm1588_vm1, %v19720_v55 }
 0x4a8   : > { %19717 = vst [vmem:[#allocation145_spill] sm:$0xff] %v17444_v52  ;;  %v17451_v9 = vadd.f32 %v13740_v26, %v6370_v60  ;;  %v6060_v47 = vpop.f32.mrf.mxu1 }
 0x4a9   : > { %v6371_v38 = vadd.f32 %v6060_v47, %v19722_v10  ;;  %v6711_v13 = vpop.f32.mrf.mxu0  ;;  %v19730_v10 = vld [vmem:[#allocation39_spill] sm:$0xff] }
 0x4aa   : > { %19721 = vst [vmem:[#allocation62_spill] sm:$0xff] %v17451_v9  ;;  %v17454_v4 = vadd.f32 %v6711_v13, %v6369_v58  ;;  %v13570_v2 = vpop.f32.mrf.mxu1  ;;  %13897 = vmatmul.mubr.msk.f32.gmra.mxu1 %vm1588_vm1, %v19724_v6  ;;  %v19728_v9 = vld [vmem:[#allocation38_spill] sm:$0xff]  ;;  %v19729_v13 = vld [vmem:[#allocation105_spill] sm:$0xff] }
 0x4ab   : > { %v13743_v15 = vpop.f32.mrf.mxu0  ;;  %13899 = vmatprep.mubr.msk.f32.mxu1 %vm1588_vm1, %v19725_v28  ;;  %v19731_v6 = vld [vmem:[#allocation106_spill] sm:$0xff] }
 0x4ac   : > { %19723 = vst [vmem:[#allocation3_spill] sm:$0xff] %v17454_v4  ;;  %v17460_v14 = vadd.f32 %v13743_v15, %v6372_v1  ;;  %v6070_v19 = vpop.f32.mrf.mxu1  ;;  %v19732_v15 = vld [vmem:[#allocation40_spill] sm:$0xff] }
 0x4ad   : > { %v6721_v55 = vpop.f32.mrf.mxu0 }
 0x4ae   : > { %19726 = vst [vmem:[#allocation64_spill] sm:$0xff] %v17460_v14  ;;  %v17462_v26 = vadd.f32 %v6721_v55, %v6371_v38  ;;  %v13573_v60 = vpop.f32.mrf.mxu1  ;;  %13900 = vmatmul.mubr.msk.f32.gmra.mxu1 %vm1588_vm1, %v19728_v9  ;;  %v19733_v38 = vld [vmem:[#allocation107_spill] sm:$0xff] }
 0x4af   : > { %v6374_v58 = vadd.f32 %v13573_v60, %v19729_v13  ;;  %v13746_v47 = vpop.f32.mrf.mxu0  ;;  %13902 = vmatprep.mubr.msk.f32.mxu1 %vm1588_vm1, %v19730_v10  ;;  %v19736_v13 = vld [vmem:[#allocation108_spill] sm:$0xff] }
 0x4b0   : > { %19727 = vst [vmem:[#allocation4_spill] sm:$0xff] %v17462_v26  ;;  %v6078_v2 = vpop.f32.mrf.mxu1  ;;  %v19734_v26 = vld [vmem:[#allocation41_spill] sm:$0xff] }
 0x4b1   : > { %v6373_v4 = vadd.f32 %v6078_v2, %v19731_v6  ;;  %v6731_v28 = vpop.f32.mrf.mxu0  ;;  %v19737_v6 = vld [vmem:[#allocation42_spill] sm:$0xff] }
 0x4b2   : > { %v13576_v1 = vpop.f32.mrf.mxu1  ;;  %13903 = vmatmul.mubr.msk.f32.gmra.mxu1 %vm1588_vm1, %v19732_v15  ;;  %v19738_v28 = vld [vmem:[#allocation109_spill] sm:$0xff] }
 0x4b3   : > { %v6376_v19 = vadd.f32 %v13576_v1, %v19733_v38  ;;  %v13749_v55 = vpop.f32.mrf.mxu0  ;;  %13905 = vmatprep.mubr.msk.f32.mxu1 %vm1588_vm1, %v19734_v26  ;;  %v19739_v1 = vld [vmem:[#allocation43_spill] sm:$0xff] }
 0x4b4   : > { %v17475_v9 = vadd.f32 %v13749_v55, %v6374_v58  ;;  %v6088_v60 = vpop.f32.mrf.mxu1  ;;  %v19740_v58 = vld [vmem:[#allocation110_spill] sm:$0xff] }
 0x4b5   : > { %v6375_v47 = vadd.f32 %v6088_v60, %v19736_v13  ;;  %v6739_v10 = vpop.f32.mrf.mxu0  ;;  %v19741_v13 = vld [vmem:[#allocation44_spill] sm:$0xff] }
 0x4b6   : > { %19735 = vst [vmem:[#allocation5_spill] sm:$0xff] %v17475_v9  ;;  %v17478_v14 = vadd.f32 %v6739_v10, %v6373_v4  ;;  %v13579_v2 = vpop.f32.mrf.mxu1  ;;  %13906 = vmatmul.mubr.msk.f32.gmra.mxu1 %vm1588_vm1, %v19737_v6  ;;  %v8089_v6 = vld [vmem:[%s18727_s7 + $0x8] sm:$0xff] }
 0x4b7   : > { %v6378_v15 = vadd.f32 %v13579_v2, %v19738_v28  ;;  %v13752_v52 = vpop.f32.mrf.mxu0  ;;  %13908 = vmatprep.mubr.msk.f32.mxu1 %vm1588_vm1, %v19739_v1  ;;  %v8091_v2 = vld [vmem:[%s18727_s7 + $0x18] sm:$0xff]  ;;  %v8088_v1 = vld [vmem:[%s18727_s7] sm:$0xff] }
 0x4b8   : > { %v17485_v38 = vadd.f32 %v13752_v52, %v6376_v19  ;;  %v6098_v26 = vpop.f32.mrf.mxu1  ;;  %8209 = vmatprep.subr.mxu1 %v8091_v2 }
 0x4b9   : > { %v6377_v55 = vadd.f32 %v6098_v26, %v19740_v58  ;;  %v6749_v9 = vpop.f32.mrf.mxu0  ;;  %v19743_v26 = vld [vmem:[#allocation111_spill] sm:$0xff] }
 0x4ba   : > { %v17488_v60 = vadd.f32 %v6749_v9, %v6375_v47  ;;  %v13582_v4 = vpop.f32.mrf.mxu1  ;;  %13909 = vmatmul.mubr.msk.f32.gmra.mxu1 %vm1588_vm1, %v19741_v13  ;;  %v8090_v9 = vld [vmem:[%s18727_s7 + $0x10] sm:$0xff]  ;;  %v8097_v13 = vld [vmem:[%s18727_s7 + $0x48] sm:$0xff] }
 0x4bb   : > { %v13755_v10 = vpop.f32.mrf.mxu0  ;;  %13911 = vmatprep.mubr.msk.f32.mxu1 %vm1588_vm1, %v19565_v40  ;;  %8210 = vmatpush1.msra.mxu1 %v8090_v9 }
 0x4bc   : > { %v17497_v52 = vadd.f32 %v13755_v10, %v6378_v15  ;;  %v6108_v19 = vpop.f32.mrf.mxu1  ;;  %v8099_v15 = vld [vmem:[%s18727_s7 + $0x58] sm:$0xff]  ;;  %8211 = vmatprep.subr.mxu1 %v8089_v6  ;;  %v19744_v10 = vld [vmem:[#allocation112_spill] sm:$0xff] }
 0x4bd   : > { %v6759_v47 = vpop.f32.mrf.mxu0  ;;  %8135 = vmatprep.subr.mxu0 %v8099_v15  ;;  %8212 = vmatpush1.msra.mxu1 %v8088_v1  ;;  %v8259_v6 = vld [vmem:[%s18727_s7 + $0xb8] sm:$0xff] }
 0x4be   : > { %v17505_v28 = vadd.f32 %v6759_v47, %v6377_v55  ;;  %v13585_v40 = vpop.f32.mrf.mxu1  ;;  %13912 = vmatmul.mubr.msk.f32.gmra.mxu1 %vm1588_vm1, %v19567_v39  ;;  %v8098_v39 = vld [vmem:[%s18727_s7 + $0x50] sm:$0xff] }
 0x4bf   : > { %v6380_v58 = vadd.f32 %v13585_v40, %v19743_v26  ;;  %v13758_v4 = vpop.f32.mrf.mxu0  ;;  %13914 = vmatprep.mubr.msk.f32.mxu1 %vm1588_vm1, %v19569_v61  ;;  %8136 = vmatpush1.msra.mxu0 %v8098_v39  ;;  %v8096_v61 = vld [vmem:[%s18727_s7 + $0x40] sm:$0xff]  ;;  %v19745_v47 = vld [vmem:[#allocation48_spill] sm:$0xff]  ;;  %v19746_v40 = vld [vmem:[#allocation113_spill] sm:$0xff] }
 0x4c0   : > { %19742 = vst [vmem:[#allocation6_spill] sm:$0xff] %v17505_v28  ;;  %v6116_v55 = vpop.f32.mrf.mxu1  ;;  %8137 = vmatprep.subr.mxu0 %v8097_v13  ;;  %v19748_v39 = vld [vmem:[#allocation114_spill] sm:$0xff] }
 0x4c1   : > { %v6379_v2 = vadd.f32 %v6116_v55, %v19744_v10  ;;  %v6769_v19 = vpop.f32.mrf.mxu0  ;;  %8138 = vmatpush1.msra.mxu0 %v8096_v61  ;;  %v19749_v61 = vld [vmem:[#allocation50_spill] sm:$0xff] }
 0x4c2   : > { %v13588_v9 = vpop.f32.mrf.mxu1  ;;  %13915 = vmatmul.mubr.msk.f32.gmra.mxu1 %vm1588_vm1, %v19745_v47  ;;  %8287 = vmatprep.subr.mxu0 %v8259_v6  ;;  %v19750_v47 = vld [vmem:[#allocation115_spill] sm:$0xff]  ;;  %v19752_v6 = vld [vmem:[#allocation116_spill] sm:$0xff] }
 0x4c3   : > { %v6382_v15 = vadd.f32 %v13588_v9, %v19746_v40  ;;  %v13761_v1 = vpop.f32.mrf.mxu0  ;;  %13917 = vmatprep.mubr.msk.f32.mxu1 %vm1588_vm1, %v19575_v7  ;;  %v19751_v40 = vld [vmem:[#allocation51_spill] sm:$0xff] }
 0x4c4   : > { %v17536_v26 = vadd.f32 %v13761_v1, %v6380_v58  ;;  %v6126_v4 = vpop.f32.mrf.mxu1 }
 0x4c5   : > { %v6381_v55 = vadd.f32 %v6126_v4, %v19748_v39  ;;  %v6777_v13 = vpop.f32.mrf.mxu0  ;;  %v19753_v39 = vld [vmem:[#allocation52_spill] sm:$0xff] }
 0x4c6   : > { %19747 = vst [vmem:[#allocation63_spill] sm:$0xff] %v17536_v26  ;;  %v17539_v10 = vadd.f32 %v6777_v13, %v6379_v2  ;;  %v13591_v19 = vpop.f32.mrf.mxu1  ;;  %13918 = vmatmul.mubr.msk.f32.gmra.mxu1 %vm1588_vm1, %v19749_v61 }
 0x4c7   : > { %v6384_v28 = vadd.f32 %v13591_v19, %v19750_v47  ;;  %v13764_v9 = vpop.f32.mrf.mxu0  ;;  %13920 = vmatprep.mubr.msk.f32.mxu1 %vm1588_vm1, %v19751_v40 }
 0x4c8   : > { %v17546_v7 = vadd.f32 %v13764_v9, %v6382_v15  ;;  %v6136_v58 = vpop.f32.mrf.mxu1 }
 0x4c9   : > { %v6383_v1 = vadd.f32 %v6136_v58, %v19752_v6  ;;  %v6787_v26 = vpop.f32.mrf.mxu0  ;;  %v19756_v6 = vld [vmem:[#allocation118_spill] sm:$0xff] }
 0x4ca   : > { %v17549_v4 = vadd.f32 %v6787_v26, %v6381_v55  ;;  %v13594_v2 = vpop.f32.mrf.mxu1  ;;  %13921 = vmatmul.mubr.msk.f32.gmra.mxu1 %vm1588_vm1, %v19753_v39  ;;  %v19755_v26 = vld [vmem:[#allocation117_spill] sm:$0xff]  ;;  %v19757_v39 = vld [vmem:[#allocation56_spill] sm:$0xff] }
 0x4cb   : > { %v13767_v13 = vpop.f32.mrf.mxu0  ;;  %13923 = vmatprep.mubr.msk.f32.mxu1 %vm1588_vm1, %v19585_v43 }
 0x4cc   : > { %v17555_v19 = vadd.f32 %v13767_v13, %v6384_v28  ;;  %v6146_v61 = vpop.f32.mrf.mxu1 }
 0x4cd   : > { %v6797_v47 = vpop.f32.mrf.mxu0 }
 0x4ce   : > { %v17557_v15 = vadd.f32 %v6797_v47, %v6383_v1  ;;  %v13597_v9 = vpop.f32.mrf.mxu1  ;;  %13924 = vmatmul.mubr.msk.f32.gmra.mxu1 %vm1588_vm1, %v19415_v45  ;;  %v19758_v1 = vld [vmem:[#allocation119_spill] sm:$0xff] }
 0x4cf   : > { %v6386_v55 = vadd.f32 %v13597_v9, %v19755_v26  ;;  %v13770_v40 = vpop.f32.mrf.mxu0  ;;  %13926 = vmatprep.mubr.msk.f32.mxu1 %vm1588_vm1, %v19417_v16  ;;  %v19759_v9 = vld [vmem:[#allocation120_spill] sm:$0xff] }
 0x4d0   : > { %19754 = vst [vmem:[#allocation7_spill] sm:$0xff] %v17557_v15  ;;  %v6154_v58 = vpop.f32.mrf.mxu1 }
 0x4d1   : > { %v6385_v2 = vadd.f32 %v6154_v58, %v19756_v6  ;;  %v6807_v43 = vpop.f32.mrf.mxu0  ;;  %v19760_v6 = vld [vmem:[#allocation58_spill] sm:$0xff] }
 0x4d2   : > { %v13600_v28 = vpop.f32.mrf.mxu1  ;;  %13927 = vmatmul.mubr.msk.f32.gmra.mxu1 %vm1588_vm1, %v19757_v39  ;;  %v19761_v43 = vld [vmem:[#allocation121_spill] sm:$0xff] }
 0x4d3   : > { %v6388_v13 = vadd.f32 %v13600_v28, %v19758_v1  ;;  %v13773_v61 = vpop.f32.mrf.mxu0  ;;  %13929 = vmatprep.mubr.msk.f32.mxu1 %vm1588_vm1, %v19423_v27  ;;  %v19762_v28 = vld [vmem:[#allocation59_spill] sm:$0xff]  ;;  %v8343_v27 = vld [vmem:[%s18727_s7 + $0xf8] sm:$0xff] }
 0x4d4   : > { %v17570_v45 = vadd.f32 %v13773_v61, %v6386_v55  ;;  %v6164_v47 = vpop.f32.mrf.mxu1  ;;  %8371 = vmatprep.subr.mxu1 %v8343_v27 }
 0x4d5   : > { %v6387_v26 = vadd.f32 %v6164_v47, %v19759_v9  ;;  %v6815_v16 = vpop.f32.mrf.mxu0 }
 0x4d6   : > { %v17573_v40 = vadd.f32 %v6815_v16, %v6385_v2  ;;  %v13603_v58 = vpop.f32.mrf.mxu1  ;;  %13930 = vmatmul.mubr.msk.f32.gmra.mxu1 %vm1588_vm1, %v19760_v6  ;;  %v19763_v2 = vld [vmem:[#allocation122_spill] sm:$0xff]  ;;  %v19764_v6 = vld [vmem:[#allocation60_spill] sm:$0xff] }
 0x4d7   : > { %v6390_v39 = vadd.f32 %v13603_v58, %v19761_v43  ;;  %v13776_v15 = vpop.f32.mrf.mxu0  ;;  %13932 = vmatprep.mubr.msk.f32.mxu1 %vm1588_vm1, %v19762_v28 }
 0x4d8   : > { %v17583_v55 = vadd.f32 %v13776_v15, %v6388_v13  ;;  %v6174_v1 = vpop.f32.mrf.mxu1 }
 0x4d9   : > { %v6389_v61 = vadd.f32 %v6174_v1, %v19763_v2  ;;  %v6825_v47 = vpop.f32.mrf.mxu0 }
 0x4da   : > { %v17586_v9 = vadd.f32 %v6825_v47, %v6387_v26  ;;  %v13606_v16 = vpop.f32.mrf.mxu1  ;;  %13933 = vmatmul.mubr.msk.f32.gmra.mxu1 %vm1588_vm1, %v19764_v6  ;;  %v19765_v47 = vld [vmem:[#allocation123_spill] sm:$0xff] }
 0x4db   : > { %v13779_v58 = vpop.f32.mrf.mxu0  ;;  %13935 = vmatprep.mubr.msk.f32.mxu1 %vm1588_vm1, %v19601_v5 }
 0x4dc   : > { %v17592_v43 = vadd.f32 %v13779_v58, %v6390_v39  ;;  %v6184_v28 = vpop.f32.mrf.mxu1 }
 0x4dd   : > { %v6835_v15 = vpop.f32.mrf.mxu0 }
 0x4de   : > { %v17594_v13 = vadd.f32 %v6835_v15, %v6389_v61  ;;  %v13609_v27 = vpop.f32.mrf.mxu1  ;;  %13936 = vmatmul.mubr.msk.f32.gmra.mxu1 %vm1588_vm1, %v19255_v30 }
 0x4df   : > { %v6392_v26 = vadd.f32 %v13609_v27, %v17035_v35  ;;  %v13782_v1 = vpop.f32.mrf.mxu0  ;;  %13938 = vmatprep.mubr.msk.f32.mxu1 %vm1588_vm1, %v19257_v63  ;;  %v19766_v27 = vld [vmem:[#allocation66_spill] sm:$0xff] }
 0x4e0   : > { %v6192_v2 = vpop.f32.mrf.mxu1  ;;  %v19767_v1 = vld [vmem:[#allocation45_spill] sm:$0xff] }
 0x4e1   : > { %v6391_v16 = vadd.f32 %v6192_v2, %v19765_v47  ;;  %v6845_v5 = vpop.f32.mrf.mxu0 }
 0x4e2   : > { %v13612_v39 = vpop.f32.mrf.mxu1  ;;  %13939 = vmatmul.mubr.msk.f32.gmra.mxu1 %vm1588_vm1, %v19435_v41 }
 0x4e3   : > { %v6394_v61 = vadd.f32 %v13612_v39, %v17049_v23  ;;  %v13785_v6 = vpop.f32.mrf.mxu0  ;;  %13941 = vmatprep.mubr.msk.f32.mxu1 %vm1588_vm1, %v19439_v48  ;;  %v19768_v23 = vld [vmem:[#allocation67_spill] sm:$0xff] }
 0x4e4   : > { %v17607_v30 = vadd.f32 %v13785_v6, %v6392_v26  ;;  %v6202_v35 = vpop.f32.mrf.mxu1  ;;  %v19769_v26 = vld [vmem:[#allocation124_spill] sm:$0xff] }
 0x4e5   : > { %v6393_v58 = vadd.f32 %v6202_v35, %v17054_v25  ;;  %v6853_v63 = vpop.f32.mrf.mxu0  ;;  %v19770_v6 = vld [vmem:[#allocation68_spill] sm:$0xff] }
 0x4e6   : > { %v17610_v28 = vadd.f32 %v6853_v63, %v6391_v16  ;;  %v13615_v15 = vpop.f32.mrf.mxu1  ;;  %13942 = vmatmul.mubr.msk.f32.gmra.mxu1 %vm1588_vm1, %v19766_v27 }
 0x4e7   : > { %v6396_v41 = vadd.f32 %v13615_v15, %v19767_v1  ;;  %v13788_v2 = vpop.f32.mrf.mxu0  ;;  %13944 = vmatprep.mubr.msk.f32.mxu1 %vm1588_vm1, %v19768_v23 }
 0x4e8   : > { %v17617_v47 = vadd.f32 %v13788_v2, %v6394_v61  ;;  %v6212_v48 = vpop.f32.mrf.mxu1 }
 0x4e9   : > { %v6395_v5 = vadd.f32 %v6212_v48, %v19769_v26  ;;  %v6863_v39 = vpop.f32.mrf.mxu0  ;;  %v19771_v48 = vld [vmem:[#allocation46_spill] sm:$0xff] }
 0x4ea   : > { %v17620_v25 = vadd.f32 %v6863_v39, %v6393_v58  ;;  %v13618_v16 = vpop.f32.mrf.mxu1  ;;  %13945 = vmatmul.mubr.msk.f32.gmra.mxu1 %vm1588_vm1, %v19770_v6 }
 0x4eb   : > { %v13791_v35 = vpop.f32.mrf.mxu0  ;;  %13947 = vmatprep.mubr.msk.f32.mxu1 %vm1588_vm1, %v19447_v46 }
 0x4ec   : > { %v17626_v63 = vadd.f32 %v13791_v35, %v6396_v41  ;;  %v6222_v15 = vpop.f32.mrf.mxu1 }
 0x4ed   : > { %v6873_v27 = vpop.f32.mrf.mxu0 }
 0x4ee   : > { %v17628_v61 = vadd.f32 %v6873_v27, %v6395_v5  ;;  %v13621_v1 = vpop.f32.mrf.mxu1  ;;  %13948 = vmatmul.mubr.msk.f32.gmra.mxu1 %vm1588_vm1, %v19267_v32 }
 0x4ef   : > { %v6398_v58 = vadd.f32 %v13621_v1, %v17085_v29  ;;  %v13794_v2 = vpop.f32.mrf.mxu0  ;;  %13950 = vmatprep.mubr.msk.f32.mxu1 %vm1588_vm1, %v19448_v57 }
 0x4f0   : > { %v6230_v23 = vpop.f32.mrf.mxu1 }
 0x4f1   : > { %v6397_v26 = vadd.f32 %v6230_v23, %v19771_v48  ;;  %v6883_v46 = vpop.f32.mrf.mxu0 }
 0x4f2   : > { %v13624_v41 = vpop.f32.mrf.mxu1  ;;  %13951 = vmatmul.mubr.msk.f32.gmra.mxu1 %vm1588_vm1, %v19613_v44  ;;  %v19773_v46 = vld [vmem:[#allocation78_spill] sm:$0xff] }
 0x4f3   : > { %v6400_v5 = vadd.f32 %v13624_v41, %v17099_v36  ;;  %v13797_v39 = vpop.f32.mrf.mxu0  ;;  %13953 = vmatprep.mubr.msk.f32.mxu1 %vm1588_vm1, %v19615_v22 }
 0x4f4   : > { %v17641_v32 = vadd.f32 %v13797_v39, %v6398_v58  ;;  %v6240_v29 = vpop.f32.mrf.mxu1 }
 0x4f5   : > { %v6399_v16 = vadd.f32 %v6240_v29, %v17104_v24  ;;  %v6891_v57 = vpop.f32.mrf.mxu0  ;;  %v19775_v29 = vld [vmem:[#allocation81_spill] sm:$0xff] }
 0x4f6   : > { %v17644_v6 = vadd.f32 %v6891_v57, %v6397_v26  ;;  %v13627_v35 = vpop.f32.mrf.mxu1  ;;  %13954 = vmatmul.mubr.msk.f32.gmra.mxu1 %vm1588_vm1, %v19617_v21  ;;  %v19772_v21 = vld [vmem:[#allocation77_spill] sm:$0xff] }
 0x4f7   : > { %v6402_v44 = vadd.f32 %v13627_v35, %v17112_v17  ;;  %v13800_v15 = vpop.f32.mrf.mxu0  ;;  %13956 = vmatprep.mubr.msk.f32.mxu1 %vm1588_vm1, %v19449_v8 }
 0x4f8   : > { %v17651_v36 = vadd.f32 %v13800_v15, %v6400_v5  ;;  %v6250_v22 = vpop.f32.mrf.mxu1 }
 0x4f9   : > { %v6401_v27 = vadd.f32 %v6250_v22, %v17116_v33  ;;  %v6901_v1 = vpop.f32.mrf.mxu0  ;;  %v19774_v33 = vld [vmem:[#allocation79_spill] sm:$0xff] }
 0x4fa   : > { %v17654_v24 = vadd.f32 %v6901_v1, %v6399_v16  ;;  %v13630_v58 = vpop.f32.mrf.mxu1  ;;  %13957 = vmatmul.mubr.msk.f32.gmra.mxu1 %vm1588_vm1, %v19618_v34 }
 0x4fb   : > { %v13803_v2 = vpop.f32.mrf.mxu0  ;;  %13959 = vmatprep.mubr.msk.f32.mxu1 %vm1588_vm1, %v19772_v21 }
 0x4fc   : > { %v17660_v17 = vadd.f32 %v13803_v2, %v6402_v44  ;;  %v6260_v23 = vpop.f32.mrf.mxu1 }
 0x4fd   : > { %v6911_v8 = vpop.f32.mrf.mxu0  ;;  %v19777_v23 = vld [vmem:[#allocation89_spill] sm:$0xff] }
 0x4fe   : > { %v17662_v48 = vadd.f32 %v6911_v8, %v6401_v27  ;;  %v13633_v26 = vpop.f32.mrf.mxu1  ;;  %13960 = vmatmul.mubr.msk.f32.gmra.mxu1 %vm1588_vm1, %v19773_v46 }
 0x4ff   : > { %13962 = vmatprep.mubr.msk.f32.mxu1 %vm1588_vm1, %v19774_v33  ;;  %v13806_v41 = vpop.f32.mrf.mxu0  ;;  %v19779_v33 = vld [vmem:[#allocation91_spill] sm:$0xff] }
 0x500   : > { %v6268_v5 = vpop.f32.mrf.mxu1 }
 0x501   : > { %v6921_v34 = vpop.f32.mrf.mxu0 }
 0x502   : > { %v13636_v39 = vpop.f32.mrf.mxu1  ;;  %13963 = vmatmul.mubr.msk.f32.gmra.mxu1 %vm1588_vm1, %v19454_v11  ;;  %v19776_v11 = vld [vmem:[#allocation88_spill] sm:$0xff] }
 0x503   : > { %13965 = vmatprep.mubr.msk.f32.mxu1 %vm1588_vm1, %v19775_v29  ;;  %v13809_v16 = vpop.f32.mrf.mxu0  ;;  %v19781_v29 = vld [vmem:[#allocation94_spill] sm:$0xff] }
 0x504   : > { %v6276_v57 = vpop.f32.mrf.mxu1 }
 0x505   : > { %v6929_v35 = vpop.f32.mrf.mxu0 }
 0x506   : > { %v13639_v44 = vpop.f32.mrf.mxu1  ;;  %13966 = vmatmul.mubr.msk.f32.gmra.mxu1 %vm1588_vm1, %v19620_v12  ;;  %v19778_v12 = vld [vmem:[#allocation90_spill] sm:$0xff] }
 0x507   : > { %13968 = vmatprep.mubr.msk.f32.mxu1 %vm1588_vm1, %v19621_v18 }
 0x508   : > { %v6284_v15 = vpop.f32.mrf.mxu1  ;;  %v13812_v22 = vpop.f32.mrf.mxu0 }
 0x50a   : > { %v13642_v27 = vpop.f32.mrf.mxu1  ;;  %13969 = vmatmul.mubr.msk.f32.gmra.mxu1 %vm1588_vm1, %v19622_v54  ;;  %v6937_v1 = vpop.f32.mrf.mxu0  ;;  %v19780_v54 = vld [vmem:[#allocation92_spill] sm:$0xff] }
 0x50b   : > { %13971 = vmatprep.mubr.msk.f32.mxu1 %vm1588_vm1, %v19776_v11  ;;  %v17696_v1 = vld [vmem:[%s18724_s4] ss:$0 sm:$0xff] }
 0x50c   : > { %v6292_v58 = vpop.f32.mrf.mxu1  ;;  %v13815_v2 = vpop.f32.mrf.mxu0 }
 0x50d   : > { %v6992_v58 = vadd.f32 %v17199_v56, %v17187_v3  ;;  %v19782_v2 = vld [vmem:[#allocation125_spill] sm:$0xff] }
 0x50e   : > { %v13645_v21 = vpop.f32.mrf.mxu1  ;;  %13972 = vmatmul.mubr.msk.f32.gmra.mxu1 %vm1588_vm1, %v19777_v23  ;;  %v6945_v18 = vpop.f32.mrf.mxu0 }
 0x50f   : > { %13974 = vmatprep.mubr.msk.f32.mxu1 %vm1588_vm1, %v19778_v12 }
 0x510   : > { %v6300_v8 = vpop.f32.mrf.mxu1  ;;  %v13818_v26 = vpop.f32.mrf.mxu0 }
 0x512   : > { %v13648_v46 = vpop.f32.mrf.mxu1  ;;  %13975 = vmatmul.mubr.msk.f32.gmra.mxu1 %vm1588_vm1, %v19779_v33  ;;  %v6953_v41 = vpop.f32.mrf.mxu0 }
 0x513   : > { %13977 = vmatprep.mubr.msk.f32.mxu1 %vm1588_vm1, %v19780_v54  ;;  %v17707_v46 = vld [vmem:[%s18725_s5] ss:$0 sm:$0xff]  ;;  %v19783_v54 = vld [vmem:[#allocation47_spill] sm:$0xff] }
 0x514   : > { %v6308_v5 = vpop.f32.mrf.mxu1  ;;  %v13821_v34 = vpop.f32.mrf.mxu0  ;;  %v6994_v3 = vadd.f32 %v17218_v0, %v19783_v54 }
 0x516   : > { %v13651_v39 = vpop.f32.mrf.mxu1  ;;  %13978 = vmatmul.mubr.msk.f32.gmra.mxu1 %vm1588_vm1, %v19781_v29  ;;  %v6961_v16 = vpop.f32.mrf.mxu0 }
 0x517   : > { %13980 = vmatprep.mubr.f32.mxu1 %v19282_v49  ;;  %v17719_v16 = vld [vmem:[%s18726_s6] ss:$0 sm:$0xff] }
 0x518   : > { %v6316_v57 = vpop.f32.mrf.mxu1  ;;  %v13824_v35 = vpop.f32.mrf.mxu0 }
 0x51a   : > { %v13654_v44 = vpop.f32.mrf.mxu1  ;;  %13981 = vmatmul.mubr.f32.gmra.mxu1 %v19282_v49  ;;  %v6969_v15 = vpop.f32.mrf.mxu0 }
 0x51b   : > { %13983 = vmatprep.mubr.f32.mxu1 %v19282_v49  ;;  %v19784_v15 = vld [vmem:[#allocation126_spill] sm:$0xff] }
 0x51c   : > { %v6324_v22 = vpop.f32.mrf.mxu1  ;;  %v13827_v27 = vpop.f32.mrf.mxu0 }
 0x51e   : > { %v13841_v11 = vpop.f32.mrf.mxu1  ;;  %13984 = vmatmul.mubr.f32.gmra.mxu1 %v19282_v49  ;;  %v6977_v23 = vpop.f32.mrf.mxu0 }
 0x51f   : > { %v7654_v21 = vadd.f32 %v13841_v11, %v19782_v2  ;;  %13986 = vmatprep.mubr.f32.mxu1 %v19282_v49  ;;  %v19785_v2 = vld [vmem:[#allocation127_spill] sm:$0xff] }
 0x520   : > { %v7134_v12 = vpop.f32.mrf.mxu1  ;;  %v13830_v26 = vpop.f32.mrf.mxu0 }
 0x521   : > { %v7733_v18 = vadd.f32 %v17696_v1, %v7654_v21  ;;  %v7653_v8 = vadd.f32 %v7134_v12, %v6992_v58 }
 0x522   : > { %v13844_v33 = vpop.f32.mrf.mxu1  ;;  %13987 = vmatmul.mubr.f32.gmra.mxu1 %v19282_v49  ;;  %v6985_v34 = vpop.f32.mrf.mxu0 }
 0x523   : > { %v7805_v56 = vmax.f32 %v7733_v18, 0.0  ;;  %v7732_v41 = vadd.f32 %v17696_v1, %v7653_v8  ;;  %v7656_v5 = vadd.f32 %v13844_v33, %v17210_v51  ;;  %13989 = vmatprep.mubr.f32.mxu1 %v19282_v49  ;;  %v6996_v51 = vadd.f32 %v17226_v53, %v19784_v15 }
 0x524   : > { %v7144_v39 = vpop.f32.mrf.mxu1 }
 0x525   : > { %v7884_v29 = vmul.f32 %v17707_v46, %v7805_v56  ;;  %v7804_v57 = vmax.f32 %v7732_v41, 0.0  ;;  %v7735_v35 = vadd.f32 %v17696_v1, %v7656_v5  ;;  %v7655_v0 = vadd.f32 %v7144_v39, %v6994_v3 }
 0x526   : > { %v13847_v44 = vpop.f32.mrf.mxu1  ;;  %13990 = vmatmul.mubr.f32.gmra.mxu1 %v19282_v49 }
 0x527   : > { %v7883_v22 = vmul.f32 %v17707_v46, %v7804_v57  ;;  %v7807_v27 = vmax.f32 %v7735_v35, 0.0  ;;  %v7734_v11 = vadd.f32 %v17696_v1, %v7655_v0  ;;  %13992 = vmatprep.mubr.f32.mxu1 %v19282_v49  ;;  %v17729_v58 = vadd.f32 %v17719_v16, %v7884_v29 }
 0x528   : > { %v7658_v21 = vadd.f32 %v13847_v44, %v19785_v2  ;;  %v7154_v23 = vpop.f32.mrf.mxu1  ;;  %v6998_v0 = vadd.f32 %v17246_v50, %v17234_v20  ;;  %v19786_v20 = vld [vmem:[#allocation49_spill] sm:$0xff] }
 0x529   : > { %v17733_v12 = vadd.f32 %v17719_v16, %v7883_v22  ;;  %v7886_v18 = vmul.f32 %v17707_v46, %v7807_v27  ;;  %v7806_v8 = vmax.f32 %v7734_v11, 0.0  ;;  %v7657_v53 = vadd.f32 %v7154_v23, %v6996_v51 }
 0x52a   : > { %v7737_v26 = vadd.f32 %v17696_v1, %v7658_v21  ;;  %v13850_v33 = vpop.f32.mrf.mxu1  ;;  %13993 = vmatmul.mubr.f32.gmra.mxu1 %v19282_v49  ;;  %v7000_v50 = vadd.f32 %v17258_v31, %v19786_v20 }
 0x52b   : > { %v8034_v54 = vmax.f32 %v17733_v12, %v17729_v58  ;;  %v7885_v3 = vmul.f32 %v17707_v46, %v7806_v8  ;;  %v7736_v56 = vadd.f32 %v17696_v1, %v7657_v53  ;;  %13995 = vmatprep.mubr.f32.mxu1 %v19282_v49  ;;  %v17744_v34 = vadd.f32 %v17719_v16, %v7886_v18 }
 0x52c   : > { %v7809_v41 = vmax.f32 %v7737_v26, 0.0  ;;  %v7164_v5 = vpop.f32.mrf.mxu1 }
 0x52d   : > { %v17747_v39 = vadd.f32 %v17719_v16, %v7885_v3  ;;  %v7808_v29 = vmax.f32 %v7736_v56, 0.0  ;;  %v7002_v56 = vadd.f32 %v17270_v62, %v17256_v42 }
 0x52e   : > { %v7888_v57 = vmul.f32 %v17707_v46, %v7809_v41  ;;  %v13853_v35 = vpop.f32.mrf.mxu1  ;;  %13996 = vmatmul.mubr.f32.gmra.mxu1 %v19282_v49 }
 0x52f   : > { %v8035_v44 = vmax.f32 %v17747_v39, %v17744_v34  ;;  %v7887_v15 = vmul.f32 %v17707_v46, %v7808_v29  ;;  %v7660_v51 = vadd.f32 %v13853_v35, %v17241_v59  ;;  %13998 = vmatprep.mubr.f32.mxu1 %v19282_v49  ;;  %v8338_v34 = vld [vmem:[%s18727_s7 + $0xd0] sm:$0xff] }
 0x530   : > { %v7172_v22 = vpop.f32.mrf.mxu1  ;;  %v17759_v27 = vadd.f32 %v17719_v16, %v7888_v57  ;;  %v19787_v57 = vld [vmem:[#allocation128_spill] sm:$0xff] }
 0x531   : > { %v17762_v11 = vadd.f32 %v17719_v16, %v7887_v15  ;;  %v7739_v58 = vadd.f32 %v17696_v1, %v7660_v51  ;;  %v7659_v2 = vadd.f32 %v7172_v22, %v6998_v0 }
 0x532   : > { %v13856_v21 = vpop.f32.mrf.mxu1  ;;  %13999 = vmatmul.mubr.f32.gmra.mxu1 %v19282_v49 }
 0x533   : > { %v8036_v59 = vmax.f32 %v17762_v11, %v17759_v27  ;;  %v7811_v23 = vmax.f32 %v7739_v58, 0.0  ;;  %v7738_v12 = vadd.f32 %v17696_v1, %v7659_v2  ;;  %v7662_v18 = vadd.f32 %v13856_v21, %v17253_v37  ;;  %14001 = vmatprep.mubr.f32.mxu1 %v19282_v49  ;;  %v8253_v27 = vld [vmem:[%s18727_s7 + $0x88] sm:$0xff]  ;;  %v19794_v11 = vld [vmem:[#allocation133_spill] sm:$0xff] }
 0x534   : > { %v7182_v8 = vpop.f32.mrf.mxu1 }
 0x535   : > { %v7890_v53 = vmul.f32 %v17707_v46, %v7811_v23  ;;  %v7810_v26 = vmax.f32 %v7738_v12, 0.0  ;;  %v7741_v33 = vadd.f32 %v17696_v1, %v7662_v18  ;;  %v7661_v31 = vadd.f32 %v7182_v8, %v7000_v50 }
 0x536   : > { %v13859_v3 = vpop.f32.mrf.mxu1  ;;  %14002 = vmatmul.mubr.f32.gmra.mxu1 %v19282_v49 }
 0x537   : > { %v7889_v41 = vmul.f32 %v17707_v46, %v7810_v26  ;;  %v7813_v5 = vmax.f32 %v7741_v33, 0.0  ;;  %v7740_v37 = vadd.f32 %v17696_v1, %v7661_v31  ;;  %14004 = vmatprep.mubr.f32.mxu1 %v19282_v49  ;;  %v7969_v29 = vadd.f32 %v17719_v16, %v7890_v53  ;;  %v8342_v26 = vld [vmem:[%s18727_s7 + $0xf0] sm:$0xff] }
 0x538   : > { %v7664_v35 = vadd.f32 %v13859_v3, %v19787_v57  ;;  %v7192_v0 = vpop.f32.mrf.mxu1  ;;  %v8341_v3 = vld [vmem:[%s18727_s7 + $0xe8] sm:$0xff] }
 0x539   : > { %v7968_v15 = vadd.f32 %v17719_v16, %v7889_v41  ;;  %v7892_v51 = vmul.f32 %v17707_v46, %v7813_v5  ;;  %v7812_v22 = vmax.f32 %v7740_v37, 0.0  ;;  %v7663_v58 = vadd.f32 %v7192_v0, %v7002_v56  ;;  %v19788_v56 = vld [vmem:[#allocation129_spill] sm:$0xff]  ;;  %v19789_v41 = vld [vmem:[#allocation131_spill] sm:$0xff] }
 0x53a   : > { %v7743_v42 = vadd.f32 %v17696_v1, %v7664_v35  ;;  %v13862_v62 = vpop.f32.mrf.mxu1  ;;  %14005 = vmatmul.mubr.f32.gmra.mxu1 %v19282_v49  ;;  %v7004_v5 = vadd.f32 %v19789_v41, %v19788_v56  ;;  %v8340_v35 = vld [vmem:[%s18727_s7 + $0xe0] sm:$0xff] }
 0x53b   : > { %v8037_v2 = vmax.f32 %v7968_v15, %v7969_v29  ;;  %v7891_v20 = vmul.f32 %v17707_v46, %v7812_v22  ;;  %v7742_v50 = vadd.f32 %v17696_v1, %v7663_v58  ;;  %8245 = vmatprep.mubr.f32.mxu1 %v19282_v49  ;;  %v7971_v18 = vadd.f32 %v17719_v16, %v7892_v51  ;;  %v19790_v29 = vld [vmem:[#allocation53_spill] sm:$0xff]  ;;  %v8336_v56 = vld [vmem:[%s18727_s7 + $0xc0] sm:$0xff] }
 0x53c   : > { %v7815_v21 = vmax.f32 %v7743_v42, 0.0  ;;  %v7202_v23 = vpop.f32.mrf.mxu1  ;;  %v8339_v51 = vld [vmem:[%s18727_s7 + $0xd8] sm:$0xff] }
 0x53d   : > { %v8070_v12 = vmax.f32 %v8034_v54, %v8037_v2  ;;  %v7970_v8 = vadd.f32 %v17719_v16, %v7891_v20  ;;  %v7814_v53 = vmax.f32 %v7742_v50, 0.0  ;;  %v8258_v2 = vld [vmem:[%s18727_s7 + $0xb0] sm:$0xff]  ;;  %v8257_v50 = vld [vmem:[%s18727_s7 + $0xa8] sm:$0xff] }
 0x53e   : > { %v7894_v33 = vmul.f32 %v17707_v46, %v7815_v21  ;;  %v13865_v31 = vpop.f32.mrf.mxu1  ;;  %v19791_v23 = vld [vmem:[#allocation132_spill] sm:$0xff] }
 0x53f   : > { %v8038_v54 = vmax.f32 %v7970_v8, %v7971_v18  ;;  %v7893_v37 = vmul.f32 %v17707_v46, %v7814_v53  ;;  %v7666_v57 = vadd.f32 %v13865_v31, %v19790_v29  ;;  %11036 = vmatmul.mubr.msk.f32.vlgmr.msra.gmra.mxu1 %vm1588_vm1, %v8070_v12  ;;  %v8256_v18 = vld [vmem:[%s18727_s7 + $0xa0] sm:$0xff]  ;;  %v8337_v8 = vld [vmem:[%s18727_s7 + $0xc8] sm:$0xff]  ;;  %v8254_v29 = vld [vmem:[%s18727_s7 + $0x90] sm:$0xff] }
 0x540   : > { %v7973_v0 = vadd.f32 %v17719_v16, %v7894_v33  ;;  %v7210_v15 = vpop.f32.mrf.mxu1  ;;  %8372 = vmatpush1.msra.mxu1 %v8342_v26  ;;  %8411 = vmatprep.mubr.f32.mxu1 %v19282_v49  ;;  %v19792_v53 = vld [vmem:[#allocation130_spill] sm:$0xff] }
 0x541   : > { %v8071_v22 = vmax.f32 %v8035_v44, %v8038_v54  ;;  %v7972_v58 = vadd.f32 %v17719_v16, %v7893_v37  ;;  %v7745_v42 = vadd.f32 %v17696_v1, %v7666_v57  ;;  %v7665_v62 = vadd.f32 %v7210_v15, %v7004_v5  ;;  %8373 = vmatprep.subr.mxu1 %v8341_v3  ;;  %v19793_v26 = vld [vmem:[#allocation134_spill] sm:$0xff]  ;;  %v8255_v3 = vld [vmem:[%s18727_s7 + $0x98] sm:$0xff] }
 0x542   : > { %v13868_v20 = vpop.f32.mrf.mxu1  ;;  %8374 = vmatpush1.msra.mxu1 %v8340_v35  ;;  %v7006_v33 = vadd.f32 %v19793_v26, %v19792_v53  ;;  %v8511_v57 = vld [vmem:[%s18727_s7 + $0x178] sm:$0xff]  ;;  %v8425_v53 = vld [vmem:[%s18727_s7 + $0x128] sm:$0xff] }
 0x543   : > { %v8039_v39 = vmax.f32 %v7972_v58, %v7973_v0  ;;  %v7817_v44 = vmax.f32 %v7745_v42, 0.0  ;;  %v7744_v21 = vadd.f32 %v17696_v1, %v7665_v62  ;;  %v7668_v12 = vadd.f32 %v13868_v20, %v19791_v23  ;;  %11035 = vmatmul.mubr.msk.f32.vlgmr.msra.gmra.mxu0 %vm1588_vm1, %v8071_v22  ;;  %8375 = vmatprep.subr.mxu1 %v8339_v51  ;;  %v19796_v58 = vld [vmem:[#allocation135_spill] sm:$0xff]  ;;  %v8252_v62 = vld [vmem:[%s18727_s7 + $0x80] sm:$0xff]  ;;  %v8426_v23 = vld [vmem:[%s18727_s7 + $0x130] sm:$0xff] }
 0x544   : > { %8288 = vmatpush1.msra.mxu0 %v8258_v2  ;;  %v7220_v31 = vpop.f32.mrf.mxu1  ;;  %8327 = vmatprep.mubr.f32.mxu0 %v19282_v49 }
 0x545   : > { %v8072_v41 = vmax.f32 %v8036_v59, %v8039_v39  ;;  %v7896_v5 = vmul.f32 %v17707_v46, %v7817_v44  ;;  %v7816_v54 = vmax.f32 %v7744_v21, 0.0  ;;  %v7747_v37 = vadd.f32 %v17696_v1, %v7668_v12  ;;  %8289 = vmatprep.subr.mxu0 %v8257_v50  ;;  %8376 = vmatpush1.msra.mxu1 %v8338_v34  ;;  %v19795_v59 = vld [vmem:[#allocation61_spill] sm:$0xff] }
 0x546   : > { %v7667_v35 = vadd.f32 %v7220_v31, %v7006_v33  ;;  %8290 = vmatpush1.msra.mxu0 %v8256_v18  ;;  %v13871_v0 = vpop.f32.mrf.mxu1  ;;  %8377 = vmatprep.subr.mxu1 %v8337_v8  ;;  %v7008_v15 = vadd.f32 %v19795_v59, %v19794_v11  ;;  %v8427_v50 = vld [vmem:[%s18727_s7 + $0x138] sm:$0xff]  ;;  %v19797_v59 = vld [vmem:[#allocation136_spill] sm:$0xff] }
 0x547   : > { %v7895_v51 = vmul.f32 %v17707_v46, %v7816_v54  ;;  %v7819_v22 = vmax.f32 %v7747_v37, 0.0  ;;  %v7670_v42 = vadd.f32 %v13871_v0, %v19796_v58  ;;  %8291 = vmatprep.subr.mxu0 %v8255_v3  ;;  %8378 = vmatpush1.msra.mxu1 %v8336_v56  ;;  %v17870_v34 = vadd.f32 %v17719_v16, %v7896_v5  ;;  %v8424_v3 = vld [vmem:[%s18727_s7 + $0x120] sm:$0xff]  ;;  %v8423_v54 = vld [vmem:[%s18727_s7 + $0x118] sm:$0xff] }
 0x548   : > { %v7746_v2 = vadd.f32 %v17696_v1, %v7667_v35  ;;  %8292 = vmatpush1.msra.mxu0 %v8254_v29  ;;  %v7230_v20 = vpop.f32.mrf.mxu1  ;;  %8539 = vmatprep.subr.mxu1 %v8511_v57 }
 0x549   : > { %v17873_v39 = vadd.f32 %v17719_v16, %v7895_v51  ;;  %v7749_v44 = vadd.f32 %v17696_v1, %v7670_v42  ;;  %v7669_v21 = vadd.f32 %v7230_v20, %v7008_v15  ;;  %8293 = vmatprep.subr.mxu0 %v8253_v27  ;;  %v7898_v12 = vmul.f32 %v17707_v46, %v7819_v22  ;;  %v8421_v27 = vld [vmem:[%s18727_s7 + $0x108] sm:$0xff]  ;;  %v8420_v51 = vld [vmem:[%s18727_s7 + $0x100] sm:$0xff]  ;;  %v8595_v42 = vld [vmem:[%s18727_s7 + $0x1b8] sm:$0xff] }
 0x54a   : > { %v7818_v18 = vmax.f32 %v7746_v2, 0.0  ;;  %8294 = vmatpush1.msra.mxu0 %v8252_v62  ;;  %v13874_v8 = vpop.f32.mrf.mxu1 }
 0x54b   : > { %v8040_v26 = vmax.f32 %v17873_v39, %v17870_v34  ;;  %v7821_v33 = vmax.f32 %v7749_v44, 0.0  ;;  %v7748_v31 = vadd.f32 %v17696_v1, %v7669_v21  ;;  %11037 = vmatmul.mubr.msk.f32.vlgmr.msra.gmra.mxu0 %vm1588_vm1, %v8072_v41  ;;  %8455 = vmatprep.subr.mxu0 %v8427_v50  ;;  %v8422_v41 = vld [vmem:[%s18727_s7 + $0x110] sm:$0xff]  ;;  %v17900_v57 = vadd.f32 %v17719_v16, %v7898_v12  ;;  %v19798_v50 = vld [vmem:[#allocation137_spill] sm:$0xff]  ;;  %v19799_v8 = vld [vmem:[#allocation138_spill] sm:$0xff] }
 0x54c   : > { %v7897_v56 = vmul.f32 %v17707_v46, %v7818_v18  ;;  %v7240_v5 = vpop.f32.mrf.mxu1  ;;  %8456 = vmatpush1.msra.mxu0 %v8426_v23  ;;  %8495 = vmatprep.mubr.f32.mxu0 %v19282_v49  ;;  %v19803_v39 = vld [vmem:[#allocation140_spill] sm:$0xff] }
 0x54d   : > { %v7900_v37 = vmul.f32 %v17707_v46, %v7821_v33  ;;  %v7820_v29 = vmax.f32 %v7748_v31, 0.0  ;;  %8457 = vmatprep.subr.mxu0 %v8425_v53  ;;  %v19800_v5 = vld [vmem:[#allocation54_spill] sm:$0xff] }
 0x54e   : > { %v17903_v35 = vadd.f32 %v17719_v16, %v7897_v56  ;;  %v13877_v0 = vpop.f32.mrf.mxu1  ;;  %8458 = vmatpush1.msra.mxu0 %v8424_v3 }
 0x54f   : > { %v7899_v11 = vmul.f32 %v17707_v46, %v7820_v29  ;;  %v7672_v15 = vadd.f32 %v13877_v0, %v19797_v59  ;;  %8459 = vmatprep.subr.mxu0 %v8423_v54  ;;  %v17919_v62 = vadd.f32 %v17719_v16, %v7900_v37  ;;  %v19801_v0 = vld [vmem:[#allocation139_spill] sm:$0xff] }
 0x550   : > { %v8041_v22 = vmax.f32 %v17903_v35, %v17900_v57  ;;  %v7248_v58 = vpop.f32.mrf.mxu1  ;;  %8460 = vmatpush1.msra.mxu0 %v8422_v41 }
 0x551   : > { %v17922_v2 = vadd.f32 %v17719_v16, %v7899_v11  ;;  %v7751_v20 = vadd.f32 %v17696_v1, %v7672_v15  ;;  %v7671_v44 = vadd.f32 %v7248_v58, %v19798_v50  ;;  %8461 = vmatprep.subr.mxu0 %v8421_v27  ;;  %v19802_v58 = vld [vmem:[#allocation55_spill] sm:$0xff] }
 0x552   : > { %v13880_v21 = vpop.f32.mrf.mxu1  ;;  %8462 = vmatpush1.msra.mxu0 %v8420_v51 }
 0x553   : > { %v8042_v23 = vmax.f32 %v17922_v2, %v17919_v62  ;;  %v7823_v12 = vmax.f32 %v7751_v20, 0.0  ;;  %v7750_v18 = vadd.f32 %v17696_v1, %v7671_v44  ;;  %v7674_v53 = vadd.f32 %v13880_v21, %v19799_v8  ;;  %8623 = vmatprep.subr.mxu0 %v8595_v42  ;;  %v8678_v62 = vld [vmem:[%s18727_s7 + $0x1f0] sm:$0xff] }
 0x554   : > { %v7258_v33 = vpop.f32.mrf.mxu1 }
 0x555   : > { %v7902_v31 = vmul.f32 %v17707_v46, %v7823_v12  ;;  %v7822_v3 = vmax.f32 %v7750_v18, 0.0  ;;  %v7753_v56 = vadd.f32 %v17696_v1, %v7674_v53  ;;  %v7673_v54 = vadd.f32 %v7258_v33, %v19800_v5 }
 0x556   : > { %v13883_v37 = vpop.f32.mrf.mxu1 }
 0x557   : > { %v7901_v29 = vmul.f32 %v17707_v46, %v7822_v3  ;;  %v7825_v41 = vmax.f32 %v7753_v56, 0.0  ;;  %v7752_v57 = vadd.f32 %v17696_v1, %v7673_v54  ;;  %v7981_v35 = vadd.f32 %v17719_v16, %v7902_v31  ;;  %v8510_v56 = vld [vmem:[%s18727_s7 + $0x170] sm:$0xff] }
 0x558   : > { %v7676_v27 = vadd.f32 %v13883_v37, %v19801_v0  ;;  %v7268_v11 = vpop.f32.mrf.mxu1  ;;  %v8509_v37 = vld [vmem:[%s18727_s7 + $0x168] sm:$0xff]  ;;  %v8507_v0 = vld [vmem:[%s18727_s7 + $0x158] sm:$0xff] }
 0x559   : > { %v7980_v59 = vadd.f32 %v17719_v16, %v7901_v29  ;;  %v7904_v15 = vmul.f32 %v17707_v46, %v7825_v41  ;;  %v7824_v51 = vmax.f32 %v7752_v57, 0.0  ;;  %v7675_v42 = vadd.f32 %v7268_v11, %v19802_v58  ;;  %v8508_v41 = vld [vmem:[%s18727_s7 + $0x160] sm:$0xff]  ;;  %v8506_v58 = vld [vmem:[%s18727_s7 + $0x150] sm:$0xff] }
 0x55a   : > { %v7755_v20 = vadd.f32 %v17696_v1, %v7676_v27  ;;  %v13886_v50 = vpop.f32.mrf.mxu1 }
 0x55b   : > { %v8043_v44 = vmax.f32 %v7980_v59, %v7981_v35  ;;  %v7903_v21 = vmul.f32 %v17707_v46, %v7824_v51  ;;  %v7754_v12 = vadd.f32 %v17696_v1, %v7675_v42  ;;  %v7983_v33 = vadd.f32 %v17719_v16, %v7904_v15  ;;  %v19804_v15 = vld [vmem:[#allocation72_spill] sm:$0xff]  ;;  %v8593_v50 = vld [vmem:[%s18727_s7 + $0x1a8] sm:$0xff] }
 0x55c   : > { %v7827_v18 = vmax.f32 %v7755_v20, 0.0  ;;  %v7278_v8 = vpop.f32.mrf.mxu1  ;;  %v8594_v42 = vld [vmem:[%s18727_s7 + $0x1b0] sm:$0xff] }
 0x55d   : > { %v8073_v53 = vmax.f32 %v8040_v26, %v8043_v44  ;;  %v7982_v31 = vadd.f32 %v17719_v16, %v7903_v21  ;;  %v7826_v3 = vmax.f32 %v7754_v12, 0.0 }
 0x55e   : > { %v7906_v5 = vmul.f32 %v17707_v46, %v7827_v18  ;;  %v13889_v54 = vpop.f32.mrf.mxu1  ;;  %v19805_v18 = vld [vmem:[#allocation141_spill] sm:$0xff] }
 0x55f   : > { %v8044_v29 = vmax.f32 %v7982_v31, %v7983_v33  ;;  %v7905_v34 = vmul.f32 %v17707_v46, %v7826_v3  ;;  %v7678_v26 = vadd.f32 %v13889_v54, %v19803_v39  ;;  %11038 = vmatmul.mubr.msk.f32.vlgmr.msra.gmra.mxu1 %vm1588_vm1, %v8073_v53  ;;  %v8504_v53 = vld [vmem:[%s18727_s7 + $0x140] sm:$0xff]  ;;  %v8591_v3 = vld [vmem:[%s18727_s7 + $0x198] sm:$0xff] }
 0x560   : > { %v7985_v57 = vadd.f32 %v17719_v16, %v7906_v5  ;;  %v7286_v35 = vpop.f32.mrf.mxu1  ;;  %8540 = vmatpush1.msra.mxu1 %v8510_v56  ;;  %8579 = vmatprep.mubr.f32.mxu1 %v19282_v49  ;;  %v8592_v33 = vld [vmem:[%s18727_s7 + $0x1a0] sm:$0xff]  ;;  %v19806_v39 = vld [vmem:[#allocation73_spill] sm:$0xff] }
 0x561   : > { %v8074_v27 = vmax.f32 %v8041_v22, %v8044_v29  ;;  %v7984_v11 = vadd.f32 %v17719_v16, %v7905_v34  ;;  %v7757_v59 = vadd.f32 %v17696_v1, %v7678_v26  ;;  %v7677_v51 = vadd.f32 %v7286_v35, %v19804_v15  ;;  %8541 = vmatprep.subr.mxu1 %v8509_v37  ;;  %v8505_v22 = vld [vmem:[%s18727_s7 + $0x148] sm:$0xff]  ;;  %v8679_v29 = vld [vmem:[%s18727_s7 + $0x1f8] sm:$0xff]  ;;  %v8590_v34 = vld [vmem:[%s18727_s7 + $0x190] sm:$0xff] }
 0x562   : > { %v13892_v20 = vpop.f32.mrf.mxu1  ;;  %8542 = vmatpush1.msra.mxu1 %v8508_v41  ;;  %v8588_v15 = vld [vmem:[%s18727_s7 + $0x180] sm:$0xff] }
 0x563   : > { %v8045_v44 = vmax.f32 %v7984_v11, %v7985_v57  ;;  %v7829_v21 = vmax.f32 %v7757_v59, 0.0  ;;  %v7756_v12 = vadd.f32 %v17696_v1, %v7677_v51  ;;  %v7680_v8 = vadd.f32 %v13892_v20, %v19805_v18  ;;  %11039 = vmatmul.mubr.msk.f32.vlgmr.msra.gmra.mxu0 %vm1588_vm1, %v8074_v27  ;;  %8543 = vmatprep.subr.mxu1 %v8507_v0  ;;  %v19807_v57 = vld [vmem:[#allocation57_spill] sm:$0xff]  ;;  %v8589_v0 = vld [vmem:[%s18727_s7 + $0x188] sm:$0xff]  ;;  %v19808_v20 = vld [vmem:[#allocation74_spill] sm:$0xff] }
 0x564   : > { %v7296_v31 = vpop.f32.mrf.mxu1  ;;  %8544 = vmatpush1.msra.mxu1 %v8506_v58  ;;  %8624 = vmatpush1.msra.mxu0 %v8594_v42  ;;  %v8677_v27 = vld [vmem:[%s18727_s7 + $0x1e8] sm:$0xff] }
 0x565   : > { %v8075_v56 = vmax.f32 %v8042_v23, %v8045_v44  ;;  %v7908_v5 = vmul.f32 %v17707_v46, %v7829_v21  ;;  %v7828_v54 = vmax.f32 %v7756_v12, 0.0  ;;  %v7759_v37 = vadd.f32 %v17696_v1, %v7680_v8  ;;  %8545 = vmatprep.subr.mxu1 %v8505_v22  ;;  %8625 = vmatprep.subr.mxu0 %v8593_v50  ;;  %v8676_v50 = vld [vmem:[%s18727_s7 + $0x1e0] sm:$0xff]  ;;  %v8763_v44 = vld [vmem:[%s18727_s7 + $0x238] sm:$0xff] }
 0x566   : > { %v7679_v26 = vadd.f32 %v7296_v31, %v19806_v39  ;;  %v13895_v41 = vpop.f32.mrf.mxu1  ;;  %8546 = vmatpush1.msra.mxu1 %v8504_v53  ;;  %8626 = vmatpush1.msra.mxu0 %v8592_v33  ;;  %v8675_v8 = vld [vmem:[%s18727_s7 + $0x1d8] sm:$0xff] }
 0x567   : > { %v7907_v2 = vmul.f32 %v17707_v46, %v7828_v54  ;;  %v7831_v23 = vmax.f32 %v7759_v37, 0.0  ;;  %v7682_v35 = vadd.f32 %v13895_v41, %v19807_v57  ;;  %11040 = vmatmul.mubr.msk.f32.vlgmr.msra.gmra.mxu1 %vm1588_vm1, %v8075_v56  ;;  %8627 = vmatprep.subr.mxu0 %v8591_v3  ;;  %v18022_v51 = vadd.f32 %v17719_v16, %v7908_v5  ;;  %v8674_v3 = vld [vmem:[%s18727_s7 + $0x1d0] sm:$0xff]  ;;  %v8673_v54 = vld [vmem:[%s18727_s7 + $0x1c8] sm:$0xff] }
 0x568   : > { %v7758_v11 = vadd.f32 %v17696_v1, %v7679_v26  ;;  %v7306_v59 = vpop.f32.mrf.mxu1  ;;  %8707 = vmatprep.subr.mxu1 %v8679_v29  ;;  %8628 = vmatpush1.msra.mxu0 %v8590_v34  ;;  %v8672_v34 = vld [vmem:[%s18727_s7 + $0x1c0] sm:$0xff] }
 0x569   : > { %v18025_v58 = vadd.f32 %v17719_v16, %v7907_v2  ;;  %v7761_v42 = vadd.f32 %v17696_v1, %v7682_v35  ;;  %v7681_v22 = vadd.f32 %v7306_v59, %v19808_v20  ;;  %8708 = vmatpush1.msra.mxu1 %v8678_v62  ;;  %v7910_v21 = vmul.f32 %v17707_v46, %v7831_v23  ;;  %v8847_v62 = vld [vmem:[%s18727_s7 + $0x278] sm:$0xff]  ;;  %v19809_v23 = vld [vmem:[#allocation76_spill] sm:$0xff] }
 0x56a   : > { %v7830_v12 = vmax.f32 %v7758_v11, 0.0  ;;  %v13898_v18 = vpop.f32.mrf.mxu1  ;;  %8629 = vmatprep.subr.mxu0 %v8589_v0  ;;  %8709 = vmatprep.subr.mxu1 %v8677_v27 }
 0x56b   : > { %v8046_v53 = vmax.f32 %v18025_v58, %v18022_v51  ;;  %v7833_v33 = vmax.f32 %v7761_v42, 0.0  ;;  %v7760_v31 = vadd.f32 %v17696_v1, %v7681_v22  ;;  %8630 = vmatpush1.msra.mxu0 %v8588_v15  ;;  %8663 = vmatprep.mubr.f32.mxu0 %v19282_v49  ;;  %v18056_v39 = vadd.f32 %v17719_v16, %v7910_v21  ;;  %v19810_v15 = vld [vmem:[#allocation83_spill] sm:$0xff] }
 0x56c   : > { %v7909_v56 = vmul.f32 %v17707_v46, %v7830_v12  ;;  %v7316_v5 = vpop.f32.mrf.mxu1  ;;  %8710 = vmatpush1.msra.mxu1 %v8676_v50  ;;  %8791 = vmatprep.subr.mxu0 %v8763_v44  ;;  %v19811_v50 = vld [vmem:[#allocation85_spill] sm:$0xff] }
 0x56d   : > { %v7912_v37 = vmul.f32 %v17707_v46, %v7833_v33  ;;  %v7832_v29 = vmax.f32 %v7760_v31, 0.0  ;;  %8711 = vmatprep.subr.mxu1 %v8675_v8  ;;  %8747 = vmatprep.mubr.f32.mxu1 %v19282_v49  ;;  %v19812_v33 = vld [vmem:[#allocation86_spill] sm:$0xff] }
 0x56e   : > { %v7988_v26 = vadd.f32 %v17719_v16, %v7909_v56  ;;  %v13901_v41 = vpop.f32.mrf.mxu1  ;;  %8712 = vmatpush1.msra.mxu1 %v8674_v3 }
 0x56f   : > { %v7911_v2 = vmul.f32 %v17707_v46, %v7832_v29  ;;  %v7684_v57 = vadd.f32 %v13901_v41, %v19809_v23  ;;  %8713 = vmatprep.subr.mxu1 %v8673_v54  ;;  %v18066_v27 = vadd.f32 %v17719_v16, %v7912_v37  ;;  %v19813_v29 = vld [vmem:[#allocation142_spill] sm:$0xff] }
 0x570   : > { %v8047_v35 = vmax.f32 %v7988_v26, %v18056_v39  ;;  %v7324_v0 = vpop.f32.mrf.mxu1  ;;  %8714 = vmatpush1.msra.mxu1 %v8672_v34 }
 0x571   : > { %v18069_v11 = vadd.f32 %v17719_v16, %v7911_v2  ;;  %v7763_v59 = vadd.f32 %v17696_v1, %v7684_v57  ;;  %v7683_v51 = vadd.f32 %v7324_v0, %v19810_v15  ;;  %8875 = vmatprep.subr.mxu1 %v8847_v62  ;;  %v19814_v2 = vld [vmem:[#allocation143_spill] sm:$0xff] }
 0x572   : > { %v13904_v58 = vpop.f32.mrf.mxu1 }
 0x573   : > { %v8048_v42 = vmax.f32 %v18069_v11, %v18066_v27  ;;  %v7835_v20 = vmax.f32 %v7763_v59, 0.0  ;;  %v7762_v22 = vadd.f32 %v17696_v1, %v7683_v51  ;;  %v7686_v44 = vadd.f32 %v13904_v58, %v19811_v50  ;;  %v8930_v27 = vld [vmem:[%s18727_s7 + $0x2b0] sm:$0xff] }
 0x574   : > { %v7334_v21 = vpop.f32.mrf.mxu1 }
 0x575   : > { %v7914_v12 = vmul.f32 %v17707_v46, %v7835_v20  ;;  %v7834_v18 = vmax.f32 %v7762_v22, 0.0  ;;  %v7765_v8 = vadd.f32 %v17696_v1, %v7686_v44  ;;  %v7685_v31 = vadd.f32 %v7334_v21, %v19812_v33  ;;  %v8761_v33 = vld [vmem:[%s18727_s7 + $0x228] sm:$0xff] }
 0x576   : > { %v13907_v3 = vpop.f32.mrf.mxu1 }
 0x577   : > { %v7913_v56 = vmul.f32 %v17707_v46, %v7834_v18  ;;  %v7837_v5 = vmax.f32 %v7765_v8, 0.0  ;;  %v7764_v54 = vadd.f32 %v17696_v1, %v7685_v31  ;;  %v7993_v37 = vadd.f32 %v17719_v16, %v7914_v12  ;;  %v8762_v12 = vld [vmem:[%s18727_s7 + $0x230] sm:$0xff] }
 0x578   : > { %v7688_v34 = vadd.f32 %v13907_v3, %v19813_v29  ;;  %v7344_v39 = vpop.f32.mrf.mxu1  ;;  %v8759_v29 = vld [vmem:[%s18727_s7 + $0x218] sm:$0xff] }
 0x579   : > { %v7992_v26 = vadd.f32 %v17719_v16, %v7913_v56  ;;  %v7916_v41 = vmul.f32 %v17707_v46, %v7837_v5  ;;  %v7836_v62 = vmax.f32 %v7764_v54, 0.0  ;;  %v7687_v23 = vadd.f32 %v7344_v39, %v19814_v2  ;;  %v8760_v5 = vld [vmem:[%s18727_s7 + $0x220] sm:$0xff]  ;;  %v8758_v2 = vld [vmem:[%s18727_s7 + $0x210] sm:$0xff] }
 0x57a   : > { %v7767_v57 = vadd.f32 %v17696_v1, %v7688_v34  ;;  %v13910_v0 = vpop.f32.mrf.mxu1 }
 0x57b   : > { %v8049_v59 = vmax.f32 %v7992_v26, %v7993_v37  ;;  %v7915_v15 = vmul.f32 %v17707_v46, %v7836_v62  ;;  %v7766_v51 = vadd.f32 %v17696_v1, %v7687_v23  ;;  %v7995_v50 = vadd.f32 %v17719_v16, %v7916_v41  ;;  %v19816_v41 = vld [vmem:[#allocation145_spill] sm:$0xff]  ;;  %v8846_v23 = vld [vmem:[%s18727_s7 + $0x270] sm:$0xff]  ;;  %v8845_v0 = vld [vmem:[%s18727_s7 + $0x268] sm:$0xff] }
 0x57c   : > { %v7839_v58 = vmax.f32 %v7767_v57, 0.0  ;;  %v7354_v20 = vpop.f32.mrf.mxu1 }
 0x57d   : > { %v8076_v22 = vmax.f32 %v8046_v53, %v8049_v59  ;;  %v7994_v44 = vadd.f32 %v17719_v16, %v7915_v15  ;;  %v7838_v21 = vmax.f32 %v7766_v51, 0.0  ;;  %v19815_v53 = vld [vmem:[#allocation144_spill] sm:$0xff] }
 0x57e   : > { %v7918_v18 = vmul.f32 %v17707_v46, %v7839_v58  ;;  %v13913_v8 = vpop.f32.mrf.mxu1  ;;  %v19817_v58 = vld [vmem:[#allocation62_spill] sm:$0xff] }
 0x57f   : > { %v8050_v31 = vmax.f32 %v7994_v44, %v7995_v50  ;;  %v7917_v3 = vmul.f32 %v17707_v46, %v7838_v21  ;;  %v7690_v56 = vadd.f32 %v13913_v8, %v19815_v53  ;;  %11041 = vmatmul.mubr.msk.f32.vlgmr.msra.gmra.mxu0 %vm1588_vm1, %v8076_v22  ;;  %v8756_v22 = vld [vmem:[%s18727_s7 + $0x200] sm:$0xff]  ;;  %v8843_v21 = vld [vmem:[%s18727_s7 + $0x258] sm:$0xff]  ;;  %v19818_v53 = vld [vmem:[#allocation3_spill] sm:$0xff] }
 0x580   : > { %v7997_v54 = vadd.f32 %v17719_v16, %v7918_v18  ;;  %v7362_v37 = vpop.f32.mrf.mxu1  ;;  %8792 = vmatpush1.msra.mxu0 %v8762_v12  ;;  %8831 = vmatprep.mubr.f32.mxu0 %v19282_v49  ;;  %v8844_v50 = vld [vmem:[%s18727_s7 + $0x260] sm:$0xff] }
 0x581   : > { %v8077_v34 = vmax.f32 %v8047_v35, %v8050_v31  ;;  %v7996_v39 = vadd.f32 %v17719_v16, %v7917_v3  ;;  %v7769_v26 = vadd.f32 %v17696_v1, %v7690_v56  ;;  %v7689_v62 = vadd.f32 %v7362_v37, %v19816_v41  ;;  %8793 = vmatprep.subr.mxu0 %v8761_v33  ;;  %v8757_v35 = vld [vmem:[%s18727_s7 + $0x208] sm:$0xff]  ;;  %v8931_v31 = vld [vmem:[%s18727_s7 + $0x2b8] sm:$0xff]  ;;  %v8842_v3 = vld [vmem:[%s18727_s7 + $0x250] sm:$0xff] }
 0x582   : > { %v13916_v57 = vpop.f32.mrf.mxu1  ;;  %8794 = vmatpush1.msra.mxu0 %v8760_v5  ;;  %v8840_v41 = vld [vmem:[%s18727_s7 + $0x240] sm:$0xff] }
 0x583   : > { %v8051_v59 = vmax.f32 %v7996_v39, %v7997_v54  ;;  %v7841_v15 = vmax.f32 %v7769_v26, 0.0  ;;  %v7768_v51 = vadd.f32 %v17696_v1, %v7689_v62  ;;  %v7692_v20 = vadd.f32 %v13916_v57, %v19817_v58  ;;  %11042 = vmatmul.mubr.msk.f32.vlgmr.msra.gmra.mxu1 %vm1588_vm1, %v8077_v34  ;;  %8795 = vmatprep.subr.mxu0 %v8759_v29  ;;  %v19819_v54 = vld [vmem:[#allocation64_spill] sm:$0xff]  ;;  %v8841_v29 = vld [vmem:[%s18727_s7 + $0x248] sm:$0xff] }
 0x584   : > { %v7372_v44 = vpop.f32.mrf.mxu1  ;;  %8796 = vmatpush1.msra.mxu0 %v8758_v2  ;;  %8876 = vmatpush1.msra.mxu1 %v8846_v23  ;;  %v8929_v34 = vld [vmem:[%s18727_s7 + $0x2a8] sm:$0xff]  ;;  %v19820_v57 = vld [vmem:[#allocation4_spill] sm:$0xff] }
 0x585   : > { %v8078_v12 = vmax.f32 %v8048_v42, %v8051_v59  ;;  %v7920_v18 = vmul.f32 %v17707_v46, %v7841_v15  ;;  %v7840_v8 = vmax.f32 %v7768_v51, 0.0  ;;  %v7771_v33 = vadd.f32 %v17696_v1, %v7692_v20  ;;  %8797 = vmatprep.subr.mxu0 %v8757_v35  ;;  %8877 = vmatprep.subr.mxu1 %v8845_v0  ;;  %v8928_v0 = vld [vmem:[%s18727_s7 + $0x2a0] sm:$0xff]  ;;  %v9015_v59 = vld [vmem:[%s18727_s7 + $0x2f8] sm:$0xff] }
 0x586   : > { %v7691_v56 = vadd.f32 %v7372_v44, %v19818_v53  ;;  %v13919_v5 = vpop.f32.mrf.mxu1  ;;  %8798 = vmatpush1.msra.mxu0 %v8756_v22  ;;  %8878 = vmatpush1.msra.mxu1 %v8844_v50  ;;  %v8927_v20 = vld [vmem:[%s18727_s7 + $0x298] sm:$0xff] }
 0x587   : > { %v7919_v11 = vmul.f32 %v17707_v46, %v7840_v8  ;;  %v7843_v42 = vmax.f32 %v7771_v33, 0.0  ;;  %v7694_v37 = vadd.f32 %v13919_v5, %v19819_v54  ;;  %11043 = vmatmul.mubr.msk.f32.vlgmr.msra.gmra.mxu0 %vm1588_vm1, %v8078_v12  ;;  %8879 = vmatprep.subr.mxu1 %v8843_v21  ;;  %v18166_v62 = vadd.f32 %v17719_v16, %v7920_v18  ;;  %v8926_v21 = vld [vmem:[%s18727_s7 + $0x290] sm:$0xff]  ;;  %v8925_v8 = vld [vmem:[%s18727_s7 + $0x288] sm:$0xff] }
 0x588   : > { %v7770_v39 = vadd.f32 %v17696_v1, %v7691_v56  ;;  %v7382_v26 = vpop.f32.mrf.mxu1  ;;  %8959 = vmatprep.subr.mxu0 %v8931_v31  ;;  %8880 = vmatpush1.msra.mxu1 %v8842_v3  ;;  %v8924_v3 = vld [vmem:[%s18727_s7 + $0x280] sm:$0xff] }
 0x589   : > { %v18169_v2 = vadd.f32 %v17719_v16, %v7919_v11  ;;  %v7773_v23 = vadd.f32 %v17696_v1, %v7694_v37  ;;  %v7693_v35 = vadd.f32 %v7382_v26, %v19820_v57  ;;  %8960 = vmatpush1.msra.mxu0 %v8930_v27  ;;  %v7922_v15 = vmul.f32 %v17707_v46, %v7843_v42  ;;  %v9099_v27 = vld [vmem:[%s18727_s7 + $0x338] sm:$0xff] }
 0x58a   : > { %v7842_v51 = vmax.f32 %v7770_v39, 0.0  ;;  %v13922_v58 = vpop.f32.mrf.mxu1  ;;  %8881 = vmatprep.subr.mxu1 %v8841_v29  ;;  %8961 = vmatprep.subr.mxu0 %v8929_v34  ;;  %v19821_v42 = vld [vmem:[#allocation5_spill] sm:$0xff] }
 0x58b   : > { %v8052_v22 = vmax.f32 %v18169_v2, %v18166_v62  ;;  %v7845_v50 = vmax.f32 %v7773_v23, 0.0  ;;  %v7772_v44 = vadd.f32 %v17696_v1, %v7693_v35  ;;  %8882 = vmatpush1.msra.mxu1 %v8840_v41  ;;  %8915 = vmatprep.mubr.f32.mxu1 %v19282_v49  ;;  %v18200_v53 = vadd.f32 %v17719_v16, %v7922_v15 }
 0x58c   : > { %v7921_v12 = vmul.f32 %v17707_v46, %v7842_v51  ;;  %v7392_v18 = vpop.f32.mrf.mxu1  ;;  %8962 = vmatpush1.msra.mxu0 %v8928_v0  ;;  %9043 = vmatprep.subr.mxu1 %v9015_v59 }
 0x58d   : > { %v7924_v33 = vmul.f32 %v17707_v46, %v7845_v50  ;;  %v7844_v31 = vmax.f32 %v7772_v44, 0.0  ;;  %8963 = vmatprep.subr.mxu0 %v8927_v20  ;;  %8999 = vmatprep.mubr.f32.mxu0 %v19282_v49 }
 0x58e   : > { %v18203_v56 = vadd.f32 %v17719_v16, %v7921_v12  ;;  %v13925_v5 = vpop.f32.mrf.mxu1  ;;  %8964 = vmatpush1.msra.mxu0 %v8926_v21 }
 0x58f   : > { %v7923_v11 = vmul.f32 %v17707_v46, %v7844_v31  ;;  %v7696_v54 = vadd.f32 %v13925_v5, %v19821_v42  ;;  %8965 = vmatprep.subr.mxu0 %v8925_v8  ;;  %v18213_v34 = vadd.f32 %v17719_v16, %v7924_v33  ;;  %v19822_v31 = vld [vmem:[#allocation6_spill] sm:$0xff] }
 0x590   : > { %v8053_v37 = vmax.f32 %v18203_v56, %v18200_v53  ;;  %v7400_v29 = vpop.f32.mrf.mxu1  ;;  %8966 = vmatpush1.msra.mxu0 %v8924_v3 }
 0x591   : > { %v18216_v39 = vadd.f32 %v17719_v16, %v7923_v11  ;;  %v7775_v26 = vadd.f32 %v17696_v1, %v7696_v54  ;;  %v7695_v41 = vadd.f32 %v7400_v29, %v17478_v14  ;;  %9127 = vmatprep.subr.mxu0 %v9099_v27 }
 0x592   : > { %v13928_v62 = vpop.f32.mrf.mxu1 }
 0x593   : > { %v8054_v2 = vmax.f32 %v18216_v39, %v18213_v34  ;;  %v7847_v23 = vmax.f32 %v7775_v26, 0.0  ;;  %v7774_v57 = vadd.f32 %v17696_v1, %v7695_v41  ;;  %v7698_v35 = vadd.f32 %v13928_v62, %v17485_v38  ;;  %v9014_v41 = vld [vmem:[%s18727_s7 + $0x2f0] sm:$0xff]  ;;  %v18250_v62 = vld [vmem:[%s18725_s5] ss:$0 sm:$0xff] }
 0x594   : > { %v7410_v0 = vpop.f32.mrf.mxu1  ;;  %v9182_v34 = vld [vmem:[%s18727_s7 + $0x370] sm:$0xff] }
 0x595   : > { %v7926_v59 = vmul.f32 %v17707_v46, %v7847_v23  ;;  %v7846_v15 = vmax.f32 %v7774_v57, 0.0  ;;  %v7777_v51 = vadd.f32 %v17696_v1, %v7698_v35  ;;  %v7697_v58 = vadd.f32 %v7410_v0, %v17488_v60  ;;  %v18237_v60 = vld [vmem:[%s18724_s4] ss:$0 sm:$0xff]  ;;  %v19823_v35 = vld [vmem:[#allocation63_spill] sm:$0xff] }
 0x596   : > { %v13931_v20 = vpop.f32.mrf.mxu1 }
 0x597   : > { %v7925_v14 = vmul.f32 %v17707_v46, %v7846_v15  ;;  %v7849_v50 = vmax.f32 %v7777_v51, 0.0  ;;  %v7776_v44 = vadd.f32 %v17696_v1, %v7697_v58  ;;  %v8005_v21 = vadd.f32 %v17719_v16, %v7926_v59  ;;  %v9012_v59 = vld [vmem:[%s18727_s7 + $0x2e0] sm:$0xff] }
 0x598   : > { %v7700_v12 = vadd.f32 %v13931_v20, %v17497_v52  ;;  %v7420_v18 = vpop.f32.mrf.mxu1  ;;  %v18265_v15 = vld [vmem:[%s18726_s6] ss:$0 sm:$0xff]  ;;  %v9011_v20 = vld [vmem:[%s18727_s7 + $0x2d8] sm:$0xff] }
 0x599   : > { %v8004_v38 = vadd.f32 %v17719_v16, %v7925_v14  ;;  %v7928_v8 = vmul.f32 %v17707_v46, %v7849_v50  ;;  %v7848_v33 = vmax.f32 %v7776_v44, 0.0  ;;  %v7699_v3 = vadd.f32 %v7420_v18, %v19822_v31  ;;  %v9098_v18 = vld [vmem:[%s18727_s7 + $0x330] sm:$0xff] }
 0x59a   : > { %v7779_v53 = vadd.f32 %v18237_v60, %v7700_v12  ;;  %v13934_v1 = vpop.f32.mrf.mxu1  ;;  %v9010_v12 = vld [vmem:[%s18727_s7 + $0x2d0] sm:$0xff] }
 0x59b   : > { %v8055_v56 = vmax.f32 %v8004_v38, %v8005_v21  ;;  %v7927_v5 = vmul.f32 %v17707_v46, %v7848_v33  ;;  %v7778_v52 = vadd.f32 %v18237_v60, %v7699_v3  ;;  %v8007_v54 = vadd.f32 %v17719_v16, %v7928_v8  ;;  %v9097_v8 = vld [vmem:[%s18727_s7 + $0x328] sm:$0xff]  ;;  %v9096_v1 = vld [vmem:[%s18727_s7 + $0x320] sm:$0xff] }
 0x59c   : > { %v7851_v27 = vmax.f32 %v7779_v53, 0.0  ;;  %v7430_v11 = vpop.f32.mrf.mxu1  ;;  %v9008_v53 = vld [vmem:[%s18727_s7 + $0x2c0] sm:$0xff] }
 0x59d   : > { %v8079_v42 = vmax.f32 %v8052_v22, %v8055_v56  ;;  %v8006_v29 = vadd.f32 %v17719_v16, %v7927_v5  ;;  %v7850_v26 = vmax.f32 %v7778_v52, 0.0  ;;  %v9013_v22 = vld [vmem:[%s18727_s7 + $0x2e8] sm:$0xff]  ;;  %v9095_v5 = vld [vmem:[%s18727_s7 + $0x318] sm:$0xff] }
 0x59e   : > { %v7930_v46 = vmul.f32 %v18250_v62, %v7851_v27  ;;  %v13937_v23 = vpop.f32.mrf.mxu1 }
 0x59f   : > { %v8056_v57 = vmax.f32 %v8006_v29, %v8007_v54  ;;  %v7929_v16 = vmul.f32 %v18250_v62, %v7850_v26  ;;  %v7702_v0 = vadd.f32 %v13937_v23, %v19823_v35  ;;  %11044 = vmatmul.mubr.msk.f32.vlgmr.msra.gmra.mxu1 %vm1588_vm1, %v8079_v42  ;;  %v9183_v42 = vld [vmem:[%s18727_s7 + $0x378] sm:$0xff]  ;;  %v9094_v54 = vld [vmem:[%s18727_s7 + $0x310] sm:$0xff] }
 0x5a0   : > { %v8009_v51 = vadd.f32 %v18265_v15, %v7930_v46  ;;  %v7438_v58 = vpop.f32.mrf.mxu1  ;;  %9044 = vmatpush1.msra.mxu1 %v9014_v41  ;;  %9083 = vmatprep.mubr.f32.mxu1 %v19282_v49  ;;  %v9093_v46 = vld [vmem:[%s18727_s7 + $0x308] sm:$0xff] }
 0x5a1   : > { %v8080_v14 = vmax.f32 %v8053_v37, %v8056_v57  ;;  %v8008_v50 = vadd.f32 %v18265_v15, %v7929_v16  ;;  %v7781_v44 = vadd.f32 %v18237_v60, %v7702_v0  ;;  %v7701_v21 = vadd.f32 %v7438_v58, %v17539_v10  ;;  %9045 = vmatprep.subr.mxu1 %v9013_v22  ;;  %v9009_v37 = vld [vmem:[%s18727_s7 + $0x2c8] sm:$0xff]  ;;  %v9267_v58 = vld [vmem:[%s18727_s7 + $0x3b8] sm:$0xff] }
 0x5a2   : > { %v13940_v38 = vpop.f32.mrf.mxu1  ;;  %9046 = vmatpush1.msra.mxu1 %v9012_v59  ;;  %v19824_v0 = vld [vmem:[#allocation7_spill] sm:$0xff] }
 0x5a3   : > { %v8057_v10 = vmax.f32 %v8008_v50, %v8009_v51  ;;  %v7853_v33 = vmax.f32 %v7781_v44, 0.0  ;;  %v7780_v31 = vadd.f32 %v18237_v60, %v7701_v21  ;;  %v7704_v3 = vadd.f32 %v13940_v38, %v17546_v7  ;;  %11045 = vmatmul.mubr.msk.f32.vlgmr.msra.gmra.mxu0 %vm1588_vm1, %v8080_v14  ;;  %9047 = vmatprep.subr.mxu1 %v9011_v20  ;;  %v9180_v51 = vld [vmem:[%s18727_s7 + $0x360] sm:$0xff]  ;;  %v9179_v44 = vld [vmem:[%s18727_s7 + $0x358] sm:$0xff]  ;;  %v9178_v38 = vld [vmem:[%s18727_s7 + $0x350] sm:$0xff] }
 0x5a4   : > { %v7448_v56 = vpop.f32.mrf.mxu1  ;;  %9048 = vmatpush1.msra.mxu1 %v9010_v12  ;;  %9128 = vmatpush1.msra.mxu0 %v9098_v18 }
 0x5a5   : > { %v8081_v7 = vmax.f32 %v8054_v2, %v8057_v10  ;;  %v7932_v52 = vmul.f32 %v18250_v62, %v7853_v33  ;;  %v7852_v27 = vmax.f32 %v7780_v31, 0.0  ;;  %v7783_v11 = vadd.f32 %v18237_v60, %v7704_v3  ;;  %9049 = vmatprep.subr.mxu1 %v9009_v37  ;;  %9129 = vmatprep.subr.mxu0 %v9097_v8  ;;  %v9177_v10 = vld [vmem:[%s18727_s7 + $0x348] sm:$0xff]  ;;  %v9176_v3 = vld [vmem:[%s18727_s7 + $0x340] sm:$0xff] }
 0x5a6   : > { %v7703_v29 = vadd.f32 %v7448_v56, %v17549_v4  ;;  %v13943_v26 = vpop.f32.mrf.mxu1  ;;  %9050 = vmatpush1.msra.mxu1 %v9008_v53  ;;  %9130 = vmatpush1.msra.mxu0 %v9096_v1  ;;  %v9181_v4 = vld [vmem:[%s18727_s7 + $0x368] sm:$0xff] }
 0x5a7   : > { %v7931_v39 = vmul.f32 %v18250_v62, %v7852_v27  ;;  %v7855_v2 = vmax.f32 %v7783_v11, 0.0  ;;  %v7706_v41 = vadd.f32 %v13943_v26, %v17555_v19  ;;  %11046 = vmatmul.mubr.msk.f32.vlgmr.msra.gmra.mxu1 %vm1588_vm1, %v8081_v7  ;;  %9131 = vmatprep.subr.mxu0 %v9095_v5  ;;  %v9092_v19 = vld [vmem:[%s18727_s7 + $0x300] sm:$0xff]  ;;  %v18328_v57 = vadd.f32 %v18265_v15, %v7932_v52  ;;  %v9351_v5 = vld [vmem:[%s18727_s7 + $0x3f8] sm:$0xff] }
 0x5a8   : > { %v7782_v23 = vadd.f32 %v18237_v60, %v7703_v29  ;;  %v7458_v22 = vpop.f32.mrf.mxu1  ;;  %9211 = vmatprep.subr.mxu1 %v9183_v42  ;;  %9132 = vmatpush1.msra.mxu0 %v9094_v54 }
 0x5a9   : > { %v18331_v16 = vadd.f32 %v18265_v15, %v7931_v39  ;;  %v7785_v35 = vadd.f32 %v18237_v60, %v7706_v41  ;;  %v7705_v59 = vadd.f32 %v7458_v22, %v19824_v0  ;;  %9212 = vmatpush1.msra.mxu1 %v9182_v34  ;;  %v7934_v20 = vmul.f32 %v18250_v62, %v7855_v2 }
 0x5aa   : > { %v7854_v14 = vmax.f32 %v7782_v23, 0.0  ;;  %v13946_v50 = vpop.f32.mrf.mxu1  ;;  %9133 = vmatprep.subr.mxu0 %v9093_v46  ;;  %9213 = vmatprep.subr.mxu1 %v9181_v4 }
 0x5ab   : > { %v8058_v21 = vmax.f32 %v18331_v16, %v18328_v57  ;;  %v7857_v12 = vmax.f32 %v7785_v35, 0.0  ;;  %v7784_v18 = vadd.f32 %v18237_v60, %v7705_v59  ;;  %9134 = vmatpush1.msra.mxu0 %v9092_v19  ;;  %9167 = vmatprep.mubr.f32.mxu0 %v19282_v49  ;;  %v18362_v53 = vadd.f32 %v18265_v15, %v7934_v20 }
 0x5ac   : > { %v7933_v37 = vmul.f32 %v18250_v62, %v7854_v14  ;;  %v7468_v8 = vpop.f32.mrf.mxu1  ;;  %9214 = vmatpush1.msra.mxu1 %v9180_v51  ;;  %9295 = vmatprep.subr.mxu0 %v9267_v58 }
 0x5ad   : > { %v7936_v33 = vmul.f32 %v18250_v62, %v7857_v12  ;;  %v7856_v31 = vmax.f32 %v7784_v18, 0.0  ;;  %9215 = vmatprep.subr.mxu1 %v9179_v44  ;;  %9251 = vmatprep.mubr.f32.mxu1 %v19282_v49 }
 0x5ae   : > { %v8012_v1 = vadd.f32 %v18265_v15, %v7933_v37  ;;  %v13949_v56 = vpop.f32.mrf.mxu1  ;;  %9216 = vmatpush1.msra.mxu1 %v9178_v38 }
 0x5af   : > { %v7935_v7 = vmul.f32 %v18250_v62, %v7856_v31  ;;  %v7708_v52 = vadd.f32 %v13949_v56, %v17570_v45  ;;  %9217 = vmatprep.subr.mxu1 %v9177_v10  ;;  %v18372_v42 = vadd.f32 %v18265_v15, %v7936_v33 }
 0x5b0   : > { %v8059_v27 = vmax.f32 %v8012_v1, %v18362_v53  ;;  %v7476_v11 = vpop.f32.mrf.mxu1  ;;  %9218 = vmatpush1.msra.mxu1 %v9176_v3  ;;  %v9265_v53 = vld [vmem:[%s18727_s7 + $0x3a8] sm:$0xff] }
 0x5b1   : > { %v18375_v54 = vadd.f32 %v18265_v15, %v7935_v7  ;;  %v7787_v29 = vadd.f32 %v18237_v60, %v7708_v52  ;;  %v7707_v26 = vadd.f32 %v7476_v11, %v17573_v40  ;;  %9379 = vmatprep.subr.mxu1 %v9351_v5  ;;  %v9264_v5 = vld [vmem:[%s18727_s7 + $0x3a0] sm:$0xff]  ;;  %v9263_v11 = vld [vmem:[%s18727_s7 + $0x398] sm:$0xff] }
 0x5b2   : > { %v13952_v34 = vpop.f32.mrf.mxu1 }
 0x5b3   : > { %v8060_v45 = vmax.f32 %v18375_v54, %v18372_v42  ;;  %v7859_v39 = vmax.f32 %v7787_v29, 0.0  ;;  %v7786_v2 = vadd.f32 %v18237_v60, %v7707_v26  ;;  %v7710_v41 = vadd.f32 %v13952_v34, %v17583_v55  ;;  %v9434_v42 = vld [vmem:[%s18727_s7 + $0x430] sm:$0xff] }
 0x5b4   : > { %v7486_v46 = vpop.f32.mrf.mxu1 }
 0x5b5   : > { %v7938_v4 = vmul.f32 %v18250_v62, %v7859_v39  ;;  %v7858_v23 = vmax.f32 %v7786_v2, 0.0  ;;  %v7789_v22 = vadd.f32 %v18237_v60, %v7710_v41  ;;  %v7709_v19 = vadd.f32 %v7486_v46, %v17586_v9  ;;  %v9262_v39 = vld [vmem:[%s18727_s7 + $0x390] sm:$0xff]  ;;  %v9349_v46 = vld [vmem:[%s18727_s7 + $0x3e8] sm:$0xff] }
 0x5b6   : > { %v13955_v57 = vpop.f32.mrf.mxu1  ;;  %v9350_v2 = vld [vmem:[%s18727_s7 + $0x3f0] sm:$0xff] }
 0x5b7   : > { %v7937_v40 = vmul.f32 %v18250_v62, %v7858_v23  ;;  %v7861_v16 = vmax.f32 %v7789_v22, 0.0  ;;  %v7788_v35 = vadd.f32 %v18237_v60, %v7709_v19  ;;  %v8017_v0 = vadd.f32 %v18265_v15, %v7938_v4  ;;  %v9260_v19 = vld [vmem:[%s18727_s7 + $0x380] sm:$0xff] }
 0x5b8   : > { %v7712_v59 = vadd.f32 %v13955_v57, %v17592_v43  ;;  %v7496_v51 = vpop.f32.mrf.mxu1  ;;  %v9348_v57 = vld [vmem:[%s18727_s7 + $0x3e0] sm:$0xff] }
 0x5b9   : > { %v8016_v55 = vadd.f32 %v18265_v15, %v7937_v40  ;;  %v7940_v58 = vmul.f32 %v18250_v62, %v7861_v16  ;;  %v7860_v20 = vmax.f32 %v7788_v35, 0.0  ;;  %v7711_v14 = vadd.f32 %v7496_v51, %v17594_v13  ;;  %v9266_v13 = vld [vmem:[%s18727_s7 + $0x3b0] sm:$0xff]  ;;  %v9347_v16 = vld [vmem:[%s18727_s7 + $0x3d8] sm:$0xff] }
 0x5ba   : > { %v7791_v9 = vadd.f32 %v18237_v60, %v7712_v59  ;;  %v13958_v50 = vpop.f32.mrf.mxu1  ;;  %v9435_v51 = vld [vmem:[%s18727_s7 + $0x438] sm:$0xff] }
 0x5bb   : > { %v8061_v44 = vmax.f32 %v8016_v55, %v8017_v0  ;;  %v7939_v12 = vmul.f32 %v18250_v62, %v7860_v20  ;;  %v7790_v18 = vadd.f32 %v18237_v60, %v7711_v14  ;;  %v8019_v43 = vadd.f32 %v18265_v15, %v7940_v58  ;;  %v9346_v55 = vld [vmem:[%s18727_s7 + $0x3d0] sm:$0xff] }
 0x5bc   : > { %v7863_v38 = vmax.f32 %v7791_v9, 0.0  ;;  %v7506_v37 = vpop.f32.mrf.mxu1  ;;  %v9345_v9 = vld [vmem:[%s18727_s7 + $0x3c8] sm:$0xff] }
 0x5bd   : > { %v8082_v8 = vmax.f32 %v8058_v21, %v8061_v44  ;;  %v8018_v10 = vadd.f32 %v18265_v15, %v7939_v12  ;;  %v7862_v33 = vmax.f32 %v7790_v18, 0.0 }
 0x5be   : > { %v7942_v31 = vmul.f32 %v18250_v62, %v7863_v38  ;;  %v13961_v3 = vpop.f32.mrf.mxu1 }
 0x5bf   : > { %v8062_v1 = vmax.f32 %v8018_v10, %v8019_v43  ;;  %v7941_v56 = vmul.f32 %v18250_v62, %v7862_v33  ;;  %v7714_v21 = vadd.f32 %v13961_v3, %v17607_v30  ;;  %11047 = vmatmul.mubr.msk.f32.vlgmr.msra.gmra.mxu0 %vm1588_vm1, %v8082_v8  ;;  %v9432_v8 = vld [vmem:[%s18727_s7 + $0x420] sm:$0xff]  ;;  %v9519_v43 = vld [vmem:[%s18727_s7 + $0x478] sm:$0xff] }
 0x5c0   : > { %v8021_v7 = vadd.f32 %v18265_v15, %v7942_v31  ;;  %v7514_v52 = vpop.f32.mrf.mxu1  ;;  %9296 = vmatpush1.msra.mxu0 %v9266_v13  ;;  %9335 = vmatprep.mubr.f32.mxu0 %v19282_v49  ;;  %v9431_v31 = vld [vmem:[%s18727_s7 + $0x418] sm:$0xff] }
 0x5c1   : > { %v8083_v29 = vmax.f32 %v8059_v27, %v8062_v1  ;;  %v8020_v26 = vadd.f32 %v18265_v15, %v7941_v56  ;;  %v7793_v30 = vadd.f32 %v18237_v60, %v7714_v21  ;;  %v7713_v34 = vadd.f32 %v7514_v52, %v17610_v28  ;;  %9297 = vmatprep.subr.mxu0 %v9265_v53  ;;  %v9261_v27 = vld [vmem:[%s18727_s7 + $0x388] sm:$0xff]  ;;  %v9430_v1 = vld [vmem:[%s18727_s7 + $0x410] sm:$0xff] }
 0x5c2   : > { %v13964_v41 = vpop.f32.mrf.mxu1  ;;  %9298 = vmatpush1.msra.mxu0 %v9264_v5  ;;  %v9429_v5 = vld [vmem:[%s18727_s7 + $0x408] sm:$0xff] }
 0x5c3   : > { %v8063_v28 = vmax.f32 %v8020_v26, %v8021_v7  ;;  %v7865_v4 = vmax.f32 %v7793_v30, 0.0  ;;  %v7792_v23 = vadd.f32 %v18237_v60, %v7713_v34  ;;  %v7716_v22 = vadd.f32 %v13964_v41, %v17617_v47  ;;  %11048 = vmatmul.mubr.msk.f32.vlgmr.msra.gmra.mxu1 %vm1588_vm1, %v8083_v29  ;;  %9299 = vmatprep.subr.mxu0 %v9263_v11  ;;  %v9428_v11 = vld [vmem:[%s18727_s7 + $0x400] sm:$0xff] }
 0x5c4   : > { %v7524_v40 = vpop.f32.mrf.mxu1  ;;  %9300 = vmatpush1.msra.mxu0 %v9262_v39  ;;  %9380 = vmatpush1.msra.mxu1 %v9350_v2 }
 0x5c5   : > { %v8084_v47 = vmax.f32 %v8060_v45, %v8063_v28  ;;  %v7944_v35 = vmul.f32 %v18250_v62, %v7865_v4  ;;  %v7864_v0 = vmax.f32 %v7792_v23, 0.0  ;;  %v7795_v59 = vadd.f32 %v18237_v60, %v7716_v22  ;;  %9301 = vmatprep.subr.mxu0 %v9261_v27  ;;  %9381 = vmatprep.subr.mxu1 %v9349_v46 }
 0x5c6   : > { %v7715_v58 = vadd.f32 %v7524_v40, %v17620_v25  ;;  %v13967_v20 = vpop.f32.mrf.mxu1  ;;  %9302 = vmatpush1.msra.mxu0 %v9260_v19  ;;  %9382 = vmatpush1.msra.mxu1 %v9348_v57  ;;  %v9433_v25 = vld [vmem:[%s18727_s7 + $0x428] sm:$0xff] }
 0x5c7   : > { %v7943_v54 = vmul.f32 %v18250_v62, %v7864_v0  ;;  %v7867_v45 = vmax.f32 %v7795_v59, 0.0  ;;  %v7718_v14 = vadd.f32 %v13967_v20, %v17626_v63  ;;  %11049 = vmatmul.mubr.msk.f32.vlgmr.msra.gmra.mxu0 %vm1588_vm1, %v8084_v47  ;;  %9383 = vmatprep.subr.mxu1 %v9347_v16  ;;  %v9344_v63 = vld [vmem:[%s18727_s7 + $0x3c0] sm:$0xff]  ;;  %v18472_v12 = vadd.f32 %v18265_v15, %v7944_v35 }
 0x5c8   : > { %v7794_v50 = vadd.f32 %v18237_v60, %v7715_v58  ;;  %v7534_v44 = vpop.f32.mrf.mxu1  ;;  %9463 = vmatprep.subr.mxu0 %v9435_v51  ;;  %9384 = vmatpush1.msra.mxu1 %v9346_v55 }
 0x5c9   : > { %v18475_v18 = vadd.f32 %v18265_v15, %v7943_v54  ;;  %v7797_v38 = vadd.f32 %v18237_v60, %v7718_v14  ;;  %v7717_v37 = vadd.f32 %v7534_v44, %v17628_v61  ;;  %9464 = vmatpush1.msra.mxu0 %v9434_v42  ;;  %v7946_v10 = vmul.f32 %v18250_v62, %v7867_v45 }
 0x5ca   : > { %v7866_v33 = vmax.f32 %v7794_v50, 0.0  ;;  %v13970_v13 = vpop.f32.mrf.mxu1  ;;  %9385 = vmatprep.subr.mxu1 %v9345_v9  ;;  %9465 = vmatprep.subr.mxu0 %v9433_v25 }
 0x5cb   : > { %v8064_v61 = vmax.f32 %v18475_v18, %v18472_v12  ;;  %v7869_v3 = vmax.f32 %v7797_v38, 0.0  ;;  %v7796_v53 = vadd.f32 %v18237_v60, %v7717_v37  ;;  %9386 = vmatpush1.msra.mxu1 %v9344_v63  ;;  %9419 = vmatprep.mubr.f32.mxu1 %v19282_v49  ;;  %v8025_v29 = vadd.f32 %v18265_v15, %v7946_v10  ;;  %v9517_v10 = vld [vmem:[%s18727_s7 + $0x468] sm:$0xff]  ;;  %v9516_v13 = vld [vmem:[%s18727_s7 + $0x460] sm:$0xff] }
 0x5cc   : > { %v7945_v56 = vmul.f32 %v18250_v62, %v7866_v33  ;;  %v7544_v21 = vpop.f32.mrf.mxu1  ;;  %9466 = vmatpush1.msra.mxu0 %v9432_v8  ;;  %9547 = vmatprep.subr.mxu1 %v9519_v43 }
 0x5cd   : > { %v7948_v7 = vmul.f32 %v18250_v62, %v7869_v3  ;;  %v7868_v52 = vmax.f32 %v7796_v53, 0.0  ;;  %9467 = vmatprep.subr.mxu0 %v9431_v31  ;;  %9503 = vmatprep.mubr.f32.mxu0 %v19282_v49  ;;  %v9513_v21 = vld [vmem:[%s18727_s7 + $0x448] sm:$0xff] }
 0x5ce   : > { %v8024_v26 = vadd.f32 %v18265_v15, %v7945_v56  ;;  %v13973_v30 = vpop.f32.mrf.mxu1  ;;  %9468 = vmatpush1.msra.mxu0 %v9430_v1 }
 0x5cf   : > { %v7947_v34 = vmul.f32 %v18250_v62, %v7868_v52  ;;  %v7720_v39 = vadd.f32 %v13973_v30, %v17641_v32  ;;  %9469 = vmatprep.subr.mxu0 %v9429_v5  ;;  %v18510_v27 = vadd.f32 %v18265_v15, %v7948_v7  ;;  %v9512_v7 = vld [vmem:[%s18727_s7 + $0x440] sm:$0xff] }
 0x5d0   : > { %v8065_v2 = vmax.f32 %v8024_v26, %v8025_v29  ;;  %v7552_v41 = vpop.f32.mrf.mxu1  ;;  %9470 = vmatpush1.msra.mxu0 %v9428_v11 }
 0x5d1   : > { %v18513_v46 = vadd.f32 %v18265_v15, %v7947_v34  ;;  %v7799_v28 = vadd.f32 %v18237_v60, %v7720_v39  ;;  %v7719_v4 = vadd.f32 %v7552_v41, %v17644_v6  ;;  %14007 = vmatprep.subr.mxu0 %v19282_v49 }
 0x5d2   : > { %v13976_v23 = vpop.f32.mrf.mxu1 }
 0x5d3   : > { %v8066_v32 = vmax.f32 %v18513_v46, %v18510_v27  ;;  %v7871_v22 = vmax.f32 %v7799_v28, 0.0  ;;  %v7798_v19 = vadd.f32 %v18237_v60, %v7719_v4  ;;  %v7722_v57 = vadd.f32 %v13976_v23, %v17651_v36  ;;  %v9688_v23 = vld [vmem:[%s18729_s9 + $0x78] sm:$0xff] }
 0x5d4   : > { %v7562_v40 = vpop.f32.mrf.mxu1 }
 0x5d5   : > { %v7950_v16 = vmul.f32 %v18250_v62, %v7871_v22  ;;  %v7870_v47 = vmax.f32 %v7798_v19, 0.0  ;;  %v7801_v35 = vadd.f32 %v18237_v60, %v7722_v57  ;;  %v7721_v0 = vadd.f32 %v7562_v40, %v17654_v24  ;;  %v9680_v22 = vld [vmem:[%s18729_s9 + $0x38] sm:$0xff]  ;;  %v9686_v19 = vld [vmem:[%s18729_s9 + $0x68] sm:$0xff]  ;;  %v9679_v57 = vld [vmem:[%s18729_s9 + $0x30] sm:$0xff] }
 0x5d6   : > { %v13979_v6 = vpop.f32.mrf.mxu1  ;;  %v9685_v40 = vld [vmem:[%s18729_s9 + $0x60] sm:$0xff] }
 0x5d7   : > { %v7949_v59 = vmul.f32 %v18250_v62, %v7870_v47  ;;  %v7873_v51 = vmax.f32 %v7801_v35, 0.0  ;;  %v7800_v55 = vadd.f32 %v18237_v60, %v7721_v0  ;;  %v8029_v58 = vadd.f32 %v18265_v15, %v7950_v16  ;;  %v9678_v16 = vld [vmem:[%s18729_s9 + $0x28] sm:$0xff]  ;;  %v9684_v47 = vld [vmem:[%s18729_s9 + $0x58] sm:$0xff]  ;;  %v9677_v35 = vld [vmem:[%s18729_s9 + $0x20] sm:$0xff] }
 0x5d8   : > { %v7724_v20 = vadd.f32 %v13979_v6, %v17660_v17  ;;  %v7572_v42 = vpop.f32.mrf.mxu1  ;;  %v9683_v0 = vld [vmem:[%s18729_s9 + $0x50] sm:$0xff]  ;;  %v9676_v6 = vld [vmem:[%s18729_s9 + $0x18] sm:$0xff] }
 0x5d9   : > { %v8028_v36 = vadd.f32 %v18265_v15, %v7949_v59  ;;  %v7952_v54 = vmul.f32 %v18250_v62, %v7873_v51  ;;  %v7872_v45 = vmax.f32 %v7800_v55, 0.0  ;;  %v7723_v14 = vadd.f32 %v7572_v42, %v17662_v48  ;;  %v9518_v48 = vld [vmem:[%s18727_s7 + $0x470] sm:$0xff]  ;;  %v9682_v59 = vld [vmem:[%s18729_s9 + $0x48] sm:$0xff]  ;;  %v9681_v55 = vld [vmem:[%s18729_s9 + $0x40] sm:$0xff] }
 0x5da   : > { %v7803_v24 = vadd.f32 %v18237_v60, %v7724_v20  ;;  %v13982_v9 = vpop.f32.mrf.mxu1  ;;  %v9675_v51 = vld [vmem:[%s18729_s9 + $0x10] sm:$0xff]  ;;  %v9673_v20 = vld [vmem:[%s18729_s9] sm:$0xff] }
 0x5db   : > { %v8067_v25 = vmax.f32 %v8028_v36, %v8029_v58  ;;  %v7951_v50 = vmul.f32 %v18250_v62, %v7872_v45  ;;  %v7802_v44 = vadd.f32 %v18237_v60, %v7723_v14  ;;  %v8031_v17 = vadd.f32 %v18265_v15, %v7952_v54  ;;  %v9674_v58 = vld [vmem:[%s18729_s9 + $0x8] sm:$0xff] }
 0x5dc   : > { %v7875_v63 = vmax.f32 %v7803_v24, 0.0  ;;  %v7582_v12 = vpop.f32.mrf.mxu1 }
 0x5dd   : > { %v8085_v18 = vmax.f32 %v8064_v61, %v8067_v25  ;;  %v8030_v38 = vadd.f32 %v18265_v15, %v7951_v50  ;;  %v7874_v37 = vmax.f32 %v7802_v44, 0.0  ;;  %v9515_v61 = vld [vmem:[%s18727_s7 + $0x458] sm:$0xff] }
 0x5de   : > { %v7954_v8 = vmul.f32 %v18250_v62, %v7875_v63  ;;  %v13985_v43 = vpop.f32.mrf.mxu1 }
 0x5df   : > { %v8068_v60 = vmax.f32 %v8030_v38, %v8031_v17  ;;  %v7953_v33 = vmul.f32 %v18250_v62, %v7874_v37  ;;  %11050 = vmatmul.mubr.msk.f32.vlgmr.msra.gmra.mxu1 %vm1588_vm1, %v8085_v18  ;;  %v9514_v62 = vld [vmem:[%s18727_s7 + $0x450] sm:$0xff] }
 0x5e0   : > { %9548 = vmatpush1.msra.mxu1 %v9518_v48  ;;  %v7590_v31 = vpop.f32.mrf.mxu1  ;;  %9587 = vmatprep.mubr.f32.mxu1 %v19282_v49  ;;  %v8033_v53 = vadd.f32 %v18265_v15, %v7954_v8 }
 0x5e1   : > { %v8086_v3 = vmax.f32 %v8065_v2, %v8068_v60  ;;  %v8032_v1 = vadd.f32 %v18265_v15, %v7953_v33  ;;  %9549 = vmatprep.subr.mxu1 %v9517_v10 }
 0x5e2   : > { %9550 = vmatpush1.msra.mxu1 %v9516_v13  ;;  %v13988_v56 = vpop.f32.mrf.mxu1 }
 0x5e3   : > { %v8069_v5 = vmax.f32 %v8032_v1, %v8033_v53  ;;  %11051 = vmatmul.mubr.msk.f32.vlgmr.msra.gmra.mxu0 %vm1588_vm1, %v8086_v3  ;;  %9551 = vmatprep.subr.mxu1 %v9515_v61 }
 0x5e4   : > { %9552 = vmatpush1.msra.mxu1 %v9514_v62  ;;  %v7598_v15 = vpop.f32.mrf.mxu1  ;;  %14008 = vmatpush3.msra.mxu0 %v9688_v23 }
 0x5e5   : > { %v8087_v52 = vmax.f32 %v8066_v32, %v8069_v5  ;;  %9553 = vmatprep.subr.mxu1 %v9513_v21  ;;  %14009 = vmatprep.subr.mxu0 %v19282_v49  ;;  %v9687_v32 = vld [vmem:[%s18729_s9 + $0x70] sm:$0xff] }
 0x5e6   : > { %9554 = vmatpush1.msra.mxu1 %v9512_v7  ;;  %v13991_v11 = vpop.f32.mrf.mxu1  ;;  %14010 = vmatpush3.msra.mxu0 %v9687_v32 }
 0x5e7   : > { %11052 = vmatmul.mubr.msk.f32.vlgmr.msra.gmra.mxu1 %vm1588_vm1, %v8087_v52  ;;  %14026 = vmatprep.subr.mxu1 %v19282_v49 }
 0x5e8   : > { %v7606_v29 = vpop.f32.mrf.mxu1  ;;  %14011 = vmatprep.subr.mxu0 %v19282_v49  ;;  %14027 = vmatpush3.msra.mxu1 %v9680_v22 }
 0x5e9   : > { %14012 = vmatpush3.msra.mxu0 %v9686_v19  ;;  %14028 = vmatprep.subr.mxu1 %v19282_v49 }
 0x5ea   : > { %v13994_v26 = vpop.f32.mrf.mxu1  ;;  %14013 = vmatprep.subr.mxu0 %v19282_v49  ;;  %14029 = vmatpush3.msra.mxu1 %v9679_v57 }
 0x5eb   : > { %14014 = vmatpush3.msra.mxu0 %v9685_v40  ;;  %14030 = vmatprep.subr.mxu1 %v19282_v49 }
 0x5ec   : > { %v7614_v30 = vpop.f32.mrf.mxu1  ;;  %14015 = vmatprep.subr.mxu0 %v19282_v49  ;;  %14031 = vmatpush3.msra.mxu1 %v9678_v16 }
 0x5ed   : > { %14016 = vmatpush3.msra.mxu0 %v9684_v47  ;;  %14032 = vmatprep.subr.mxu1 %v19282_v49 }
 0x5ee   : > { %v13997_v34 = vpop.f32.mrf.mxu1  ;;  %14017 = vmatprep.subr.mxu0 %v19282_v49  ;;  %14033 = vmatpush3.msra.mxu1 %v9677_v35 }
 0x5ef   : > { %14018 = vmatpush3.msra.mxu0 %v9683_v0  ;;  %14034 = vmatprep.subr.mxu1 %v19282_v49 }
 0x5f0   : > { %v7622_v39 = vpop.f32.mrf.mxu1  ;;  %14019 = vmatprep.subr.mxu0 %v19282_v49  ;;  %14035 = vmatpush3.msra.mxu1 %v9676_v6 }
 0x5f1   : > { %14020 = vmatpush3.msra.mxu0 %v9682_v59  ;;  %14036 = vmatprep.subr.mxu1 %v19282_v49 }
 0x5f2   : > { %v14000_v2 = vpop.f32.mrf.mxu1  ;;  %14021 = vmatprep.subr.mxu0 %v19282_v49  ;;  %14037 = vmatpush3.msra.mxu1 %v9675_v51 }
 0x5f3   : > { %14022 = vmatpush3.msra.mxu0 %v9681_v55  ;;  %14038 = vmatprep.subr.mxu1 %v19282_v49 }
 0x5f4   : > { %v7630_v41 = vpop.f32.mrf.mxu1  ;;  %14023 = vmatprep.mubr.msk.f32.mxu0 %vm14113_vm2, %v19282_v49  ;;  %14039 = vmatpush3.msra.mxu1 %v9674_v58 }
 0x5f5   : > { %14045 = vmatprep.subr.mxu0 %v19282_v49  ;;  %14040 = vmatprep.subr.mxu1 %v19282_v49 }
 0x5f6   : > { %v14003_v27 = vpop.f32.mrf.mxu1  ;;  %14041 = vmatpush3.msra.mxu1 %v9673_v20  ;;  %14042 = vmatprep.mubr.msk.f32.mxu1 %vm14113_vm2, %v19282_v49 }
 0x5f8   : > { %v7638_v46 = vpop.f32.mrf.mxu1 }
 0x5fa   : > { %v14006_v28 = vpop.f32.mrf.mxu1 }
 0x5fb   : > { %v9598_v28 = vlaneseq }
 0x5fc   : > { %v7646_v4 = vpop.f32.mrf.mxu1 }
 0x5fd   : > { %v9599_v16 = vshrl.u32 %v9598_v28, 7 }
 0x5ff   : > { %v8247_v36 = vpop.f32.mrf.mxu1  ;;  %v9600_v55 = vsub.s32 0, %v9599_v16 }
 0x601   : > { %v8249_v45 = vpop.f32.mrf.mxu1 }
 0x603   : > { %v8173_v42 = vpop.f32.mrf.mxu0 }
 0x604   : > { %v8248_v38 = vadd.f32 %v8247_v36, %v8173_v42  ;;  %v9596_v42 = vld [vmem:[%s18728_s8] sm:$0x3] }
 0x605   : > { %v8175_v54 = vpop.f32.mrf.mxu0 }
 0x606   : > { %v8250_v48 = vadd.f32 %v8249_v45, %v8175_v54  ;;  %v9604_v45 = vsub.s32 1, %v9599_v16 }
 0x60b   : > { %v8329_v14 = vpop.f32.mrf.mxu0 }
 0x60c   : > { %v8334_v8 = vadd.f32 %v8329_v14, %v8248_v38 }
 0x60d   : > { %v8331_v9 = vpop.f32.mrf.mxu0 }
 0x60e   : > { %v8335_v60 = vadd.f32 %v8331_v9, %v8250_v48 }
 0x61f   : > { %v8413_v24 = vpop.f32.mrf.mxu1 }
 0x620   : > { %v8418_v33 = vadd.f32 %v8413_v24, %v8334_v8 }
 0x621   : > { %v8415_v25 = vpop.f32.mrf.mxu1 }
 0x622   : > { %v8419_v31 = vadd.f32 %v8415_v25, %v8335_v60  ;;  %v9601_v25 = vrot.slane %v9596_v42, %v9600_v55 }
 0x623   : > { %v8497_v50 = vpop.f32.mrf.mxu0 }
 0x624   : > { %v8502_v61 = vadd.f32 %v8497_v50, %v8418_v33 }
 0x625   : > { %v8499_v63 = vpop.f32.mrf.mxu0 }
 0x626   : > { %v8503_v53 = vadd.f32 %v8499_v63, %v8419_v31 }
 0x627   : > { %v8581_v44 = vpop.f32.mrf.mxu1 }
 0x628   : > { %v8586_v1 = vadd.f32 %v8581_v44, %v8502_v61 }
 0x629   : > { %v8583_v12 = vpop.f32.mrf.mxu1 }
 0x62a   : > { %v8587_v21 = vadd.f32 %v8583_v12, %v8503_v53  ;;  %v9605_v12 = vrot.slane %v9596_v42, %v9604_v45  ;;  %v9851_v45 = vld [vmem:[%s18729_s9 + $0xf8] sm:$0xff] }
 0x63f   : > { %v8665_v18 = vpop.f32.mrf.mxu0 }
 0x640   : > { %v8670_v5 = vadd.f32 %v8665_v18, %v8586_v1 }
 0x641   : > { %v8667_v37 = vpop.f32.mrf.mxu0 }
 0x642   : > { %v8671_v15 = vadd.f32 %v8667_v37, %v8587_v21 }
 0x643   : > { %v8749_v17 = vpop.f32.mrf.mxu1 }
 0x644   : > { %v8754_v52 = vadd.f32 %v8749_v17, %v8670_v5 }
 0x645   : > { %v8751_v43 = vpop.f32.mrf.mxu1 }
 0x646   : > { %v8755_v29 = vadd.f32 %v8751_v43, %v8671_v15 }
 0x647   : > { %v8833_v10 = vpop.f32.mrf.mxu0 }
 0x648   : > { %v8838_v26 = vadd.f32 %v8833_v10, %v8754_v52 }
 0x649   : > { %v8835_v3 = vpop.f32.mrf.mxu0 }
 0x64a   : > { %v8839_v39 = vadd.f32 %v8835_v3, %v8755_v29 }
 0x65f   : > { %v8917_v13 = vpop.f32.mrf.mxu1 }
 0x660   : > { %v8922_v2 = vadd.f32 %v8917_v13, %v8838_v26 }
 0x661   : > { %v8919_v62 = vpop.f32.mrf.mxu1 }
 0x662   : > { %v8923_v27 = vadd.f32 %v8919_v62, %v8839_v39 }
 0x663   : > { %v9001_v56 = vpop.f32.mrf.mxu0 }
 0x664   : > { %v9006_v46 = vadd.f32 %v9001_v56, %v8922_v2 }
 0x665   : > { %v9003_v11 = vpop.f32.mrf.mxu0 }
 0x666   : > { %v9007_v23 = vadd.f32 %v9003_v11, %v8923_v27 }
 0x667   : > { %v9085_v7 = vpop.f32.mrf.mxu1 }
 0x668   : > { %v9090_v32 = vadd.f32 %v9085_v7, %v9006_v46 }
 0x669   : > { %v9087_v30 = vpop.f32.mrf.mxu1 }
 0x66a   : > { %v9091_v57 = vadd.f32 %v9087_v30, %v9007_v23 }
 0x67f   : > { %v9169_v34 = vpop.f32.mrf.mxu0 }
 0x680   : > { %v9174_v40 = vadd.f32 %v9169_v34, %v9090_v32 }
 0x681   : > { %v9171_v4 = vpop.f32.mrf.mxu0 }
 0x682   : > { %v9175_v35 = vadd.f32 %v9171_v4, %v9091_v57 }
 0x683   : > { %v9253_v41 = vpop.f32.mrf.mxu1 }
 0x684   : > { %v9258_v0 = vadd.f32 %v9253_v41, %v9174_v40 }
 0x685   : > { %v9255_v22 = vpop.f32.mrf.mxu1 }
 0x686   : > { %v9259_v59 = vadd.f32 %v9255_v22, %v9175_v35 }
 0x687   : > { %v9337_v19 = vpop.f32.mrf.mxu0 }
 0x688   : > { %v9342_v51 = vadd.f32 %v9337_v19, %v9258_v0 }
 0x689   : > { %v9339_v6 = vpop.f32.mrf.mxu0 }
 0x68a   : > { %v9343_v36 = vadd.f32 %v9339_v6, %v9259_v59 }
 0x69f   : > { %v9421_v47 = vpop.f32.mrf.mxu1 }
 0x6a0   : > { %v9426_v54 = vadd.f32 %v9421_v47, %v9342_v51 }
 0x6a1   : > { %v9423_v58 = vpop.f32.mrf.mxu1 }
 0x6a2   : > { %v9427_v24 = vadd.f32 %v9423_v58, %v9343_v36 }
 0x6a3   : > { %v9505_v20 = vpop.f32.mrf.mxu0 }
 0x6a4   : > { %v9510_v9 = vadd.f32 %v9505_v20, %v9426_v54 }
 0x6a5   : > { %v9507_v14 = vpop.f32.mrf.mxu0 }
 0x6a6   : > { %v9511_v44 = vadd.f32 %v9507_v14, %v9427_v24  ;;  %v9850_v24 = vld [vmem:[%s18729_s9 + $0xf0] sm:$0xff] }
 0x6a7   : > { %v9589_v50 = vpop.f32.mrf.mxu1 }
 0x6a8   : > { %v9594_v63 = vadd.f32 %v9589_v50, %v9510_v9  ;;  %v9848_v50 = vld [vmem:[%s18729_s9 + $0xe0] sm:$0xff] }
 0x6a9   : > { %v9591_v18 = vpop.f32.mrf.mxu1 }
 0x6aa   : > { %v9608_v17 = vadd.f32 %v9601_v25, %v9594_v63  ;;  %v9595_v38 = vadd.f32 %v9591_v18, %v9511_v44  ;;  %v9849_v25 = vld [vmem:[%s18729_s9 + $0xe8] sm:$0xff]  ;;  %v9847_v63 = vld [vmem:[%s18729_s9 + $0xd8] sm:$0xff] }
 0x6ac   : > { %v9610_v37 = vmul.f32 0.31830987, %v9608_v17  ;;  %v18637_v48 = vadd.f32 %v9605_v12, %v9595_v38  ;;  %v9846_v12 = vld [vmem:[%s18729_s9 + $0xd0] sm:$0xff]  ;;  %v9844_v38 = vld [vmem:[%s18729_s9 + $0xc0] sm:$0xff] }
 0x6ae   : > { %v9611_v8 = vadd.f32 0.5, %v9610_v37  ;;  %v18640_v43 = vmul.f32 0.70710677, %v18637_v48 }
 0x6b0   : > { %v9612_v10 = vfloor.f32 %v9611_v8  ;;  %v9651_v60 = vand.u32 2147483647, %v18640_v43  ;;  %vm9649_vm4 = vcmp.ge.f32.partialorder %v18640_v43, 0.0  ;;  %v9839_v43 = vld [vmem:[%s18729_s9 + $0x98] sm:$0xff] }
 0x6b2   : > { %v9613_v33 = vmul.f32 3.1415927, %v9612_v10  ;;  %v9652_v13 = vmul.f32 0.3275911, %v9651_v60  ;;  %v9615_v53 = vmul.f32 0.5, %v9612_v10  ;;  %v9664_v41 = vsub.f32 0.0, %v9651_v60 }
 0x6b4   : > { %v9614_v31 = vsub.f32 %v9608_v17, %v9613_v33  ;;  %v9653_v61 = vadd.f32 1.0, %v9652_v13  ;;  %v9616_v5 = vfloor.f32 %v9615_v53  ;;  %v9665_v19 = vmul.f32 %v9664_v41, %v9651_v60  ;;  %v9845_v17 = vld [vmem:[%s18729_s9 + $0xc8] sm:$0xff]  ;;  %v9842_v60 = vld [vmem:[%s18729_s9 + $0xb0] sm:$0xff] }
 0x6b5   : > { %v9841_v13 = vld [vmem:[%s18729_s9 + $0xa8] sm:$0xff] }
 0x6b6   : > { %v9621_v3 = vmul.f32 %v9614_v31, %v9614_v31  ;;  %14096 = vrcp.f32 %v9653_v61  ;;  %v9617_v29 = vmul.f32 2.0, %v9616_v5  ;;  %v9666_v59 = vmul.f32 1.442695, %v9665_v19  ;;  %v9836_v5 = vld [vmem:[%s18729_s9 + $0x80] sm:$0xff] }
 0x6b7   : > { %v14114_v61 = vmov -1.0  }
 0x6b8   : > { %v9622_v1 = vmul.f32 -2.5052108e-08, %v9621_v3  ;;  %v9633_v62 = vmul.f32 2.0876756e-09, %v9621_v3  ;;  %v9618_v27 = vsub.f32 %v9612_v10, %v9617_v29  ;;  %14098 = vpow2.f32 %v9666_v59  ;;  %v9843_v10 = vld [vmem:[%s18729_s9 + $0xb8] sm:$0xff] }
 0x6ba   : > { %v9623_v56 = vadd.f32 2.7557319e-06, %v9622_v1  ;;  %v9634_v21 = vadd.f32 -2.755732e-07, %v9633_v62  ;;  %v9619_v57 = vmul.f32 2.0, %v9618_v27  ;;  %v9838_v1 = vld [vmem:[%s18729_s9 + $0x90] sm:$0xff] }
 0x6bc   : > { %v9624_v7 = vmul.f32 %v9623_v56, %v9621_v3  ;;  %v9635_v15 = vmul.f32 %v9634_v21, %v9621_v3  ;;  %v9620_v51 = vsub.f32 1.0, %v9619_v57  ;;  %v9837_v56 = vld [vmem:[%s18729_s9 + $0x88] sm:$0xff]  ;;  %v9647_v21 = vmul.f32 0.5, %v18637_v48  ;;  %v11055_v48 = vld [vmem:[%s18730_s10] ss:$0 sm:$0xff] }
 0x6be   : > { %v9625_v52 = vadd.f32 -0.0001984127, %v9624_v7  ;;  %v9636_v11 = vadd.f32 2.4801588e-05, %v9635_v15 }
 0x6c0   : > { %v9626_v26 = vmul.f32 %v9625_v52, %v9621_v3  ;;  %v9637_v30 = vmul.f32 %v9636_v11, %v9621_v3 }
 0x6c2   : > { %v9627_v34 = vadd.f32 0.008333334, %v9626_v26  ;;  %v9638_v39 = vadd.f32 -0.0013888889, %v9637_v30 }
 0x6c3   : > { %v14097_v2 = vpop.eup %14096 }
 0x6c4   : > { %v9628_v46 = vmul.f32 %v9627_v34, %v9621_v3  ;;  %v9639_v28 = vmul.f32 %v9638_v39, %v9621_v3  ;;  %v9655_v4 = vmul.f32 1.0614054, %v14097_v2 }
 0x6c5   : > { %v14099_v37 = vpop.eup %14098 }
 0x6c6   : > { %v9629_v23 = vadd.f32 -0.16666667, %v9628_v46  ;;  %v9640_v32 = vadd.f32 0.041666668, %v9639_v28  ;;  %v9656_v22 = vadd.f32 -1.4531521, %v9655_v4 }
 0x6c8   : > { %v9630_v40 = vmul.f32 %v9629_v23, %v9621_v3  ;;  %v9641_v16 = vmul.f32 %v9640_v32, %v9621_v3  ;;  %v9657_v47 = vmul.f32 %v14097_v2, %v9656_v22 }
 0x6ca   : > { %v9631_v35 = vadd.f32 1.0, %v9630_v40  ;;  %v9642_v0 = vadd.f32 -0.5, %v9641_v16  ;;  %v9658_v6 = vadd.f32 1.4214138, %v9657_v47 }
 0x6cc   : > { %v9632_v55 = vmul.f32 %v9631_v35, %v9614_v31  ;;  %v9643_v58 = vmul.f32 %v9642_v0, %v9621_v3  ;;  %v9659_v20 = vmul.f32 %v14097_v2, %v9658_v6  ;;  %v9840_v31 = vld [vmem:[%s18729_s9 + $0xa0] sm:$0xff]  ;;  %v9650_v3 = vsel %vm9649_vm4, 1.0, %v14114_v61 }
 0x6ce   : > { %v9644_v42 = vadd.f32 1.0, %v9643_v58  ;;  %v9645_v36 = vmul.f32 %v9632_v55, %v9620_v51  ;;  %v9660_v54 = vadd.f32 -0.28449672, %v9659_v20 }
 0x6d0   : > { %v9646_v14 = vmul.f32 %v9644_v42, %v9620_v51  ;;  %14024 = vmatmul.mubr.msk.f32.vlgmr.msra.gmra.mxu0 %vm9689_vm3, %v9645_v36  ;;  %v9661_v9 = vmul.f32 %v14097_v2, %v9660_v54 }
 0x6d1   : > { %14046 = vmatpush3.msra.mxu0 %v9851_v45  ;;  %14077 = vmatprep.mubr.msk.f32.mxu0 %vm14113_vm2, %v19282_v49 }
 0x6d2   : > { %14047 = vmatprep.subr.mxu0 %v19282_v49  ;;  %14043 = vmatmul.mubr.msk.f32.vlgmr.msra.gmra.mxu1 %vm9689_vm3, %v9646_v14  ;;  %v9662_v44 = vadd.f32 0.2548296, %v9661_v9 }
 0x6d3   : > { %14048 = vmatpush3.msra.mxu0 %v9850_v24 }
 0x6d4   : > { %14049 = vmatprep.subr.mxu0 %v19282_v49  ;;  %v9663_v18 = vmul.f32 %v14097_v2, %v9662_v44 }
 0x6d5   : > { %14050 = vmatpush3.msra.mxu0 %v9849_v25 }
 0x6d6   : > { %14051 = vmatprep.subr.mxu0 %v19282_v49  ;;  %v9668_v8 = vmul.f32 %v14099_v37, %v9663_v18 }
 0x6d7   : > { %14052 = vmatpush3.msra.mxu0 %v9848_v50 }
 0x6d8   : > { %14053 = vmatprep.subr.mxu0 %v19282_v49  ;;  %v9669_v33 = vsub.f32 1.0, %v9668_v8 }
 0x6d9   : > { %14054 = vmatpush3.msra.mxu0 %v9847_v63 }
 0x6da   : > { %14055 = vmatprep.subr.mxu0 %v19282_v49  ;;  %v9670_v53 = vmul.f32 %v9669_v33, %v9650_v3 }
 0x6db   : > { %14056 = vmatpush3.msra.mxu0 %v9846_v12 }
 0x6dc   : > { %14057 = vmatprep.subr.mxu0 %v19282_v49  ;;  %v9671_v62 = vadd.f32 1.0, %v9670_v53 }
 0x6dd   : > { %14058 = vmatpush3.msra.mxu0 %v9845_v17 }
 0x6de   : > { %14059 = vmatprep.subr.mxu0 %v19282_v49  ;;  %v9672_v7 = vmul.f32 %v9671_v62, %v9647_v21 }
 0x6df   : > { %14060 = vmatpush3.msra.mxu0 %v9844_v38 }
 0x6e0   : > { %14061 = vmatprep.subr.mxu0 %v19282_v49 }
 0x6e1   : > { %14062 = vmatpush3.msra.mxu0 %v9843_v10 }
 0x6e2   : > { %14063 = vmatprep.subr.mxu0 %v19282_v49 }
 0x6e3   : > { %14064 = vmatpush3.msra.mxu0 %v9842_v60 }
 0x6e4   : > { %14065 = vmatprep.subr.mxu0 %v19282_v49 }
 0x6e5   : > { %14066 = vmatpush3.msra.mxu0 %v9841_v13 }
 0x6e6   : > { %14067 = vmatprep.subr.mxu0 %v19282_v49 }
 0x6e7   : > { %14068 = vmatpush3.msra.mxu0 %v9840_v31 }
 0x6e8   : > { %14069 = vmatprep.subr.mxu0 %v19282_v49 }
 0x6e9   : > { %14070 = vmatpush3.msra.mxu0 %v9839_v43 }
 0x6ea   : > { %14071 = vmatprep.subr.mxu0 %v19282_v49 }
 0x6eb   : > { %14072 = vmatpush3.msra.mxu0 %v9838_v1 }
 0x6ec   : > { %14073 = vmatprep.subr.mxu0 %v19282_v49 }
 0x6ed   : > { %14074 = vmatpush3.msra.mxu0 %v9837_v56 }
 0x6ee   : > { %14075 = vmatprep.subr.mxu0 %v19282_v49 }
 0x6ef   : > { %14076 = vmatpush3.msra.mxu0 %v9836_v5 }
 0x6f0   : > { %14078 = vmatmul.mubr.f32.vlgmr.msra.gmra.mxu0 %v9672_v7 }
 0x790   : > { %v9759_v15 = vpop.f32.mrf.mxu0 }
 0x792   : > { %v14025_v52 = vpop.f32.mrf.mxu0  ;;  %v9832_v11 = vpop.f32.mrf.mxu1 }
 0x793   : > { %v9833_v26 = vadd.f32 %v9832_v11, %v9759_v15 }
 0x794   : > { %v14044_v29 = vpop.f32.mrf.mxu1 }
 0x7b0   : > { %v9918_v30 = vpop.f32.mrf.mxu0 }
 0x7b1   : > { %v9922_v34 = vadd.f32 %v9918_v30, %v9833_v26 }
 0x7b2   : > { %v14079_v39 = vpop.f32.mrf.mxu0 }
 0x7b3   : > { %v9930_v49 = vadd.f32 %v11055_v48, %v9922_v34 }
 0x7b5   : > { %9931 = vst [vmem:[%s384_s26] sm:$0xff] %v9930_v49 }
 0x7b6 PF: > { %s21_s17 = sadd.s32 1, %s14110_s17  }
 0x7b7   : > { %p18_p4 = scmp.ge.s32.totalorder %s21_s17, 4  }
 0x7b9   :  { %20 = sbr.rel (!%p18_p4) target bundleno = 1 (0x1), region = 94 }

</bundles_post_ra>
